<compile_context>
chip_gen: v7x
topology: tpu7x:2x2x1
jax: 0.10.0
libtpu: 0.0.40
codegen_flags: <defaults>
</compile_context>

<pallas_src>
import math

import jax
import jax.numpy as jnp
from jax.experimental import pallas as pl
from jax.experimental.pallas import tpu as pltpu


LAYER_DIMS = [
    (32 * 32 * 3, 750),
    (750, 750),
    (750, 750),
    (750, 750),
    (750, 750),
    (750, 150),
    (150, 10),
]


def _round_up(v, m):
    return ((v + m - 1) // m) * m


def _fused_mlp_kernel(x_ref, *refs):
    """Fused 7-layer MLP.

    x_ref : [TB, 3072] bf16 activation tile.
    refs  : (w0, b0, w1, b1, ..., w6, b6, o_ref)
            w_i : [Kp_i, Np_i] bf16 (zero-padded), b_i : [1, Np_i] f32,
            o_ref : [TB, Np_last] f32.
    Activations stay in VMEM/vregs for the whole chain; only the final padded
    logits tile is written back.
    """
    o_ref = refs[-1]
    wb = refs[:-1]
    n_layers = len(wb) // 2

    h = x_ref[...]                               # bf16 [TB, Kp0]
    for i in range(n_layers):
        w = wb[2 * i][...]                       # bf16 [Kp, Np]
        b = wb[2 * i + 1][...]                   # f32  [1, Np]
        acc = jnp.dot(h, w, preferred_element_type=jnp.float32) + b
        if i < n_layers - 1:
            # ReLU, then immediately narrow to bf16 to halve the live
            # intermediate footprint (AlphaDropout == identity in eval).
            h = jnp.maximum(acc, 0.0).astype(jnp.bfloat16)
        else:
            h = acc                              # final logits stay f32
    o_ref[...] = h.astype(o_ref.dtype)


def init_params(key):
    """Deterministic init mimicking PyTorch nn.Linear default U(-1/sqrt(fan_in), +)."""
    params = []
    for i, (fan_in, fan_out) in enumerate(LAYER_DIMS):
        k_w, k_b = jax.random.split(jax.random.fold_in(key, i))
        bound = 1.0 / math.sqrt(fan_in)
        # Stored as [in, out]  (== transpose of PyTorch's [out, in]).
        w = jax.random.uniform(k_w, (fan_in, fan_out), jnp.float32, -bound, bound)
        b = jax.random.uniform(k_b, (fan_out,), jnp.float32, -bound, bound)
        params.append((w, b))
    return params


def prepare_params(params):
    """Pad once to TPU-friendly shapes and cast weights to bf16. Call once."""
    ws, bs = [], []
    for w, b in params:
        K, N = w.shape
        Kp = _round_up(K, 128)
        Np = _round_up(N, 128)
        w_p = jnp.zeros((Kp, Np), jnp.bfloat16).at[:K, :N].set(w.astype(jnp.bfloat16))
        b_p = jnp.zeros((1, Np), jnp.float32).at[0, :N].set(b)
        ws.append(w_p)
        bs.append(b_p)
    return tuple(ws), tuple(bs)


def _const_spec(shape):
    """BlockSpec for an operand that is resident (same block every grid step).

    Single-buffered since it is never re-streamed across grid iterations;
    falls back to the default pipeline mode on older JAX versions.
    """
    index_map = lambda i: (0,) * len(shape)
    try:
        return pl.BlockSpec(shape, index_map, pipeline_mode=pl.Buffered(1))
    except (AttributeError, TypeError, ValueError):
        return pl.BlockSpec(shape, index_map)


@jax.jit
def cifar10_deep7_forward(x_nchw, ws, bs):
    """Forward pass of CIFAR10Deep7.

    x_nchw: [B, 3, 32, 32] float32 (NCHW, PyTorch convention).
    ws/bs : prepared (padded, bf16/f32) params from prepare_params.
    Returns logits [B, 10] float32.
    """
    B = x_nchw.shape[0]
    K0 = 32 * 32 * 3
    # Identical flattening to torch .view(-1, 3072); host-side cast to bf16
    # halves the activation HBM stream (matmuls still accumulate in f32).
    x = x_nchw.reshape(B, K0).astype(jnp.bfloat16)

    # Batch tiling: one minimally-padded tile for small/medium batches,
    # 256-row tiles for large batches (amortizes per-step pipeline overhead
    # while keeping the working set within v7x's 64 MiB VMEM).
    if B <= 512:
        TB = _round_up(max(B, 1), 8)
        Bp = TB
    else:
        TB = 256
        Bp = _round_up(B, TB)
    num_tiles = Bp // TB

    if Bp == B:
        x_p = x                                   # no padding copy needed
    else:
        x_p = jnp.zeros((Bp, K0), jnp.bfloat16).at[:B, :].set(x)

    n_last_p = ws[-1].shape[1]

    in_specs = [pl.BlockSpec((TB, K0), lambda i: (i, 0))]
    for w, b in zip(ws, bs):
        Kp, Np = w.shape
        in_specs.append(_const_spec((Kp, Np)))    # weights: resident, 1-buffered
        in_specs.append(_const_spec((1, Np)))     # biases : resident, 1-buffered
    out_specs = pl.BlockSpec((TB, n_last_p), lambda i: (i, 0))

    # v7x has 2 TensorCores sharing HBM: only split the batch grid across them
    # when there are enough tiles that duplicating the ~9.4 MiB weight stream
    # per core is amortized.  v5e/v6e have a single TC (flag is a no-op there).
    dim_sem = ("parallel",) if num_tiles >= 4 else ("arbitrary",)

    flops = 2 * Bp * sum(w.shape[0] * w.shape[1] for w in ws)
    bytes_accessed = (
        sum(w.size * w.dtype.itemsize for w in ws)
        + sum(b.size * b.dtype.itemsize for b in bs)
        + x_p.size * x_p.dtype.itemsize
        + Bp * n_last_p * 4
    )

    inputs = [x_p]
    for w, b in zip(ws, bs):
        inputs.append(w)
        inputs.append(b)

    out_p = pl.pallas_call(
        _fused_mlp_kernel,
        out_shape=jax.ShapeDtypeStruct((Bp, n_last_p), jnp.float32),
        grid=(num_tiles,),
        in_specs=in_specs,
        out_specs=out_specs,
        compiler_params=pltpu.CompilerParams(
            dimension_semantics=dim_sem,
            vmem_limit_bytes=48 * 1024 * 1024,
        ),
        cost_estimate=pl.CostEstimate(
            flops=flops, transcendentals=0, bytes_accessed=bytes_accessed),
    )(*inputs)

    return out_p[:B, :10]


if __name__ == "__main__":
    key = jax.random.PRNGKey(0)
    k_in, k_par = jax.random.split(key)

    # Batch=2 CIFAR-10 style input (NCHW). Spatial dims fixed by the module
    # (first Linear expects 32*32*3 = 3072 features).
    x = jax.random.normal(k_in, (2, 3, 32, 32), jnp.float32)
    params = init_params(k_par)
    ws, bs = prepare_params(params)  # pad + cast ONCE, outside the hot path

    logits = cifar10_deep7_forward(x, ws, bs)
    logits = jax.block_until_ready(logits)
    assert logits.shape == (2, 10), logits.shape

    # Reference 1: pure-JAX with the SAME bf16 weights / bf16 activations
    # (tight tolerance -- checks the kernel math itself).
    def ref_bf16(x_nchw, ws, bs):
        h = x_nchw.reshape(x_nchw.shape[0], -1).astype(jnp.bfloat16)
        n = len(ws)
        for i in range(n):
            h = jnp.dot(h, ws[i], preferred_element_type=jnp.float32) + bs[i][0]
            if i < n - 1:
                h = jnp.maximum(h, 0.0).astype(jnp.bfloat16)
        return h[:, :10]

    ref = ref_bf16(x, ws, bs)
    assert jnp.allclose(logits, ref, atol=1e-2, rtol=1e-2), (
        float(jnp.max(jnp.abs(logits - ref))))

    # Reference 2: full-f32 reference (loose tolerance -- bf16 weight/activation
    # streaming with f32 accumulation).
    def ref_f32(x_nchw, params):
        h = x_nchw.reshape(x_nchw.shape[0], -1)
        for i, (w, b) in enumerate(params):
            h = h @ w + b
            if i < len(params) - 1:
                h = jnp.maximum(h, 0.0)
        return h

    reff = ref_f32(x, params)
    assert jnp.allclose(logits, reff, atol=1e-1, rtol=0.0), (
        float(jnp.max(jnp.abs(logits - reff))))

    print("KERNEL_OK")
</pallas_src>

<mosaic_0001>
module attributes {stable_mosaic.version = 11 : i64} {
  func.func @_fused_mlp_kernel(%arg0: i32, %arg1: memref<8x3072xbf16, #tpu.memory_space<vmem>>, %arg2: memref<3072x768xbf16, #tpu.memory_space<vmem>>, %arg3: memref<1x768xf32, #tpu.memory_space<vmem>>, %arg4: memref<768x768xbf16, #tpu.memory_space<vmem>>, %arg5: memref<1x768xf32, #tpu.memory_space<vmem>>, %arg6: memref<768x768xbf16, #tpu.memory_space<vmem>>, %arg7: memref<1x768xf32, #tpu.memory_space<vmem>>, %arg8: memref<768x768xbf16, #tpu.memory_space<vmem>>, %arg9: memref<1x768xf32, #tpu.memory_space<vmem>>, %arg10: memref<768x768xbf16, #tpu.memory_space<vmem>>, %arg11: memref<1x768xf32, #tpu.memory_space<vmem>>, %arg12: memref<768x256xbf16, #tpu.memory_space<vmem>>, %arg13: memref<1x256xf32, #tpu.memory_space<vmem>>, %arg14: memref<256x128xbf16, #tpu.memory_space<vmem>>, %arg15: memref<1x128xf32, #tpu.memory_space<vmem>>, %arg16: memref<8x128xf32, #tpu.memory_space<vmem>>) attributes {dimension_semantics = [#tpu.dimension_semantics<arbitrary>], iteration_bounds = array<i64: 1>, scalar_prefetch = 0 : i64, scratch_operands = 0 : i64, tpu.core_type = #tpu.core_type<tc>, window_params = [{transform_indices = @transform_0, window_bounds = array<i64: 8, 3072>}, {pipeline_mode = #tpu.pipeline_mode<synchronous>, transform_indices = @transform_1, window_bounds = array<i64: 3072, 768>}, {pipeline_mode = #tpu.pipeline_mode<synchronous>, transform_indices = @transform_2, window_bounds = array<i64: 1, 768>}, {pipeline_mode = #tpu.pipeline_mode<synchronous>, transform_indices = @transform_3, window_bounds = array<i64: 768, 768>}, {pipeline_mode = #tpu.pipeline_mode<synchronous>, transform_indices = @transform_4, window_bounds = array<i64: 1, 768>}, {pipeline_mode = #tpu.pipeline_mode<synchronous>, transform_indices = @transform_5, window_bounds = array<i64: 768, 768>}, {pipeline_mode = #tpu.pipeline_mode<synchronous>, transform_indices = @transform_6, window_bounds = array<i64: 1, 768>}, {pipeline_mode = #tpu.pipeline_mode<synchronous>, transform_indices = @transform_7, window_bounds = array<i64: 768, 768>}, {pipeline_mode = #tpu.pipeline_mode<synchronous>, transform_indices = @transform_8, window_bounds = array<i64: 1, 768>}, {pipeline_mode = #tpu.pipeline_mode<synchronous>, transform_indices = @transform_9, window_bounds = array<i64: 768, 768>}, {pipeline_mode = #tpu.pipeline_mode<synchronous>, transform_indices = @transform_10, window_bounds = array<i64: 1, 768>}, {pipeline_mode = #tpu.pipeline_mode<synchronous>, transform_indices = @transform_11, window_bounds = array<i64: 768, 256>}, {pipeline_mode = #tpu.pipeline_mode<synchronous>, transform_indices = @transform_12, window_bounds = array<i64: 1, 256>}, {pipeline_mode = #tpu.pipeline_mode<synchronous>, transform_indices = @transform_13, window_bounds = array<i64: 256, 128>}, {pipeline_mode = #tpu.pipeline_mode<synchronous>, transform_indices = @transform_14, window_bounds = array<i64: 1, 128>}, {transform_indices = @transform_15, window_bounds = array<i64: 8, 128>}]} {
    %c0 = arith.constant 0 : index
    %c0_0 = arith.constant 0 : index
    %0 = vector.load %arg1[%c0, %c0_0] : memref<8x3072xbf16, #tpu.memory_space<vmem>>, vector<8x3072xbf16>
    %c0_1 = arith.constant 0 : index
    %c0_2 = arith.constant 0 : index
    %1 = vector.load %arg2[%c0_1, %c0_2] : memref<3072x768xbf16, #tpu.memory_space<vmem>>, vector<3072x768xbf16>
    %c0_3 = arith.constant 0 : index
    %c0_4 = arith.constant 0 : index
    %2 = vector.load %arg3[%c0_3, %c0_4] : memref<1x768xf32, #tpu.memory_space<vmem>>, vector<1x768xf32>
    %cst = arith.constant dense<0.000000e+00> : vector<8x768xf32>
    %3 = tpu.matmul %0, %1, %cst {dimension_numbers = #tpu.dot_dimension_numbers<[1], [0], [0], [1], [0, 0, 1, 1], [], []>} : vector<8x3072xbf16>, vector<3072x768xbf16>, vector<8x768xf32> -> vector<8x768xf32>
    %4 = vector.broadcast %2 : vector<1x768xf32> to vector<8x768xf32>
    %5 = arith.addf %3, %4 : vector<8x768xf32>
    %cst_5 = arith.constant 0.000000e+00 : f32
    %6 = vector.broadcast %cst_5 : f32 to vector<8x768xf32>
    %7 = arith.maximumf %5, %6 : vector<8x768xf32>
    %8 = arith.truncf %7 : vector<8x768xf32> to vector<8x768xbf16>
    %c0_6 = arith.constant 0 : index
    %c0_7 = arith.constant 0 : index
    %9 = vector.load %arg4[%c0_6, %c0_7] : memref<768x768xbf16, #tpu.memory_space<vmem>>, vector<768x768xbf16>
    %c0_8 = arith.constant 0 : index
    %c0_9 = arith.constant 0 : index
    %10 = vector.load %arg5[%c0_8, %c0_9] : memref<1x768xf32, #tpu.memory_space<vmem>>, vector<1x768xf32>
    %cst_10 = arith.constant dense<0.000000e+00> : vector<8x768xf32>
    %11 = tpu.matmul %8, %9, %cst_10 {dimension_numbers = #tpu.dot_dimension_numbers<[1], [0], [0], [1], [0, 0, 1, 1], [], []>} : vector<8x768xbf16>, vector<768x768xbf16>, vector<8x768xf32> -> vector<8x768xf32>
    %12 = vector.broadcast %10 : vector<1x768xf32> to vector<8x768xf32>
    %13 = arith.addf %11, %12 : vector<8x768xf32>
    %cst_11 = arith.constant 0.000000e+00 : f32
    %14 = vector.broadcast %cst_11 : f32 to vector<8x768xf32>
    %15 = arith.maximumf %13, %14 : vector<8x768xf32>
    %16 = arith.truncf %15 : vector<8x768xf32> to vector<8x768xbf16>
    %c0_12 = arith.constant 0 : index
    %c0_13 = arith.constant 0 : index
    %17 = vector.load %arg6[%c0_12, %c0_13] : memref<768x768xbf16, #tpu.memory_space<vmem>>, vector<768x768xbf16>
    %c0_14 = arith.constant 0 : index
    %c0_15 = arith.constant 0 : index
    %18 = vector.load %arg7[%c0_14, %c0_15] : memref<1x768xf32, #tpu.memory_space<vmem>>, vector<1x768xf32>
    %cst_16 = arith.constant dense<0.000000e+00> : vector<8x768xf32>
    %19 = tpu.matmul %16, %17, %cst_16 {dimension_numbers = #tpu.dot_dimension_numbers<[1], [0], [0], [1], [0, 0, 1, 1], [], []>} : vector<8x768xbf16>, vector<768x768xbf16>, vector<8x768xf32> -> vector<8x768xf32>
    %20 = vector.broadcast %18 : vector<1x768xf32> to vector<8x768xf32>
    %21 = arith.addf %19, %20 : vector<8x768xf32>
    %cst_17 = arith.constant 0.000000e+00 : f32
    %22 = vector.broadcast %cst_17 : f32 to vector<8x768xf32>
    %23 = arith.maximumf %21, %22 : vector<8x768xf32>
    %24 = arith.truncf %23 : vector<8x768xf32> to vector<8x768xbf16>
    %c0_18 = arith.constant 0 : index
    %c0_19 = arith.constant 0 : index
    %25 = vector.load %arg8[%c0_18, %c0_19] : memref<768x768xbf16, #tpu.memory_space<vmem>>, vector<768x768xbf16>
    %c0_20 = arith.constant 0 : index
    %c0_21 = arith.constant 0 : index
    %26 = vector.load %arg9[%c0_20, %c0_21] : memref<1x768xf32, #tpu.memory_space<vmem>>, vector<1x768xf32>
    %cst_22 = arith.constant dense<0.000000e+00> : vector<8x768xf32>
    %27 = tpu.matmul %24, %25, %cst_22 {dimension_numbers = #tpu.dot_dimension_numbers<[1], [0], [0], [1], [0, 0, 1, 1], [], []>} : vector<8x768xbf16>, vector<768x768xbf16>, vector<8x768xf32> -> vector<8x768xf32>
    %28 = vector.broadcast %26 : vector<1x768xf32> to vector<8x768xf32>
    %29 = arith.addf %27, %28 : vector<8x768xf32>
    %cst_23 = arith.constant 0.000000e+00 : f32
    %30 = vector.broadcast %cst_23 : f32 to vector<8x768xf32>
    %31 = arith.maximumf %29, %30 : vector<8x768xf32>
    %32 = arith.truncf %31 : vector<8x768xf32> to vector<8x768xbf16>
    %c0_24 = arith.constant 0 : index
    %c0_25 = arith.constant 0 : index
    %33 = vector.load %arg10[%c0_24, %c0_25] : memref<768x768xbf16, #tpu.memory_space<vmem>>, vector<768x768xbf16>
    %c0_26 = arith.constant 0 : index
    %c0_27 = arith.constant 0 : index
    %34 = vector.load %arg11[%c0_26, %c0_27] : memref<1x768xf32, #tpu.memory_space<vmem>>, vector<1x768xf32>
    %cst_28 = arith.constant dense<0.000000e+00> : vector<8x768xf32>
    %35 = tpu.matmul %32, %33, %cst_28 {dimension_numbers = #tpu.dot_dimension_numbers<[1], [0], [0], [1], [0, 0, 1, 1], [], []>} : vector<8x768xbf16>, vector<768x768xbf16>, vector<8x768xf32> -> vector<8x768xf32>
    %36 = vector.broadcast %34 : vector<1x768xf32> to vector<8x768xf32>
    %37 = arith.addf %35, %36 : vector<8x768xf32>
    %cst_29 = arith.constant 0.000000e+00 : f32
    %38 = vector.broadcast %cst_29 : f32 to vector<8x768xf32>
    %39 = arith.maximumf %37, %38 : vector<8x768xf32>
    %40 = arith.truncf %39 : vector<8x768xf32> to vector<8x768xbf16>
    %c0_30 = arith.constant 0 : index
    %c0_31 = arith.constant 0 : index
    %41 = vector.load %arg12[%c0_30, %c0_31] : memref<768x256xbf16, #tpu.memory_space<vmem>>, vector<768x256xbf16>
    %c0_32 = arith.constant 0 : index
    %c0_33 = arith.constant 0 : index
    %42 = vector.load %arg13[%c0_32, %c0_33] : memref<1x256xf32, #tpu.memory_space<vmem>>, vector<1x256xf32>
    %cst_34 = arith.constant dense<0.000000e+00> : vector<8x256xf32>
    %43 = tpu.matmul %40, %41, %cst_34 {dimension_numbers = #tpu.dot_dimension_numbers<[1], [0], [0], [1], [0, 0, 1, 1], [], []>} : vector<8x768xbf16>, vector<768x256xbf16>, vector<8x256xf32> -> vector<8x256xf32>
    %44 = vector.broadcast %42 : vector<1x256xf32> to vector<8x256xf32>
    %45 = arith.addf %43, %44 : vector<8x256xf32>
    %cst_35 = arith.constant 0.000000e+00 : f32
    %46 = vector.broadcast %cst_35 : f32 to vector<8x256xf32>
    %47 = arith.maximumf %45, %46 : vector<8x256xf32>
    %48 = arith.truncf %47 : vector<8x256xf32> to vector<8x256xbf16>
    %c0_36 = arith.constant 0 : index
    %c0_37 = arith.constant 0 : index
    %49 = vector.load %arg14[%c0_36, %c0_37] : memref<256x128xbf16, #tpu.memory_space<vmem>>, vector<256x128xbf16>
    %c0_38 = arith.constant 0 : index
    %c0_39 = arith.constant 0 : index
    %50 = vector.load %arg15[%c0_38, %c0_39] : memref<1x128xf32, #tpu.memory_space<vmem>>, vector<1x128xf32>
    %cst_40 = arith.constant dense<0.000000e+00> : vector<8x128xf32>
    %51 = tpu.matmul %48, %49, %cst_40 {dimension_numbers = #tpu.dot_dimension_numbers<[1], [0], [0], [1], [0, 0, 1, 1], [], []>} : vector<8x256xbf16>, vector<256x128xbf16>, vector<8x128xf32> -> vector<8x128xf32>
    %52 = vector.broadcast %50 : vector<1x128xf32> to vector<8x128xf32>
    %53 = arith.addf %51, %52 : vector<8x128xf32>
    %c0_41 = arith.constant 0 : index
    %c0_42 = arith.constant 0 : index
    %54 = vector.load %arg16[%c0_41, %c0_42] : memref<8x128xf32, #tpu.memory_space<vmem>>, vector<8x128xf32>
    tpu.vector_store %arg16[%c0_41, %c0_42], %53 {strides = array<i32>} : memref<8x128xf32, #tpu.memory_space<vmem>>, vector<8x128xf32>,
    return
  }
  func.func @transform_0(%arg0: i32) -> (i32, i32) {
    %c0_i32 = arith.constant 0 : i32
    %c0_i32_0 = arith.constant 0 : i32
    return %arg0, %c0_i32 : i32, i32
  }
  func.func @transform_1(%arg0: i32) -> (i32, i32) {
    %c0_i32 = arith.constant 0 : i32
    %c0_i32_0 = arith.constant 0 : i32
    %c0_i32_1 = arith.constant 0 : i32
    return %c0_i32, %c0_i32_0 : i32, i32
  }
  func.func @transform_2(%arg0: i32) -> (i32, i32) {
    %c0_i32 = arith.constant 0 : i32
    %c0_i32_0 = arith.constant 0 : i32
    %c0_i32_1 = arith.constant 0 : i32
    return %c0_i32, %c0_i32_0 : i32, i32
  }
  func.func @transform_3(%arg0: i32) -> (i32, i32) {
    %c0_i32 = arith.constant 0 : i32
    %c0_i32_0 = arith.constant 0 : i32
    %c0_i32_1 = arith.constant 0 : i32
    return %c0_i32, %c0_i32_0 : i32, i32
  }
  func.func @transform_4(%arg0: i32) -> (i32, i32) {
    %c0_i32 = arith.constant 0 : i32
    %c0_i32_0 = arith.constant 0 : i32
    %c0_i32_1 = arith.constant 0 : i32
    return %c0_i32, %c0_i32_0 : i32, i32
  }
  func.func @transform_5(%arg0: i32) -> (i32, i32) {
    %c0_i32 = arith.constant 0 : i32
    %c0_i32_0 = arith.constant 0 : i32
    %c0_i32_1 = arith.constant 0 : i32
    return %c0_i32, %c0_i32_0 : i32, i32
  }
  func.func @transform_6(%arg0: i32) -> (i32, i32) {
    %c0_i32 = arith.constant 0 : i32
    %c0_i32_0 = arith.constant 0 : i32
    %c0_i32_1 = arith.constant 0 : i32
    return %c0_i32, %c0_i32_0 : i32, i32
  }
  func.func @transform_7(%arg0: i32) -> (i32, i32) {
    %c0_i32 = arith.constant 0 : i32
    %c0_i32_0 = arith.constant 0 : i32
    %c0_i32_1 = arith.constant 0 : i32
    return %c0_i32, %c0_i32_0 : i32, i32
  }
  func.func @transform_8(%arg0: i32) -> (i32, i32) {
    %c0_i32 = arith.constant 0 : i32
    %c0_i32_0 = arith.constant 0 : i32
    %c0_i32_1 = arith.constant 0 : i32
    return %c0_i32, %c0_i32_0 : i32, i32
  }
  func.func @transform_9(%arg0: i32) -> (i32, i32) {
    %c0_i32 = arith.constant 0 : i32
    %c0_i32_0 = arith.constant 0 : i32
    %c0_i32_1 = arith.constant 0 : i32
    return %c0_i32, %c0_i32_0 : i32, i32
  }
  func.func @transform_10(%arg0: i32) -> (i32, i32) {
    %c0_i32 = arith.constant 0 : i32
    %c0_i32_0 = arith.constant 0 : i32
    %c0_i32_1 = arith.constant 0 : i32
    return %c0_i32, %c0_i32_0 : i32, i32
  }
  func.func @transform_11(%arg0: i32) -> (i32, i32) {
    %c0_i32 = arith.constant 0 : i32
    %c0_i32_0 = arith.constant 0 : i32
    %c0_i32_1 = arith.constant 0 : i32
    return %c0_i32, %c0_i32_0 : i32, i32
  }
  func.func @transform_12(%arg0: i32) -> (i32, i32) {
    %c0_i32 = arith.constant 0 : i32
    %c0_i32_0 = arith.constant 0 : i32
    %c0_i32_1 = arith.constant 0 : i32
    return %c0_i32, %c0_i32_0 : i32, i32
  }
  func.func @transform_13(%arg0: i32) -> (i32, i32) {
    %c0_i32 = arith.constant 0 : i32
    %c0_i32_0 = arith.constant 0 : i32
    %c0_i32_1 = arith.constant 0 : i32
    return %c0_i32, %c0_i32_0 : i32, i32
  }
  func.func @transform_14(%arg0: i32) -> (i32, i32) {
    %c0_i32 = arith.constant 0 : i32
    %c0_i32_0 = arith.constant 0 : i32
    %c0_i32_1 = arith.constant 0 : i32
    return %c0_i32, %c0_i32_0 : i32, i32
  }
  func.func @transform_15(%arg0: i32) -> (i32, i32) {
    %c0_i32 = arith.constant 0 : i32
    %c0_i32_0 = arith.constant 0 : i32
    return %arg0, %c0_i32 : i32, i32
  }
}

</mosaic_0001>

<bundles_post_ra>
// kernel: cifar10_deep7_forward.1
= control target key start
LH: loop header
LB: loop body
LE: loop exit
PB: predicated region body
PF: predicated region fallthrough
CT: control target
= control target key end

     0   :  { %20 = vsyncpa [#allocation3], 0  ;;  %s25657_s0 = inlined_call_operand.vmem [shape: bf16[8,3072], index: 0, kind: input, shape index: {}]   ;;  %s25658_s1 = inlined_call_operand.hbm [shape: bf16[3072,768], index: 1, kind: input, shape index: {}]   ;;  %s25659_s2 = inlined_call_operand.hbm [shape: f32[1,768], index: 2, kind: input, shape index: {}]   ;;  %s25660_s3 = inlined_call_operand.hbm [shape: bf16[768,768], index: 3, kind: input, shape index: {}]   ;;  %s25661_s4 = inlined_call_operand.hbm [shape: f32[1,768], index: 4, kind: input, shape index: {}]   ;;  %s25662_s5 = inlined_call_operand.hbm [shape: bf16[768,768], index: 5, kind: input, shape index: {}]   ;;  %s25663_s6 = inlined_call_operand.hbm [shape: f32[1,768], index: 6, kind: input, shape index: {}]   ;;  %s25664_s7 = inlined_call_operand.hbm [shape: bf16[768,768], index: 7, kind: input, shape index: {}]   ;;  %s25665_s8 = inlined_call_operand.hbm [shape: f32[1,768], index: 8, kind: input, shape index: {}]   ;;  %s25666_s9 = inlined_call_operand.hbm [shape: bf16[768,768], index: 9, kind: input, shape index: {}]   ;;  %s25667_s10 = inlined_call_operand.hbm [shape: f32[1,768], index: 10, kind: input, shape index: {}]   ;;  %s25668_s11 = inlined_call_operand.hbm [shape: bf16[768,256], index: 11, kind: input, shape index: {}]   ;;  %s25669_s12 = inlined_call_operand.hbm [shape: f32[1,256], index: 12, kind: input, shape index: {}]   ;;  %s25670_s13 = inlined_call_operand.hbm [shape: bf16[256,128], index: 13, kind: input, shape index: {}]   ;;  %s25671_s14 = inlined_call_operand.hbm [shape: f32[1,128], index: 14, kind: input, shape index: {}]   ;;  %s25672_s15 = inlined_call_operand.vmem [shape: f32[8,128], index: 15, kind: output, shape index: {}]  }
   0x1   :  { %21 = vsyncpa [#allocation5], 0 }
   0x2   :  { %22 = vsyncpa [#allocation8], 0 }
   0x3   :  { %23 = vsyncpa [#allocation11], 0 }
   0x4   :  { %24 = vsyncpa [#allocation14], 0 }
   0x5   :  { %25 = vsyncpa [#allocation17], 0 }
   0x6   :  { %26 = vsyncpa [#allocation20], 0 }
   0x7   :  { %27 = vsyncpa [#allocation23], 0  ;;  %s24938_s18 = smov [#allocation4]   ;;  %s24939_s20 = smov [#allocation7]  }
   0x8   :  { %s48_s19 = sshll.u32 %s24938_s18, 4  ;;  %s70_s21 = sshll.u32 %s24939_s20, 4  ;;  %s49_s19 = int_to_ptr.vmem [resolvable:$true] %s48_s19  ;;  %s71_s21 = int_to_ptr.vmem [resolvable:$true] %s70_s21 }
   0x9   :  { %s24614_s24 = scalar_lea.hbm %s25659_s2, 96 }
   0xa   :  { %p24615_p0 = scmp.ne.s32.totalorder %s25659_s2, %s24614_s24  ;;  %p24618_p1 = scmp.lt.u32.totalorder %s24614_s24, %s25659_s2 }
   0xc   :  { %p24620_p2 = pnand %p24618_p1, %p24615_p0 }
   0xe   :  { %24623 = shalt.err (!%p24620_p2)
}
   0xf   :  { %s24624_s29 = scalar_lea.vmem %s49_s19, 96  ;;  %p24629_p4 = scmp.lt.s32.totalorder %s49_s19, %s49_s19 }
  0x10   :  { %p24625_p3 = scmp.ne.s32.totalorder %s49_s19, %s24624_s29  ;;  %p24630_p5 = scmp.lt.s32.totalorder %s24624_s29, %s24624_s29 }
  0x12   :  { %p24631_p6 = por %p24630_p5, %p24629_p4 }
  0x14   :  { %p24632_p7 = pnand %p24631_p6, %p24625_p3 }
  0x16   :  { %24635 = shalt.err (!%p24632_p7)
}
  0x17   :  { %51 = dma.hbm_to_vmem [thread:$0]  %s25659_s2, 96, %s49_s19, [#allocation5]  }
  0x18   :  { %s24636_s20 = scalar_lea.hbm %s25661_s4, 96 }
  0x19   :  { %p24637_p8 = scmp.ne.s32.totalorder %s25661_s4, %s24636_s20  ;;  %p24640_p9 = scmp.lt.u32.totalorder %s24636_s20, %s25661_s4 }
  0x1b   :  { %p24642_p10 = pnand %p24640_p9, %p24637_p8 }
  0x1d   :  { %24645 = shalt.err (!%p24642_p10)
}
  0x1e   :  { %s24646_s26 = scalar_lea.vmem %s71_s21, 96  ;;  %p24651_p12 = scmp.lt.s32.totalorder %s71_s21, %s71_s21 }
  0x1f   :  { %p24647_p11 = scmp.ne.s32.totalorder %s71_s21, %s24646_s26  ;;  %p24652_p13 = scmp.lt.s32.totalorder %s24646_s26, %s24646_s26 }
  0x21   :  { %p24653_p0 = por %p24652_p13, %p24651_p12 }
  0x23   :  { %p24654_p1 = pnand %p24653_p0, %p24647_p11 }
  0x25   :  { %24657 = shalt.err (!%p24654_p1)
}
  0x26   :  { %73 = dma.hbm_to_vmem [thread:$0]  %s25661_s4, 96, %s71_s21, [#allocation8]  }
  0x27   :  { %s24940_s27 = smov [#allocation10]   ;;  %s24941_s29 = smov [#allocation13]  }
  0x28   :  { %s92_s28 = sshll.u32 %s24940_s27, 4  ;;  %s114_s30 = sshll.u32 %s24941_s29, 4  ;;  %s93_s28 = int_to_ptr.vmem [resolvable:$true] %s92_s28  ;;  %s115_s30 = int_to_ptr.vmem [resolvable:$true] %s114_s30 }
  0x29   :  { %s24658_s18 = scalar_lea.hbm %s25663_s6, 96 }
  0x2a   :  { %p24659_p2 = scmp.ne.s32.totalorder %s25663_s6, %s24658_s18  ;;  %p24662_p3 = scmp.lt.u32.totalorder %s24658_s18, %s25663_s6 }
  0x2c   :  { %p24664_p4 = pnand %p24662_p3, %p24659_p2 }
  0x2e   :  { %24667 = shalt.err (!%p24664_p4)
}
  0x2f   :  { %s24668_s4 = scalar_lea.vmem %s93_s28, 96  ;;  %p24673_p6 = scmp.lt.s32.totalorder %s93_s28, %s93_s28 }
  0x30   :  { %p24669_p5 = scmp.ne.s32.totalorder %s93_s28, %s24668_s4  ;;  %p24674_p7 = scmp.lt.s32.totalorder %s24668_s4, %s24668_s4 }
  0x32   :  { %p24675_p8 = por %p24674_p7, %p24673_p6 }
  0x34   :  { %p24676_p9 = pnand %p24675_p8, %p24669_p5 }
  0x36   :  { %24679 = shalt.err (!%p24676_p9)
}
  0x37   :  { %95 = dma.hbm_to_vmem [thread:$0]  %s25663_s6, 96, %s93_s28, [#allocation11]  }
  0x38   :  { %s24680_s19 = scalar_lea.hbm %s25665_s8, 96 }
  0x39   :  { %p24681_p10 = scmp.ne.s32.totalorder %s25665_s8, %s24680_s19  ;;  %p24684_p11 = scmp.lt.u32.totalorder %s24680_s19, %s25665_s8 }
  0x3b   :  { %p24686_p12 = pnand %p24684_p11, %p24681_p10 }
  0x3d   :  { %24689 = shalt.err (!%p24686_p12)
}
  0x3e   :  { %s24690_s18 = scalar_lea.vmem %s115_s30, 96  ;;  %p24695_p0 = scmp.lt.s32.totalorder %s115_s30, %s115_s30 }
  0x3f   :  { %p24691_p13 = scmp.ne.s32.totalorder %s115_s30, %s24690_s18  ;;  %p24696_p1 = scmp.lt.s32.totalorder %s24690_s18, %s24690_s18 }
  0x41   :  { %p24697_p2 = por %p24696_p1, %p24695_p0 }
  0x43   :  { %p24698_p3 = pnand %p24697_p2, %p24691_p13 }
  0x45   :  { %24701 = shalt.err (!%p24698_p3)
}
  0x46   :  { %117 = dma.hbm_to_vmem [thread:$0]  %s25665_s8, 96, %s115_s30, [#allocation14]  }
  0x47   :  { %s24942_s20 = smov [#allocation16]   ;;  %s24943_s23 = smov [#allocation19]  }
  0x48   :  { %s136_s22 = sshll.u32 %s24942_s20, 4  ;;  %s158_s24 = sshll.u32 %s24943_s23, 4  ;;  %s137_s22 = int_to_ptr.vmem [resolvable:$true] %s136_s22  ;;  %s159_s24 = int_to_ptr.vmem [resolvable:$true] %s158_s24 }
  0x49   :  { %s24702_s25 = scalar_lea.hbm %s25667_s10, 96 }
  0x4a   :  { %p24703_p4 = scmp.ne.s32.totalorder %s25667_s10, %s24702_s25  ;;  %p24706_p5 = scmp.lt.u32.totalorder %s24702_s25, %s25667_s10 }
  0x4c   :  { %p24708_p6 = pnand %p24706_p5, %p24703_p4 }
  0x4e   :  { %24711 = shalt.err (!%p24708_p6)
}
  0x4f   :  { %s24712_s8 = scalar_lea.vmem %s137_s22, 96  ;;  %p24717_p8 = scmp.lt.s32.totalorder %s137_s22, %s137_s22 }
  0x50   :  { %p24713_p7 = scmp.ne.s32.totalorder %s137_s22, %s24712_s8  ;;  %p24718_p9 = scmp.lt.s32.totalorder %s24712_s8, %s24712_s8 }
  0x52   :  { %p24719_p10 = por %p24718_p9, %p24717_p8 }
  0x54   :  { %p24720_p11 = pnand %p24719_p10, %p24713_p7 }
  0x56   :  { %24723 = shalt.err (!%p24720_p11)
}
  0x57   :  { %139 = dma.hbm_to_vmem [thread:$0]  %s25667_s10, 96, %s137_s22, [#allocation17]  }
  0x58   :  { %s24724_s18 = scalar_lea.hbm %s25669_s12, 32 }
  0x59   :  { %p24725_p12 = scmp.ne.s32.totalorder %s25669_s12, %s24724_s18  ;;  %p24728_p13 = scmp.lt.u32.totalorder %s24724_s18, %s25669_s12 }
  0x5b   :  { %p24730_p0 = pnand %p24728_p13, %p24725_p12 }
  0x5d   :  { %24733 = shalt.err (!%p24730_p0)
}
  0x5e   :  { %s24734_s4 = scalar_lea.vmem %s159_s24, 32  ;;  %p24739_p2 = scmp.lt.s32.totalorder %s159_s24, %s159_s24 }
  0x5f   :  { %p24735_p1 = scmp.ne.s32.totalorder %s159_s24, %s24734_s4  ;;  %p24740_p3 = scmp.lt.s32.totalorder %s24734_s4, %s24734_s4 }
  0x61   :  { %p24741_p4 = por %p24740_p3, %p24739_p2 }
  0x63   :  { %p24742_p5 = pnand %p24741_p4, %p24735_p1 }
  0x65   :  { %24745 = shalt.err (!%p24742_p5)
}
  0x66   :  { %161 = dma.hbm_to_vmem [thread:$0]  %s25669_s12, 32, %s159_s24, [#allocation20]  }
  0x67   :  { %s24944_s21 = smov [#allocation2]   ;;  %s24746_s19 = scalar_lea.hbm %s25658_s1, 147456 }
  0x68   :  { %s35_s25 = sshll.u32 %s24944_s21, 4  ;;  %p24747_p6 = scmp.ne.s32.totalorder %s25658_s1, %s24746_s19  ;;  %s36_s25 = int_to_ptr.vmem [resolvable:$true] %s35_s25 }
  0x69   :  { %p24750_p7 = scmp.lt.u32.totalorder %s24746_s19, %s25658_s1 }
  0x6b   :  { %p24752_p8 = pnand %p24750_p7, %p24747_p6 }
  0x6d   :  { %24755 = shalt.err (!%p24752_p8)
}
  0x6e   :  { %s24756_s16 = scalar_lea.vmem %s36_s25, 147456  ;;  %p24761_p10 = scmp.lt.s32.totalorder %s36_s25, %s36_s25 }
  0x6f   :  { %p24757_p9 = scmp.ne.s32.totalorder %s36_s25, %s24756_s16  ;;  %p24762_p11 = scmp.lt.s32.totalorder %s24756_s16, %s24756_s16 }
  0x71   :  { %p24763_p12 = por %p24762_p11, %p24761_p10 }
  0x73   :  { %p24764_p13 = pnand %p24763_p12, %p24757_p9 }
  0x75   :  { %24767 = shalt.err (!%p24764_p13)
}
  0x76   :  { %s24945_s12 = smov 384   ;;  %s24946_s24 = smov 24  }
  0x77   :  { %41 = dma.hbm_to_vmem [thread:$0]  %s25658_s1, 147456, %s36_s25, [#allocation3], %s24945_s12, %s24945_s12, %s24946_s24  }
  0x78   :  { %s24947_s6 = smov [#allocation6]   ;;  %s24948_s20 = smov [#allocation9]  }
  0x79   :  { %s57_s28 = sshll.u32 %s24947_s6, 4  ;;  %s79_s23 = sshll.u32 %s24948_s20, 4  ;;  %s58_s28 = int_to_ptr.vmem [resolvable:$true] %s57_s28  ;;  %s80_s23 = int_to_ptr.vmem [resolvable:$true] %s79_s23 }
  0x7a   :  { %s24768_s22 = scalar_lea.hbm %s25660_s3, 36864 }
  0x7b   :  { %p24769_p0 = scmp.ne.s32.totalorder %s25660_s3, %s24768_s22  ;;  %p24772_p1 = scmp.lt.u32.totalorder %s24768_s22, %s25660_s3 }
  0x7d   :  { %p24774_p2 = pnand %p24772_p1, %p24769_p0 }
  0x7f   :  { %24777 = shalt.err (!%p24774_p2)
}
  0x80   :  { %s24778_s1 = scalar_lea.vmem %s58_s28, 36864  ;;  %p24783_p4 = scmp.lt.s32.totalorder %s58_s28, %s58_s28 }
  0x81   :  { %p24779_p3 = scmp.ne.s32.totalorder %s58_s28, %s24778_s1  ;;  %p24784_p5 = scmp.lt.s32.totalorder %s24778_s1, %s24778_s1 }
  0x83   :  { %p24785_p6 = por %p24784_p5, %p24783_p4 }
  0x85   :  { %p24786_p7 = pnand %p24785_p6, %p24779_p3 }
  0x87   :  { %24789 = shalt.err (!%p24786_p7)
}
  0x88   :  { %63 = dma.hbm_to_vmem [thread:$0]  %s25660_s3, 36864, %s58_s28, [#allocation5], %s24945_s12, %s24945_s12, %s24946_s24  }
  0x89   :  { %s24790_s29 = scalar_lea.hbm %s25662_s5, 36864 }
  0x8a   :  { %p24791_p8 = scmp.ne.s32.totalorder %s25662_s5, %s24790_s29  ;;  %p24794_p9 = scmp.lt.u32.totalorder %s24790_s29, %s25662_s5 }
  0x8c   :  { %p24796_p10 = pnand %p24794_p9, %p24791_p8 }
  0x8e   :  { %24799 = shalt.err (!%p24796_p10)
}
  0x8f   :  { %s24800_s20 = scalar_lea.vmem %s80_s23, 36864  ;;  %p24805_p12 = scmp.lt.s32.totalorder %s80_s23, %s80_s23 }
  0x90   :  { %p24801_p11 = scmp.ne.s32.totalorder %s80_s23, %s24800_s20  ;;  %p24806_p13 = scmp.lt.s32.totalorder %s24800_s20, %s24800_s20 }
  0x92   :  { %p24807_p0 = por %p24806_p13, %p24805_p12 }
  0x94   :  { %p24808_p1 = pnand %p24807_p0, %p24801_p11 }
  0x96   :  { %24811 = shalt.err (!%p24808_p1)
}
  0x97   :  { %85 = dma.hbm_to_vmem [thread:$0]  %s25662_s5, 36864, %s80_s23, [#allocation8], %s24945_s12, %s24945_s12, %s24946_s24  }
  0x98   :  { %s24949_s4 = smov [#allocation12]   ;;  %s24950_s22 = smov [#allocation15]  }
  0x99   :  { %s101_s10 = sshll.u32 %s24949_s4, 4  ;;  %s123_s21 = sshll.u32 %s24950_s22, 4  ;;  %s102_s10 = int_to_ptr.vmem [resolvable:$true] %s101_s10  ;;  %s124_s21 = int_to_ptr.vmem [resolvable:$true] %s123_s21 }
  0x9a   :  { %s24812_s19 = scalar_lea.hbm %s25664_s7, 36864 }
  0x9b   :  { %p24813_p2 = scmp.ne.s32.totalorder %s25664_s7, %s24812_s19  ;;  %p24816_p3 = scmp.lt.u32.totalorder %s24812_s19, %s25664_s7 }
  0x9d   :  { %p24818_p4 = pnand %p24816_p3, %p24813_p2 }
  0x9f   :  { %24821 = shalt.err (!%p24818_p4)
}
  0xa0   :  { %s24822_s5 = scalar_lea.vmem %s102_s10, 36864  ;;  %p24827_p6 = scmp.lt.s32.totalorder %s102_s10, %s102_s10 }
  0xa1   :  { %p24823_p5 = scmp.ne.s32.totalorder %s102_s10, %s24822_s5  ;;  %p24828_p7 = scmp.lt.s32.totalorder %s24822_s5, %s24822_s5 }
  0xa3   :  { %p24829_p8 = por %p24828_p7, %p24827_p6 }
  0xa5   :  { %p24830_p9 = pnand %p24829_p8, %p24823_p5 }
  0xa7   :  { %24833 = shalt.err (!%p24830_p9)
}
  0xa8   :  { %107 = dma.hbm_to_vmem [thread:$0]  %s25664_s7, 36864, %s102_s10, [#allocation11], %s24945_s12, %s24945_s12, %s24946_s24  }
  0xa9   :  { %s24834_s17 = scalar_lea.hbm %s25666_s9, 36864 }
  0xaa   :  { %p24835_p10 = scmp.ne.s32.totalorder %s25666_s9, %s24834_s17  ;;  %p24838_p11 = scmp.lt.u32.totalorder %s24834_s17, %s25666_s9 }
  0xac   :  { %p24840_p12 = pnand %p24838_p11, %p24835_p10 }
  0xae   :  { %24843 = shalt.err (!%p24840_p12)
}
  0xaf   :  { %s24844_s28 = scalar_lea.vmem %s124_s21, 36864  ;;  %p24849_p0 = scmp.lt.s32.totalorder %s124_s21, %s124_s21 }
  0xb0   :  { %p24845_p13 = scmp.ne.s32.totalorder %s124_s21, %s24844_s28  ;;  %p24850_p1 = scmp.lt.s32.totalorder %s24844_s28, %s24844_s28 }
  0xb2   :  { %p24851_p2 = por %p24850_p1, %p24849_p0 }
  0xb4   :  { %p24852_p3 = pnand %p24851_p2, %p24845_p13 }
  0xb6   :  { %24855 = shalt.err (!%p24852_p3)
}
  0xb7   :  { %129 = dma.hbm_to_vmem [thread:$0]  %s25666_s9, 36864, %s124_s21, [#allocation14], %s24945_s12, %s24945_s12, %s24946_s24  }
  0xb8   :  { %s24951_s10 = smov [#allocation18]   ;;  %s24856_s19 = scalar_lea.hbm %s25668_s11, 12288 }
  0xb9   :  { %s145_s22 = sshll.u32 %s24951_s10, 4  ;;  %p24857_p4 = scmp.ne.s32.totalorder %s25668_s11, %s24856_s19  ;;  %s146_s22 = int_to_ptr.vmem [resolvable:$true] %s145_s22 }
  0xba   :  { %p24860_p5 = scmp.lt.u32.totalorder %s24856_s19, %s25668_s11 }
  0xbc   :  { %p24862_p6 = pnand %p24860_p5, %p24857_p4 }
  0xbe   :  { %24865 = shalt.err (!%p24862_p6)
}
  0xbf   :  { %s24866_s5 = scalar_lea.vmem %s146_s22, 12288  ;;  %p24871_p8 = scmp.lt.s32.totalorder %s146_s22, %s146_s22 }
  0xc0   :  { %p24867_p7 = scmp.ne.s32.totalorder %s146_s22, %s24866_s5  ;;  %p24872_p9 = scmp.lt.s32.totalorder %s24866_s5, %s24866_s5 }
  0xc2   :  { %p24873_p10 = por %p24872_p9, %p24871_p8 }
  0xc4   :  { %p24874_p11 = pnand %p24873_p10, %p24867_p7 }
  0xc6   :  { %24877 = shalt.err (!%p24874_p11)
}
  0xc7   :  { %s24952_s9 = smov 128   ;;  %s24953_s12 = smov 8  }
  0xc8   :  { %151 = dma.hbm_to_vmem [thread:$0]  %s25668_s11, 12288, %s146_s22, [#allocation17], %s24952_s9, %s24952_s9, %s24953_s12  }
  0xc9   :  { %s24954_s23 = smov [#allocation21]   ;;  %s24878_s17 = scalar_lea.hbm %s25670_s13, 2048 }
  0xca   :  { %s167_s30 = sshll.u32 %s24954_s23, 4  ;;  %p24879_p12 = scmp.ne.s32.totalorder %s25670_s13, %s24878_s17  ;;  %s168_s30 = int_to_ptr.vmem [resolvable:$true] %s167_s30 }
  0xcb   :  { %p24882_p13 = scmp.lt.u32.totalorder %s24878_s17, %s25670_s13 }
  0xcd   :  { %p24884_p0 = pnand %p24882_p13, %p24879_p12 }
  0xcf   :  { %24887 = shalt.err (!%p24884_p0)
}
  0xd0   :  { %s24888_s28 = scalar_lea.vmem %s168_s30, 2048  ;;  %p24893_p2 = scmp.lt.s32.totalorder %s168_s30, %s168_s30 }
  0xd1   :  { %p24889_p1 = scmp.ne.s32.totalorder %s168_s30, %s24888_s28  ;;  %p24894_p3 = scmp.lt.s32.totalorder %s24888_s28, %s24888_s28 }
  0xd3   :  { %p24895_p4 = por %p24894_p3, %p24893_p2 }
  0xd5   :  { %p24896_p5 = pnand %p24895_p4, %p24889_p1 }
  0xd7   :  { %24899 = shalt.err (!%p24896_p5)
}
  0xd8   :  { %s24955_s11 = smov 64   ;;  %s24956_s7 = smov 4  }
  0xd9   :  { %173 = dma.hbm_to_vmem [thread:$0]  %s25670_s13, 2048, %s168_s30, [#allocation20], %s24955_s11, %s24955_s11, %s24956_s7  }
  0xda   :  { %s24957_s22 = smov [#allocation22]   ;;  %s24900_s1 = scalar_lea.hbm %s25671_s14, 16 }
  0xdb   :  { %s180_s26 = sshll.u32 %s24957_s22, 4  ;;  %p24901_p6 = scmp.ne.s32.totalorder %s25671_s14, %s24900_s1  ;;  %s181_s26 = int_to_ptr.vmem [resolvable:$true] %s180_s26 }
  0xdc   :  { %p24904_p7 = scmp.lt.u32.totalorder %s24900_s1, %s25671_s14 }
  0xde   :  { %p24906_p8 = pnand %p24904_p7, %p24901_p6 }
  0xe0   :  { %24909 = shalt.err (!%p24906_p8)
}
  0xe1   :  { %s24910_s9 = scalar_lea.vmem %s181_s26, 16  ;;  %s24914_s13 = scalar_lea.vmem %s181_s26, 32 }
  0xe2   :  { %p24911_p9 = scmp.ne.s32.totalorder %s181_s26, %s24910_s9  ;;  %p24915_p10 = scmp.lt.s32.totalorder %s181_s26, %s181_s26 }
  0xe3   :  { %p24916_p11 = scmp.lt.s32.totalorder %s24914_s13, %s24910_s9 }
  0xe5   :  { %p24917_p12 = por %p24916_p11, %p24915_p10 }
  0xe7   :  { %p24918_p13 = pnand %p24917_p12, %p24911_p9 }
  0xe9   :  { %24921 = shalt.err (!%p24918_p13)
}
  0xea   :  { %183 = dma.hbm_to_vmem [thread:$0]  %s25671_s14, 16, %s181_s26, [#allocation23]  }
  0xeb   :  { %24922 = dma.done.wait [#allocation3], 147456  }
  0xec   :  { %24923 = vsyncadd [#allocation3], 4294819840 }
  0xed   :  { %24924 = dma.done.wait [#allocation5], 36960  }
  0xee   :  { %24925 = vsyncadd [#allocation5], 4294930336 }
  0xef   :  { %24926 = dma.done.wait [#allocation8], 36960  }
  0xf0   :  { %24927 = vsyncadd [#allocation8], 4294930336 }
  0xf1   :  { %24928 = dma.done.wait [#allocation11], 36960  }
  0xf2   :  { %24929 = vsyncadd [#allocation11], 4294930336 }
  0xf3   :  { %24930 = dma.done.wait [#allocation14], 36960  }
  0xf4   :  { %24931 = vsyncadd [#allocation14], 4294930336 }
  0xf5   :  { %24932 = dma.done.wait [#allocation17], 12384  }
  0xf6   :  { %24933 = vsyncadd [#allocation17], 4294954912 }
  0xf7   :  { %24934 = dma.done.wait [#allocation20], 2080  }
  0xf8   :  { %24935 = vsyncadd [#allocation20], 4294965216 }
  0xf9   :  { %24936 = dma.done.wait [#allocation23], 16  }
  0xfa   :  { %24937 = vsyncadd [#allocation23], 4294967280  ;;  %v20971_v0 = vld [vmem:[#allocation2 + $0x4] ss:$24 sps:$4 sm:$0xff]   ;;  %v20975_v2 = vld [vmem:[#allocation2] ss:$24 sps:$4 sm:$0xff]  }
  0xfb   :  { %v20973_v1 = vld [vmem:[#allocation2 + $0x304] ss:$24 sps:$4 sm:$0xff]   ;;  %7267 = vmatprep.subr.bf16.mxu1 %v20971_v0  ;;  %v20976_v3 = vld [vmem:[#allocation2 + $0x300] ss:$24 sps:$4 sm:$0xff]   ;;  %v20977_v4 = vld [vmem:[#allocation2 + $0x34] ss:$24 sps:$4 sm:$0xff]  }
  0xfc   :  { %7308 = vmatprep.subr.bf16.mxu0 %v20973_v1  ;;  %7268 = vmatpush1.bf16.msra.mxu1 %v20975_v2  ;;  %v20979_v5 = vld [vmem:[#allocation2 + $0x334] ss:$24 sps:$4 sm:$0xff]   ;;  %v20981_v6 = vld [vmem:[#allocation2 + $0x30] ss:$24 sps:$4 sm:$0xff]   ;;  %v20983_v8 = vld [vmem:[#allocation2 + $0x64] ss:$24 sps:$4 sm:$0xff]  }
  0xfd   :  { %7309 = vmatpush1.bf16.msra.mxu0 %v20976_v3  ;;  %7269 = vmatprep.subr.bf16.mxu1 %v20977_v4  ;;  %v20982_v7 = vld [vmem:[#allocation2 + $0x330] ss:$24 sps:$4 sm:$0xff]   ;;  %v20985_v9 = vld [vmem:[#allocation2 + $0x364] ss:$24 sps:$4 sm:$0xff]   ;;  %v20987_v10 = vld [vmem:[#allocation2 + $0x60] ss:$24 sps:$4 sm:$0xff]  }
  0xfe   :  { %7310 = vmatprep.subr.bf16.mxu0 %v20979_v5  ;;  %v20988_v11 = vld [vmem:[#allocation2 + $0x360] ss:$24 sps:$4 sm:$0xff]   ;;  %v20989_v12 = vld [vmem:[#allocation2 + $0x94] ss:$24 sps:$4 sm:$0xff]   ;;  %v20993_v14 = vld [vmem:[#allocation2 + $0x90] ss:$24 sps:$4 sm:$0xff]  }
  0xff   :  { %v20991_v13 = vld [vmem:[#allocation2 + $0x394] ss:$24 sps:$4 sm:$0xff]   ;;  %v20994_v15 = vld [vmem:[#allocation2 + $0x390] ss:$24 sps:$4 sm:$0xff]   ;;  %v20995_v16 = vld [vmem:[#allocation2 + $0xc4] ss:$24 sps:$4 sm:$0xff]  }
 0x100   :  { %7270 = vmatpush1.bf16.msra.mxu1 %v20981_v6  ;;  %v20997_v17 = vld [vmem:[#allocation2 + $0x3c4] ss:$24 sps:$4 sm:$0xff]   ;;  %v20999_v18 = vld [vmem:[#allocation2 + $0xc0] ss:$24 sps:$4 sm:$0xff]   ;;  %v21001_v20 = vld [vmem:[#allocation2 + $0xf4] ss:$24 sps:$4 sm:$0xff]  }
 0x101   :  { %7311 = vmatpush1.bf16.msra.mxu0 %v20982_v7  ;;  %7271 = vmatprep.subr.bf16.mxu1 %v20983_v8  ;;  %v21000_v19 = vld [vmem:[#allocation2 + $0x3c0] ss:$24 sps:$4 sm:$0xff]   ;;  %v21003_v21 = vld [vmem:[#allocation2 + $0x3f4] ss:$24 sps:$4 sm:$0xff]   ;;  %v21005_v22 = vld [vmem:[#allocation2 + $0xf0] ss:$24 sps:$4 sm:$0xff]  }
 0x102   :  { %7312 = vmatprep.subr.bf16.mxu0 %v20985_v9  ;;  %v21006_v23 = vld [vmem:[#allocation2 + $0x3f0] ss:$24 sps:$4 sm:$0xff]   ;;  %v21007_v24 = vld [vmem:[#allocation2 + $0x124] ss:$24 sps:$4 sm:$0xff]   ;;  %v21011_v26 = vld [vmem:[#allocation2 + $0x120] ss:$24 sps:$4 sm:$0xff]  }
 0x103   :  { %v21009_v25 = vld [vmem:[#allocation2 + $0x424] ss:$24 sps:$4 sm:$0xff]   ;;  %v21012_v27 = vld [vmem:[#allocation2 + $0x420] ss:$24 sps:$4 sm:$0xff]   ;;  %v21013_v28 = vld [vmem:[#allocation2 + $0x154] ss:$24 sps:$4 sm:$0xff]  }
 0x104   :  { %7272 = vmatpush1.bf16.msra.mxu1 %v20987_v10  ;;  %v21015_v29 = vld [vmem:[#allocation2 + $0x454] ss:$24 sps:$4 sm:$0xff]   ;;  %v21017_v30 = vld [vmem:[#allocation2 + $0x150] ss:$24 sps:$4 sm:$0xff]   ;;  %v21019_v32 = vld [vmem:[#allocation2 + $0x184] ss:$24 sps:$4 sm:$0xff]  }
 0x105   :  { %7313 = vmatpush1.bf16.msra.mxu0 %v20988_v11  ;;  %7273 = vmatprep.subr.bf16.mxu1 %v20989_v12  ;;  %v21018_v31 = vld [vmem:[#allocation2 + $0x450] ss:$24 sps:$4 sm:$0xff]   ;;  %v21021_v33 = vld [vmem:[#allocation2 + $0x484] ss:$24 sps:$4 sm:$0xff]   ;;  %v21023_v34 = vld [vmem:[#allocation2 + $0x180] ss:$24 sps:$4 sm:$0xff]  }
 0x106   :  { %7314 = vmatprep.subr.bf16.mxu0 %v20991_v13  ;;  %v21024_v35 = vld [vmem:[#allocation2 + $0x480] ss:$24 sps:$4 sm:$0xff]   ;;  %v21025_v36 = vld [vmem:[#allocation2 + $0x1b4] ss:$24 sps:$4 sm:$0xff]   ;;  %v21029_v38 = vld [vmem:[#allocation2 + $0x1b0] ss:$24 sps:$4 sm:$0xff]  }
 0x107   :  { %v21027_v37 = vld [vmem:[#allocation2 + $0x4b4] ss:$24 sps:$4 sm:$0xff]   ;;  %v21030_v39 = vld [vmem:[#allocation2 + $0x4b0] ss:$24 sps:$4 sm:$0xff]   ;;  %v21031_v40 = vld [vmem:[#allocation2 + $0x1e4] ss:$24 sps:$4 sm:$0xff]  }
 0x108   :  { %7274 = vmatpush1.bf16.msra.mxu1 %v20993_v14  ;;  %v21033_v41 = vld [vmem:[#allocation2 + $0x4e4] ss:$24 sps:$4 sm:$0xff]   ;;  %v21035_v42 = vld [vmem:[#allocation2 + $0x1e0] ss:$24 sps:$4 sm:$0xff]   ;;  %v21037_v44 = vld [vmem:[#allocation2 + $0x214] ss:$24 sps:$4 sm:$0xff]  }
 0x109   :  { %7315 = vmatpush1.bf16.msra.mxu0 %v20994_v15  ;;  %7275 = vmatprep.subr.bf16.mxu1 %v20995_v16  ;;  %v21036_v43 = vld [vmem:[#allocation2 + $0x4e0] ss:$24 sps:$4 sm:$0xff]   ;;  %v21039_v45 = vld [vmem:[#allocation2 + $0x514] ss:$24 sps:$4 sm:$0xff]   ;;  %v21041_v49 = vld [vmem:[#allocation2 + $0x210] ss:$24 sps:$4 sm:$0xff]  }
 0x10a   :  { %7316 = vmatprep.subr.bf16.mxu0 %v20997_v17  ;;  %v227_v46 = vld [vmem:[%s25657_s0] sm:$0xff]  ;;  %v228_v48 = vld [vmem:[%s25657_s0 + $0x8] sm:$0xff]  ;;  %v21082_v11 = vld [vmem:[#allocation2 + $0x3c] ss:$24 sps:$4 sm:$0xff]  }
 0x10b   :  { %v25224_v47 = vcombine.high %v227_v46, %v227_v46  ;;  %v21042_v50 = vld [vmem:[#allocation2 + $0x510] ss:$24 sps:$4 sm:$0xff]   ;;  %v25229_v51 = vcombine.high %v228_v48, %v228_v48  ;;  %v21043_v52 = vld [vmem:[#allocation2 + $0x244] ss:$24 sps:$4 sm:$0xff]   ;;  %v21047_v54 = vld [vmem:[#allocation2 + $0x240] ss:$24 sps:$4 sm:$0xff]   ;;  %v25233_v6 = vcombine.low %v227_v46, %v227_v46  ;;  %v25235_v7 = vcombine.low %v228_v48, %v228_v48 }
 0x10c   :  { %7276 = vmatpush1.bf16.msra.mxu1 %v20999_v18  ;;  %v21045_v53 = vld [vmem:[#allocation2 + $0x544] ss:$24 sps:$4 sm:$0xff]   ;;  %v21048_v55 = vld [vmem:[#allocation2 + $0x540] ss:$24 sps:$4 sm:$0xff]   ;;  %v21049_v56 = vld [vmem:[#allocation2 + $0x274] ss:$24 sps:$4 sm:$0xff]  }
 0x10d   :  { %7317 = vmatpush1.bf16.msra.mxu0 %v21000_v19  ;;  %7277 = vmatprep.subr.bf16.mxu1 %v21001_v20  ;;  %v21051_v57 = vld [vmem:[#allocation2 + $0x574] ss:$24 sps:$4 sm:$0xff]   ;;  %v21053_v58 = vld [vmem:[#allocation2 + $0x270] ss:$24 sps:$4 sm:$0xff]   ;;  %v21055_v60 = vld [vmem:[#allocation2 + $0x2a4] ss:$24 sps:$4 sm:$0xff]  }
 0x10e   :  { %7318 = vmatprep.subr.bf16.mxu0 %v21003_v21  ;;  %7299 = vmatprep.mubr.bf16.mxu1 %v25224_v47  ;;  %v21054_v59 = vld [vmem:[#allocation2 + $0x570] ss:$24 sps:$4 sm:$0xff]   ;;  %v21057_v61 = vld [vmem:[#allocation2 + $0x5a4] ss:$24 sps:$4 sm:$0xff]   ;;  %v21059_v62 = vld [vmem:[#allocation2 + $0x2a0] ss:$24 sps:$4 sm:$0xff]  }
 0x10f   :  { %7340 = vmatprep.mubr.bf16.mxu0 %v25229_v51  ;;  %v21060_v63 = vld [vmem:[#allocation2 + $0x5a0] ss:$24 sps:$4 sm:$0xff]   ;;  %v21061_v0 = vld [vmem:[#allocation2 + $0x2d4] ss:$24 sps:$4 sm:$0xff]   ;;  %v21065_v2 = vld [vmem:[#allocation2 + $0x2d0] ss:$24 sps:$4 sm:$0xff]  }
 0x110   :  { %7278 = vmatpush1.bf16.msra.mxu1 %v21005_v22  ;;  %v21063_v1 = vld [vmem:[#allocation2 + $0x5d4] ss:$24 sps:$4 sm:$0xff]   ;;  %v21066_v3 = vld [vmem:[#allocation2 + $0x5d0] ss:$24 sps:$4 sm:$0xff]   ;;  %v21071_v4 = vld [vmem:[#allocation2 + $0x604] ss:$24 sps:$4 sm:$0xff]  }
 0x111   :  { %7319 = vmatpush1.bf16.msra.mxu0 %v21006_v23  ;;  %7279 = vmatprep.subr.bf16.mxu1 %v21007_v24  ;;  %v21074_v5 = vld [vmem:[#allocation2 + $0xc] ss:$24 sps:$4 sm:$0xff]   ;;  %v21069_v8 = vld [vmem:[#allocation2 + $0x600] ss:$24 sps:$4 sm:$0xff]   ;;  %v21077_v12 = vld [vmem:[#allocation2 + $0x630] ss:$24 sps:$4 sm:$0xff]  }
 0x112   :  { %7320 = vmatprep.subr.bf16.mxu0 %v21009_v25  ;;  %v21072_v9 = vld [vmem:[#allocation2 + $0x8] ss:$24 sps:$4 sm:$0xff]   ;;  %v21079_v10 = vld [vmem:[#allocation2 + $0x634] ss:$24 sps:$4 sm:$0xff]   ;;  %v21080_v13 = vld [vmem:[#allocation2 + $0x38] ss:$24 sps:$4 sm:$0xff]  }
 0x113   :  { %v21085_v14 = vld [vmem:[#allocation2 + $0x664] ss:$24 sps:$4 sm:$0xff]   ;;  %v21083_v16 = vld [vmem:[#allocation2 + $0x660] ss:$24 sps:$4 sm:$0xff]   ;;  %v21091_v18 = vld [vmem:[#allocation2 + $0x694] ss:$24 sps:$4 sm:$0xff]  }
 0x114   :  { %7280 = vmatpush1.bf16.msra.mxu1 %v21011_v26  ;;  %v21088_v15 = vld [vmem:[#allocation2 + $0x6c] ss:$24 sps:$4 sm:$0xff]   ;;  %v21086_v17 = vld [vmem:[#allocation2 + $0x68] ss:$24 sps:$4 sm:$0xff]   ;;  %v21094_v19 = vld [vmem:[#allocation2 + $0x9c] ss:$24 sps:$4 sm:$0xff]  }
 0x115   :  { %7321 = vmatpush1.bf16.msra.mxu0 %v21012_v27  ;;  %7281 = vmatprep.subr.bf16.mxu1 %v21013_v28  ;;  %v21089_v20 = vld [vmem:[#allocation2 + $0x690] ss:$24 sps:$4 sm:$0xff]   ;;  %v21097_v22 = vld [vmem:[#allocation2 + $0x6c4] ss:$24 sps:$4 sm:$0xff]   ;;  %v21095_v24 = vld [vmem:[#allocation2 + $0x6c0] ss:$24 sps:$4 sm:$0xff]  }
 0x116   :  { %7322 = vmatprep.subr.bf16.mxu0 %v21015_v29  ;;  %v21092_v21 = vld [vmem:[#allocation2 + $0x98] ss:$24 sps:$4 sm:$0xff]   ;;  %v21100_v23 = vld [vmem:[#allocation2 + $0xcc] ss:$24 sps:$4 sm:$0xff]   ;;  %v21098_v25 = vld [vmem:[#allocation2 + $0xc8] ss:$24 sps:$4 sm:$0xff]  }
 0x117   :  { %v21103_v26 = vld [vmem:[#allocation2 + $0x6f4] ss:$24 sps:$4 sm:$0xff]   ;;  %v21101_v28 = vld [vmem:[#allocation2 + $0x6f0] ss:$24 sps:$4 sm:$0xff]  }
 0x118   :  { %7282 = vmatpush1.bf16.msra.mxu1 %v21017_v30  ;;  %v21106_v27 = vld [vmem:[#allocation2 + $0xfc] ss:$24 sps:$4 sm:$0xff]   ;;  %v21104_v29 = vld [vmem:[#allocation2 + $0xf8] ss:$24 sps:$4 sm:$0xff]  }
 0x119   :  { %7323 = vmatpush1.bf16.msra.mxu0 %v21018_v31  ;;  %7283 = vmatprep.subr.bf16.mxu1 %v21019_v32  ;;  %v21109_v30 = vld [vmem:[#allocation2 + $0x724] ss:$24 sps:$4 sm:$0xff]   ;;  %v25243_v32 = vld [vmem:[%s25657_s0 + $0x10] sm:$0xff] }
 0x11a   :  { %7324 = vmatprep.subr.bf16.mxu0 %v21021_v33  ;;  %v21112_v31 = vld [vmem:[#allocation2 + $0x12c] ss:$24 sps:$4 sm:$0xff]   ;;  %v21107_v33 = vld [vmem:[#allocation2 + $0x720] ss:$24 sps:$4 sm:$0xff]   ;;  %v21125_v46 = vld [vmem:[#allocation2 + $0x7b0] ss:$24 sps:$4 sm:$0xff]  }
 0x11b   :  { %v21128_v48 = vld [vmem:[#allocation2 + $0x1b8] ss:$24 sps:$4 sm:$0xff]  }
 0x11c   :  { %7284 = vmatpush1.bf16.msra.mxu1 %v21023_v34  ;;  %v25247_v34 = vcombine.high %v25243_v32, %v25243_v32 }
 0x11d   :  { %7325 = vmatpush1.bf16.msra.mxu0 %v21024_v35  ;;  %7285 = vmatprep.subr.bf16.mxu1 %v21025_v36  ;;  %v21110_v35 = vld [vmem:[#allocation2 + $0x128] ss:$24 sps:$4 sm:$0xff]   ;;  %v21115_v36 = vld [vmem:[#allocation2 + $0x754] ss:$24 sps:$4 sm:$0xff]  }
 0x11e   :  { %7326 = vmatprep.subr.bf16.mxu0 %v21027_v37  ;;  %v21118_v37 = vld [vmem:[#allocation2 + $0x15c] ss:$24 sps:$4 sm:$0xff]  }
 0x120   :  { %7286 = vmatpush1.bf16.msra.mxu1 %v21029_v38  ;;  %v21113_v38 = vld [vmem:[#allocation2 + $0x750] ss:$24 sps:$4 sm:$0xff]  }
 0x121   :  { %7327 = vmatpush1.bf16.msra.mxu0 %v21030_v39  ;;  %7287 = vmatprep.subr.bf16.mxu1 %v21031_v40  ;;  %v21116_v39 = vld [vmem:[#allocation2 + $0x158] ss:$24 sps:$4 sm:$0xff]   ;;  %v21121_v40 = vld [vmem:[#allocation2 + $0x784] ss:$24 sps:$4 sm:$0xff]  }
 0x122   :  { %7328 = vmatprep.subr.bf16.mxu0 %v21033_v41  ;;  %v21124_v41 = vld [vmem:[#allocation2 + $0x18c] ss:$24 sps:$4 sm:$0xff]  }
 0x124   :  { %7288 = vmatpush1.bf16.msra.mxu1 %v21035_v42  ;;  %v21119_v42 = vld [vmem:[#allocation2 + $0x780] ss:$24 sps:$4 sm:$0xff]  }
 0x125   :  { %7329 = vmatpush1.bf16.msra.mxu0 %v21036_v43  ;;  %7289 = vmatprep.subr.bf16.mxu1 %v21037_v44  ;;  %v21122_v43 = vld [vmem:[#allocation2 + $0x188] ss:$24 sps:$4 sm:$0xff]   ;;  %v21127_v44 = vld [vmem:[#allocation2 + $0x7b4] ss:$24 sps:$4 sm:$0xff]  }
 0x126   :  { %7330 = vmatprep.subr.bf16.mxu0 %v21039_v45  ;;  %v21130_v45 = vld [vmem:[#allocation2 + $0x1bc] ss:$24 sps:$4 sm:$0xff]  }
 0x128   :  { %7290 = vmatpush1.bf16.msra.mxu1 %v21041_v49  ;;  %v21133_v49 = vld [vmem:[#allocation2 + $0x7e4] ss:$24 sps:$4 sm:$0xff]  }
 0x129   :  { %7331 = vmatpush1.bf16.msra.mxu0 %v21042_v50  ;;  %7291 = vmatprep.subr.bf16.mxu1 %v21043_v52  ;;  %v21136_v50 = vld [vmem:[#allocation2 + $0x1ec] ss:$24 sps:$4 sm:$0xff]   ;;  %v21131_v52 = vld [vmem:[#allocation2 + $0x7e0] ss:$24 sps:$4 sm:$0xff]  }
 0x12a   :  { %7332 = vmatprep.subr.bf16.mxu0 %v21045_v53  ;;  %v21134_v53 = vld [vmem:[#allocation2 + $0x1e8] ss:$24 sps:$4 sm:$0xff]  }
 0x12c   :  { %7292 = vmatpush1.bf16.msra.mxu1 %v21047_v54  ;;  %v21139_v54 = vld [vmem:[#allocation2 + $0x814] ss:$24 sps:$4 sm:$0xff]  }
 0x12d   :  { %7333 = vmatpush1.bf16.msra.mxu0 %v21048_v55  ;;  %7293 = vmatprep.subr.bf16.mxu1 %v21049_v56  ;;  %v21142_v55 = vld [vmem:[#allocation2 + $0x21c] ss:$24 sps:$4 sm:$0xff]   ;;  %v21137_v56 = vld [vmem:[#allocation2 + $0x810] ss:$24 sps:$4 sm:$0xff]  }
 0x12e   :  { %7334 = vmatprep.subr.bf16.mxu0 %v21051_v57  ;;  %v21140_v57 = vld [vmem:[#allocation2 + $0x218] ss:$24 sps:$4 sm:$0xff]  }
 0x130   :  { %7294 = vmatpush1.bf16.msra.mxu1 %v21053_v58  ;;  %v21145_v58 = vld [vmem:[#allocation2 + $0x844] ss:$24 sps:$4 sm:$0xff]  }
 0x131   :  { %7335 = vmatpush1.bf16.msra.mxu0 %v21054_v59  ;;  %7295 = vmatprep.subr.bf16.mxu1 %v21055_v60  ;;  %v21148_v59 = vld [vmem:[#allocation2 + $0x24c] ss:$24 sps:$4 sm:$0xff]   ;;  %v21143_v60 = vld [vmem:[#allocation2 + $0x840] ss:$24 sps:$4 sm:$0xff]  }
 0x132   :  { %7336 = vmatprep.subr.bf16.mxu0 %v21057_v61  ;;  %v21146_v61 = vld [vmem:[#allocation2 + $0x248] ss:$24 sps:$4 sm:$0xff]  }
 0x134   :  { %7296 = vmatpush1.bf16.msra.mxu1 %v21059_v62  ;;  %v21151_v62 = vld [vmem:[#allocation2 + $0x874] ss:$24 sps:$4 sm:$0xff]  }
 0x135   :  { %7337 = vmatpush1.bf16.msra.mxu0 %v21060_v63  ;;  %7297 = vmatprep.subr.bf16.mxu1 %v21061_v0  ;;  %v21154_v63 = vld [vmem:[#allocation2 + $0x27c] ss:$24 sps:$4 sm:$0xff]   ;;  %v21149_v0 = vld [vmem:[#allocation2 + $0x870] ss:$24 sps:$4 sm:$0xff]  }
 0x136   :  { %7338 = vmatprep.subr.bf16.mxu0 %v21063_v1  ;;  %v21152_v1 = vld [vmem:[#allocation2 + $0x278] ss:$24 sps:$4 sm:$0xff]  }
 0x138   :  { %7298 = vmatpush1.bf16.msra.mxu1 %v21065_v2  ;;  %v21157_v2 = vld [vmem:[#allocation2 + $0x8a4] ss:$24 sps:$4 sm:$0xff]  }
 0x139   :  { %7339 = vmatpush1.bf16.msra.mxu0 %v21066_v3  ;;  %7759 = vmatprep.subr.bf16.mxu1 %v21074_v5  ;;  %v21160_v3 = vld [vmem:[#allocation2 + $0x2ac] ss:$24 sps:$4 sm:$0xff]   ;;  %v21158_v5 = vld [vmem:[#allocation2 + $0x2a8] ss:$24 sps:$4 sm:$0xff]  }
 0x13a   :  { %7349 = vmatprep.subr.bf16.mxu0 %v21071_v4  ;;  %v21155_v4 = vld [vmem:[#allocation2 + $0x8a0] ss:$24 sps:$4 sm:$0xff]  }
 0x13b   :  { %7300 = vmatmul.mubr.bf16.vlgmr.msra.gmra.mrb[0].mxu1 %v25233_v6 }
 0x13c   :  { %7341 = vmatmul.mubr.bf16.vlgmr.msra.gmra.mrb[0].mxu0 %v25235_v7  ;;  %7760 = vmatpush1.bf16.msra.mxu1 %v21072_v9  ;;  %v21166_v9 = vld [vmem:[#allocation2 + $0x2dc] ss:$24 sps:$4 sm:$0xff]  }
 0x13d   :  { %7350 = vmatpush1.bf16.msra.mxu0 %v21069_v8  ;;  %7761 = vmatprep.subr.bf16.mxu1 %v21082_v11  ;;  %v21163_v8 = vld [vmem:[#allocation2 + $0x8d4] ss:$24 sps:$4 sm:$0xff]   ;;  %v21164_v11 = vld [vmem:[#allocation2 + $0x2d8] ss:$24 sps:$4 sm:$0xff]  }
 0x13e   :  { %7351 = vmatprep.subr.bf16.mxu0 %v21079_v10  ;;  %7791 = vmatprep.mubr.bf16.mxu1 %v25224_v47  ;;  %v21161_v10 = vld [vmem:[#allocation2 + $0x8d0] ss:$24 sps:$4 sm:$0xff]  }
 0x13f   :  { %7381 = vmatprep.mubr.bf16.mxu0 %v25247_v34 }
 0x140   :  { %7762 = vmatpush1.bf16.msra.mxu1 %v21080_v13  ;;  %v21174_v13 = vld [vmem:[#allocation2 + $0x30c] ss:$24 sps:$4 sm:$0xff]  }
 0x141   :  { %7352 = vmatpush1.bf16.msra.mxu0 %v21077_v12  ;;  %7763 = vmatprep.subr.bf16.mxu1 %v21088_v15  ;;  %v21171_v12 = vld [vmem:[#allocation2 + $0x904] ss:$24 sps:$4 sm:$0xff]   ;;  %v21169_v15 = vld [vmem:[#allocation2 + $0x900] ss:$24 sps:$4 sm:$0xff]  }
 0x142   :  { %7353 = vmatprep.subr.bf16.mxu0 %v21085_v14  ;;  %v25252_v14 = vcombine.low %v25243_v32, %v25243_v32  ;;  %v21198_v32 = vld [vmem:[#allocation2 + $0x3cc] ss:$24 sps:$4 sm:$0xff]  }
 0x144   :  { %7764 = vmatpush1.bf16.msra.mxu1 %v21086_v17  ;;  %v21177_v17 = vld [vmem:[#allocation2 + $0x934] ss:$24 sps:$4 sm:$0xff]  }
 0x145   :  { %7354 = vmatpush1.bf16.msra.mxu0 %v21083_v16  ;;  %7765 = vmatprep.subr.bf16.mxu1 %v21094_v19  ;;  %v21172_v16 = vld [vmem:[#allocation2 + $0x308] ss:$24 sps:$4 sm:$0xff]   ;;  %v25257_v19 = vld [vmem:[%s25657_s0 + $0x18] sm:$0xff] }
 0x146   :  { %7355 = vmatprep.subr.bf16.mxu0 %v21091_v18  ;;  %v21180_v18 = vld [vmem:[#allocation2 + $0x33c] ss:$24 sps:$4 sm:$0xff]  }
 0x148   :  { %7766 = vmatpush1.bf16.msra.mxu1 %v21092_v21  ;;  %v21175_v21 = vld [vmem:[#allocation2 + $0x930] ss:$24 sps:$4 sm:$0xff]  }
 0x149   :  { %7356 = vmatpush1.bf16.msra.mxu0 %v21089_v20  ;;  %7767 = vmatprep.subr.bf16.mxu1 %v21100_v23  ;;  %v25261_v20 = vcombine.high %v25257_v19, %v25257_v19  ;;  %v21183_v23 = vld [vmem:[#allocation2 + $0x964] ss:$24 sps:$4 sm:$0xff]  }
 0x14a   :  { %7357 = vmatprep.subr.bf16.mxu0 %v21097_v22  ;;  %v21178_v22 = vld [vmem:[#allocation2 + $0x338] ss:$24 sps:$4 sm:$0xff]  }
 0x14c   :  { %7768 = vmatpush1.bf16.msra.mxu1 %v21098_v25  ;;  %v21181_v25 = vld [vmem:[#allocation2 + $0x960] ss:$24 sps:$4 sm:$0xff]  }
 0x14d   :  { %7358 = vmatpush1.bf16.msra.mxu0 %v21095_v24  ;;  %7769 = vmatprep.subr.bf16.mxu1 %v21106_v27  ;;  %v21186_v24 = vld [vmem:[#allocation2 + $0x36c] ss:$24 sps:$4 sm:$0xff]  }
 0x14e   :  { %7359 = vmatprep.subr.bf16.mxu0 %v21103_v26  ;;  %v21184_v26 = vld [vmem:[#allocation2 + $0x368] ss:$24 sps:$4 sm:$0xff]   ;;  %v21189_v27 = vld [vmem:[#allocation2 + $0x994] ss:$24 sps:$4 sm:$0xff]  }
 0x150   :  { %7770 = vmatpush1.bf16.msra.mxu1 %v21104_v29  ;;  %v21187_v29 = vld [vmem:[#allocation2 + $0x990] ss:$24 sps:$4 sm:$0xff]  }
 0x151   :  { %7360 = vmatpush1.bf16.msra.mxu0 %v21101_v28  ;;  %7771 = vmatprep.subr.bf16.mxu1 %v21112_v31  ;;  %v21192_v28 = vld [vmem:[#allocation2 + $0x39c] ss:$24 sps:$4 sm:$0xff]  }
 0x152   :  { %7361 = vmatprep.subr.bf16.mxu0 %v21109_v30  ;;  %v21190_v30 = vld [vmem:[#allocation2 + $0x398] ss:$24 sps:$4 sm:$0xff]   ;;  %v21195_v31 = vld [vmem:[#allocation2 + $0x9c4] ss:$24 sps:$4 sm:$0xff]  }
 0x154   :  { %7772 = vmatpush1.bf16.msra.mxu1 %v21110_v35  ;;  %v21196_v35 = vld [vmem:[#allocation2 + $0x3c8] ss:$24 sps:$4 sm:$0xff]  }
 0x155   :  { %7362 = vmatpush1.bf16.msra.mxu0 %v21107_v33  ;;  %7773 = vmatprep.subr.bf16.mxu1 %v21118_v37  ;;  %v21193_v33 = vld [vmem:[#allocation2 + $0x9c0] ss:$24 sps:$4 sm:$0xff]   ;;  %v21204_v37 = vld [vmem:[#allocation2 + $0x3fc] ss:$24 sps:$4 sm:$0xff]  }
 0x156   :  { %7363 = vmatprep.subr.bf16.mxu0 %v21115_v36  ;;  %v21201_v36 = vld [vmem:[#allocation2 + $0x9f4] ss:$24 sps:$4 sm:$0xff]  }
 0x158   :  { %7774 = vmatpush1.bf16.msra.mxu1 %v21116_v39  ;;  %v21202_v39 = vld [vmem:[#allocation2 + $0x3f8] ss:$24 sps:$4 sm:$0xff]  }
 0x159   :  { %7364 = vmatpush1.bf16.msra.mxu0 %v21113_v38  ;;  %7775 = vmatprep.subr.bf16.mxu1 %v21124_v41  ;;  %v21199_v38 = vld [vmem:[#allocation2 + $0x9f0] ss:$24 sps:$4 sm:$0xff]   ;;  %v21210_v41 = vld [vmem:[#allocation2 + $0x42c] ss:$24 sps:$4 sm:$0xff]  }
 0x15a   :  { %7365 = vmatprep.subr.bf16.mxu0 %v21121_v40  ;;  %v21207_v40 = vld [vmem:[#allocation2 + $0xa24] ss:$24 sps:$4 sm:$0xff]  }
 0x15c   :  { %7776 = vmatpush1.bf16.msra.mxu1 %v21122_v43  ;;  %v21208_v43 = vld [vmem:[#allocation2 + $0x428] ss:$24 sps:$4 sm:$0xff]  }
 0x15d   :  { %7366 = vmatpush1.bf16.msra.mxu0 %v21119_v42  ;;  %7777 = vmatprep.subr.bf16.mxu1 %v21130_v45  ;;  %v21205_v42 = vld [vmem:[#allocation2 + $0xa20] ss:$24 sps:$4 sm:$0xff]   ;;  %v21216_v45 = vld [vmem:[#allocation2 + $0x45c] ss:$24 sps:$4 sm:$0xff]  }
 0x15e   :  { %7367 = vmatprep.subr.bf16.mxu0 %v21127_v44  ;;  %v21213_v44 = vld [vmem:[#allocation2 + $0xa54] ss:$24 sps:$4 sm:$0xff]  }
 0x160   :  { %7778 = vmatpush1.bf16.msra.mxu1 %v21128_v48  ;;  %v21214_v48 = vld [vmem:[#allocation2 + $0x458] ss:$24 sps:$4 sm:$0xff]  }
 0x161   :  { %7368 = vmatpush1.bf16.msra.mxu0 %v21125_v46  ;;  %7779 = vmatprep.subr.bf16.mxu1 %v21136_v50  ;;  %v21211_v46 = vld [vmem:[#allocation2 + $0xa50] ss:$24 sps:$4 sm:$0xff]   ;;  %v21222_v50 = vld [vmem:[#allocation2 + $0x48c] ss:$24 sps:$4 sm:$0xff]  }
 0x162   :  { %7369 = vmatprep.subr.bf16.mxu0 %v21133_v49  ;;  %v21219_v49 = vld [vmem:[#allocation2 + $0xa84] ss:$24 sps:$4 sm:$0xff]  }
 0x164   :  { %7780 = vmatpush1.bf16.msra.mxu1 %v21134_v53  ;;  %v21220_v53 = vld [vmem:[#allocation2 + $0x488] ss:$24 sps:$4 sm:$0xff]  }
 0x165   :  { %7370 = vmatpush1.bf16.msra.mxu0 %v21131_v52  ;;  %7781 = vmatprep.subr.bf16.mxu1 %v21142_v55  ;;  %v21217_v52 = vld [vmem:[#allocation2 + $0xa80] ss:$24 sps:$4 sm:$0xff]   ;;  %v21228_v55 = vld [vmem:[#allocation2 + $0x4bc] ss:$24 sps:$4 sm:$0xff]  }
 0x166   :  { %7371 = vmatprep.subr.bf16.mxu0 %v21139_v54  ;;  %v21225_v54 = vld [vmem:[#allocation2 + $0xab4] ss:$24 sps:$4 sm:$0xff]  }
 0x168   :  { %7782 = vmatpush1.bf16.msra.mxu1 %v21140_v57  ;;  %v21226_v57 = vld [vmem:[#allocation2 + $0x4b8] ss:$24 sps:$4 sm:$0xff]  }
 0x169   :  { %7372 = vmatpush1.bf16.msra.mxu0 %v21137_v56  ;;  %7783 = vmatprep.subr.bf16.mxu1 %v21148_v59  ;;  %v21223_v56 = vld [vmem:[#allocation2 + $0xab0] ss:$24 sps:$4 sm:$0xff]   ;;  %v21234_v59 = vld [vmem:[#allocation2 + $0x4ec] ss:$24 sps:$4 sm:$0xff]  }
 0x16a   :  { %7373 = vmatprep.subr.bf16.mxu0 %v21145_v58  ;;  %v21231_v58 = vld [vmem:[#allocation2 + $0xae4] ss:$24 sps:$4 sm:$0xff]  }
 0x16c   :  { %7784 = vmatpush1.bf16.msra.mxu1 %v21146_v61  ;;  %v21232_v61 = vld [vmem:[#allocation2 + $0x4e8] ss:$24 sps:$4 sm:$0xff]  }
 0x16d   :  { %7374 = vmatpush1.bf16.msra.mxu0 %v21143_v60  ;;  %7785 = vmatprep.subr.bf16.mxu1 %v21154_v63  ;;  %v21229_v60 = vld [vmem:[#allocation2 + $0xae0] ss:$24 sps:$4 sm:$0xff]   ;;  %v21240_v63 = vld [vmem:[#allocation2 + $0x51c] ss:$24 sps:$4 sm:$0xff]  }
 0x16e   :  { %7375 = vmatprep.subr.bf16.mxu0 %v21151_v62  ;;  %v21237_v62 = vld [vmem:[#allocation2 + $0xb14] ss:$24 sps:$4 sm:$0xff]  }
 0x170   :  { %7786 = vmatpush1.bf16.msra.mxu1 %v21152_v1  ;;  %v21238_v1 = vld [vmem:[#allocation2 + $0x518] ss:$24 sps:$4 sm:$0xff]  }
 0x171   :  { %7376 = vmatpush1.bf16.msra.mxu0 %v21149_v0  ;;  %7787 = vmatprep.subr.bf16.mxu1 %v21160_v3  ;;  %v21235_v0 = vld [vmem:[#allocation2 + $0xb10] ss:$24 sps:$4 sm:$0xff]   ;;  %v21246_v3 = vld [vmem:[#allocation2 + $0x54c] ss:$24 sps:$4 sm:$0xff]  }
 0x172   :  { %7377 = vmatprep.subr.bf16.mxu0 %v21157_v2  ;;  %v21243_v2 = vld [vmem:[#allocation2 + $0xb44] ss:$24 sps:$4 sm:$0xff]  }
 0x174   :  { %7788 = vmatpush1.bf16.msra.mxu1 %v21158_v5  ;;  %v21244_v5 = vld [vmem:[#allocation2 + $0x548] ss:$24 sps:$4 sm:$0xff]  }
 0x175   :  { %7378 = vmatpush1.bf16.msra.mxu0 %v21155_v4  ;;  %7789 = vmatprep.subr.bf16.mxu1 %v21166_v9  ;;  %v21241_v4 = vld [vmem:[#allocation2 + $0xb40] ss:$24 sps:$4 sm:$0xff]   ;;  %v21252_v9 = vld [vmem:[#allocation2 + $0x57c] ss:$24 sps:$4 sm:$0xff]  }
 0x176   :  { %7379 = vmatprep.subr.bf16.mxu0 %v21163_v8  ;;  %v21249_v8 = vld [vmem:[#allocation2 + $0xb74] ss:$24 sps:$4 sm:$0xff]  }
 0x178   :  { %7790 = vmatpush1.bf16.msra.mxu1 %v21164_v11  ;;  %v21250_v11 = vld [vmem:[#allocation2 + $0x578] ss:$24 sps:$4 sm:$0xff]  }
 0x179   :  { %7380 = vmatpush1.bf16.msra.mxu0 %v21161_v10  ;;  %7800 = vmatprep.subr.bf16.mxu1 %v21174_v13  ;;  %v21247_v10 = vld [vmem:[#allocation2 + $0xb70] ss:$24 sps:$4 sm:$0xff]   ;;  %v21258_v13 = vld [vmem:[#allocation2 + $0x5ac] ss:$24 sps:$4 sm:$0xff]  }
 0x17a   :  { %7390 = vmatprep.subr.bf16.mxu0 %v21171_v12  ;;  %v21255_v12 = vld [vmem:[#allocation2 + $0xba4] ss:$24 sps:$4 sm:$0xff]  }
 0x17b   :  { %7792 = vmatmul.mubr.bf16.vlgmr.msra.gmra.mrb[4].mxu1 %v25233_v6 }
 0x17c   :  { %7382 = vmatmul.mubr.bf16.vlgmr.msra.gmra.mrb[0].mxu0 %v25252_v14  ;;  %7801 = vmatpush1.bf16.msra.mxu1 %v21172_v16  ;;  %v21256_v16 = vld [vmem:[#allocation2 + $0x5a8] ss:$24 sps:$4 sm:$0xff]  }
 0x17d   :  { %7391 = vmatpush1.bf16.msra.mxu0 %v21169_v15  ;;  %7802 = vmatprep.subr.bf16.mxu1 %v21180_v18  ;;  %v21253_v15 = vld [vmem:[#allocation2 + $0xba0] ss:$24 sps:$4 sm:$0xff]   ;;  %v21264_v18 = vld [vmem:[#allocation2 + $0x5dc] ss:$24 sps:$4 sm:$0xff]  }
 0x17e   :  { %7392 = vmatprep.subr.bf16.mxu0 %v21177_v17  ;;  %7422 = vmatprep.mubr.bf16.mxu0 %v25261_v20  ;;  %v21261_v17 = vld [vmem:[#allocation2 + $0xbd4] ss:$24 sps:$4 sm:$0xff]  }
 0x17f   :  { %7832 = vmatprep.mubr.bf16.mxu1 %v25229_v51 }
 0x180   :  { %7803 = vmatpush1.bf16.msra.mxu1 %v21178_v22  ;;  %v21262_v22 = vld [vmem:[#allocation2 + $0x5d8] ss:$24 sps:$4 sm:$0xff]  }
 0x181   :  { %7393 = vmatpush1.bf16.msra.mxu0 %v21175_v21  ;;  %7804 = vmatprep.subr.bf16.mxu1 %v21186_v24  ;;  %v21259_v21 = vld [vmem:[#allocation2 + $0xbd0] ss:$24 sps:$4 sm:$0xff]   ;;  %v21272_v24 = vld [vmem:[#allocation2 + $0x60c] ss:$24 sps:$4 sm:$0xff]  }
 0x182   :  { %7394 = vmatprep.subr.bf16.mxu0 %v21183_v23  ;;  %v21269_v23 = vld [vmem:[#allocation2 + $0xc04] ss:$24 sps:$4 sm:$0xff]  }
 0x184   :  { %7805 = vmatpush1.bf16.msra.mxu1 %v21184_v26  ;;  %v25269_v26 = vcombine.low %v25257_v19, %v25257_v19  ;;  %v21273_v19 = vld [vmem:[#allocation2 + $0xc30] ss:$24 sps:$4 sm:$0xff]  }
 0x185   :  { %7395 = vmatpush1.bf16.msra.mxu0 %v21181_v25  ;;  %7806 = vmatprep.subr.bf16.mxu1 %v21192_v28  ;;  %v21267_v25 = vld [vmem:[#allocation2 + $0xc00] ss:$24 sps:$4 sm:$0xff]  }
 0x186   :  { %7396 = vmatprep.subr.bf16.mxu0 %v21189_v27  ;;  %v25274_v27 = vld [vmem:[%s25657_s0 + $0x20] sm:$0xff] }
 0x187   :  { %v21270_v28 = vld [vmem:[#allocation2 + $0x608] ss:$24 sps:$4 sm:$0xff]  }
 0x188   :  { %7807 = vmatpush1.bf16.msra.mxu1 %v21190_v30  ;;  %v21278_v30 = vld [vmem:[#allocation2 + $0x63c] ss:$24 sps:$4 sm:$0xff]  }
 0x189   :  { %7397 = vmatpush1.bf16.msra.mxu0 %v21187_v29  ;;  %7808 = vmatprep.subr.bf16.mxu1 %v21198_v32  ;;  %v21275_v29 = vld [vmem:[#allocation2 + $0xc34] ss:$24 sps:$4 sm:$0xff]   ;;  %v21276_v32 = vld [vmem:[#allocation2 + $0x638] ss:$24 sps:$4 sm:$0xff]  }
 0x18a   :  { %7398 = vmatprep.subr.bf16.mxu0 %v21195_v31  ;;  %v25278_v31 = vcombine.high %v25274_v27, %v25274_v27 }
 0x18c   :  { %7809 = vmatpush1.bf16.msra.mxu1 %v21196_v35  ;;  %v21284_v35 = vld [vmem:[#allocation2 + $0x66c] ss:$24 sps:$4 sm:$0xff]  }
 0x18d   :  { %7399 = vmatpush1.bf16.msra.mxu0 %v21193_v33  ;;  %7810 = vmatprep.subr.bf16.mxu1 %v21204_v37  ;;  %v21281_v33 = vld [vmem:[#allocation2 + $0xc64] ss:$24 sps:$4 sm:$0xff]   ;;  %v21282_v37 = vld [vmem:[#allocation2 + $0x668] ss:$24 sps:$4 sm:$0xff]  }
 0x18e   :  { %7400 = vmatprep.subr.bf16.mxu0 %v21201_v36  ;;  %v21279_v36 = vld [vmem:[#allocation2 + $0xc60] ss:$24 sps:$4 sm:$0xff]  }
 0x190   :  { %7811 = vmatpush1.bf16.msra.mxu1 %v21202_v39  ;;  %v21290_v39 = vld [vmem:[#allocation2 + $0x69c] ss:$24 sps:$4 sm:$0xff]  }
 0x191   :  { %7401 = vmatpush1.bf16.msra.mxu0 %v21199_v38  ;;  %7812 = vmatprep.subr.bf16.mxu1 %v21210_v41  ;;  %v21287_v38 = vld [vmem:[#allocation2 + $0xc94] ss:$24 sps:$4 sm:$0xff]   ;;  %v21288_v41 = vld [vmem:[#allocation2 + $0x698] ss:$24 sps:$4 sm:$0xff]  }
 0x192   :  { %7402 = vmatprep.subr.bf16.mxu0 %v21207_v40  ;;  %v21285_v40 = vld [vmem:[#allocation2 + $0xc90] ss:$24 sps:$4 sm:$0xff]  }
 0x194   :  { %7813 = vmatpush1.bf16.msra.mxu1 %v21208_v43  ;;  %v21296_v43 = vld [vmem:[#allocation2 + $0x6cc] ss:$24 sps:$4 sm:$0xff]  }
 0x195   :  { %7403 = vmatpush1.bf16.msra.mxu0 %v21205_v42  ;;  %7814 = vmatprep.subr.bf16.mxu1 %v21216_v45  ;;  %v21293_v42 = vld [vmem:[#allocation2 + $0xcc4] ss:$24 sps:$4 sm:$0xff]   ;;  %v21294_v45 = vld [vmem:[#allocation2 + $0x6c8] ss:$24 sps:$4 sm:$0xff]  }
 0x196   :  { %7404 = vmatprep.subr.bf16.mxu0 %v21213_v44  ;;  %v21291_v44 = vld [vmem:[#allocation2 + $0xcc0] ss:$24 sps:$4 sm:$0xff]  }
 0x198   :  { %7815 = vmatpush1.bf16.msra.mxu1 %v21214_v48  ;;  %v21302_v48 = vld [vmem:[#allocation2 + $0x6fc] ss:$24 sps:$4 sm:$0xff]  }
 0x199   :  { %7405 = vmatpush1.bf16.msra.mxu0 %v21211_v46  ;;  %7816 = vmatprep.subr.bf16.mxu1 %v21222_v50  ;;  %v21299_v46 = vld [vmem:[#allocation2 + $0xcf4] ss:$24 sps:$4 sm:$0xff]   ;;  %v21300_v50 = vld [vmem:[#allocation2 + $0x6f8] ss:$24 sps:$4 sm:$0xff]  }
 0x19a   :  { %7406 = vmatprep.subr.bf16.mxu0 %v21219_v49  ;;  %v21297_v49 = vld [vmem:[#allocation2 + $0xcf0] ss:$24 sps:$4 sm:$0xff]  }
 0x19c   :  { %7817 = vmatpush1.bf16.msra.mxu1 %v21220_v53  ;;  %v21308_v53 = vld [vmem:[#allocation2 + $0x72c] ss:$24 sps:$4 sm:$0xff]  }
 0x19d   :  { %7407 = vmatpush1.bf16.msra.mxu0 %v21217_v52  ;;  %7818 = vmatprep.subr.bf16.mxu1 %v21228_v55  ;;  %v21305_v52 = vld [vmem:[#allocation2 + $0xd24] ss:$24 sps:$4 sm:$0xff]   ;;  %v21306_v55 = vld [vmem:[#allocation2 + $0x728] ss:$24 sps:$4 sm:$0xff]  }
 0x19e   :  { %7408 = vmatprep.subr.bf16.mxu0 %v21225_v54  ;;  %v21303_v54 = vld [vmem:[#allocation2 + $0xd20] ss:$24 sps:$4 sm:$0xff]  }
 0x1a0   :  { %7819 = vmatpush1.bf16.msra.mxu1 %v21226_v57  ;;  %v21314_v57 = vld [vmem:[#allocation2 + $0x75c] ss:$24 sps:$4 sm:$0xff]  }
 0x1a1   :  { %7409 = vmatpush1.bf16.msra.mxu0 %v21223_v56  ;;  %7820 = vmatprep.subr.bf16.mxu1 %v21234_v59  ;;  %v21311_v56 = vld [vmem:[#allocation2 + $0xd54] ss:$24 sps:$4 sm:$0xff]   ;;  %v21312_v59 = vld [vmem:[#allocation2 + $0x758] ss:$24 sps:$4 sm:$0xff]  }
 0x1a2   :  { %7410 = vmatprep.subr.bf16.mxu0 %v21231_v58  ;;  %v21309_v58 = vld [vmem:[#allocation2 + $0xd50] ss:$24 sps:$4 sm:$0xff]  }
 0x1a4   :  { %7821 = vmatpush1.bf16.msra.mxu1 %v21232_v61  ;;  %v21320_v61 = vld [vmem:[#allocation2 + $0x78c] ss:$24 sps:$4 sm:$0xff]  }
 0x1a5   :  { %7411 = vmatpush1.bf16.msra.mxu0 %v21229_v60  ;;  %7822 = vmatprep.subr.bf16.mxu1 %v21240_v63  ;;  %v21317_v60 = vld [vmem:[#allocation2 + $0xd84] ss:$24 sps:$4 sm:$0xff]   ;;  %v21318_v63 = vld [vmem:[#allocation2 + $0x788] ss:$24 sps:$4 sm:$0xff]  }
 0x1a6   :  { %7412 = vmatprep.subr.bf16.mxu0 %v21237_v62  ;;  %v21315_v62 = vld [vmem:[#allocation2 + $0xd80] ss:$24 sps:$4 sm:$0xff]  }
 0x1a8   :  { %7823 = vmatpush1.bf16.msra.mxu1 %v21238_v1  ;;  %v21326_v1 = vld [vmem:[#allocation2 + $0x7bc] ss:$24 sps:$4 sm:$0xff]  }
 0x1a9   :  { %7413 = vmatpush1.bf16.msra.mxu0 %v21235_v0  ;;  %7824 = vmatprep.subr.bf16.mxu1 %v21246_v3  ;;  %v21323_v0 = vld [vmem:[#allocation2 + $0xdb4] ss:$24 sps:$4 sm:$0xff]   ;;  %v21324_v3 = vld [vmem:[#allocation2 + $0x7b8] ss:$24 sps:$4 sm:$0xff]  }
 0x1aa   :  { %7414 = vmatprep.subr.bf16.mxu0 %v21243_v2  ;;  %v21321_v2 = vld [vmem:[#allocation2 + $0xdb0] ss:$24 sps:$4 sm:$0xff]  }
 0x1ac   :  { %7825 = vmatpush1.bf16.msra.mxu1 %v21244_v5  ;;  %v21332_v5 = vld [vmem:[#allocation2 + $0x7ec] ss:$24 sps:$4 sm:$0xff]  }
 0x1ad   :  { %7415 = vmatpush1.bf16.msra.mxu0 %v21241_v4  ;;  %7826 = vmatprep.subr.bf16.mxu1 %v21252_v9  ;;  %v21329_v4 = vld [vmem:[#allocation2 + $0xde4] ss:$24 sps:$4 sm:$0xff]   ;;  %v21330_v9 = vld [vmem:[#allocation2 + $0x7e8] ss:$24 sps:$4 sm:$0xff]  }
 0x1ae   :  { %7416 = vmatprep.subr.bf16.mxu0 %v21249_v8  ;;  %v21327_v8 = vld [vmem:[#allocation2 + $0xde0] ss:$24 sps:$4 sm:$0xff]  }
 0x1b0   :  { %7827 = vmatpush1.bf16.msra.mxu1 %v21250_v11  ;;  %v21338_v11 = vld [vmem:[#allocation2 + $0x81c] ss:$24 sps:$4 sm:$0xff]  }
 0x1b1   :  { %7417 = vmatpush1.bf16.msra.mxu0 %v21247_v10  ;;  %7828 = vmatprep.subr.bf16.mxu1 %v21258_v13  ;;  %v21335_v10 = vld [vmem:[#allocation2 + $0xe14] ss:$24 sps:$4 sm:$0xff]   ;;  %v21336_v13 = vld [vmem:[#allocation2 + $0x818] ss:$24 sps:$4 sm:$0xff]  }
 0x1b2   :  { %7418 = vmatprep.subr.bf16.mxu0 %v21255_v12  ;;  %v21333_v12 = vld [vmem:[#allocation2 + $0xe10] ss:$24 sps:$4 sm:$0xff]  }
 0x1b4   :  { %7829 = vmatpush1.bf16.msra.mxu1 %v21256_v16  ;;  %v21344_v16 = vld [vmem:[#allocation2 + $0x84c] ss:$24 sps:$4 sm:$0xff]  }
 0x1b5   :  { %7419 = vmatpush1.bf16.msra.mxu0 %v21253_v15  ;;  %7830 = vmatprep.subr.bf16.mxu1 %v21264_v18  ;;  %v21341_v15 = vld [vmem:[#allocation2 + $0xe44] ss:$24 sps:$4 sm:$0xff]   ;;  %v21342_v18 = vld [vmem:[#allocation2 + $0x848] ss:$24 sps:$4 sm:$0xff]  }
 0x1b6   :  { %7420 = vmatprep.subr.bf16.mxu0 %v21261_v17  ;;  %v21339_v17 = vld [vmem:[#allocation2 + $0xe40] ss:$24 sps:$4 sm:$0xff]  }
 0x1b8   :  { %7831 = vmatpush1.bf16.msra.mxu1 %v21262_v22  ;;  %v21350_v22 = vld [vmem:[#allocation2 + $0x87c] ss:$24 sps:$4 sm:$0xff]  }
 0x1b9   :  { %7421 = vmatpush1.bf16.msra.mxu0 %v21259_v21  ;;  %7841 = vmatprep.subr.bf16.mxu1 %v21272_v24  ;;  %v21347_v21 = vld [vmem:[#allocation2 + $0xe74] ss:$24 sps:$4 sm:$0xff]   ;;  %v21348_v24 = vld [vmem:[#allocation2 + $0x878] ss:$24 sps:$4 sm:$0xff]  }
 0x1ba   :  { %7431 = vmatprep.subr.bf16.mxu0 %v21269_v23  ;;  %v21345_v23 = vld [vmem:[#allocation2 + $0xe70] ss:$24 sps:$4 sm:$0xff]  }
 0x1bb   :  { %7833 = vmatmul.mubr.bf16.vlgmr.msra.gmra.mrb[4].mxu1 %v25235_v7 }
 0x1bc   :  { %7423 = vmatmul.mubr.bf16.vlgmr.msra.gmra.mrb[0].mxu0 %v25269_v26  ;;  %7842 = vmatpush1.bf16.msra.mxu1 %v21270_v28  ;;  %v21356_v28 = vld [vmem:[#allocation2 + $0x8ac] ss:$24 sps:$4 sm:$0xff]  }
 0x1bd   :  { %7432 = vmatpush1.bf16.msra.mxu0 %v21267_v25  ;;  %7843 = vmatprep.subr.bf16.mxu1 %v21278_v30  ;;  %v21353_v25 = vld [vmem:[#allocation2 + $0xea4] ss:$24 sps:$4 sm:$0xff]   ;;  %v21354_v30 = vld [vmem:[#allocation2 + $0x8a8] ss:$24 sps:$4 sm:$0xff]  }
 0x1be   :  { %7433 = vmatprep.subr.bf16.mxu0 %v21275_v29  ;;  %7463 = vmatprep.mubr.bf16.mxu0 %v25278_v31  ;;  %v21351_v29 = vld [vmem:[#allocation2 + $0xea0] ss:$24 sps:$4 sm:$0xff]  }
 0x1bf   :  { %7873 = vmatprep.mubr.bf16.mxu1 %v25247_v34 }
 0x1c0   :  { %7844 = vmatpush1.bf16.msra.mxu1 %v21276_v32  ;;  %v21362_v32 = vld [vmem:[#allocation2 + $0x8dc] ss:$24 sps:$4 sm:$0xff]  }
 0x1c1   :  { %7434 = vmatpush1.bf16.msra.mxu0 %v21273_v19  ;;  %7845 = vmatprep.subr.bf16.mxu1 %v21284_v35  ;;  %v21359_v19 = vld [vmem:[#allocation2 + $0xed4] ss:$24 sps:$4 sm:$0xff]   ;;  %v21360_v35 = vld [vmem:[#allocation2 + $0x8d8] ss:$24 sps:$4 sm:$0xff]  }
 0x1c2   :  { %7435 = vmatprep.subr.bf16.mxu0 %v21281_v33  ;;  %v21357_v33 = vld [vmem:[#allocation2 + $0xed0] ss:$24 sps:$4 sm:$0xff]  }
 0x1c4   :  { %7846 = vmatpush1.bf16.msra.mxu1 %v21282_v37  ;;  %v21370_v37 = vld [vmem:[#allocation2 + $0x90c] ss:$24 sps:$4 sm:$0xff]  }
 0x1c5   :  { %7436 = vmatpush1.bf16.msra.mxu0 %v21279_v36  ;;  %7847 = vmatprep.subr.bf16.mxu1 %v21290_v39  ;;  %v21367_v36 = vld [vmem:[#allocation2 + $0xf04] ss:$24 sps:$4 sm:$0xff]   ;;  %v25291_v39 = vld [vmem:[%s25657_s0 + $0x28] sm:$0xff] }
 0x1c6   :  { %7437 = vmatprep.subr.bf16.mxu0 %v21287_v38  ;;  %v25286_v38 = vcombine.low %v25274_v27, %v25274_v27  ;;  %v21371_v27 = vld [vmem:[#allocation2 + $0xf30] ss:$24 sps:$4 sm:$0xff]  }
 0x1c8   :  { %7848 = vmatpush1.bf16.msra.mxu1 %v21288_v41  ;;  %v21368_v41 = vld [vmem:[#allocation2 + $0x908] ss:$24 sps:$4 sm:$0xff]  }
 0x1c9   :  { %7438 = vmatpush1.bf16.msra.mxu0 %v21285_v40  ;;  %7849 = vmatprep.subr.bf16.mxu1 %v21296_v43  ;;  %v21365_v40 = vld [vmem:[#allocation2 + $0xf00] ss:$24 sps:$4 sm:$0xff]   ;;  %v21376_v43 = vld [vmem:[#allocation2 + $0x93c] ss:$24 sps:$4 sm:$0xff]  }
 0x1ca   :  { %7439 = vmatprep.subr.bf16.mxu0 %v21293_v42  ;;  %v21373_v42 = vld [vmem:[#allocation2 + $0xf34] ss:$24 sps:$4 sm:$0xff]  }
 0x1cc   :  { %7850 = vmatpush1.bf16.msra.mxu1 %v21294_v45  ;;  %v21374_v45 = vld [vmem:[#allocation2 + $0x938] ss:$24 sps:$4 sm:$0xff]  }
 0x1cd   :  { %7440 = vmatpush1.bf16.msra.mxu0 %v21291_v44  ;;  %7851 = vmatprep.subr.bf16.mxu1 %v21302_v48  ;;  %v25295_v44 = vcombine.high %v25291_v39, %v25291_v39  ;;  %v21382_v48 = vld [vmem:[#allocation2 + $0x96c] ss:$24 sps:$4 sm:$0xff]  }
 0x1ce   :  { %7441 = vmatprep.subr.bf16.mxu0 %v21299_v46  ;;  %v21379_v46 = vld [vmem:[#allocation2 + $0xf64] ss:$24 sps:$4 sm:$0xff]  }
 0x1d0   :  { %7852 = vmatpush1.bf16.msra.mxu1 %v21300_v50  ;;  %v21380_v50 = vld [vmem:[#allocation2 + $0x968] ss:$24 sps:$4 sm:$0xff]  }
 0x1d1   :  { %7442 = vmatpush1.bf16.msra.mxu0 %v21297_v49  ;;  %7853 = vmatprep.subr.bf16.mxu1 %v21308_v53  ;;  %v21377_v49 = vld [vmem:[#allocation2 + $0xf60] ss:$24 sps:$4 sm:$0xff]   ;;  %v21388_v53 = vld [vmem:[#allocation2 + $0x99c] ss:$24 sps:$4 sm:$0xff]  }
 0x1d2   :  { %7443 = vmatprep.subr.bf16.mxu0 %v21305_v52  ;;  %v21385_v52 = vld [vmem:[#allocation2 + $0xf94] ss:$24 sps:$4 sm:$0xff]  }
 0x1d4   :  { %7854 = vmatpush1.bf16.msra.mxu1 %v21306_v55  ;;  %v21386_v55 = vld [vmem:[#allocation2 + $0x998] ss:$24 sps:$4 sm:$0xff]  }
 0x1d5   :  { %7444 = vmatpush1.bf16.msra.mxu0 %v21303_v54  ;;  %7855 = vmatprep.subr.bf16.mxu1 %v21314_v57  ;;  %v21383_v54 = vld [vmem:[#allocation2 + $0xf90] ss:$24 sps:$4 sm:$0xff]   ;;  %v21394_v57 = vld [vmem:[#allocation2 + $0x9cc] ss:$24 sps:$4 sm:$0xff]  }
 0x1d6   :  { %7445 = vmatprep.subr.bf16.mxu0 %v21311_v56  ;;  %v21391_v56 = vld [vmem:[#allocation2 + $0xfc4] ss:$24 sps:$4 sm:$0xff]  }
 0x1d8   :  { %7856 = vmatpush1.bf16.msra.mxu1 %v21312_v59  ;;  %v21392_v59 = vld [vmem:[#allocation2 + $0x9c8] ss:$24 sps:$4 sm:$0xff]  }
 0x1d9   :  { %7446 = vmatpush1.bf16.msra.mxu0 %v21309_v58  ;;  %7857 = vmatprep.subr.bf16.mxu1 %v21320_v61  ;;  %v21389_v58 = vld [vmem:[#allocation2 + $0xfc0] ss:$24 sps:$4 sm:$0xff]   ;;  %v21400_v61 = vld [vmem:[#allocation2 + $0x9fc] ss:$24 sps:$4 sm:$0xff]  }
 0x1da   :  { %7447 = vmatprep.subr.bf16.mxu0 %v21317_v60  ;;  %v21397_v60 = vld [vmem:[#allocation2 + $0xff4] ss:$24 sps:$4 sm:$0xff]  }
 0x1dc   :  { %7858 = vmatpush1.bf16.msra.mxu1 %v21318_v63  ;;  %v21398_v63 = vld [vmem:[#allocation2 + $0x9f8] ss:$24 sps:$4 sm:$0xff]  }
 0x1dd   :  { %7448 = vmatpush1.bf16.msra.mxu0 %v21315_v62  ;;  %7859 = vmatprep.subr.bf16.mxu1 %v21326_v1  ;;  %v21395_v62 = vld [vmem:[#allocation2 + $0xff0] ss:$24 sps:$4 sm:$0xff]   ;;  %v21406_v1 = vld [vmem:[#allocation2 + $0xa2c] ss:$24 sps:$4 sm:$0xff]  }
 0x1de   :  { %7449 = vmatprep.subr.bf16.mxu0 %v21323_v0  ;;  %v21403_v0 = vld [vmem:[#allocation2 + $0x1024] ss:$24 sps:$4 sm:$0xff]  }
 0x1e0   :  { %7860 = vmatpush1.bf16.msra.mxu1 %v21324_v3  ;;  %v21404_v3 = vld [vmem:[#allocation2 + $0xa28] ss:$24 sps:$4 sm:$0xff]  }
 0x1e1   :  { %7450 = vmatpush1.bf16.msra.mxu0 %v21321_v2  ;;  %7861 = vmatprep.subr.bf16.mxu1 %v21332_v5  ;;  %v21401_v2 = vld [vmem:[#allocation2 + $0x1020] ss:$24 sps:$4 sm:$0xff]   ;;  %v21412_v5 = vld [vmem:[#allocation2 + $0xa5c] ss:$24 sps:$4 sm:$0xff]  }
 0x1e2   :  { %7451 = vmatprep.subr.bf16.mxu0 %v21329_v4  ;;  %v21409_v4 = vld [vmem:[#allocation2 + $0x1054] ss:$24 sps:$4 sm:$0xff]  }
 0x1e4   :  { %7862 = vmatpush1.bf16.msra.mxu1 %v21330_v9  ;;  %v21410_v9 = vld [vmem:[#allocation2 + $0xa58] ss:$24 sps:$4 sm:$0xff]  }
 0x1e5   :  { %7452 = vmatpush1.bf16.msra.mxu0 %v21327_v8  ;;  %7863 = vmatprep.subr.bf16.mxu1 %v21338_v11  ;;  %v21407_v8 = vld [vmem:[#allocation2 + $0x1050] ss:$24 sps:$4 sm:$0xff]   ;;  %v21418_v11 = vld [vmem:[#allocation2 + $0xa8c] ss:$24 sps:$4 sm:$0xff]  }
 0x1e6   :  { %7453 = vmatprep.subr.bf16.mxu0 %v21335_v10  ;;  %v21415_v10 = vld [vmem:[#allocation2 + $0x1084] ss:$24 sps:$4 sm:$0xff]  }
 0x1e8   :  { %7864 = vmatpush1.bf16.msra.mxu1 %v21336_v13  ;;  %v21416_v13 = vld [vmem:[#allocation2 + $0xa88] ss:$24 sps:$4 sm:$0xff]  }
 0x1e9   :  { %7454 = vmatpush1.bf16.msra.mxu0 %v21333_v12  ;;  %7865 = vmatprep.subr.bf16.mxu1 %v21344_v16  ;;  %v21413_v12 = vld [vmem:[#allocation2 + $0x1080] ss:$24 sps:$4 sm:$0xff]   ;;  %v21424_v16 = vld [vmem:[#allocation2 + $0xabc] ss:$24 sps:$4 sm:$0xff]  }
 0x1ea   :  { %7455 = vmatprep.subr.bf16.mxu0 %v21341_v15  ;;  %v21421_v15 = vld [vmem:[#allocation2 + $0x10b4] ss:$24 sps:$4 sm:$0xff]  }
 0x1ec   :  { %7866 = vmatpush1.bf16.msra.mxu1 %v21342_v18  ;;  %v21422_v18 = vld [vmem:[#allocation2 + $0xab8] ss:$24 sps:$4 sm:$0xff]  }
 0x1ed   :  { %7456 = vmatpush1.bf16.msra.mxu0 %v21339_v17  ;;  %7867 = vmatprep.subr.bf16.mxu1 %v21350_v22  ;;  %v21419_v17 = vld [vmem:[#allocation2 + $0x10b0] ss:$24 sps:$4 sm:$0xff]   ;;  %v21430_v22 = vld [vmem:[#allocation2 + $0xaec] ss:$24 sps:$4 sm:$0xff]  }
 0x1ee   :  { %7457 = vmatprep.subr.bf16.mxu0 %v21347_v21  ;;  %v21427_v21 = vld [vmem:[#allocation2 + $0x10e4] ss:$24 sps:$4 sm:$0xff]  }
 0x1f0   :  { %7868 = vmatpush1.bf16.msra.mxu1 %v21348_v24  ;;  %v21428_v24 = vld [vmem:[#allocation2 + $0xae8] ss:$24 sps:$4 sm:$0xff]  }
 0x1f1   :  { %7458 = vmatpush1.bf16.msra.mxu0 %v21345_v23  ;;  %7869 = vmatprep.subr.bf16.mxu1 %v21356_v28  ;;  %v21425_v23 = vld [vmem:[#allocation2 + $0x10e0] ss:$24 sps:$4 sm:$0xff]   ;;  %v21436_v28 = vld [vmem:[#allocation2 + $0xb1c] ss:$24 sps:$4 sm:$0xff]  }
 0x1f2   :  { %7459 = vmatprep.subr.bf16.mxu0 %v21353_v25  ;;  %v21433_v25 = vld [vmem:[#allocation2 + $0x1114] ss:$24 sps:$4 sm:$0xff]  }
 0x1f4   :  { %7870 = vmatpush1.bf16.msra.mxu1 %v21354_v30  ;;  %v21434_v30 = vld [vmem:[#allocation2 + $0xb18] ss:$24 sps:$4 sm:$0xff]  }
 0x1f5   :  { %7460 = vmatpush1.bf16.msra.mxu0 %v21351_v29  ;;  %7871 = vmatprep.subr.bf16.mxu1 %v21362_v32  ;;  %v21431_v29 = vld [vmem:[#allocation2 + $0x1110] ss:$24 sps:$4 sm:$0xff]   ;;  %v21442_v32 = vld [vmem:[#allocation2 + $0xb4c] ss:$24 sps:$4 sm:$0xff]  }
 0x1f6   :  { %7461 = vmatprep.subr.bf16.mxu0 %v21359_v19  ;;  %v21439_v19 = vld [vmem:[#allocation2 + $0x1144] ss:$24 sps:$4 sm:$0xff]  }
 0x1f8   :  { %7872 = vmatpush1.bf16.msra.mxu1 %v21360_v35  ;;  %v21440_v35 = vld [vmem:[#allocation2 + $0xb48] ss:$24 sps:$4 sm:$0xff]  }
 0x1f9   :  { %7462 = vmatpush1.bf16.msra.mxu0 %v21357_v33  ;;  %7882 = vmatprep.subr.bf16.mxu1 %v21370_v37  ;;  %v21437_v33 = vld [vmem:[#allocation2 + $0x1140] ss:$24 sps:$4 sm:$0xff]   ;;  %v21448_v37 = vld [vmem:[#allocation2 + $0xb7c] ss:$24 sps:$4 sm:$0xff]  }
 0x1fa   :  { %7472 = vmatprep.subr.bf16.mxu0 %v21367_v36  ;;  %v21445_v36 = vld [vmem:[#allocation2 + $0x1174] ss:$24 sps:$4 sm:$0xff]  }
 0x1fb   :  { %7874 = vmatmul.mubr.bf16.vlgmr.msra.gmra.mrb[4].mxu1 %v25252_v14 }
 0x1fc   :  { %7464 = vmatmul.mubr.bf16.vlgmr.msra.gmra.mrb[0].mxu0 %v25286_v38  ;;  %7883 = vmatpush1.bf16.msra.mxu1 %v21368_v41  ;;  %v21446_v41 = vld [vmem:[#allocation2 + $0xb78] ss:$24 sps:$4 sm:$0xff]  }
 0x1fd   :  { %7473 = vmatpush1.bf16.msra.mxu0 %v21365_v40  ;;  %7884 = vmatprep.subr.bf16.mxu1 %v21376_v43  ;;  %v21443_v40 = vld [vmem:[#allocation2 + $0x1170] ss:$24 sps:$4 sm:$0xff]   ;;  %v21454_v43 = vld [vmem:[#allocation2 + $0xbac] ss:$24 sps:$4 sm:$0xff]  }
 0x1fe   :  { %7474 = vmatprep.subr.bf16.mxu0 %v21373_v42  ;;  %7504 = vmatprep.mubr.bf16.mxu0 %v25295_v44  ;;  %v21451_v42 = vld [vmem:[#allocation2 + $0x11a4] ss:$24 sps:$4 sm:$0xff]  }
 0x1ff   :  { %7914 = vmatprep.mubr.bf16.mxu1 %v25261_v20 }
 0x200   :  { %7885 = vmatpush1.bf16.msra.mxu1 %v21374_v45  ;;  %v21452_v45 = vld [vmem:[#allocation2 + $0xba8] ss:$24 sps:$4 sm:$0xff]  }
 0x201   :  { %7475 = vmatpush1.bf16.msra.mxu0 %v21371_v27  ;;  %7886 = vmatprep.subr.bf16.mxu1 %v21382_v48  ;;  %v21449_v27 = vld [vmem:[#allocation2 + $0x11a0] ss:$24 sps:$4 sm:$0xff]   ;;  %v21460_v48 = vld [vmem:[#allocation2 + $0xbdc] ss:$24 sps:$4 sm:$0xff]  }
 0x202   :  { %7476 = vmatprep.subr.bf16.mxu0 %v21379_v46  ;;  %v21457_v46 = vld [vmem:[#allocation2 + $0x11d4] ss:$24 sps:$4 sm:$0xff]  }
 0x204   :  { %7887 = vmatpush1.bf16.msra.mxu1 %v21380_v50  ;;  %v21458_v50 = vld [vmem:[#allocation2 + $0xbd8] ss:$24 sps:$4 sm:$0xff]  }
 0x205   :  { %7477 = vmatpush1.bf16.msra.mxu0 %v21377_v49  ;;  %7888 = vmatprep.subr.bf16.mxu1 %v21388_v53  ;;  %v21455_v49 = vld [vmem:[#allocation2 + $0x11d0] ss:$24 sps:$4 sm:$0xff]   ;;  %v21468_v53 = vld [vmem:[#allocation2 + $0xc0c] ss:$24 sps:$4 sm:$0xff]  }
 0x206   :  { %7478 = vmatprep.subr.bf16.mxu0 %v21385_v52  ;;  %v21465_v52 = vld [vmem:[#allocation2 + $0x1204] ss:$24 sps:$4 sm:$0xff]  }
 0x208   :  { %7889 = vmatpush1.bf16.msra.mxu1 %v21386_v55  ;;  %v25308_v55 = vcombine.low %v25291_v39, %v25291_v39  ;;  %v21469_v39 = vld [vmem:[#allocation2 + $0x1230] ss:$24 sps:$4 sm:$0xff]  }
 0x209   :  { %7479 = vmatpush1.bf16.msra.mxu0 %v21383_v54  ;;  %7890 = vmatprep.subr.bf16.mxu1 %v21394_v57  ;;  %v25304_v54 = vld [vmem:[%s25657_s0 + $0x30] sm:$0xff]  ;;  %v21466_v57 = vld [vmem:[#allocation2 + $0xc08] ss:$24 sps:$4 sm:$0xff]  }
 0x20a   :  { %7480 = vmatprep.subr.bf16.mxu0 %v21391_v56  ;;  %v21463_v56 = vld [vmem:[#allocation2 + $0x1200] ss:$24 sps:$4 sm:$0xff]  }
 0x20c   :  { %7891 = vmatpush1.bf16.msra.mxu1 %v21392_v59  ;;  %v21474_v59 = vld [vmem:[#allocation2 + $0xc3c] ss:$24 sps:$4 sm:$0xff]  }
 0x20d   :  { %7481 = vmatpush1.bf16.msra.mxu0 %v21389_v58  ;;  %7892 = vmatprep.subr.bf16.mxu1 %v21400_v61  ;;  %v21471_v58 = vld [vmem:[#allocation2 + $0x1234] ss:$24 sps:$4 sm:$0xff]   ;;  %v21472_v61 = vld [vmem:[#allocation2 + $0xc38] ss:$24 sps:$4 sm:$0xff]  }
 0x20e   :  { %7482 = vmatprep.subr.bf16.mxu0 %v21397_v60  ;;  %v25312_v60 = vcombine.high %v25304_v54, %v25304_v54 }
 0x210   :  { %7893 = vmatpush1.bf16.msra.mxu1 %v21398_v63  ;;  %v21480_v63 = vld [vmem:[#allocation2 + $0xc6c] ss:$24 sps:$4 sm:$0xff]  }
 0x211   :  { %7483 = vmatpush1.bf16.msra.mxu0 %v21395_v62  ;;  %7894 = vmatprep.subr.bf16.mxu1 %v21406_v1  ;;  %v21477_v62 = vld [vmem:[#allocation2 + $0x1264] ss:$24 sps:$4 sm:$0xff]   ;;  %v21478_v1 = vld [vmem:[#allocation2 + $0xc68] ss:$24 sps:$4 sm:$0xff]  }
 0x212   :  { %7484 = vmatprep.subr.bf16.mxu0 %v21403_v0  ;;  %v21475_v0 = vld [vmem:[#allocation2 + $0x1260] ss:$24 sps:$4 sm:$0xff]  }
 0x214   :  { %7895 = vmatpush1.bf16.msra.mxu1 %v21404_v3  ;;  %v21486_v3 = vld [vmem:[#allocation2 + $0xc9c] ss:$24 sps:$4 sm:$0xff]  }
 0x215   :  { %7485 = vmatpush1.bf16.msra.mxu0 %v21401_v2  ;;  %7896 = vmatprep.subr.bf16.mxu1 %v21412_v5  ;;  %v21483_v2 = vld [vmem:[#allocation2 + $0x1294] ss:$24 sps:$4 sm:$0xff]   ;;  %v21484_v5 = vld [vmem:[#allocation2 + $0xc98] ss:$24 sps:$4 sm:$0xff]  }
 0x216   :  { %7486 = vmatprep.subr.bf16.mxu0 %v21409_v4  ;;  %v21481_v4 = vld [vmem:[#allocation2 + $0x1290] ss:$24 sps:$4 sm:$0xff]  }
 0x218   :  { %7897 = vmatpush1.bf16.msra.mxu1 %v21410_v9  ;;  %v21492_v9 = vld [vmem:[#allocation2 + $0xccc] ss:$24 sps:$4 sm:$0xff]  }
 0x219   :  { %7487 = vmatpush1.bf16.msra.mxu0 %v21407_v8  ;;  %7898 = vmatprep.subr.bf16.mxu1 %v21418_v11  ;;  %v21489_v8 = vld [vmem:[#allocation2 + $0x12c4] ss:$24 sps:$4 sm:$0xff]   ;;  %v21490_v11 = vld [vmem:[#allocation2 + $0xcc8] ss:$24 sps:$4 sm:$0xff]  }
 0x21a   :  { %7488 = vmatprep.subr.bf16.mxu0 %v21415_v10  ;;  %v21487_v10 = vld [vmem:[#allocation2 + $0x12c0] ss:$24 sps:$4 sm:$0xff]  }
 0x21c   :  { %7899 = vmatpush1.bf16.msra.mxu1 %v21416_v13  ;;  %v21498_v13 = vld [vmem:[#allocation2 + $0xcfc] ss:$24 sps:$4 sm:$0xff]  }
 0x21d   :  { %7489 = vmatpush1.bf16.msra.mxu0 %v21413_v12  ;;  %7900 = vmatprep.subr.bf16.mxu1 %v21424_v16  ;;  %v21495_v12 = vld [vmem:[#allocation2 + $0x12f4] ss:$24 sps:$4 sm:$0xff]   ;;  %v21496_v16 = vld [vmem:[#allocation2 + $0xcf8] ss:$24 sps:$4 sm:$0xff]  }
 0x21e   :  { %7490 = vmatprep.subr.bf16.mxu0 %v21421_v15  ;;  %v21493_v15 = vld [vmem:[#allocation2 + $0x12f0] ss:$24 sps:$4 sm:$0xff]  }
 0x220   :  { %7901 = vmatpush1.bf16.msra.mxu1 %v21422_v18  ;;  %v21504_v18 = vld [vmem:[#allocation2 + $0xd2c] ss:$24 sps:$4 sm:$0xff]  }
 0x221   :  { %7491 = vmatpush1.bf16.msra.mxu0 %v21419_v17  ;;  %7902 = vmatprep.subr.bf16.mxu1 %v21430_v22  ;;  %v21501_v17 = vld [vmem:[#allocation2 + $0x1324] ss:$24 sps:$4 sm:$0xff]   ;;  %v21502_v22 = vld [vmem:[#allocation2 + $0xd28] ss:$24 sps:$4 sm:$0xff]  }
 0x222   :  { %7492 = vmatprep.subr.bf16.mxu0 %v21427_v21  ;;  %v21499_v21 = vld [vmem:[#allocation2 + $0x1320] ss:$24 sps:$4 sm:$0xff]  }
 0x224   :  { %7903 = vmatpush1.bf16.msra.mxu1 %v21428_v24  ;;  %v21510_v24 = vld [vmem:[#allocation2 + $0xd5c] ss:$24 sps:$4 sm:$0xff]  }
 0x225   :  { %7493 = vmatpush1.bf16.msra.mxu0 %v21425_v23  ;;  %7904 = vmatprep.subr.bf16.mxu1 %v21436_v28  ;;  %v21507_v23 = vld [vmem:[#allocation2 + $0x1354] ss:$24 sps:$4 sm:$0xff]   ;;  %v21508_v28 = vld [vmem:[#allocation2 + $0xd58] ss:$24 sps:$4 sm:$0xff]  }
 0x226   :  { %7494 = vmatprep.subr.bf16.mxu0 %v21433_v25  ;;  %v21505_v25 = vld [vmem:[#allocation2 + $0x1350] ss:$24 sps:$4 sm:$0xff]  }
 0x228   :  { %7905 = vmatpush1.bf16.msra.mxu1 %v21434_v30  ;;  %v21516_v30 = vld [vmem:[#allocation2 + $0xd8c] ss:$24 sps:$4 sm:$0xff]  }
 0x229   :  { %7495 = vmatpush1.bf16.msra.mxu0 %v21431_v29  ;;  %7906 = vmatprep.subr.bf16.mxu1 %v21442_v32  ;;  %v21513_v29 = vld [vmem:[#allocation2 + $0x1384] ss:$24 sps:$4 sm:$0xff]   ;;  %v21514_v32 = vld [vmem:[#allocation2 + $0xd88] ss:$24 sps:$4 sm:$0xff]  }
 0x22a   :  { %7496 = vmatprep.subr.bf16.mxu0 %v21439_v19  ;;  %v21511_v19 = vld [vmem:[#allocation2 + $0x1380] ss:$24 sps:$4 sm:$0xff]  }
 0x22c   :  { %7907 = vmatpush1.bf16.msra.mxu1 %v21440_v35  ;;  %v21522_v35 = vld [vmem:[#allocation2 + $0xdbc] ss:$24 sps:$4 sm:$0xff]  }
 0x22d   :  { %7497 = vmatpush1.bf16.msra.mxu0 %v21437_v33  ;;  %7908 = vmatprep.subr.bf16.mxu1 %v21448_v37  ;;  %v21519_v33 = vld [vmem:[#allocation2 + $0x13b4] ss:$24 sps:$4 sm:$0xff]   ;;  %v21520_v37 = vld [vmem:[#allocation2 + $0xdb8] ss:$24 sps:$4 sm:$0xff]  }
 0x22e   :  { %7498 = vmatprep.subr.bf16.mxu0 %v21445_v36  ;;  %v21517_v36 = vld [vmem:[#allocation2 + $0x13b0] ss:$24 sps:$4 sm:$0xff]  }
 0x230   :  { %7909 = vmatpush1.bf16.msra.mxu1 %v21446_v41  ;;  %v21528_v41 = vld [vmem:[#allocation2 + $0xdec] ss:$24 sps:$4 sm:$0xff]  }
 0x231   :  { %7499 = vmatpush1.bf16.msra.mxu0 %v21443_v40  ;;  %7910 = vmatprep.subr.bf16.mxu1 %v21454_v43  ;;  %v21525_v40 = vld [vmem:[#allocation2 + $0x13e4] ss:$24 sps:$4 sm:$0xff]   ;;  %v21526_v43 = vld [vmem:[#allocation2 + $0xde8] ss:$24 sps:$4 sm:$0xff]  }
 0x232   :  { %7500 = vmatprep.subr.bf16.mxu0 %v21451_v42  ;;  %v21523_v42 = vld [vmem:[#allocation2 + $0x13e0] ss:$24 sps:$4 sm:$0xff]  }
 0x234   :  { %7911 = vmatpush1.bf16.msra.mxu1 %v21452_v45  ;;  %v21534_v45 = vld [vmem:[#allocation2 + $0xe1c] ss:$24 sps:$4 sm:$0xff]  }
 0x235   :  { %7501 = vmatpush1.bf16.msra.mxu0 %v21449_v27  ;;  %7912 = vmatprep.subr.bf16.mxu1 %v21460_v48  ;;  %v21531_v27 = vld [vmem:[#allocation2 + $0x1414] ss:$24 sps:$4 sm:$0xff]   ;;  %v21532_v48 = vld [vmem:[#allocation2 + $0xe18] ss:$24 sps:$4 sm:$0xff]  }
 0x236   :  { %7502 = vmatprep.subr.bf16.mxu0 %v21457_v46  ;;  %v21529_v46 = vld [vmem:[#allocation2 + $0x1410] ss:$24 sps:$4 sm:$0xff]  }
 0x238   :  { %7913 = vmatpush1.bf16.msra.mxu1 %v21458_v50  ;;  %v21540_v50 = vld [vmem:[#allocation2 + $0xe4c] ss:$24 sps:$4 sm:$0xff]  }
 0x239   :  { %7503 = vmatpush1.bf16.msra.mxu0 %v21455_v49  ;;  %7923 = vmatprep.subr.bf16.mxu1 %v21468_v53  ;;  %v21537_v49 = vld [vmem:[#allocation2 + $0x1444] ss:$24 sps:$4 sm:$0xff]   ;;  %v21538_v53 = vld [vmem:[#allocation2 + $0xe48] ss:$24 sps:$4 sm:$0xff]  }
 0x23a   :  { %7513 = vmatprep.subr.bf16.mxu0 %v21465_v52  ;;  %v21535_v52 = vld [vmem:[#allocation2 + $0x1440] ss:$24 sps:$4 sm:$0xff]  }
 0x23b   :  { %7915 = vmatmul.mubr.bf16.vlgmr.msra.gmra.mrb[4].mxu1 %v25269_v26 }
 0x23c   :  { %7505 = vmatmul.mubr.bf16.vlgmr.msra.gmra.mrb[0].mxu0 %v25308_v55  ;;  %7924 = vmatpush1.bf16.msra.mxu1 %v21466_v57  ;;  %v21546_v57 = vld [vmem:[#allocation2 + $0xe7c] ss:$24 sps:$4 sm:$0xff]  }
 0x23d   :  { %7514 = vmatpush1.bf16.msra.mxu0 %v21463_v56  ;;  %7925 = vmatprep.subr.bf16.mxu1 %v21474_v59  ;;  %v21543_v56 = vld [vmem:[#allocation2 + $0x1474] ss:$24 sps:$4 sm:$0xff]   ;;  %v21544_v59 = vld [vmem:[#allocation2 + $0xe78] ss:$24 sps:$4 sm:$0xff]  }
 0x23e   :  { %7515 = vmatprep.subr.bf16.mxu0 %v21471_v58  ;;  %7545 = vmatprep.mubr.bf16.mxu0 %v25312_v60  ;;  %v21541_v58 = vld [vmem:[#allocation2 + $0x1470] ss:$24 sps:$4 sm:$0xff]  }
 0x23f   :  { %7955 = vmatprep.mubr.bf16.mxu1 %v25278_v31 }
 0x240   :  { %7926 = vmatpush1.bf16.msra.mxu1 %v21472_v61  ;;  %v21552_v61 = vld [vmem:[#allocation2 + $0xeac] ss:$24 sps:$4 sm:$0xff]  }
 0x241   :  { %7516 = vmatpush1.bf16.msra.mxu0 %v21469_v39  ;;  %7927 = vmatprep.subr.bf16.mxu1 %v21480_v63  ;;  %v21549_v39 = vld [vmem:[#allocation2 + $0x14a4] ss:$24 sps:$4 sm:$0xff]   ;;  %v21550_v63 = vld [vmem:[#allocation2 + $0xea8] ss:$24 sps:$4 sm:$0xff]  }
 0x242   :  { %7517 = vmatprep.subr.bf16.mxu0 %v21477_v62  ;;  %v21547_v62 = vld [vmem:[#allocation2 + $0x14a0] ss:$24 sps:$4 sm:$0xff]  }
 0x244   :  { %7928 = vmatpush1.bf16.msra.mxu1 %v21478_v1  ;;  %v21558_v1 = vld [vmem:[#allocation2 + $0xedc] ss:$24 sps:$4 sm:$0xff]  }
 0x245   :  { %7518 = vmatpush1.bf16.msra.mxu0 %v21475_v0  ;;  %7929 = vmatprep.subr.bf16.mxu1 %v21486_v3  ;;  %v21555_v0 = vld [vmem:[#allocation2 + $0x14d4] ss:$24 sps:$4 sm:$0xff]   ;;  %v21556_v3 = vld [vmem:[#allocation2 + $0xed8] ss:$24 sps:$4 sm:$0xff]  }
 0x246   :  { %7519 = vmatprep.subr.bf16.mxu0 %v21483_v2  ;;  %v21553_v2 = vld [vmem:[#allocation2 + $0x14d0] ss:$24 sps:$4 sm:$0xff]  }
 0x248   :  { %7930 = vmatpush1.bf16.msra.mxu1 %v21484_v5  ;;  %v21566_v5 = vld [vmem:[#allocation2 + $0xf0c] ss:$24 sps:$4 sm:$0xff]  }
 0x249   :  { %7520 = vmatpush1.bf16.msra.mxu0 %v21481_v4  ;;  %7931 = vmatprep.subr.bf16.mxu1 %v21492_v9  ;;  %v21563_v4 = vld [vmem:[#allocation2 + $0x1504] ss:$24 sps:$4 sm:$0xff]   ;;  %v25325_v9 = vcombine.low %v25304_v54, %v25304_v54  ;;  %v21567_v54 = vld [vmem:[#allocation2 + $0x1530] ss:$24 sps:$4 sm:$0xff]  }
 0x24a   :  { %7521 = vmatprep.subr.bf16.mxu0 %v21489_v8  ;;  %v25321_v8 = vld [vmem:[%s25657_s0 + $0x38] sm:$0xff] }
 0x24c   :  { %7932 = vmatpush1.bf16.msra.mxu1 %v21490_v11  ;;  %v21564_v11 = vld [vmem:[#allocation2 + $0xf08] ss:$24 sps:$4 sm:$0xff]  }
 0x24d   :  { %7522 = vmatpush1.bf16.msra.mxu0 %v21487_v10  ;;  %7933 = vmatprep.subr.bf16.mxu1 %v21498_v13  ;;  %v21561_v10 = vld [vmem:[#allocation2 + $0x1500] ss:$24 sps:$4 sm:$0xff]   ;;  %v21572_v13 = vld [vmem:[#allocation2 + $0xf3c] ss:$24 sps:$4 sm:$0xff]  }
 0x24e   :  { %7523 = vmatprep.subr.bf16.mxu0 %v21495_v12  ;;  %v21569_v12 = vld [vmem:[#allocation2 + $0x1534] ss:$24 sps:$4 sm:$0xff]  }
 0x250   :  { %7934 = vmatpush1.bf16.msra.mxu1 %v21496_v16  ;;  %v21570_v16 = vld [vmem:[#allocation2 + $0xf38] ss:$24 sps:$4 sm:$0xff]  }
 0x251   :  { %7524 = vmatpush1.bf16.msra.mxu0 %v21493_v15  ;;  %7935 = vmatprep.subr.bf16.mxu1 %v21504_v18  ;;  %v25329_v15 = vcombine.high %v25321_v8, %v25321_v8  ;;  %v21578_v18 = vld [vmem:[#allocation2 + $0xf6c] ss:$24 sps:$4 sm:$0xff]  }
 0x252   :  { %7525 = vmatprep.subr.bf16.mxu0 %v21501_v17  ;;  %v21575_v17 = vld [vmem:[#allocation2 + $0x1564] ss:$24 sps:$4 sm:$0xff]  }
 0x254   :  { %7936 = vmatpush1.bf16.msra.mxu1 %v21502_v22  ;;  %v21576_v22 = vld [vmem:[#allocation2 + $0xf68] ss:$24 sps:$4 sm:$0xff]  }
 0x255   :  { %7526 = vmatpush1.bf16.msra.mxu0 %v21499_v21  ;;  %7937 = vmatprep.subr.bf16.mxu1 %v21510_v24  ;;  %v21573_v21 = vld [vmem:[#allocation2 + $0x1560] ss:$24 sps:$4 sm:$0xff]   ;;  %v21584_v24 = vld [vmem:[#allocation2 + $0xf9c] ss:$24 sps:$4 sm:$0xff]  }
 0x256   :  { %7527 = vmatprep.subr.bf16.mxu0 %v21507_v23  ;;  %v21581_v23 = vld [vmem:[#allocation2 + $0x1594] ss:$24 sps:$4 sm:$0xff]  }
 0x258   :  { %7938 = vmatpush1.bf16.msra.mxu1 %v21508_v28  ;;  %v21582_v28 = vld [vmem:[#allocation2 + $0xf98] ss:$24 sps:$4 sm:$0xff]  }
 0x259   :  { %7528 = vmatpush1.bf16.msra.mxu0 %v21505_v25  ;;  %7939 = vmatprep.subr.bf16.mxu1 %v21516_v30  ;;  %v21579_v25 = vld [vmem:[#allocation2 + $0x1590] ss:$24 sps:$4 sm:$0xff]   ;;  %v21590_v30 = vld [vmem:[#allocation2 + $0xfcc] ss:$24 sps:$4 sm:$0xff]  }
 0x25a   :  { %7529 = vmatprep.subr.bf16.mxu0 %v21513_v29  ;;  %v21587_v29 = vld [vmem:[#allocation2 + $0x15c4] ss:$24 sps:$4 sm:$0xff]  }
 0x25c   :  { %7940 = vmatpush1.bf16.msra.mxu1 %v21514_v32  ;;  %v21588_v32 = vld [vmem:[#allocation2 + $0xfc8] ss:$24 sps:$4 sm:$0xff]  }
 0x25d   :  { %7530 = vmatpush1.bf16.msra.mxu0 %v21511_v19  ;;  %7941 = vmatprep.subr.bf16.mxu1 %v21522_v35  ;;  %v21585_v19 = vld [vmem:[#allocation2 + $0x15c0] ss:$24 sps:$4 sm:$0xff]   ;;  %v21596_v35 = vld [vmem:[#allocation2 + $0xffc] ss:$24 sps:$4 sm:$0xff]  }
 0x25e   :  { %7531 = vmatprep.subr.bf16.mxu0 %v21519_v33  ;;  %v21593_v33 = vld [vmem:[#allocation2 + $0x15f4] ss:$24 sps:$4 sm:$0xff]  }
 0x260   :  { %7942 = vmatpush1.bf16.msra.mxu1 %v21520_v37  ;;  %v21594_v37 = vld [vmem:[#allocation2 + $0xff8] ss:$24 sps:$4 sm:$0xff]  }
 0x261   :  { %7532 = vmatpush1.bf16.msra.mxu0 %v21517_v36  ;;  %7943 = vmatprep.subr.bf16.mxu1 %v21528_v41  ;;  %v21591_v36 = vld [vmem:[#allocation2 + $0x15f0] ss:$24 sps:$4 sm:$0xff]   ;;  %v21602_v41 = vld [vmem:[#allocation2 + $0x102c] ss:$24 sps:$4 sm:$0xff]  }
 0x262   :  { %7533 = vmatprep.subr.bf16.mxu0 %v21525_v40  ;;  %v21599_v40 = vld [vmem:[#allocation2 + $0x1624] ss:$24 sps:$4 sm:$0xff]  }
 0x264   :  { %7944 = vmatpush1.bf16.msra.mxu1 %v21526_v43  ;;  %v21600_v43 = vld [vmem:[#allocation2 + $0x1028] ss:$24 sps:$4 sm:$0xff]  }
 0x265   :  { %7534 = vmatpush1.bf16.msra.mxu0 %v21523_v42  ;;  %7945 = vmatprep.subr.bf16.mxu1 %v21534_v45  ;;  %v21597_v42 = vld [vmem:[#allocation2 + $0x1620] ss:$24 sps:$4 sm:$0xff]   ;;  %v21608_v45 = vld [vmem:[#allocation2 + $0x105c] ss:$24 sps:$4 sm:$0xff]  }
 0x266   :  { %7535 = vmatprep.subr.bf16.mxu0 %v21531_v27  ;;  %v21605_v27 = vld [vmem:[#allocation2 + $0x1654] ss:$24 sps:$4 sm:$0xff]  }
 0x268   :  { %7946 = vmatpush1.bf16.msra.mxu1 %v21532_v48  ;;  %v21606_v48 = vld [vmem:[#allocation2 + $0x1058] ss:$24 sps:$4 sm:$0xff]  }
 0x269   :  { %7536 = vmatpush1.bf16.msra.mxu0 %v21529_v46  ;;  %7947 = vmatprep.subr.bf16.mxu1 %v21540_v50  ;;  %v21603_v46 = vld [vmem:[#allocation2 + $0x1650] ss:$24 sps:$4 sm:$0xff]   ;;  %v21614_v50 = vld [vmem:[#allocation2 + $0x108c] ss:$24 sps:$4 sm:$0xff]  }
 0x26a   :  { %7537 = vmatprep.subr.bf16.mxu0 %v21537_v49  ;;  %v21611_v49 = vld [vmem:[#allocation2 + $0x1684] ss:$24 sps:$4 sm:$0xff]  }
 0x26c   :  { %7948 = vmatpush1.bf16.msra.mxu1 %v21538_v53  ;;  %v21612_v53 = vld [vmem:[#allocation2 + $0x1088] ss:$24 sps:$4 sm:$0xff]  }
 0x26d   :  { %7538 = vmatpush1.bf16.msra.mxu0 %v21535_v52  ;;  %7949 = vmatprep.subr.bf16.mxu1 %v21546_v57  ;;  %v21609_v52 = vld [vmem:[#allocation2 + $0x1680] ss:$24 sps:$4 sm:$0xff]   ;;  %v21620_v57 = vld [vmem:[#allocation2 + $0x10bc] ss:$24 sps:$4 sm:$0xff]  }
 0x26e   :  { %7539 = vmatprep.subr.bf16.mxu0 %v21543_v56  ;;  %v21617_v56 = vld [vmem:[#allocation2 + $0x16b4] ss:$24 sps:$4 sm:$0xff]  }
 0x270   :  { %7950 = vmatpush1.bf16.msra.mxu1 %v21544_v59  ;;  %v21618_v59 = vld [vmem:[#allocation2 + $0x10b8] ss:$24 sps:$4 sm:$0xff]  }
 0x271   :  { %7540 = vmatpush1.bf16.msra.mxu0 %v21541_v58  ;;  %7951 = vmatprep.subr.bf16.mxu1 %v21552_v61  ;;  %v21615_v58 = vld [vmem:[#allocation2 + $0x16b0] ss:$24 sps:$4 sm:$0xff]   ;;  %v21626_v61 = vld [vmem:[#allocation2 + $0x10ec] ss:$24 sps:$4 sm:$0xff]  }
 0x272   :  { %7541 = vmatprep.subr.bf16.mxu0 %v21549_v39  ;;  %v21623_v39 = vld [vmem:[#allocation2 + $0x16e4] ss:$24 sps:$4 sm:$0xff]  }
 0x274   :  { %7952 = vmatpush1.bf16.msra.mxu1 %v21550_v63  ;;  %v21624_v63 = vld [vmem:[#allocation2 + $0x10e8] ss:$24 sps:$4 sm:$0xff]  }
 0x275   :  { %7542 = vmatpush1.bf16.msra.mxu0 %v21547_v62  ;;  %7953 = vmatprep.subr.bf16.mxu1 %v21558_v1  ;;  %v21621_v62 = vld [vmem:[#allocation2 + $0x16e0] ss:$24 sps:$4 sm:$0xff]   ;;  %v21632_v1 = vld [vmem:[#allocation2 + $0x111c] ss:$24 sps:$4 sm:$0xff]  }
 0x276   :  { %7543 = vmatprep.subr.bf16.mxu0 %v21555_v0  ;;  %v21629_v0 = vld [vmem:[#allocation2 + $0x1714] ss:$24 sps:$4 sm:$0xff]  }
 0x278   :  { %7954 = vmatpush1.bf16.msra.mxu1 %v21556_v3  ;;  %v21630_v3 = vld [vmem:[#allocation2 + $0x1118] ss:$24 sps:$4 sm:$0xff]  }
 0x279   :  { %7544 = vmatpush1.bf16.msra.mxu0 %v21553_v2  ;;  %7964 = vmatprep.subr.bf16.mxu1 %v21566_v5  ;;  %v21627_v2 = vld [vmem:[#allocation2 + $0x1710] ss:$24 sps:$4 sm:$0xff]   ;;  %v21638_v5 = vld [vmem:[#allocation2 + $0x114c] ss:$24 sps:$4 sm:$0xff]  }
 0x27a   :  { %7554 = vmatprep.subr.bf16.mxu0 %v21563_v4  ;;  %v21635_v4 = vld [vmem:[#allocation2 + $0x1744] ss:$24 sps:$4 sm:$0xff]  }
 0x27b   :  { %7956 = vmatmul.mubr.bf16.vlgmr.msra.gmra.mrb[4].mxu1 %v25286_v38 }
 0x27c   :  { %7546 = vmatmul.mubr.bf16.vlgmr.msra.gmra.mrb[0].mxu0 %v25325_v9  ;;  %7965 = vmatpush1.bf16.msra.mxu1 %v21564_v11  ;;  %v21636_v11 = vld [vmem:[#allocation2 + $0x1148] ss:$24 sps:$4 sm:$0xff]  }
 0x27d   :  { %7555 = vmatpush1.bf16.msra.mxu0 %v21561_v10  ;;  %7966 = vmatprep.subr.bf16.mxu1 %v21572_v13  ;;  %v21633_v10 = vld [vmem:[#allocation2 + $0x1740] ss:$24 sps:$4 sm:$0xff]   ;;  %v21644_v13 = vld [vmem:[#allocation2 + $0x117c] ss:$24 sps:$4 sm:$0xff]  }
 0x27e   :  { %7556 = vmatprep.subr.bf16.mxu0 %v21569_v12  ;;  %7586 = vmatprep.mubr.bf16.mxu0 %v25329_v15  ;;  %v21641_v12 = vld [vmem:[#allocation2 + $0x1774] ss:$24 sps:$4 sm:$0xff]  }
 0x27f   :  { %7996 = vmatprep.mubr.bf16.mxu1 %v25295_v44 }
 0x280   :  { %7967 = vmatpush1.bf16.msra.mxu1 %v21570_v16  ;;  %v21642_v16 = vld [vmem:[#allocation2 + $0x1178] ss:$24 sps:$4 sm:$0xff]  }
 0x281   :  { %7557 = vmatpush1.bf16.msra.mxu0 %v21567_v54  ;;  %7968 = vmatprep.subr.bf16.mxu1 %v21578_v18  ;;  %v21639_v54 = vld [vmem:[#allocation2 + $0x1770] ss:$24 sps:$4 sm:$0xff]   ;;  %v21650_v18 = vld [vmem:[#allocation2 + $0x11ac] ss:$24 sps:$4 sm:$0xff]  }
 0x282   :  { %7558 = vmatprep.subr.bf16.mxu0 %v21575_v17  ;;  %v21647_v17 = vld [vmem:[#allocation2 + $0x17a4] ss:$24 sps:$4 sm:$0xff]  }
 0x284   :  { %7969 = vmatpush1.bf16.msra.mxu1 %v21576_v22  ;;  %v21648_v22 = vld [vmem:[#allocation2 + $0x11a8] ss:$24 sps:$4 sm:$0xff]  }
 0x285   :  { %7559 = vmatpush1.bf16.msra.mxu0 %v21573_v21  ;;  %7970 = vmatprep.subr.bf16.mxu1 %v21584_v24  ;;  %v21645_v21 = vld [vmem:[#allocation2 + $0x17a0] ss:$24 sps:$4 sm:$0xff]   ;;  %v21656_v24 = vld [vmem:[#allocation2 + $0x11dc] ss:$24 sps:$4 sm:$0xff]  }
 0x286   :  { %7560 = vmatprep.subr.bf16.mxu0 %v21581_v23  ;;  %v21653_v23 = vld [vmem:[#allocation2 + $0x17d4] ss:$24 sps:$4 sm:$0xff]  }
 0x288   :  { %7971 = vmatpush1.bf16.msra.mxu1 %v21582_v28  ;;  %v21654_v28 = vld [vmem:[#allocation2 + $0x11d8] ss:$24 sps:$4 sm:$0xff]  }
 0x289   :  { %7561 = vmatpush1.bf16.msra.mxu0 %v21579_v25  ;;  %7972 = vmatprep.subr.bf16.mxu1 %v21590_v30  ;;  %v21651_v25 = vld [vmem:[#allocation2 + $0x17d0] ss:$24 sps:$4 sm:$0xff]   ;;  %v21664_v30 = vld [vmem:[#allocation2 + $0x120c] ss:$24 sps:$4 sm:$0xff]  }
 0x28a   :  { %7562 = vmatprep.subr.bf16.mxu0 %v21587_v29  ;;  %v21661_v29 = vld [vmem:[#allocation2 + $0x1804] ss:$24 sps:$4 sm:$0xff]  }
 0x28c   :  { %7973 = vmatpush1.bf16.msra.mxu1 %v21588_v32  ;;  %v25342_v32 = vcombine.low %v25321_v8, %v25321_v8  ;;  %v21665_v8 = vld [vmem:[#allocation2 + $0x1830] ss:$24 sps:$4 sm:$0xff]  }
 0x28d   :  { %7563 = vmatpush1.bf16.msra.mxu0 %v21585_v19  ;;  %7974 = vmatprep.subr.bf16.mxu1 %v21596_v35  ;;  %v25338_v19 = vld [vmem:[%s25657_s0 + $0x40] sm:$0xff] }
 0x28e   :  { %7564 = vmatprep.subr.bf16.mxu0 %v21593_v33  ;;  %v21659_v33 = vld [vmem:[#allocation2 + $0x1800] ss:$24 sps:$4 sm:$0xff]  }
 0x28f   :  { %v21662_v35 = vld [vmem:[#allocation2 + $0x1208] ss:$24 sps:$4 sm:$0xff]  }
 0x290   :  { %7975 = vmatpush1.bf16.msra.mxu1 %v21594_v37  ;;  %v21670_v37 = vld [vmem:[#allocation2 + $0x123c] ss:$24 sps:$4 sm:$0xff]  }
 0x291   :  { %7565 = vmatpush1.bf16.msra.mxu0 %v21591_v36  ;;  %7976 = vmatprep.subr.bf16.mxu1 %v21602_v41  ;;  %v21667_v36 = vld [vmem:[#allocation2 + $0x1834] ss:$24 sps:$4 sm:$0xff]   ;;  %v21668_v41 = vld [vmem:[#allocation2 + $0x1238] ss:$24 sps:$4 sm:$0xff]  }
 0x292   :  { %7566 = vmatprep.subr.bf16.mxu0 %v21599_v40  ;;  %v25346_v40 = vcombine.high %v25338_v19, %v25338_v19 }
 0x294   :  { %7977 = vmatpush1.bf16.msra.mxu1 %v21600_v43  ;;  %v21676_v43 = vld [vmem:[#allocation2 + $0x126c] ss:$24 sps:$4 sm:$0xff]  }
 0x295   :  { %7567 = vmatpush1.bf16.msra.mxu0 %v21597_v42  ;;  %7978 = vmatprep.subr.bf16.mxu1 %v21608_v45  ;;  %v21673_v42 = vld [vmem:[#allocation2 + $0x1864] ss:$24 sps:$4 sm:$0xff]   ;;  %v21674_v45 = vld [vmem:[#allocation2 + $0x1268] ss:$24 sps:$4 sm:$0xff]  }
 0x296   :  { %7568 = vmatprep.subr.bf16.mxu0 %v21605_v27  ;;  %v21671_v27 = vld [vmem:[#allocation2 + $0x1860] ss:$24 sps:$4 sm:$0xff]  }
 0x298   :  { %7979 = vmatpush1.bf16.msra.mxu1 %v21606_v48  ;;  %v21682_v48 = vld [vmem:[#allocation2 + $0x129c] ss:$24 sps:$4 sm:$0xff]  }
 0x299   :  { %7569 = vmatpush1.bf16.msra.mxu0 %v21603_v46  ;;  %7980 = vmatprep.subr.bf16.mxu1 %v21614_v50  ;;  %v21679_v46 = vld [vmem:[#allocation2 + $0x1894] ss:$24 sps:$4 sm:$0xff]   ;;  %v21680_v50 = vld [vmem:[#allocation2 + $0x1298] ss:$24 sps:$4 sm:$0xff]  }
 0x29a   :  { %7570 = vmatprep.subr.bf16.mxu0 %v21611_v49  ;;  %v21677_v49 = vld [vmem:[#allocation2 + $0x1890] ss:$24 sps:$4 sm:$0xff]  }
 0x29c   :  { %7981 = vmatpush1.bf16.msra.mxu1 %v21612_v53  ;;  %v21688_v53 = vld [vmem:[#allocation2 + $0x12cc] ss:$24 sps:$4 sm:$0xff]  }
 0x29d   :  { %7571 = vmatpush1.bf16.msra.mxu0 %v21609_v52  ;;  %7982 = vmatprep.subr.bf16.mxu1 %v21620_v57  ;;  %v21685_v52 = vld [vmem:[#allocation2 + $0x18c4] ss:$24 sps:$4 sm:$0xff]   ;;  %v21686_v57 = vld [vmem:[#allocation2 + $0x12c8] ss:$24 sps:$4 sm:$0xff]  }
 0x29e   :  { %7572 = vmatprep.subr.bf16.mxu0 %v21617_v56  ;;  %v21683_v56 = vld [vmem:[#allocation2 + $0x18c0] ss:$24 sps:$4 sm:$0xff]  }
 0x2a0   :  { %7983 = vmatpush1.bf16.msra.mxu1 %v21618_v59  ;;  %v21694_v59 = vld [vmem:[#allocation2 + $0x12fc] ss:$24 sps:$4 sm:$0xff]  }
 0x2a1   :  { %7573 = vmatpush1.bf16.msra.mxu0 %v21615_v58  ;;  %7984 = vmatprep.subr.bf16.mxu1 %v21626_v61  ;;  %v21691_v58 = vld [vmem:[#allocation2 + $0x18f4] ss:$24 sps:$4 sm:$0xff]   ;;  %v21692_v61 = vld [vmem:[#allocation2 + $0x12f8] ss:$24 sps:$4 sm:$0xff]  }
 0x2a2   :  { %7574 = vmatprep.subr.bf16.mxu0 %v21623_v39  ;;  %v21689_v39 = vld [vmem:[#allocation2 + $0x18f0] ss:$24 sps:$4 sm:$0xff]  }
 0x2a4   :  { %7985 = vmatpush1.bf16.msra.mxu1 %v21624_v63  ;;  %v21700_v63 = vld [vmem:[#allocation2 + $0x132c] ss:$24 sps:$4 sm:$0xff]  }
 0x2a5   :  { %7575 = vmatpush1.bf16.msra.mxu0 %v21621_v62  ;;  %7986 = vmatprep.subr.bf16.mxu1 %v21632_v1  ;;  %v21697_v62 = vld [vmem:[#allocation2 + $0x1924] ss:$24 sps:$4 sm:$0xff]   ;;  %v21698_v1 = vld [vmem:[#allocation2 + $0x1328] ss:$24 sps:$4 sm:$0xff]  }
 0x2a6   :  { %7576 = vmatprep.subr.bf16.mxu0 %v21629_v0  ;;  %v21695_v0 = vld [vmem:[#allocation2 + $0x1920] ss:$24 sps:$4 sm:$0xff]  }
 0x2a8   :  { %7987 = vmatpush1.bf16.msra.mxu1 %v21630_v3  ;;  %v21706_v3 = vld [vmem:[#allocation2 + $0x135c] ss:$24 sps:$4 sm:$0xff]  }
 0x2a9   :  { %7577 = vmatpush1.bf16.msra.mxu0 %v21627_v2  ;;  %7988 = vmatprep.subr.bf16.mxu1 %v21638_v5  ;;  %v21703_v2 = vld [vmem:[#allocation2 + $0x1954] ss:$24 sps:$4 sm:$0xff]   ;;  %v21704_v5 = vld [vmem:[#allocation2 + $0x1358] ss:$24 sps:$4 sm:$0xff]  }
 0x2aa   :  { %7578 = vmatprep.subr.bf16.mxu0 %v21635_v4  ;;  %v21701_v4 = vld [vmem:[#allocation2 + $0x1950] ss:$24 sps:$4 sm:$0xff]  }
 0x2ac   :  { %7989 = vmatpush1.bf16.msra.mxu1 %v21636_v11  ;;  %v21712_v11 = vld [vmem:[#allocation2 + $0x138c] ss:$24 sps:$4 sm:$0xff]  }
 0x2ad   :  { %7579 = vmatpush1.bf16.msra.mxu0 %v21633_v10  ;;  %7990 = vmatprep.subr.bf16.mxu1 %v21644_v13  ;;  %v21709_v10 = vld [vmem:[#allocation2 + $0x1984] ss:$24 sps:$4 sm:$0xff]   ;;  %v21710_v13 = vld [vmem:[#allocation2 + $0x1388] ss:$24 sps:$4 sm:$0xff]  }
 0x2ae   :  { %7580 = vmatprep.subr.bf16.mxu0 %v21641_v12  ;;  %v21707_v12 = vld [vmem:[#allocation2 + $0x1980] ss:$24 sps:$4 sm:$0xff]  }
 0x2b0   :  { %7991 = vmatpush1.bf16.msra.mxu1 %v21642_v16  ;;  %v21718_v16 = vld [vmem:[#allocation2 + $0x13bc] ss:$24 sps:$4 sm:$0xff]  }
 0x2b1   :  { %7581 = vmatpush1.bf16.msra.mxu0 %v21639_v54  ;;  %7992 = vmatprep.subr.bf16.mxu1 %v21650_v18  ;;  %v21715_v54 = vld [vmem:[#allocation2 + $0x19b4] ss:$24 sps:$4 sm:$0xff]   ;;  %v21716_v18 = vld [vmem:[#allocation2 + $0x13b8] ss:$24 sps:$4 sm:$0xff]  }
 0x2b2   :  { %7582 = vmatprep.subr.bf16.mxu0 %v21647_v17  ;;  %v21713_v17 = vld [vmem:[#allocation2 + $0x19b0] ss:$24 sps:$4 sm:$0xff]  }
 0x2b4   :  { %7993 = vmatpush1.bf16.msra.mxu1 %v21648_v22  ;;  %v21724_v22 = vld [vmem:[#allocation2 + $0x13ec] ss:$24 sps:$4 sm:$0xff]  }
 0x2b5   :  { %7583 = vmatpush1.bf16.msra.mxu0 %v21645_v21  ;;  %7994 = vmatprep.subr.bf16.mxu1 %v21656_v24  ;;  %v21721_v21 = vld [vmem:[#allocation2 + $0x19e4] ss:$24 sps:$4 sm:$0xff]   ;;  %v21722_v24 = vld [vmem:[#allocation2 + $0x13e8] ss:$24 sps:$4 sm:$0xff]  }
 0x2b6   :  { %7584 = vmatprep.subr.bf16.mxu0 %v21653_v23  ;;  %v21719_v23 = vld [vmem:[#allocation2 + $0x19e0] ss:$24 sps:$4 sm:$0xff]  }
 0x2b8   :  { %7995 = vmatpush1.bf16.msra.mxu1 %v21654_v28  ;;  %v21730_v28 = vld [vmem:[#allocation2 + $0x141c] ss:$24 sps:$4 sm:$0xff]  }
 0x2b9   :  { %7585 = vmatpush1.bf16.msra.mxu0 %v21651_v25  ;;  %8005 = vmatprep.subr.bf16.mxu1 %v21664_v30  ;;  %v21727_v25 = vld [vmem:[#allocation2 + $0x1a14] ss:$24 sps:$4 sm:$0xff]   ;;  %v21728_v30 = vld [vmem:[#allocation2 + $0x1418] ss:$24 sps:$4 sm:$0xff]  }
 0x2ba   :  { %7595 = vmatprep.subr.bf16.mxu0 %v21661_v29  ;;  %v21725_v29 = vld [vmem:[#allocation2 + $0x1a10] ss:$24 sps:$4 sm:$0xff]  }
 0x2bb   :  { %7997 = vmatmul.mubr.bf16.vlgmr.msra.gmra.mrb[4].mxu1 %v25308_v55 }
 0x2bc   :  { %7587 = vmatmul.mubr.bf16.vlgmr.msra.gmra.mrb[0].mxu0 %v25342_v32  ;;  %8006 = vmatpush1.bf16.msra.mxu1 %v21662_v35  ;;  %v21736_v35 = vld [vmem:[#allocation2 + $0x144c] ss:$24 sps:$4 sm:$0xff]  }
 0x2bd   :  { %7596 = vmatpush1.bf16.msra.mxu0 %v21659_v33  ;;  %8007 = vmatprep.subr.bf16.mxu1 %v21670_v37  ;;  %v21733_v33 = vld [vmem:[#allocation2 + $0x1a44] ss:$24 sps:$4 sm:$0xff]   ;;  %v21734_v37 = vld [vmem:[#allocation2 + $0x1448] ss:$24 sps:$4 sm:$0xff]  }
 0x2be   :  { %7597 = vmatprep.subr.bf16.mxu0 %v21667_v36  ;;  %7627 = vmatprep.mubr.bf16.mxu0 %v25346_v40  ;;  %v21731_v36 = vld [vmem:[#allocation2 + $0x1a40] ss:$24 sps:$4 sm:$0xff]  }
 0x2bf   :  { %8037 = vmatprep.mubr.bf16.mxu1 %v25312_v60 }
 0x2c0   :  { %8008 = vmatpush1.bf16.msra.mxu1 %v21668_v41  ;;  %v21742_v41 = vld [vmem:[#allocation2 + $0x147c] ss:$24 sps:$4 sm:$0xff]  }
 0x2c1   :  { %7598 = vmatpush1.bf16.msra.mxu0 %v21665_v8  ;;  %8009 = vmatprep.subr.bf16.mxu1 %v21676_v43  ;;  %v21739_v8 = vld [vmem:[#allocation2 + $0x1a74] ss:$24 sps:$4 sm:$0xff]   ;;  %v21740_v43 = vld [vmem:[#allocation2 + $0x1478] ss:$24 sps:$4 sm:$0xff]  }
 0x2c2   :  { %7599 = vmatprep.subr.bf16.mxu0 %v21673_v42  ;;  %v21737_v42 = vld [vmem:[#allocation2 + $0x1a70] ss:$24 sps:$4 sm:$0xff]  }
 0x2c4   :  { %8010 = vmatpush1.bf16.msra.mxu1 %v21674_v45  ;;  %v21748_v45 = vld [vmem:[#allocation2 + $0x14ac] ss:$24 sps:$4 sm:$0xff]  }
 0x2c5   :  { %7600 = vmatpush1.bf16.msra.mxu0 %v21671_v27  ;;  %8011 = vmatprep.subr.bf16.mxu1 %v21682_v48  ;;  %v21745_v27 = vld [vmem:[#allocation2 + $0x1aa4] ss:$24 sps:$4 sm:$0xff]   ;;  %v21746_v48 = vld [vmem:[#allocation2 + $0x14a8] ss:$24 sps:$4 sm:$0xff]  }
 0x2c6   :  { %7601 = vmatprep.subr.bf16.mxu0 %v21679_v46  ;;  %v21743_v46 = vld [vmem:[#allocation2 + $0x1aa0] ss:$24 sps:$4 sm:$0xff]  }
 0x2c8   :  { %8012 = vmatpush1.bf16.msra.mxu1 %v21680_v50  ;;  %v21754_v50 = vld [vmem:[#allocation2 + $0x14dc] ss:$24 sps:$4 sm:$0xff]  }
 0x2c9   :  { %7602 = vmatpush1.bf16.msra.mxu0 %v21677_v49  ;;  %8013 = vmatprep.subr.bf16.mxu1 %v21688_v53  ;;  %v21751_v49 = vld [vmem:[#allocation2 + $0x1ad4] ss:$24 sps:$4 sm:$0xff]   ;;  %v21752_v53 = vld [vmem:[#allocation2 + $0x14d8] ss:$24 sps:$4 sm:$0xff]  }
 0x2ca   :  { %7603 = vmatprep.subr.bf16.mxu0 %v21685_v52  ;;  %v21749_v52 = vld [vmem:[#allocation2 + $0x1ad0] ss:$24 sps:$4 sm:$0xff]  }
 0x2cc   :  { %8014 = vmatpush1.bf16.msra.mxu1 %v21686_v57  ;;  %v21762_v57 = vld [vmem:[#allocation2 + $0x150c] ss:$24 sps:$4 sm:$0xff]  }
 0x2cd   :  { %7604 = vmatpush1.bf16.msra.mxu0 %v21683_v56  ;;  %8015 = vmatprep.subr.bf16.mxu1 %v21694_v59  ;;  %v21759_v56 = vld [vmem:[#allocation2 + $0x1b04] ss:$24 sps:$4 sm:$0xff]   ;;  %v25359_v59 = vcombine.low %v25338_v19, %v25338_v19  ;;  %v21763_v19 = vld [vmem:[#allocation2 + $0x1b30] ss:$24 sps:$4 sm:$0xff]  }
 0x2ce   :  { %7605 = vmatprep.subr.bf16.mxu0 %v21691_v58  ;;  %v25355_v58 = vld [vmem:[%s25657_s0 + $0x48] sm:$0xff] }
 0x2d0   :  { %8016 = vmatpush1.bf16.msra.mxu1 %v21692_v61  ;;  %v21760_v61 = vld [vmem:[#allocation2 + $0x1508] ss:$24 sps:$4 sm:$0xff]  }
 0x2d1   :  { %7606 = vmatpush1.bf16.msra.mxu0 %v21689_v39  ;;  %8017 = vmatprep.subr.bf16.mxu1 %v21700_v63  ;;  %v21757_v39 = vld [vmem:[#allocation2 + $0x1b00] ss:$24 sps:$4 sm:$0xff]   ;;  %v21768_v63 = vld [vmem:[#allocation2 + $0x153c] ss:$24 sps:$4 sm:$0xff]  }
 0x2d2   :  { %7607 = vmatprep.subr.bf16.mxu0 %v21697_v62  ;;  %v21765_v62 = vld [vmem:[#allocation2 + $0x1b34] ss:$24 sps:$4 sm:$0xff]  }
 0x2d4   :  { %8018 = vmatpush1.bf16.msra.mxu1 %v21698_v1  ;;  %v21766_v1 = vld [vmem:[#allocation2 + $0x1538] ss:$24 sps:$4 sm:$0xff]  }
 0x2d5   :  { %7608 = vmatpush1.bf16.msra.mxu0 %v21695_v0  ;;  %8019 = vmatprep.subr.bf16.mxu1 %v21706_v3  ;;  %v25363_v0 = vcombine.high %v25355_v58, %v25355_v58  ;;  %v21774_v3 = vld [vmem:[#allocation2 + $0x156c] ss:$24 sps:$4 sm:$0xff]  }
 0x2d6   :  { %7609 = vmatprep.subr.bf16.mxu0 %v21703_v2  ;;  %v21771_v2 = vld [vmem:[#allocation2 + $0x1b64] ss:$24 sps:$4 sm:$0xff]  }
 0x2d8   :  { %8020 = vmatpush1.bf16.msra.mxu1 %v21704_v5  ;;  %v21772_v5 = vld [vmem:[#allocation2 + $0x1568] ss:$24 sps:$4 sm:$0xff]  }
 0x2d9   :  { %7610 = vmatpush1.bf16.msra.mxu0 %v21701_v4  ;;  %8021 = vmatprep.subr.bf16.mxu1 %v21712_v11  ;;  %v21769_v4 = vld [vmem:[#allocation2 + $0x1b60] ss:$24 sps:$4 sm:$0xff]   ;;  %v21780_v11 = vld [vmem:[#allocation2 + $0x159c] ss:$24 sps:$4 sm:$0xff]  }
 0x2da   :  { %7611 = vmatprep.subr.bf16.mxu0 %v21709_v10  ;;  %v21777_v10 = vld [vmem:[#allocation2 + $0x1b94] ss:$24 sps:$4 sm:$0xff]  }
 0x2dc   :  { %8022 = vmatpush1.bf16.msra.mxu1 %v21710_v13  ;;  %v21778_v13 = vld [vmem:[#allocation2 + $0x1598] ss:$24 sps:$4 sm:$0xff]  }
 0x2dd   :  { %7612 = vmatpush1.bf16.msra.mxu0 %v21707_v12  ;;  %8023 = vmatprep.subr.bf16.mxu1 %v21718_v16  ;;  %v21775_v12 = vld [vmem:[#allocation2 + $0x1b90] ss:$24 sps:$4 sm:$0xff]   ;;  %v21786_v16 = vld [vmem:[#allocation2 + $0x15cc] ss:$24 sps:$4 sm:$0xff]  }
 0x2de   :  { %7613 = vmatprep.subr.bf16.mxu0 %v21715_v54  ;;  %v21783_v54 = vld [vmem:[#allocation2 + $0x1bc4] ss:$24 sps:$4 sm:$0xff]  }
 0x2e0   :  { %8024 = vmatpush1.bf16.msra.mxu1 %v21716_v18  ;;  %v21784_v18 = vld [vmem:[#allocation2 + $0x15c8] ss:$24 sps:$4 sm:$0xff]  }
 0x2e1   :  { %7614 = vmatpush1.bf16.msra.mxu0 %v21713_v17  ;;  %8025 = vmatprep.subr.bf16.mxu1 %v21724_v22  ;;  %v21781_v17 = vld [vmem:[#allocation2 + $0x1bc0] ss:$24 sps:$4 sm:$0xff]   ;;  %v21792_v22 = vld [vmem:[#allocation2 + $0x15fc] ss:$24 sps:$4 sm:$0xff]  }
 0x2e2   :  { %7615 = vmatprep.subr.bf16.mxu0 %v21721_v21  ;;  %v21789_v21 = vld [vmem:[#allocation2 + $0x1bf4] ss:$24 sps:$4 sm:$0xff]  }
 0x2e4   :  { %8026 = vmatpush1.bf16.msra.mxu1 %v21722_v24  ;;  %v21790_v24 = vld [vmem:[#allocation2 + $0x15f8] ss:$24 sps:$4 sm:$0xff]  }
 0x2e5   :  { %7616 = vmatpush1.bf16.msra.mxu0 %v21719_v23  ;;  %8027 = vmatprep.subr.bf16.mxu1 %v21730_v28  ;;  %v21787_v23 = vld [vmem:[#allocation2 + $0x1bf0] ss:$24 sps:$4 sm:$0xff]   ;;  %v21798_v28 = vld [vmem:[#allocation2 + $0x162c] ss:$24 sps:$4 sm:$0xff]  }
 0x2e6   :  { %7617 = vmatprep.subr.bf16.mxu0 %v21727_v25  ;;  %v21795_v25 = vld [vmem:[#allocation2 + $0x1c24] ss:$24 sps:$4 sm:$0xff]  }
 0x2e8   :  { %8028 = vmatpush1.bf16.msra.mxu1 %v21728_v30  ;;  %v21796_v30 = vld [vmem:[#allocation2 + $0x1628] ss:$24 sps:$4 sm:$0xff]  }
 0x2e9   :  { %7618 = vmatpush1.bf16.msra.mxu0 %v21725_v29  ;;  %8029 = vmatprep.subr.bf16.mxu1 %v21736_v35  ;;  %v21793_v29 = vld [vmem:[#allocation2 + $0x1c20] ss:$24 sps:$4 sm:$0xff]   ;;  %v21804_v35 = vld [vmem:[#allocation2 + $0x165c] ss:$24 sps:$4 sm:$0xff]  }
 0x2ea   :  { %7619 = vmatprep.subr.bf16.mxu0 %v21733_v33  ;;  %v21801_v33 = vld [vmem:[#allocation2 + $0x1c54] ss:$24 sps:$4 sm:$0xff]  }
 0x2ec   :  { %8030 = vmatpush1.bf16.msra.mxu1 %v21734_v37  ;;  %v21802_v37 = vld [vmem:[#allocation2 + $0x1658] ss:$24 sps:$4 sm:$0xff]  }
 0x2ed   :  { %7620 = vmatpush1.bf16.msra.mxu0 %v21731_v36  ;;  %8031 = vmatprep.subr.bf16.mxu1 %v21742_v41  ;;  %v21799_v36 = vld [vmem:[#allocation2 + $0x1c50] ss:$24 sps:$4 sm:$0xff]   ;;  %v21810_v41 = vld [vmem:[#allocation2 + $0x168c] ss:$24 sps:$4 sm:$0xff]  }
 0x2ee   :  { %7621 = vmatprep.subr.bf16.mxu0 %v21739_v8  ;;  %v21807_v8 = vld [vmem:[#allocation2 + $0x1c84] ss:$24 sps:$4 sm:$0xff]  }
 0x2f0   :  { %8032 = vmatpush1.bf16.msra.mxu1 %v21740_v43  ;;  %v21808_v43 = vld [vmem:[#allocation2 + $0x1688] ss:$24 sps:$4 sm:$0xff]  }
 0x2f1   :  { %7622 = vmatpush1.bf16.msra.mxu0 %v21737_v42  ;;  %8033 = vmatprep.subr.bf16.mxu1 %v21748_v45  ;;  %v21805_v42 = vld [vmem:[#allocation2 + $0x1c80] ss:$24 sps:$4 sm:$0xff]   ;;  %v21816_v45 = vld [vmem:[#allocation2 + $0x16bc] ss:$24 sps:$4 sm:$0xff]  }
 0x2f2   :  { %7623 = vmatprep.subr.bf16.mxu0 %v21745_v27  ;;  %v21813_v27 = vld [vmem:[#allocation2 + $0x1cb4] ss:$24 sps:$4 sm:$0xff]  }
 0x2f4   :  { %8034 = vmatpush1.bf16.msra.mxu1 %v21746_v48  ;;  %v21814_v48 = vld [vmem:[#allocation2 + $0x16b8] ss:$24 sps:$4 sm:$0xff]  }
 0x2f5   :  { %7624 = vmatpush1.bf16.msra.mxu0 %v21743_v46  ;;  %8035 = vmatprep.subr.bf16.mxu1 %v21754_v50  ;;  %v21811_v46 = vld [vmem:[#allocation2 + $0x1cb0] ss:$24 sps:$4 sm:$0xff]   ;;  %v21822_v50 = vld [vmem:[#allocation2 + $0x16ec] ss:$24 sps:$4 sm:$0xff]  }
 0x2f6   :  { %7625 = vmatprep.subr.bf16.mxu0 %v21751_v49  ;;  %v21819_v49 = vld [vmem:[#allocation2 + $0x1ce4] ss:$24 sps:$4 sm:$0xff]  }
 0x2f8   :  { %8036 = vmatpush1.bf16.msra.mxu1 %v21752_v53  ;;  %v21820_v53 = vld [vmem:[#allocation2 + $0x16e8] ss:$24 sps:$4 sm:$0xff]  }
 0x2f9   :  { %7626 = vmatpush1.bf16.msra.mxu0 %v21749_v52  ;;  %8046 = vmatprep.subr.bf16.mxu1 %v21762_v57  ;;  %v21817_v52 = vld [vmem:[#allocation2 + $0x1ce0] ss:$24 sps:$4 sm:$0xff]   ;;  %v21828_v57 = vld [vmem:[#allocation2 + $0x171c] ss:$24 sps:$4 sm:$0xff]  }
 0x2fa   :  { %7636 = vmatprep.subr.bf16.mxu0 %v21759_v56  ;;  %v21825_v56 = vld [vmem:[#allocation2 + $0x1d14] ss:$24 sps:$4 sm:$0xff]  }
 0x2fb   :  { %8038 = vmatmul.mubr.bf16.vlgmr.msra.gmra.mrb[4].mxu1 %v25325_v9 }
 0x2fc   :  { %7628 = vmatmul.mubr.bf16.vlgmr.msra.gmra.mrb[0].mxu0 %v25359_v59  ;;  %8047 = vmatpush1.bf16.msra.mxu1 %v21760_v61  ;;  %v21826_v61 = vld [vmem:[#allocation2 + $0x1718] ss:$24 sps:$4 sm:$0xff]  }
 0x2fd   :  { %7637 = vmatpush1.bf16.msra.mxu0 %v21757_v39  ;;  %8048 = vmatprep.subr.bf16.mxu1 %v21768_v63  ;;  %v21823_v39 = vld [vmem:[#allocation2 + $0x1d10] ss:$24 sps:$4 sm:$0xff]   ;;  %v21834_v63 = vld [vmem:[#allocation2 + $0x174c] ss:$24 sps:$4 sm:$0xff]  }
 0x2fe   :  { %7638 = vmatprep.subr.bf16.mxu0 %v21765_v62  ;;  %7668 = vmatprep.mubr.bf16.mxu0 %v25363_v0  ;;  %v21831_v62 = vld [vmem:[#allocation2 + $0x1d44] ss:$24 sps:$4 sm:$0xff]  }
 0x2ff   :  { %8078 = vmatprep.mubr.bf16.mxu1 %v25329_v15 }
 0x300   :  { %8049 = vmatpush1.bf16.msra.mxu1 %v21766_v1  ;;  %v21832_v1 = vld [vmem:[#allocation2 + $0x1748] ss:$24 sps:$4 sm:$0xff]  }
 0x301   :  { %7639 = vmatpush1.bf16.msra.mxu0 %v21763_v19  ;;  %8050 = vmatprep.subr.bf16.mxu1 %v21774_v3  ;;  %v21829_v19 = vld [vmem:[#allocation2 + $0x1d40] ss:$24 sps:$4 sm:$0xff]   ;;  %v21840_v3 = vld [vmem:[#allocation2 + $0x177c] ss:$24 sps:$4 sm:$0xff]  }
 0x302   :  { %7640 = vmatprep.subr.bf16.mxu0 %v21771_v2  ;;  %v21837_v2 = vld [vmem:[#allocation2 + $0x1d74] ss:$24 sps:$4 sm:$0xff]  }
 0x304   :  { %8051 = vmatpush1.bf16.msra.mxu1 %v21772_v5  ;;  %v21838_v5 = vld [vmem:[#allocation2 + $0x1778] ss:$24 sps:$4 sm:$0xff]  }
 0x305   :  { %7641 = vmatpush1.bf16.msra.mxu0 %v21769_v4  ;;  %8052 = vmatprep.subr.bf16.mxu1 %v21780_v11  ;;  %v21835_v4 = vld [vmem:[#allocation2 + $0x1d70] ss:$24 sps:$4 sm:$0xff]   ;;  %v21846_v11 = vld [vmem:[#allocation2 + $0x17ac] ss:$24 sps:$4 sm:$0xff]  }
 0x306   :  { %7642 = vmatprep.subr.bf16.mxu0 %v21777_v10  ;;  %v21843_v10 = vld [vmem:[#allocation2 + $0x1da4] ss:$24 sps:$4 sm:$0xff]  }
 0x308   :  { %8053 = vmatpush1.bf16.msra.mxu1 %v21778_v13  ;;  %v21844_v13 = vld [vmem:[#allocation2 + $0x17a8] ss:$24 sps:$4 sm:$0xff]  }
 0x309   :  { %7643 = vmatpush1.bf16.msra.mxu0 %v21775_v12  ;;  %8054 = vmatprep.subr.bf16.mxu1 %v21786_v16  ;;  %v21841_v12 = vld [vmem:[#allocation2 + $0x1da0] ss:$24 sps:$4 sm:$0xff]   ;;  %v21852_v16 = vld [vmem:[#allocation2 + $0x17dc] ss:$24 sps:$4 sm:$0xff]  }
 0x30a   :  { %7644 = vmatprep.subr.bf16.mxu0 %v21783_v54  ;;  %v21849_v54 = vld [vmem:[#allocation2 + $0x1dd4] ss:$24 sps:$4 sm:$0xff]  }
 0x30c   :  { %8055 = vmatpush1.bf16.msra.mxu1 %v21784_v18  ;;  %v21850_v18 = vld [vmem:[#allocation2 + $0x17d8] ss:$24 sps:$4 sm:$0xff]  }
 0x30d   :  { %7645 = vmatpush1.bf16.msra.mxu0 %v21781_v17  ;;  %8056 = vmatprep.subr.bf16.mxu1 %v21792_v22  ;;  %v21847_v17 = vld [vmem:[#allocation2 + $0x1dd0] ss:$24 sps:$4 sm:$0xff]   ;;  %v21860_v22 = vld [vmem:[#allocation2 + $0x180c] ss:$24 sps:$4 sm:$0xff]  }
 0x30e   :  { %7646 = vmatprep.subr.bf16.mxu0 %v21789_v21  ;;  %v21857_v21 = vld [vmem:[#allocation2 + $0x1e04] ss:$24 sps:$4 sm:$0xff]  }
 0x310   :  { %8057 = vmatpush1.bf16.msra.mxu1 %v21790_v24  ;;  %v21858_v24 = vld [vmem:[#allocation2 + $0x1808] ss:$24 sps:$4 sm:$0xff]  }
 0x311   :  { %7647 = vmatpush1.bf16.msra.mxu0 %v21787_v23  ;;  %8058 = vmatprep.subr.bf16.mxu1 %v21798_v28  ;;  %v21855_v23 = vld [vmem:[#allocation2 + $0x1e00] ss:$24 sps:$4 sm:$0xff]   ;;  %v25376_v28 = vld [vmem:[%s25657_s0 + $0x50] sm:$0xff] }
 0x312   :  { %7648 = vmatprep.subr.bf16.mxu0 %v21795_v25  ;;  %v25371_v25 = vcombine.low %v25355_v58, %v25355_v58  ;;  %v21861_v58 = vld [vmem:[#allocation2 + $0x1e30] ss:$24 sps:$4 sm:$0xff]  }
 0x314   :  { %8059 = vmatpush1.bf16.msra.mxu1 %v21796_v30  ;;  %v21866_v30 = vld [vmem:[#allocation2 + $0x183c] ss:$24 sps:$4 sm:$0xff]  }
 0x315   :  { %7649 = vmatpush1.bf16.msra.mxu0 %v21793_v29  ;;  %8060 = vmatprep.subr.bf16.mxu1 %v21804_v35  ;;  %v21863_v29 = vld [vmem:[#allocation2 + $0x1e34] ss:$24 sps:$4 sm:$0xff]   ;;  %v21864_v35 = vld [vmem:[#allocation2 + $0x1838] ss:$24 sps:$4 sm:$0xff]  }
 0x316   :  { %7650 = vmatprep.subr.bf16.mxu0 %v21801_v33  ;;  %v25380_v33 = vcombine.high %v25376_v28, %v25376_v28 }
 0x318   :  { %8061 = vmatpush1.bf16.msra.mxu1 %v21802_v37  ;;  %v21872_v37 = vld [vmem:[#allocation2 + $0x186c] ss:$24 sps:$4 sm:$0xff]  }
 0x319   :  { %7651 = vmatpush1.bf16.msra.mxu0 %v21799_v36  ;;  %8062 = vmatprep.subr.bf16.mxu1 %v21810_v41  ;;  %v21869_v36 = vld [vmem:[#allocation2 + $0x1e64] ss:$24 sps:$4 sm:$0xff]   ;;  %v21870_v41 = vld [vmem:[#allocation2 + $0x1868] ss:$24 sps:$4 sm:$0xff]  }
 0x31a   :  { %7652 = vmatprep.subr.bf16.mxu0 %v21807_v8  ;;  %v21867_v8 = vld [vmem:[#allocation2 + $0x1e60] ss:$24 sps:$4 sm:$0xff]  }
 0x31c   :  { %8063 = vmatpush1.bf16.msra.mxu1 %v21808_v43  ;;  %v21878_v43 = vld [vmem:[#allocation2 + $0x189c] ss:$24 sps:$4 sm:$0xff]  }
 0x31d   :  { %7653 = vmatpush1.bf16.msra.mxu0 %v21805_v42  ;;  %8064 = vmatprep.subr.bf16.mxu1 %v21816_v45  ;;  %v21875_v42 = vld [vmem:[#allocation2 + $0x1e94] ss:$24 sps:$4 sm:$0xff]   ;;  %v21876_v45 = vld [vmem:[#allocation2 + $0x1898] ss:$24 sps:$4 sm:$0xff]  }
 0x31e   :  { %7654 = vmatprep.subr.bf16.mxu0 %v21813_v27  ;;  %v21873_v27 = vld [vmem:[#allocation2 + $0x1e90] ss:$24 sps:$4 sm:$0xff]  }
 0x320   :  { %8065 = vmatpush1.bf16.msra.mxu1 %v21814_v48  ;;  %v21884_v48 = vld [vmem:[#allocation2 + $0x18cc] ss:$24 sps:$4 sm:$0xff]  }
 0x321   :  { %7655 = vmatpush1.bf16.msra.mxu0 %v21811_v46  ;;  %8066 = vmatprep.subr.bf16.mxu1 %v21822_v50  ;;  %v21881_v46 = vld [vmem:[#allocation2 + $0x1ec4] ss:$24 sps:$4 sm:$0xff]   ;;  %v21882_v50 = vld [vmem:[#allocation2 + $0x18c8] ss:$24 sps:$4 sm:$0xff]  }
 0x322   :  { %7656 = vmatprep.subr.bf16.mxu0 %v21819_v49  ;;  %v21879_v49 = vld [vmem:[#allocation2 + $0x1ec0] ss:$24 sps:$4 sm:$0xff]  }
 0x324   :  { %8067 = vmatpush1.bf16.msra.mxu1 %v21820_v53  ;;  %v21890_v53 = vld [vmem:[#allocation2 + $0x18fc] ss:$24 sps:$4 sm:$0xff]  }
 0x325   :  { %7657 = vmatpush1.bf16.msra.mxu0 %v21817_v52  ;;  %8068 = vmatprep.subr.bf16.mxu1 %v21828_v57  ;;  %v21887_v52 = vld [vmem:[#allocation2 + $0x1ef4] ss:$24 sps:$4 sm:$0xff]   ;;  %v21888_v57 = vld [vmem:[#allocation2 + $0x18f8] ss:$24 sps:$4 sm:$0xff]  }
 0x326   :  { %7658 = vmatprep.subr.bf16.mxu0 %v21825_v56  ;;  %v21885_v56 = vld [vmem:[#allocation2 + $0x1ef0] ss:$24 sps:$4 sm:$0xff]  }
 0x328   :  { %8069 = vmatpush1.bf16.msra.mxu1 %v21826_v61  ;;  %v21896_v61 = vld [vmem:[#allocation2 + $0x192c] ss:$24 sps:$4 sm:$0xff]  }
 0x329   :  { %7659 = vmatpush1.bf16.msra.mxu0 %v21823_v39  ;;  %8070 = vmatprep.subr.bf16.mxu1 %v21834_v63  ;;  %v21893_v39 = vld [vmem:[#allocation2 + $0x1f24] ss:$24 sps:$4 sm:$0xff]   ;;  %v21894_v63 = vld [vmem:[#allocation2 + $0x1928] ss:$24 sps:$4 sm:$0xff]  }
 0x32a   :  { %7660 = vmatprep.subr.bf16.mxu0 %v21831_v62  ;;  %v21891_v62 = vld [vmem:[#allocation2 + $0x1f20] ss:$24 sps:$4 sm:$0xff]  }
 0x32c   :  { %8071 = vmatpush1.bf16.msra.mxu1 %v21832_v1  ;;  %v21902_v1 = vld [vmem:[#allocation2 + $0x195c] ss:$24 sps:$4 sm:$0xff]  }
 0x32d   :  { %7661 = vmatpush1.bf16.msra.mxu0 %v21829_v19  ;;  %8072 = vmatprep.subr.bf16.mxu1 %v21840_v3  ;;  %v21899_v19 = vld [vmem:[#allocation2 + $0x1f54] ss:$24 sps:$4 sm:$0xff]   ;;  %v21900_v3 = vld [vmem:[#allocation2 + $0x1958] ss:$24 sps:$4 sm:$0xff]  }
 0x32e   :  { %7662 = vmatprep.subr.bf16.mxu0 %v21837_v2  ;;  %v21897_v2 = vld [vmem:[#allocation2 + $0x1f50] ss:$24 sps:$4 sm:$0xff]  }
 0x330   :  { %8073 = vmatpush1.bf16.msra.mxu1 %v21838_v5  ;;  %v21908_v5 = vld [vmem:[#allocation2 + $0x198c] ss:$24 sps:$4 sm:$0xff]  }
 0x331   :  { %7663 = vmatpush1.bf16.msra.mxu0 %v21835_v4  ;;  %8074 = vmatprep.subr.bf16.mxu1 %v21846_v11  ;;  %v21905_v4 = vld [vmem:[#allocation2 + $0x1f84] ss:$24 sps:$4 sm:$0xff]   ;;  %v21906_v11 = vld [vmem:[#allocation2 + $0x1988] ss:$24 sps:$4 sm:$0xff]  }
 0x332   :  { %7664 = vmatprep.subr.bf16.mxu0 %v21843_v10  ;;  %v21903_v10 = vld [vmem:[#allocation2 + $0x1f80] ss:$24 sps:$4 sm:$0xff]  }
 0x334   :  { %8075 = vmatpush1.bf16.msra.mxu1 %v21844_v13  ;;  %v21914_v13 = vld [vmem:[#allocation2 + $0x19bc] ss:$24 sps:$4 sm:$0xff]  }
 0x335   :  { %7665 = vmatpush1.bf16.msra.mxu0 %v21841_v12  ;;  %8076 = vmatprep.subr.bf16.mxu1 %v21852_v16  ;;  %v21911_v12 = vld [vmem:[#allocation2 + $0x1fb4] ss:$24 sps:$4 sm:$0xff]   ;;  %v21912_v16 = vld [vmem:[#allocation2 + $0x19b8] ss:$24 sps:$4 sm:$0xff]  }
 0x336   :  { %7666 = vmatprep.subr.bf16.mxu0 %v21849_v54  ;;  %v21909_v54 = vld [vmem:[#allocation2 + $0x1fb0] ss:$24 sps:$4 sm:$0xff]  }
 0x338   :  { %8077 = vmatpush1.bf16.msra.mxu1 %v21850_v18  ;;  %v21920_v18 = vld [vmem:[#allocation2 + $0x19ec] ss:$24 sps:$4 sm:$0xff]  }
 0x339   :  { %7667 = vmatpush1.bf16.msra.mxu0 %v21847_v17  ;;  %8087 = vmatprep.subr.bf16.mxu1 %v21860_v22  ;;  %v21917_v17 = vld [vmem:[#allocation2 + $0x1fe4] ss:$24 sps:$4 sm:$0xff]   ;;  %v21918_v22 = vld [vmem:[#allocation2 + $0x19e8] ss:$24 sps:$4 sm:$0xff]  }
 0x33a   :  { %7677 = vmatprep.subr.bf16.mxu0 %v21857_v21  ;;  %v21915_v21 = vld [vmem:[#allocation2 + $0x1fe0] ss:$24 sps:$4 sm:$0xff]  }
 0x33b   :  { %8079 = vmatmul.mubr.bf16.vlgmr.msra.gmra.mrb[4].mxu1 %v25342_v32 }
 0x33c   :  { %7669 = vmatmul.mubr.bf16.vlgmr.msra.gmra.mrb[0].mxu0 %v25371_v25  ;;  %8088 = vmatpush1.bf16.msra.mxu1 %v21858_v24  ;;  %v21926_v24 = vld [vmem:[#allocation2 + $0x1a1c] ss:$24 sps:$4 sm:$0xff]  }
 0x33d   :  { %7678 = vmatpush1.bf16.msra.mxu0 %v21855_v23  ;;  %8089 = vmatprep.subr.bf16.mxu1 %v21866_v30  ;;  %v21923_v23 = vld [vmem:[#allocation2 + $0x2014] ss:$24 sps:$4 sm:$0xff]   ;;  %v21924_v30 = vld [vmem:[#allocation2 + $0x1a18] ss:$24 sps:$4 sm:$0xff]  }
 0x33e   :  { %7679 = vmatprep.subr.bf16.mxu0 %v21863_v29  ;;  %7709 = vmatprep.mubr.bf16.mxu0 %v25380_v33  ;;  %v21921_v29 = vld [vmem:[#allocation2 + $0x2010] ss:$24 sps:$4 sm:$0xff]  }
 0x33f   :  { %8119 = vmatprep.mubr.bf16.mxu1 %v25346_v40 }
 0x340   :  { %8090 = vmatpush1.bf16.msra.mxu1 %v21864_v35  ;;  %v21932_v35 = vld [vmem:[#allocation2 + $0x1a4c] ss:$24 sps:$4 sm:$0xff]  }
 0x341   :  { %7680 = vmatpush1.bf16.msra.mxu0 %v21861_v58  ;;  %8091 = vmatprep.subr.bf16.mxu1 %v21872_v37  ;;  %v21929_v58 = vld [vmem:[#allocation2 + $0x2044] ss:$24 sps:$4 sm:$0xff]   ;;  %v21930_v37 = vld [vmem:[#allocation2 + $0x1a48] ss:$24 sps:$4 sm:$0xff]  }
 0x342   :  { %7681 = vmatprep.subr.bf16.mxu0 %v21869_v36  ;;  %v21927_v36 = vld [vmem:[#allocation2 + $0x2040] ss:$24 sps:$4 sm:$0xff]  }
 0x344   :  { %8092 = vmatpush1.bf16.msra.mxu1 %v21870_v41  ;;  %v21938_v41 = vld [vmem:[#allocation2 + $0x1a7c] ss:$24 sps:$4 sm:$0xff]  }
 0x345   :  { %7682 = vmatpush1.bf16.msra.mxu0 %v21867_v8  ;;  %8093 = vmatprep.subr.bf16.mxu1 %v21878_v43  ;;  %v21935_v8 = vld [vmem:[#allocation2 + $0x2074] ss:$24 sps:$4 sm:$0xff]   ;;  %v21936_v43 = vld [vmem:[#allocation2 + $0x1a78] ss:$24 sps:$4 sm:$0xff]  }
 0x346   :  { %7683 = vmatprep.subr.bf16.mxu0 %v21875_v42  ;;  %v21933_v42 = vld [vmem:[#allocation2 + $0x2070] ss:$24 sps:$4 sm:$0xff]  }
 0x348   :  { %8094 = vmatpush1.bf16.msra.mxu1 %v21876_v45  ;;  %v21944_v45 = vld [vmem:[#allocation2 + $0x1aac] ss:$24 sps:$4 sm:$0xff]  }
 0x349   :  { %7684 = vmatpush1.bf16.msra.mxu0 %v21873_v27  ;;  %8095 = vmatprep.subr.bf16.mxu1 %v21884_v48  ;;  %v21941_v27 = vld [vmem:[#allocation2 + $0x20a4] ss:$24 sps:$4 sm:$0xff]   ;;  %v21942_v48 = vld [vmem:[#allocation2 + $0x1aa8] ss:$24 sps:$4 sm:$0xff]  }
 0x34a   :  { %7685 = vmatprep.subr.bf16.mxu0 %v21881_v46  ;;  %v21939_v46 = vld [vmem:[#allocation2 + $0x20a0] ss:$24 sps:$4 sm:$0xff]  }
 0x34c   :  { %8096 = vmatpush1.bf16.msra.mxu1 %v21882_v50  ;;  %v21950_v50 = vld [vmem:[#allocation2 + $0x1adc] ss:$24 sps:$4 sm:$0xff]  }
 0x34d   :  { %7686 = vmatpush1.bf16.msra.mxu0 %v21879_v49  ;;  %8097 = vmatprep.subr.bf16.mxu1 %v21890_v53  ;;  %v21947_v49 = vld [vmem:[#allocation2 + $0x20d4] ss:$24 sps:$4 sm:$0xff]   ;;  %v21948_v53 = vld [vmem:[#allocation2 + $0x1ad8] ss:$24 sps:$4 sm:$0xff]  }
 0x34e   :  { %7687 = vmatprep.subr.bf16.mxu0 %v21887_v52  ;;  %v21945_v52 = vld [vmem:[#allocation2 + $0x20d0] ss:$24 sps:$4 sm:$0xff]  }
 0x350   :  { %8098 = vmatpush1.bf16.msra.mxu1 %v21888_v57  ;;  %v21958_v57 = vld [vmem:[#allocation2 + $0x1b0c] ss:$24 sps:$4 sm:$0xff]  }
 0x351   :  { %7688 = vmatpush1.bf16.msra.mxu0 %v21885_v56  ;;  %8099 = vmatprep.subr.bf16.mxu1 %v21896_v61  ;;  %v21955_v56 = vld [vmem:[#allocation2 + $0x2104] ss:$24 sps:$4 sm:$0xff]   ;;  %v25393_v61 = vcombine.low %v25376_v28, %v25376_v28  ;;  %v21959_v28 = vld [vmem:[#allocation2 + $0x2130] ss:$24 sps:$4 sm:$0xff]  }
 0x352   :  { %7689 = vmatprep.subr.bf16.mxu0 %v21893_v39  ;;  %v25389_v39 = vld [vmem:[%s25657_s0 + $0x58] sm:$0xff] }
 0x354   :  { %8100 = vmatpush1.bf16.msra.mxu1 %v21894_v63  ;;  %v21956_v63 = vld [vmem:[#allocation2 + $0x1b08] ss:$24 sps:$4 sm:$0xff]  }
 0x355   :  { %7690 = vmatpush1.bf16.msra.mxu0 %v21891_v62  ;;  %8101 = vmatprep.subr.bf16.mxu1 %v21902_v1  ;;  %v21953_v62 = vld [vmem:[#allocation2 + $0x2100] ss:$24 sps:$4 sm:$0xff]   ;;  %v21964_v1 = vld [vmem:[#allocation2 + $0x1b3c] ss:$24 sps:$4 sm:$0xff]  }
 0x356   :  { %7691 = vmatprep.subr.bf16.mxu0 %v21899_v19  ;;  %v21961_v19 = vld [vmem:[#allocation2 + $0x2134] ss:$24 sps:$4 sm:$0xff]  }
 0x358   :  { %8102 = vmatpush1.bf16.msra.mxu1 %v21900_v3  ;;  %v21962_v3 = vld [vmem:[#allocation2 + $0x1b38] ss:$24 sps:$4 sm:$0xff]  }
 0x359   :  { %7692 = vmatpush1.bf16.msra.mxu0 %v21897_v2  ;;  %8103 = vmatprep.subr.bf16.mxu1 %v21908_v5  ;;  %v25397_v2 = vcombine.high %v25389_v39, %v25389_v39  ;;  %v21970_v5 = vld [vmem:[#allocation2 + $0x1b6c] ss:$24 sps:$4 sm:$0xff]  }
 0x35a   :  { %7693 = vmatprep.subr.bf16.mxu0 %v21905_v4  ;;  %v21967_v4 = vld [vmem:[#allocation2 + $0x2164] ss:$24 sps:$4 sm:$0xff]  }
 0x35c   :  { %8104 = vmatpush1.bf16.msra.mxu1 %v21906_v11  ;;  %v21968_v11 = vld [vmem:[#allocation2 + $0x1b68] ss:$24 sps:$4 sm:$0xff]  }
 0x35d   :  { %7694 = vmatpush1.bf16.msra.mxu0 %v21903_v10  ;;  %8105 = vmatprep.subr.bf16.mxu1 %v21914_v13  ;;  %v21965_v10 = vld [vmem:[#allocation2 + $0x2160] ss:$24 sps:$4 sm:$0xff]   ;;  %v21976_v13 = vld [vmem:[#allocation2 + $0x1b9c] ss:$24 sps:$4 sm:$0xff]  }
 0x35e   :  { %7695 = vmatprep.subr.bf16.mxu0 %v21911_v12  ;;  %v21973_v12 = vld [vmem:[#allocation2 + $0x2194] ss:$24 sps:$4 sm:$0xff]  }
 0x360   :  { %8106 = vmatpush1.bf16.msra.mxu1 %v21912_v16  ;;  %v21974_v16 = vld [vmem:[#allocation2 + $0x1b98] ss:$24 sps:$4 sm:$0xff]  }
 0x361   :  { %7696 = vmatpush1.bf16.msra.mxu0 %v21909_v54  ;;  %8107 = vmatprep.subr.bf16.mxu1 %v21920_v18  ;;  %v21971_v54 = vld [vmem:[#allocation2 + $0x2190] ss:$24 sps:$4 sm:$0xff]   ;;  %v21982_v18 = vld [vmem:[#allocation2 + $0x1bcc] ss:$24 sps:$4 sm:$0xff]  }
 0x362   :  { %7697 = vmatprep.subr.bf16.mxu0 %v21917_v17  ;;  %v21979_v17 = vld [vmem:[#allocation2 + $0x21c4] ss:$24 sps:$4 sm:$0xff]  }
 0x364   :  { %8108 = vmatpush1.bf16.msra.mxu1 %v21918_v22  ;;  %v21980_v22 = vld [vmem:[#allocation2 + $0x1bc8] ss:$24 sps:$4 sm:$0xff]  }
 0x365   :  { %7698 = vmatpush1.bf16.msra.mxu0 %v21915_v21  ;;  %8109 = vmatprep.subr.bf16.mxu1 %v21926_v24  ;;  %v21977_v21 = vld [vmem:[#allocation2 + $0x21c0] ss:$24 sps:$4 sm:$0xff]   ;;  %v21988_v24 = vld [vmem:[#allocation2 + $0x1bfc] ss:$24 sps:$4 sm:$0xff]  }
 0x366   :  { %7699 = vmatprep.subr.bf16.mxu0 %v21923_v23  ;;  %v21985_v23 = vld [vmem:[#allocation2 + $0x21f4] ss:$24 sps:$4 sm:$0xff]  }
 0x368   :  { %8110 = vmatpush1.bf16.msra.mxu1 %v21924_v30  ;;  %v21986_v30 = vld [vmem:[#allocation2 + $0x1bf8] ss:$24 sps:$4 sm:$0xff]  }
 0x369   :  { %7700 = vmatpush1.bf16.msra.mxu0 %v21921_v29  ;;  %8111 = vmatprep.subr.bf16.mxu1 %v21932_v35  ;;  %v21983_v29 = vld [vmem:[#allocation2 + $0x21f0] ss:$24 sps:$4 sm:$0xff]   ;;  %v21994_v35 = vld [vmem:[#allocation2 + $0x1c2c] ss:$24 sps:$4 sm:$0xff]  }
 0x36a   :  { %7701 = vmatprep.subr.bf16.mxu0 %v21929_v58  ;;  %v21991_v58 = vld [vmem:[#allocation2 + $0x2224] ss:$24 sps:$4 sm:$0xff]  }
 0x36c   :  { %8112 = vmatpush1.bf16.msra.mxu1 %v21930_v37  ;;  %v21992_v37 = vld [vmem:[#allocation2 + $0x1c28] ss:$24 sps:$4 sm:$0xff]  }
 0x36d   :  { %7702 = vmatpush1.bf16.msra.mxu0 %v21927_v36  ;;  %8113 = vmatprep.subr.bf16.mxu1 %v21938_v41  ;;  %v21989_v36 = vld [vmem:[#allocation2 + $0x2220] ss:$24 sps:$4 sm:$0xff]   ;;  %v22000_v41 = vld [vmem:[#allocation2 + $0x1c5c] ss:$24 sps:$4 sm:$0xff]  }
 0x36e   :  { %7703 = vmatprep.subr.bf16.mxu0 %v21935_v8  ;;  %v21997_v8 = vld [vmem:[#allocation2 + $0x2254] ss:$24 sps:$4 sm:$0xff]  }
 0x370   :  { %8114 = vmatpush1.bf16.msra.mxu1 %v21936_v43  ;;  %v21998_v43 = vld [vmem:[#allocation2 + $0x1c58] ss:$24 sps:$4 sm:$0xff]  }
 0x371   :  { %7704 = vmatpush1.bf16.msra.mxu0 %v21933_v42  ;;  %8115 = vmatprep.subr.bf16.mxu1 %v21944_v45  ;;  %v21995_v42 = vld [vmem:[#allocation2 + $0x2250] ss:$24 sps:$4 sm:$0xff]   ;;  %v22006_v45 = vld [vmem:[#allocation2 + $0x1c8c] ss:$24 sps:$4 sm:$0xff]  }
 0x372   :  { %7705 = vmatprep.subr.bf16.mxu0 %v21941_v27  ;;  %v22003_v27 = vld [vmem:[#allocation2 + $0x2284] ss:$24 sps:$4 sm:$0xff]  }
 0x374   :  { %8116 = vmatpush1.bf16.msra.mxu1 %v21942_v48  ;;  %v22004_v48 = vld [vmem:[#allocation2 + $0x1c88] ss:$24 sps:$4 sm:$0xff]  }
 0x375   :  { %7706 = vmatpush1.bf16.msra.mxu0 %v21939_v46  ;;  %8117 = vmatprep.subr.bf16.mxu1 %v21950_v50  ;;  %v22001_v46 = vld [vmem:[#allocation2 + $0x2280] ss:$24 sps:$4 sm:$0xff]   ;;  %v22012_v50 = vld [vmem:[#allocation2 + $0x1cbc] ss:$24 sps:$4 sm:$0xff]  }
 0x376   :  { %7707 = vmatprep.subr.bf16.mxu0 %v21947_v49  ;;  %v22009_v49 = vld [vmem:[#allocation2 + $0x22b4] ss:$24 sps:$4 sm:$0xff]  }
 0x378   :  { %8118 = vmatpush1.bf16.msra.mxu1 %v21948_v53  ;;  %v22010_v53 = vld [vmem:[#allocation2 + $0x1cb8] ss:$24 sps:$4 sm:$0xff]  }
 0x379   :  { %7708 = vmatpush1.bf16.msra.mxu0 %v21945_v52  ;;  %8128 = vmatprep.subr.bf16.mxu1 %v21958_v57  ;;  %v22007_v52 = vld [vmem:[#allocation2 + $0x22b0] ss:$24 sps:$4 sm:$0xff]   ;;  %v22018_v57 = vld [vmem:[#allocation2 + $0x1cec] ss:$24 sps:$4 sm:$0xff]  }
 0x37a   :  { %7718 = vmatprep.subr.bf16.mxu0 %v21955_v56  ;;  %v22015_v56 = vld [vmem:[#allocation2 + $0x22e4] ss:$24 sps:$4 sm:$0xff]  }
 0x37b   :  { %8120 = vmatmul.mubr.bf16.vlgmr.msra.gmra.mrb[4].mxu1 %v25359_v59 }
 0x37c   :  { %7710 = vmatmul.mubr.bf16.vlgmr.msra.gmra.mrb[0].mxu0 %v25393_v61  ;;  %8129 = vmatpush1.bf16.msra.mxu1 %v21956_v63  ;;  %v22016_v63 = vld [vmem:[#allocation2 + $0x1ce8] ss:$24 sps:$4 sm:$0xff]  }
 0x37d   :  { %7719 = vmatpush1.bf16.msra.mxu0 %v21953_v62  ;;  %8130 = vmatprep.subr.bf16.mxu1 %v21964_v1  ;;  %v22013_v62 = vld [vmem:[#allocation2 + $0x22e0] ss:$24 sps:$4 sm:$0xff]   ;;  %v22024_v1 = vld [vmem:[#allocation2 + $0x1d1c] ss:$24 sps:$4 sm:$0xff]  }
 0x37e   :  { %7720 = vmatprep.subr.bf16.mxu0 %v21961_v19  ;;  %7750 = vmatprep.mubr.bf16.mxu0 %v25397_v2  ;;  %v22021_v19 = vld [vmem:[#allocation2 + $0x2314] ss:$24 sps:$4 sm:$0xff]  }
 0x37f   :  { %8160 = vmatprep.mubr.bf16.mxu1 %v25363_v0 }
 0x380   :  { %8131 = vmatpush1.bf16.msra.mxu1 %v21962_v3  ;;  %v22022_v3 = vld [vmem:[#allocation2 + $0x1d18] ss:$24 sps:$4 sm:$0xff]  }
 0x381   :  { %7721 = vmatpush1.bf16.msra.mxu0 %v21959_v28  ;;  %8132 = vmatprep.subr.bf16.mxu1 %v21970_v5  ;;  %v22019_v28 = vld [vmem:[#allocation2 + $0x2310] ss:$24 sps:$4 sm:$0xff]   ;;  %v22030_v5 = vld [vmem:[#allocation2 + $0x1d4c] ss:$24 sps:$4 sm:$0xff]  }
 0x382   :  { %7722 = vmatprep.subr.bf16.mxu0 %v21967_v4  ;;  %v22027_v4 = vld [vmem:[#allocation2 + $0x2344] ss:$24 sps:$4 sm:$0xff]  }
 0x384   :  { %8133 = vmatpush1.bf16.msra.mxu1 %v21968_v11  ;;  %v22028_v11 = vld [vmem:[#allocation2 + $0x1d48] ss:$24 sps:$4 sm:$0xff]  }
 0x385   :  { %7723 = vmatpush1.bf16.msra.mxu0 %v21965_v10  ;;  %8134 = vmatprep.subr.bf16.mxu1 %v21976_v13  ;;  %v22025_v10 = vld [vmem:[#allocation2 + $0x2340] ss:$24 sps:$4 sm:$0xff]   ;;  %v22036_v13 = vld [vmem:[#allocation2 + $0x1d7c] ss:$24 sps:$4 sm:$0xff]  }
 0x386   :  { %7724 = vmatprep.subr.bf16.mxu0 %v21973_v12  ;;  %v22033_v12 = vld [vmem:[#allocation2 + $0x2374] ss:$24 sps:$4 sm:$0xff]  }
 0x388   :  { %8135 = vmatpush1.bf16.msra.mxu1 %v21974_v16  ;;  %v22034_v16 = vld [vmem:[#allocation2 + $0x1d78] ss:$24 sps:$4 sm:$0xff]  }
 0x389   :  { %7725 = vmatpush1.bf16.msra.mxu0 %v21971_v54  ;;  %8136 = vmatprep.subr.bf16.mxu1 %v21982_v18  ;;  %v22031_v54 = vld [vmem:[#allocation2 + $0x2370] ss:$24 sps:$4 sm:$0xff]   ;;  %v22042_v18 = vld [vmem:[#allocation2 + $0x1dac] ss:$24 sps:$4 sm:$0xff]  }
 0x38a   :  { %7726 = vmatprep.subr.bf16.mxu0 %v21979_v17  ;;  %v22039_v17 = vld [vmem:[#allocation2 + $0x23a4] ss:$24 sps:$4 sm:$0xff]  }
 0x38c   :  { %8137 = vmatpush1.bf16.msra.mxu1 %v21980_v22  ;;  %v22040_v22 = vld [vmem:[#allocation2 + $0x1da8] ss:$24 sps:$4 sm:$0xff]  }
 0x38d   :  { %7727 = vmatpush1.bf16.msra.mxu0 %v21977_v21  ;;  %8138 = vmatprep.subr.bf16.mxu1 %v21988_v24  ;;  %v22037_v21 = vld [vmem:[#allocation2 + $0x23a0] ss:$24 sps:$4 sm:$0xff]   ;;  %v22048_v24 = vld [vmem:[#allocation2 + $0x1ddc] ss:$24 sps:$4 sm:$0xff]  }
 0x38e   :  { %7728 = vmatprep.subr.bf16.mxu0 %v21985_v23  ;;  %v22045_v23 = vld [vmem:[#allocation2 + $0x23d4] ss:$24 sps:$4 sm:$0xff]  }
 0x390   :  { %8139 = vmatpush1.bf16.msra.mxu1 %v21986_v30  ;;  %v22046_v30 = vld [vmem:[#allocation2 + $0x1dd8] ss:$24 sps:$4 sm:$0xff]  }
 0x391   :  { %7729 = vmatpush1.bf16.msra.mxu0 %v21983_v29  ;;  %8140 = vmatprep.subr.bf16.mxu1 %v21994_v35  ;;  %v22043_v29 = vld [vmem:[#allocation2 + $0x23d0] ss:$24 sps:$4 sm:$0xff]   ;;  %v22056_v35 = vld [vmem:[#allocation2 + $0x14] ss:$24 sps:$4 sm:$0xff]  }
 0x392   :  { %7730 = vmatprep.subr.bf16.mxu0 %v21991_v58  ;;  %v22053_v58 = vld [vmem:[#allocation2 + $0x1e0c] ss:$24 sps:$4 sm:$0xff]  }
 0x394   :  { %8141 = vmatpush1.bf16.msra.mxu1 %v21992_v37  ;;  %v22054_v37 = vld [vmem:[#allocation2 + $0x10] ss:$24 sps:$4 sm:$0xff]  }
 0x395   :  { %7731 = vmatpush1.bf16.msra.mxu0 %v21989_v36  ;;  %8142 = vmatprep.subr.bf16.mxu1 %v22000_v41  ;;  %v22051_v36 = vld [vmem:[#allocation2 + $0x1e08] ss:$24 sps:$4 sm:$0xff]   ;;  %v22059_v41 = vld [vmem:[#allocation2 + $0x1e3c] ss:$24 sps:$4 sm:$0xff]  }
 0x396   :  { %7732 = vmatprep.subr.bf16.mxu0 %v21997_v8  ;;  %v25405_v8 = vcombine.low %v25389_v39, %v25389_v39  ;;  %v22063_v39 = vld [vmem:[#allocation2 + $0x1e68] ss:$24 sps:$4 sm:$0xff]  }
 0x398   :  { %8143 = vmatpush1.bf16.msra.mxu1 %v21998_v43  ;;  %v22057_v43 = vld [vmem:[#allocation2 + $0x1e38] ss:$24 sps:$4 sm:$0xff]  }
 0x399   :  { %7733 = vmatpush1.bf16.msra.mxu0 %v21995_v42  ;;  %8144 = vmatprep.subr.bf16.mxu1 %v22006_v45  ;;  %v22062_v42 = vld [vmem:[#allocation2 + $0x44] ss:$24 sps:$4 sm:$0xff]  }
 0x39a   :  { %7734 = vmatprep.subr.bf16.mxu0 %v22003_v27  ;;  %v22060_v27 = vld [vmem:[#allocation2 + $0x40] ss:$24 sps:$4 sm:$0xff]   ;;  %v22065_v45 = vld [vmem:[#allocation2 + $0x1e6c] ss:$24 sps:$4 sm:$0xff]  }
 0x39c   :  { %8145 = vmatpush1.bf16.msra.mxu1 %v22004_v48  ;;  %v22066_v48 = vld [vmem:[#allocation2 + $0x70] ss:$24 sps:$4 sm:$0xff]  }
 0x39d   :  { %7735 = vmatpush1.bf16.msra.mxu0 %v22001_v46  ;;  %8146 = vmatprep.subr.bf16.mxu1 %v22012_v50  ;;  %v22068_v46 = vld [vmem:[#allocation2 + $0x74] ss:$24 sps:$4 sm:$0xff]   ;;  %v22074_v50 = vld [vmem:[#allocation2 + $0xa4] ss:$24 sps:$4 sm:$0xff]  }
 0x39e   :  { %7736 = vmatprep.subr.bf16.mxu0 %v22009_v49  ;;  %v22071_v49 = vld [vmem:[#allocation2 + $0x1e9c] ss:$24 sps:$4 sm:$0xff]  }
 0x3a0   :  { %8147 = vmatpush1.bf16.msra.mxu1 %v22010_v53  ;;  %v22072_v53 = vld [vmem:[#allocation2 + $0xa0] ss:$24 sps:$4 sm:$0xff]  }
 0x3a1   :  { %7737 = vmatpush1.bf16.msra.mxu0 %v22007_v52  ;;  %8148 = vmatprep.subr.bf16.mxu1 %v22018_v57  ;;  %v22069_v52 = vld [vmem:[#allocation2 + $0x1e98] ss:$24 sps:$4 sm:$0xff]   ;;  %v22080_v57 = vld [vmem:[#allocation2 + $0xd4] ss:$24 sps:$4 sm:$0xff]  }
 0x3a2   :  { %7738 = vmatprep.subr.bf16.mxu0 %v22015_v56  ;;  %v22077_v56 = vld [vmem:[#allocation2 + $0x1ecc] ss:$24 sps:$4 sm:$0xff]  }
 0x3a4   :  { %8149 = vmatpush1.bf16.msra.mxu1 %v22016_v63  ;;  %v22078_v63 = vld [vmem:[#allocation2 + $0xd0] ss:$24 sps:$4 sm:$0xff]  }
 0x3a5   :  { %7739 = vmatpush1.bf16.msra.mxu0 %v22013_v62  ;;  %8150 = vmatprep.subr.bf16.mxu1 %v22024_v1  ;;  %v22075_v62 = vld [vmem:[#allocation2 + $0x1ec8] ss:$24 sps:$4 sm:$0xff]   ;;  %v25411_v1 = vpop.f32.mrb[0].mxu1 }
 0x3a6   :  { %7740 = vmatprep.subr.bf16.mxu0 %v22021_v19  ;;  %v22083_v19 = vld [vmem:[#allocation2 + $0x1efc] ss:$24 sps:$4 sm:$0xff]  }
 0x3a8   :  { %8151 = vmatpush1.bf16.msra.mxu1 %v22022_v3  ;;  %v22084_v3 = vld [vmem:[#allocation2 + $0x100] ss:$24 sps:$4 sm:$0xff]  }
 0x3a9   :  { %7741 = vmatpush1.bf16.msra.mxu0 %v22019_v28  ;;  %8152 = vmatprep.subr.bf16.mxu1 %v22030_v5  ;;  %v22081_v28 = vld [vmem:[#allocation2 + $0x1ef8] ss:$24 sps:$4 sm:$0xff]   ;;  %v25413_v5 = vpop.f32.mrb[1].mxu1 }
 0x3aa   :  { %7742 = vmatprep.subr.bf16.mxu0 %v22027_v4  ;;  %v22089_v4 = vld [vmem:[#allocation2 + $0x1f2c] ss:$24 sps:$4 sm:$0xff]  }
 0x3ac   :  { %8153 = vmatpush1.bf16.msra.mxu1 %v22028_v11  ;;  %v7305_v11 = vpop.f32.mrb[2].mxu1 }
 0x3ad   :  { %7743 = vmatpush1.bf16.msra.mxu0 %v22025_v10  ;;  %8154 = vmatprep.subr.bf16.mxu1 %v22036_v13  ;;  %v22092_v10 = vld [vmem:[#allocation2 + $0x134] ss:$24 sps:$4 sm:$0xff]   ;;  %v22090_v13 = vld [vmem:[#allocation2 + $0x130] ss:$24 sps:$4 sm:$0xff]   ;;  %v22144_v11 = vld [vmem:[#allocation2 + $0x2e0] ss:$24 sps:$4 sm:$0xff]  }
 0x3ae   :  { %7744 = vmatprep.subr.bf16.mxu0 %v22033_v12  ;;  %v22087_v12 = vld [vmem:[#allocation2 + $0x1f28] ss:$24 sps:$4 sm:$0xff]  }
 0x3b0   :  { %8155 = vmatpush1.bf16.msra.mxu1 %v22034_v16  ;;  %v22095_v16 = vld [vmem:[#allocation2 + $0x1f5c] ss:$24 sps:$4 sm:$0xff]  }
 0x3b1   :  { %7745 = vmatpush1.bf16.msra.mxu0 %v22031_v54  ;;  %8156 = vmatprep.subr.bf16.mxu1 %v22042_v18  ;;  %v7306_v54 = vpop.f32.mrb[3].mxu1  ;;  %v22093_v18 = vld [vmem:[#allocation2 + $0x1f58] ss:$24 sps:$4 sm:$0xff]  }
 0x3b2   :  { %7746 = vmatprep.subr.bf16.mxu0 %v22039_v17  ;;  %v22098_v17 = vld [vmem:[#allocation2 + $0x164] ss:$24 sps:$4 sm:$0xff]   ;;  %v22147_v54 = vld [vmem:[#allocation2 + $0x2108] ss:$24 sps:$4 sm:$0xff]  }
 0x3b4   :  { %8157 = vmatpush1.bf16.msra.mxu1 %v22040_v22  ;;  %v22101_v22 = vld [vmem:[#allocation2 + $0x1f8c] ss:$24 sps:$4 sm:$0xff]  }
 0x3b5   :  { %7747 = vmatpush1.bf16.msra.mxu0 %v22037_v21  ;;  %8158 = vmatprep.subr.bf16.mxu1 %v22048_v24  ;;  %v22096_v21 = vld [vmem:[#allocation2 + $0x160] ss:$24 sps:$4 sm:$0xff]  }
 0x3b6   :  { %7748 = vmatprep.subr.bf16.mxu0 %v22045_v23  ;;  %v22104_v23 = vld [vmem:[#allocation2 + $0x194] ss:$24 sps:$4 sm:$0xff]   ;;  %v22099_v24 = vld [vmem:[#allocation2 + $0x1f88] ss:$24 sps:$4 sm:$0xff]  }
 0x3b8   :  { %8159 = vmatpush1.bf16.msra.mxu1 %v22046_v30  ;;  %v22107_v30 = vld [vmem:[#allocation2 + $0x1fbc] ss:$24 sps:$4 sm:$0xff]  }
 0x3b9   :  { %7749 = vmatpush1.bf16.msra.mxu0 %v22043_v29  ;;  %8169 = vmatprep.subr.bf16.mxu1 %v22053_v58  ;;  %v22102_v29 = vld [vmem:[#allocation2 + $0x190] ss:$24 sps:$4 sm:$0xff]   ;;  %v22110_v58 = vld [vmem:[#allocation2 + $0x1c4] ss:$24 sps:$4 sm:$0xff]  }
 0x3ba   :  { %8251 = vmatprep.subr.bf16.mxu0 %v22056_v35  ;;  %v22105_v35 = vld [vmem:[#allocation2 + $0x1fb8] ss:$24 sps:$4 sm:$0xff]  }
 0x3bb   :  { %8161 = vmatmul.mubr.bf16.vlgmr.msra.gmra.mrb[4].mxu1 %v25371_v25 }
 0x3bc   :  { %7751 = vmatmul.mubr.bf16.vlgmr.msra.gmra.mrb[0].mxu0 %v25405_v8  ;;  %8170 = vmatpush1.bf16.msra.mxu1 %v22051_v36  ;;  %v22108_v36 = vld [vmem:[#allocation2 + $0x1c0] ss:$24 sps:$4 sm:$0xff]  }
 0x3bd   :  { %8252 = vmatpush1.bf16.msra.mxu0 %v22054_v37  ;;  %8171 = vmatprep.subr.bf16.mxu1 %v22059_v41  ;;  %v22113_v37 = vld [vmem:[#allocation2 + $0x1fec] ss:$24 sps:$4 sm:$0xff]  }
 0x3be   :  { %8253 = vmatprep.subr.bf16.mxu0 %v22062_v42  ;;  %8201 = vmatprep.mubr.bf16.mxu1 %v25380_v33  ;;  %v22116_v41 = vld [vmem:[#allocation2 + $0x1f4] ss:$24 sps:$4 sm:$0xff]   ;;  %v22111_v42 = vld [vmem:[#allocation2 + $0x1fe8] ss:$24 sps:$4 sm:$0xff]  }
 0x3bf   :  { %8283 = vmatprep.mubr.bf16.mxu0 %v25224_v47  ;;  %v22086_v47 = vld [vmem:[#allocation2 + $0x104] ss:$24 sps:$4 sm:$0xff]  }
 0x3c0   :  { %8172 = vmatpush1.bf16.msra.mxu1 %v22057_v43  ;;  %v22114_v43 = vld [vmem:[#allocation2 + $0x1f0] ss:$24 sps:$4 sm:$0xff]  }
 0x3c1   :  { %8254 = vmatpush1.bf16.msra.mxu0 %v22060_v27  ;;  %8173 = vmatprep.subr.bf16.mxu1 %v22065_v45  ;;  %v22119_v27 = vld [vmem:[#allocation2 + $0x201c] ss:$24 sps:$4 sm:$0xff]  }
 0x3c2   :  { %8255 = vmatprep.subr.bf16.mxu0 %v22068_v46  ;;  %v22122_v45 = vld [vmem:[#allocation2 + $0x224] ss:$24 sps:$4 sm:$0xff]   ;;  %v22117_v46 = vld [vmem:[#allocation2 + $0x2018] ss:$24 sps:$4 sm:$0xff]  }
 0x3c4   :  { %8174 = vmatpush1.bf16.msra.mxu1 %v22063_v39  ;;  %v22120_v39 = vld [vmem:[#allocation2 + $0x220] ss:$24 sps:$4 sm:$0xff]  }
 0x3c5   :  { %8256 = vmatpush1.bf16.msra.mxu0 %v22066_v48  ;;  %8175 = vmatprep.subr.bf16.mxu1 %v22071_v49  ;;  %v22125_v48 = vld [vmem:[#allocation2 + $0x204c] ss:$24 sps:$4 sm:$0xff]  }
 0x3c6   :  { %8257 = vmatprep.subr.bf16.mxu0 %v22074_v50  ;;  %v22128_v49 = vld [vmem:[#allocation2 + $0x254] ss:$24 sps:$4 sm:$0xff]   ;;  %v22123_v50 = vld [vmem:[#allocation2 + $0x2048] ss:$24 sps:$4 sm:$0xff]  }
 0x3c8   :  { %8176 = vmatpush1.bf16.msra.mxu1 %v22069_v52  ;;  %v22126_v52 = vld [vmem:[#allocation2 + $0x250] ss:$24 sps:$4 sm:$0xff]  }
 0x3c9   :  { %8258 = vmatpush1.bf16.msra.mxu0 %v22072_v53  ;;  %8177 = vmatprep.subr.bf16.mxu1 %v22077_v56  ;;  %v22131_v53 = vld [vmem:[#allocation2 + $0x207c] ss:$24 sps:$4 sm:$0xff]  }
 0x3ca   :  { %8259 = vmatprep.subr.bf16.mxu0 %v22080_v57  ;;  %v22134_v56 = vld [vmem:[#allocation2 + $0x284] ss:$24 sps:$4 sm:$0xff]   ;;  %v22129_v57 = vld [vmem:[#allocation2 + $0x2078] ss:$24 sps:$4 sm:$0xff]  }
 0x3cc   :  { %8178 = vmatpush1.bf16.msra.mxu1 %v22075_v62  ;;  %v22132_v62 = vld [vmem:[#allocation2 + $0x280] ss:$24 sps:$4 sm:$0xff]  }
 0x3cd   :  { %8260 = vmatpush1.bf16.msra.mxu0 %v22078_v63  ;;  %8179 = vmatprep.subr.bf16.mxu1 %v22083_v19  ;;  %v22137_v63 = vld [vmem:[#allocation2 + $0x20ac] ss:$24 sps:$4 sm:$0xff]  }
 0x3ce   :  { %8261 = vmatprep.subr.bf16.mxu0 %v22086_v47  ;;  %v22140_v19 = vld [vmem:[#allocation2 + $0x2b4] ss:$24 sps:$4 sm:$0xff]   ;;  %v22135_v47 = vld [vmem:[#allocation2 + $0x20a8] ss:$24 sps:$4 sm:$0xff]  }
 0x3d0   :  { %8180 = vmatpush1.bf16.msra.mxu1 %v22081_v28  ;;  %v22138_v28 = vld [vmem:[#allocation2 + $0x2b0] ss:$24 sps:$4 sm:$0xff]  }
 0x3d1   :  { %8262 = vmatpush1.bf16.msra.mxu0 %v22084_v3  ;;  %8181 = vmatprep.subr.bf16.mxu1 %v22089_v4  ;;  %v22143_v3 = vld [vmem:[#allocation2 + $0x20dc] ss:$24 sps:$4 sm:$0xff]  }
 0x3d2   :  { %8263 = vmatprep.subr.bf16.mxu0 %v22092_v10  ;;  %v22146_v4 = vld [vmem:[#allocation2 + $0x2e4] ss:$24 sps:$4 sm:$0xff]   ;;  %v22141_v10 = vld [vmem:[#allocation2 + $0x20d8] ss:$24 sps:$4 sm:$0xff]  }
 0x3d4   :  { %8182 = vmatpush1.bf16.msra.mxu1 %v22087_v12  ;;  %v22149_v12 = vld [vmem:[#allocation2 + $0x210c] ss:$24 sps:$4 sm:$0xff]  }
 0x3d5   :  { %8264 = vmatpush1.bf16.msra.mxu0 %v22090_v13  ;;  %8183 = vmatprep.subr.bf16.mxu1 %v22095_v16  ;;  %v22152_v13 = vld [vmem:[#allocation2 + $0x314] ss:$24 sps:$4 sm:$0xff]   ;;  %v22150_v16 = vld [vmem:[#allocation2 + $0x310] ss:$24 sps:$4 sm:$0xff]  }
 0x3d6   :  { %8265 = vmatprep.subr.bf16.mxu0 %v22098_v17  ;;  %v22155_v17 = vld [vmem:[#allocation2 + $0x213c] ss:$24 sps:$4 sm:$0xff]  }
 0x3d8   :  { %8184 = vmatpush1.bf16.msra.mxu1 %v22093_v18  ;;  %v22158_v18 = vld [vmem:[#allocation2 + $0x344] ss:$24 sps:$4 sm:$0xff]  }
 0x3d9   :  { %8266 = vmatpush1.bf16.msra.mxu0 %v22096_v21  ;;  %8185 = vmatprep.subr.bf16.mxu1 %v22101_v22  ;;  %v22153_v21 = vld [vmem:[#allocation2 + $0x2138] ss:$24 sps:$4 sm:$0xff]  }
 0x3da   :  { %8267 = vmatprep.subr.bf16.mxu0 %v22104_v23  ;;  %v22156_v22 = vld [vmem:[#allocation2 + $0x340] ss:$24 sps:$4 sm:$0xff]   ;;  %v22161_v23 = vld [vmem:[#allocation2 + $0x216c] ss:$24 sps:$4 sm:$0xff]  }
 0x3dc   :  { %8186 = vmatpush1.bf16.msra.mxu1 %v22099_v24  ;;  %v22164_v24 = vld [vmem:[#allocation2 + $0x374] ss:$24 sps:$4 sm:$0xff]  }
 0x3dd   :  { %8268 = vmatpush1.bf16.msra.mxu0 %v22102_v29  ;;  %8187 = vmatprep.subr.bf16.mxu1 %v22107_v30  ;;  %v22159_v29 = vld [vmem:[#allocation2 + $0x2168] ss:$24 sps:$4 sm:$0xff]  }
 0x3de   :  { %8269 = vmatprep.subr.bf16.mxu0 %v22110_v58  ;;  %v22162_v30 = vld [vmem:[#allocation2 + $0x370] ss:$24 sps:$4 sm:$0xff]   ;;  %v22167_v58 = vld [vmem:[#allocation2 + $0x219c] ss:$24 sps:$4 sm:$0xff]  }
 0x3e0   :  { %8188 = vmatpush1.bf16.msra.mxu1 %v22105_v35  ;;  %v22165_v35 = vld [vmem:[#allocation2 + $0x2198] ss:$24 sps:$4 sm:$0xff]  }
 0x3e1   :  { %8270 = vmatpush1.bf16.msra.mxu0 %v22108_v36  ;;  %8189 = vmatprep.subr.bf16.mxu1 %v22113_v37  ;;  %v22168_v36 = vld [vmem:[#allocation2 + $0x3a0] ss:$24 sps:$4 sm:$0xff]   ;;  %v22173_v37 = vld [vmem:[#allocation2 + $0x21cc] ss:$24 sps:$4 sm:$0xff]  }
 0x3e2   :  { %8271 = vmatprep.subr.bf16.mxu0 %v22116_v41  ;;  %v22176_v41 = vld [vmem:[#allocation2 + $0x3d4] ss:$24 sps:$4 sm:$0xff]  }
 0x3e4   :  { %8190 = vmatpush1.bf16.msra.mxu1 %v22111_v42  ;;  %v22171_v42 = vld [vmem:[#allocation2 + $0x21c8] ss:$24 sps:$4 sm:$0xff]  }
 0x3e5   :  { %8272 = vmatpush1.bf16.msra.mxu0 %v22114_v43  ;;  %8191 = vmatprep.subr.bf16.mxu1 %v22119_v27  ;;  %v22179_v43 = vld [vmem:[#allocation2 + $0x21fc] ss:$24 sps:$4 sm:$0xff]  }
 0x3e6   :  { %8273 = vmatprep.subr.bf16.mxu0 %v22122_v45  ;;  %v22182_v27 = vld [vmem:[#allocation2 + $0x404] ss:$24 sps:$4 sm:$0xff]   ;;  %v22177_v45 = vld [vmem:[#allocation2 + $0x21f8] ss:$24 sps:$4 sm:$0xff]  }
 0x3e8   :  { %8192 = vmatpush1.bf16.msra.mxu1 %v22117_v46  ;;  %v22180_v46 = vld [vmem:[#allocation2 + $0x400] ss:$24 sps:$4 sm:$0xff]  }
 0x3e9   :  { %8274 = vmatpush1.bf16.msra.mxu0 %v22120_v39  ;;  %8193 = vmatprep.subr.bf16.mxu1 %v22125_v48  ;;  %v22185_v39 = vld [vmem:[#allocation2 + $0x222c] ss:$24 sps:$4 sm:$0xff]  }
 0x3ea   :  { %8275 = vmatprep.subr.bf16.mxu0 %v22128_v49  ;;  %v22188_v48 = vld [vmem:[#allocation2 + $0x434] ss:$24 sps:$4 sm:$0xff]   ;;  %v22183_v49 = vld [vmem:[#allocation2 + $0x2228] ss:$24 sps:$4 sm:$0xff]  }
 0x3ec   :  { %8194 = vmatpush1.bf16.msra.mxu1 %v22123_v50  ;;  %v22186_v50 = vld [vmem:[#allocation2 + $0x430] ss:$24 sps:$4 sm:$0xff]  }
 0x3ed   :  { %8276 = vmatpush1.bf16.msra.mxu0 %v22126_v52  ;;  %8195 = vmatprep.subr.bf16.mxu1 %v22131_v53  ;;  %v22191_v52 = vld [vmem:[#allocation2 + $0x225c] ss:$24 sps:$4 sm:$0xff]  }
 0x3ee   :  { %8277 = vmatprep.subr.bf16.mxu0 %v22134_v56  ;;  %v22194_v53 = vld [vmem:[#allocation2 + $0x464] ss:$24 sps:$4 sm:$0xff]   ;;  %v22189_v56 = vld [vmem:[#allocation2 + $0x2258] ss:$24 sps:$4 sm:$0xff]  }
 0x3f0   :  { %8196 = vmatpush1.bf16.msra.mxu1 %v22129_v57  ;;  %v22192_v57 = vld [vmem:[#allocation2 + $0x460] ss:$24 sps:$4 sm:$0xff]  }
 0x3f1   :  { %8278 = vmatpush1.bf16.msra.mxu0 %v22132_v62  ;;  %8197 = vmatprep.subr.bf16.mxu1 %v22137_v63  ;;  %v22197_v62 = vld [vmem:[#allocation2 + $0x228c] ss:$24 sps:$4 sm:$0xff]  }
 0x3f2   :  { %8279 = vmatprep.subr.bf16.mxu0 %v22140_v19  ;;  %v22200_v63 = vld [vmem:[#allocation2 + $0x494] ss:$24 sps:$4 sm:$0xff]   ;;  %v22195_v19 = vld [vmem:[#allocation2 + $0x2288] ss:$24 sps:$4 sm:$0xff]  }
 0x3f4   :  { %8198 = vmatpush1.bf16.msra.mxu1 %v22135_v47  ;;  %v22198_v47 = vld [vmem:[#allocation2 + $0x490] ss:$24 sps:$4 sm:$0xff]  }
 0x3f5   :  { %8280 = vmatpush1.bf16.msra.mxu0 %v22138_v28  ;;  %8199 = vmatprep.subr.bf16.mxu1 %v22143_v3  ;;  %v22203_v28 = vld [vmem:[#allocation2 + $0x22bc] ss:$24 sps:$4 sm:$0xff]  }
 0x3f6   :  { %8281 = vmatprep.subr.bf16.mxu0 %v22146_v4  ;;  %v22206_v3 = vld [vmem:[#allocation2 + $0x4c4] ss:$24 sps:$4 sm:$0xff]   ;;  %v22201_v4 = vld [vmem:[#allocation2 + $0x22b8] ss:$24 sps:$4 sm:$0xff]  }
 0x3f8   :  { %8200 = vmatpush1.bf16.msra.mxu1 %v22141_v10  ;;  %v22204_v10 = vld [vmem:[#allocation2 + $0x4c0] ss:$24 sps:$4 sm:$0xff]  }
 0x3f9   :  { %8282 = vmatpush1.bf16.msra.mxu0 %v22144_v11  ;;  %8210 = vmatprep.subr.bf16.mxu1 %v22149_v12  ;;  %v22209_v11 = vld [vmem:[#allocation2 + $0x22ec] ss:$24 sps:$4 sm:$0xff]  }
 0x3fa   :  { %8292 = vmatprep.subr.bf16.mxu0 %v22152_v13  ;;  %v22212_v12 = vld [vmem:[#allocation2 + $0x4f4] ss:$24 sps:$4 sm:$0xff]   ;;  %v22207_v13 = vld [vmem:[#allocation2 + $0x22e8] ss:$24 sps:$4 sm:$0xff]  }
 0x3fb   :  { %8202 = vmatmul.mubr.bf16.vlgmr.msra.gmra.mrb[4].mxu1 %v25393_v61 }
 0x3fc   :  { %8284 = vmatmul.mubr.bf16.vlgmr.msra.gmra.mrb[4].mxu0 %v25233_v6  ;;  %8211 = vmatpush1.bf16.msra.mxu1 %v22147_v54  ;;  %v22170_v6 = vld [vmem:[#allocation2 + $0x3a4] ss:$24 sps:$4 sm:$0xff]   ;;  %v22210_v54 = vld [vmem:[#allocation2 + $0x4f0] ss:$24 sps:$4 sm:$0xff]  }
 0x3fd   :  { %8293 = vmatpush1.bf16.msra.mxu0 %v22150_v16  ;;  %8212 = vmatprep.subr.bf16.mxu1 %v22155_v17  ;;  %v22215_v16 = vld [vmem:[#allocation2 + $0x231c] ss:$24 sps:$4 sm:$0xff]  }
 0x3fe   :  { %8294 = vmatprep.subr.bf16.mxu0 %v22158_v18  ;;  %8242 = vmatprep.mubr.bf16.mxu1 %v25397_v2  ;;  %v22218_v17 = vld [vmem:[#allocation2 + $0x524] ss:$24 sps:$4 sm:$0xff]   ;;  %v22213_v18 = vld [vmem:[#allocation2 + $0x2318] ss:$24 sps:$4 sm:$0xff]  }
 0x3ff   :  { %8324 = vmatprep.mubr.bf16.mxu0 %v25229_v51  ;;  %v22174_v51 = vld [vmem:[#allocation2 + $0x3d0] ss:$24 sps:$4 sm:$0xff]  }
 0x400   :  { %8213 = vmatpush1.bf16.msra.mxu1 %v22153_v21  ;;  %v22216_v21 = vld [vmem:[#allocation2 + $0x520] ss:$24 sps:$4 sm:$0xff]  }
 0x401   :  { %8295 = vmatpush1.bf16.msra.mxu0 %v22156_v22  ;;  %8214 = vmatprep.subr.bf16.mxu1 %v22161_v23  ;;  %v22221_v22 = vld [vmem:[#allocation2 + $0x234c] ss:$24 sps:$4 sm:$0xff]  }
 0x402   :  { %8296 = vmatprep.subr.bf16.mxu0 %v22164_v24  ;;  %v22224_v23 = vld [vmem:[#allocation2 + $0x554] ss:$24 sps:$4 sm:$0xff]   ;;  %v22219_v24 = vld [vmem:[#allocation2 + $0x2348] ss:$24 sps:$4 sm:$0xff]  }
 0x404   :  { %8215 = vmatpush1.bf16.msra.mxu1 %v22159_v29  ;;  %v22222_v29 = vld [vmem:[#allocation2 + $0x550] ss:$24 sps:$4 sm:$0xff]  }
 0x405   :  { %8297 = vmatpush1.bf16.msra.mxu0 %v22162_v30  ;;  %8216 = vmatprep.subr.bf16.mxu1 %v22167_v58  ;;  %v22227_v30 = vld [vmem:[#allocation2 + $0x237c] ss:$24 sps:$4 sm:$0xff]  }
 0x406   :  { %8298 = vmatprep.subr.bf16.mxu0 %v22170_v6  ;;  %v22230_v58 = vld [vmem:[#allocation2 + $0x584] ss:$24 sps:$4 sm:$0xff]   ;;  %v22225_v6 = vld [vmem:[#allocation2 + $0x2378] ss:$24 sps:$4 sm:$0xff]  }
 0x408   :  { %8217 = vmatpush1.bf16.msra.mxu1 %v22165_v35  ;;  %v22228_v35 = vld [vmem:[#allocation2 + $0x580] ss:$24 sps:$4 sm:$0xff]  }
 0x409   :  { %8299 = vmatpush1.bf16.msra.mxu0 %v22168_v36  ;;  %8218 = vmatprep.subr.bf16.mxu1 %v22173_v37  ;;  %v22233_v36 = vld [vmem:[#allocation2 + $0x23ac] ss:$24 sps:$4 sm:$0xff]  }
 0x40a   :  { %8300 = vmatprep.subr.bf16.mxu0 %v22176_v41  ;;  %v22236_v37 = vld [vmem:[#allocation2 + $0x5b4] ss:$24 sps:$4 sm:$0xff]   ;;  %v22231_v41 = vld [vmem:[#allocation2 + $0x23a8] ss:$24 sps:$4 sm:$0xff]  }
 0x40c   :  { %8219 = vmatpush1.bf16.msra.mxu1 %v22171_v42  ;;  %v22234_v42 = vld [vmem:[#allocation2 + $0x5b0] ss:$24 sps:$4 sm:$0xff]  }
 0x40d   :  { %8301 = vmatpush1.bf16.msra.mxu0 %v22174_v51  ;;  %8220 = vmatprep.subr.bf16.mxu1 %v22179_v43  ;;  %v22239_v51 = vld [vmem:[#allocation2 + $0x23dc] ss:$24 sps:$4 sm:$0xff]  }
 0x40e   :  { %8302 = vmatprep.subr.bf16.mxu0 %v22182_v27  ;;  %v22242_v43 = vld [vmem:[#allocation2 + $0x5e4] ss:$24 sps:$4 sm:$0xff]   ;;  %v22237_v27 = vld [vmem:[#allocation2 + $0x23d8] ss:$24 sps:$4 sm:$0xff]  }
 0x410   :  { %8221 = vmatpush1.bf16.msra.mxu1 %v22177_v45  ;;  %v22240_v45 = vld [vmem:[#allocation2 + $0x5e0] ss:$24 sps:$4 sm:$0xff]  }
 0x411   :  { %8303 = vmatpush1.bf16.msra.mxu0 %v22180_v46  ;;  %8222 = vmatprep.subr.bf16.mxu1 %v22185_v39  ;;  %v22245_v46 = vld [vmem:[#allocation2 + $0x614] ss:$24 sps:$4 sm:$0xff]  }
 0x412   :  { %8304 = vmatprep.subr.bf16.mxu0 %v22188_v48  ;;  %v22269_v39 = vld [vmem:[#allocation6 + $0x4] ss:$24 sps:$4 sm:$0xff]  }
 0x413   :  { %v22243_v48 = vld [vmem:[#allocation2 + $0x610] ss:$24 sps:$4 sm:$0xff]  }
 0x414   :  { %8223 = vmatpush1.bf16.msra.mxu1 %v22183_v49  ;;  %v22248_v49 = vld [vmem:[#allocation2 + $0x644] ss:$24 sps:$4 sm:$0xff]  }
 0x415   :  { %8305 = vmatpush1.bf16.msra.mxu0 %v22186_v50  ;;  %8224 = vmatprep.subr.bf16.mxu1 %v22191_v52  ;;  %v22267_v50 = vld [vmem:[#allocation6] ss:$24 sps:$4 sm:$0xff]   ;;  %v22275_v52 = vld [vmem:[#allocation6 + $0x34] ss:$24 sps:$4 sm:$0xff]  }
 0x416   :  { %8306 = vmatprep.subr.bf16.mxu0 %v22194_v53  ;;  %v22246_v53 = vld [vmem:[#allocation2 + $0x640] ss:$24 sps:$4 sm:$0xff]  }
 0x418   :  { %8225 = vmatpush1.bf16.msra.mxu1 %v22189_v56  ;;  %v22251_v56 = vld [vmem:[#allocation2 + $0x674] ss:$24 sps:$4 sm:$0xff]  }
 0x419   :  { %8307 = vmatpush1.bf16.msra.mxu0 %v22192_v57  ;;  %8226 = vmatprep.subr.bf16.mxu1 %v22197_v62  ;;  %v22273_v57 = vld [vmem:[#allocation6 + $0x30] ss:$24 sps:$4 sm:$0xff]   ;;  %v22281_v62 = vld [vmem:[#allocation6 + $0x64] ss:$24 sps:$4 sm:$0xff]  }
 0x41a   :  { %8308 = vmatprep.subr.bf16.mxu0 %v22200_v63  ;;  %v22249_v63 = vld [vmem:[#allocation2 + $0x670] ss:$24 sps:$4 sm:$0xff]  }
 0x41c   :  { %8227 = vmatpush1.bf16.msra.mxu1 %v22195_v19  ;;  %v22254_v19 = vld [vmem:[#allocation2 + $0x6a4] ss:$24 sps:$4 sm:$0xff]  }
 0x41d   :  { %8309 = vmatpush1.bf16.msra.mxu0 %v22198_v47  ;;  %8228 = vmatprep.subr.bf16.mxu1 %v22203_v28  ;;  %v22279_v47 = vld [vmem:[#allocation6 + $0x60] ss:$24 sps:$4 sm:$0xff]   ;;  %v22287_v28 = vld [vmem:[#allocation6 + $0x94] ss:$24 sps:$4 sm:$0xff]  }
 0x41e   :  { %8310 = vmatprep.subr.bf16.mxu0 %v22206_v3  ;;  %v22252_v3 = vld [vmem:[#allocation2 + $0x6a0] ss:$24 sps:$4 sm:$0xff]  }
 0x420   :  { %8229 = vmatpush1.bf16.msra.mxu1 %v22201_v4  ;;  %v22257_v4 = vld [vmem:[#allocation2 + $0x6d4] ss:$24 sps:$4 sm:$0xff]  }
 0x421   :  { %8311 = vmatpush1.bf16.msra.mxu0 %v22204_v10  ;;  %8230 = vmatprep.subr.bf16.mxu1 %v22209_v11  ;;  %v22293_v10 = vld [vmem:[#allocation6 + $0xc4] ss:$24 sps:$4 sm:$0xff]  }
 0x422   :  { %8312 = vmatprep.subr.bf16.mxu0 %v22212_v12  ;;  %v22255_v11 = vld [vmem:[#allocation2 + $0x6d0] ss:$24 sps:$4 sm:$0xff]   ;;  %v22260_v12 = vld [vmem:[#allocation2 + $0x704] ss:$24 sps:$4 sm:$0xff]  }
 0x424   :  { %8231 = vmatpush1.bf16.msra.mxu1 %v22207_v13  ;;  %v22299_v13 = vld [vmem:[#allocation6 + $0xf4] ss:$24 sps:$4 sm:$0xff]  }
 0x425   :  { %8313 = vmatpush1.bf16.msra.mxu0 %v22210_v54  ;;  %8232 = vmatprep.subr.bf16.mxu1 %v22215_v16  ;;  %v22258_v54 = vld [vmem:[#allocation2 + $0x700] ss:$24 sps:$4 sm:$0xff]   ;;  %v22263_v16 = vld [vmem:[#allocation2 + $0x734] ss:$24 sps:$4 sm:$0xff]  }
 0x426   :  { %8314 = vmatprep.subr.bf16.mxu0 %v22218_v17  ;;  %v22297_v17 = vld [vmem:[#allocation6 + $0xf0] ss:$24 sps:$4 sm:$0xff]  }
 0x428   :  { %8233 = vmatpush1.bf16.msra.mxu1 %v22213_v18  ;;  %v22305_v18 = vld [vmem:[#allocation6 + $0x124] ss:$24 sps:$4 sm:$0xff]  }
 0x429   :  { %8315 = vmatpush1.bf16.msra.mxu0 %v22216_v21  ;;  %8234 = vmatprep.subr.bf16.mxu1 %v22221_v22  ;;  %v22261_v21 = vld [vmem:[#allocation2 + $0x730] ss:$24 sps:$4 sm:$0xff]   ;;  %v22266_v22 = vld [vmem:[#allocation2 + $0x764] ss:$24 sps:$4 sm:$0xff]  }
 0x42a   :  { %8316 = vmatprep.subr.bf16.mxu0 %v22224_v23  ;;  %v22303_v23 = vld [vmem:[#allocation6 + $0x120] ss:$24 sps:$4 sm:$0xff]  }
 0x42c   :  { %8235 = vmatpush1.bf16.msra.mxu1 %v22219_v24  ;;  %v22311_v24 = vld [vmem:[#allocation6 + $0x154] ss:$24 sps:$4 sm:$0xff]  }
 0x42d   :  { %8317 = vmatpush1.bf16.msra.mxu0 %v22222_v29  ;;  %8236 = vmatprep.subr.bf16.mxu1 %v22227_v30  ;;  %v22264_v29 = vld [vmem:[#allocation2 + $0x760] ss:$24 sps:$4 sm:$0xff]  }
 0x42e   :  { %8318 = vmatprep.subr.bf16.mxu0 %v22230_v58  ;;  %v22309_v30 = vld [vmem:[#allocation6 + $0x150] ss:$24 sps:$4 sm:$0xff]  }
 0x42f   :  { %v22272_v58 = vld [vmem:[#allocation2 + $0x794] ss:$24 sps:$4 sm:$0xff]  }
 0x430   :  { %8237 = vmatpush1.bf16.msra.mxu1 %v22225_v6  ;;  %v22317_v6 = vld [vmem:[#allocation6 + $0x184] ss:$24 sps:$4 sm:$0xff]  }
 0x431   :  { %8319 = vmatpush1.bf16.msra.mxu0 %v22228_v35  ;;  %8238 = vmatprep.subr.bf16.mxu1 %v22233_v36  ;;  %v22270_v35 = vld [vmem:[#allocation2 + $0x790] ss:$24 sps:$4 sm:$0xff]  }
 0x432   :  { %8320 = vmatprep.subr.bf16.mxu0 %v22236_v37  ;;  %v22315_v36 = vld [vmem:[#allocation6 + $0x180] ss:$24 sps:$4 sm:$0xff]  }
 0x433   :  { %v22278_v37 = vld [vmem:[#allocation2 + $0x7c4] ss:$24 sps:$4 sm:$0xff]  }
 0x434   :  { %8239 = vmatpush1.bf16.msra.mxu1 %v22231_v41  ;;  %v22323_v41 = vld [vmem:[#allocation6 + $0x1b4] ss:$24 sps:$4 sm:$0xff]  }
 0x435   :  { %8321 = vmatpush1.bf16.msra.mxu0 %v22234_v42  ;;  %8240 = vmatprep.subr.bf16.mxu1 %v22239_v51  ;;  %v22276_v42 = vld [vmem:[#allocation2 + $0x7c0] ss:$24 sps:$4 sm:$0xff]  }
 0x436   :  { %8322 = vmatprep.subr.bf16.mxu0 %v22242_v43  ;;  %v22321_v51 = vld [vmem:[#allocation6 + $0x1b0] ss:$24 sps:$4 sm:$0xff]  }
 0x437   :  { %v22284_v43 = vld [vmem:[#allocation2 + $0x7f4] ss:$24 sps:$4 sm:$0xff]  }
 0x438   :  { %8241 = vmatpush1.bf16.msra.mxu1 %v22237_v27  ;;  %v22329_v27 = vld [vmem:[#allocation6 + $0x1e4] ss:$24 sps:$4 sm:$0xff]  }
 0x439   :  { %8323 = vmatpush1.bf16.msra.mxu0 %v22240_v45  ;;  %10515 = vmatprep.subr.bf16.mxu1 %v22269_v39  ;;  %v22282_v45 = vld [vmem:[#allocation2 + $0x7f0] ss:$24 sps:$4 sm:$0xff]   ;;  %v22290_v39 = vld [vmem:[#allocation2 + $0x824] ss:$24 sps:$4 sm:$0xff]  }
 0x43a   :  { %8333 = vmatprep.subr.bf16.mxu0 %v22245_v46  ;;  %v22327_v46 = vld [vmem:[#allocation6 + $0x1e0] ss:$24 sps:$4 sm:$0xff]  }
 0x43b   :  { %8243 = vmatmul.mubr.bf16.vlgmr.msra.gmra.mrb[4].mxu1 %v25405_v8 }
 0x43c   :  { %8325 = vmatmul.mubr.bf16.vlgmr.msra.gmra.mrb[4].mxu0 %v25235_v7  ;;  %10516 = vmatpush1.bf16.msra.mxu1 %v22267_v50  ;;  %v22285_v7 = vld [vmem:[#allocation6 + $0x90] ss:$24 sps:$4 sm:$0xff]  }
 0x43d   :  { %8334 = vmatpush1.bf16.msra.mxu0 %v22243_v48  ;;  %10517 = vmatprep.subr.bf16.mxu1 %v22275_v52  ;;  %v22335_v48 = vld [vmem:[#allocation6 + $0x214] ss:$24 sps:$4 sm:$0xff]   ;;  %v22333_v50 = vld [vmem:[#allocation6 + $0x210] ss:$24 sps:$4 sm:$0xff]  }
 0x43e   :  { %8335 = vmatprep.subr.bf16.mxu0 %v22248_v49  ;;  %8365 = vmatprep.mubr.bf16.mxu0 %v25247_v34  ;;  %v22291_v34 = vld [vmem:[#allocation6 + $0xc0] ss:$24 sps:$4 sm:$0xff]   ;;  %v22296_v52 = vld [vmem:[#allocation2 + $0x854] ss:$24 sps:$4 sm:$0xff]  }
 0x43f   :  { %v22288_v49 = vld [vmem:[#allocation2 + $0x820] ss:$24 sps:$4 sm:$0xff]  }
 0x440   :  { %10518 = vmatpush1.bf16.msra.mxu1 %v22273_v57  ;;  %v22339_v57 = vld [vmem:[#allocation6 + $0x240] ss:$24 sps:$4 sm:$0xff]  }
 0x441   :  { %8336 = vmatpush1.bf16.msra.mxu0 %v22246_v53  ;;  %10519 = vmatprep.subr.bf16.mxu1 %v22281_v62  ;;  %v22341_v53 = vld [vmem:[#allocation6 + $0x244] ss:$24 sps:$4 sm:$0xff]  }
 0x442   :  { %8337 = vmatprep.subr.bf16.mxu0 %v22251_v56  ;;  %v22294_v56 = vld [vmem:[#allocation2 + $0x850] ss:$24 sps:$4 sm:$0xff]   ;;  %v22302_v62 = vld [vmem:[#allocation2 + $0x884] ss:$24 sps:$4 sm:$0xff]  }
 0x444   :  { %10520 = vmatpush1.bf16.msra.mxu1 %v22279_v47  ;;  %v22345_v47 = vld [vmem:[#allocation6 + $0x270] ss:$24 sps:$4 sm:$0xff]  }
 0x445   :  { %8338 = vmatpush1.bf16.msra.mxu0 %v22249_v63  ;;  %10521 = vmatprep.subr.bf16.mxu1 %v22287_v28  ;;  %v22347_v63 = vld [vmem:[#allocation6 + $0x274] ss:$24 sps:$4 sm:$0xff]  }
 0x446   :  { %8339 = vmatprep.subr.bf16.mxu0 %v22254_v19  ;;  %v22300_v19 = vld [vmem:[#allocation2 + $0x880] ss:$24 sps:$4 sm:$0xff]   ;;  %v22308_v28 = vld [vmem:[#allocation2 + $0x8b4] ss:$24 sps:$4 sm:$0xff]  }
 0x448   :  { %10522 = vmatpush1.bf16.msra.mxu1 %v22285_v7  ;;  %v22351_v7 = vld [vmem:[#allocation6 + $0x2a0] ss:$24 sps:$4 sm:$0xff]  }
 0x449   :  { %8340 = vmatpush1.bf16.msra.mxu0 %v22252_v3  ;;  %10523 = vmatprep.subr.bf16.mxu1 %v22293_v10  ;;  %v22353_v3 = vld [vmem:[#allocation6 + $0x2a4] ss:$24 sps:$4 sm:$0xff]  }
 0x44a   :  { %8341 = vmatprep.subr.bf16.mxu0 %v22257_v4  ;;  %v22306_v4 = vld [vmem:[#allocation2 + $0x8b0] ss:$24 sps:$4 sm:$0xff]   ;;  %v22314_v10 = vld [vmem:[#allocation2 + $0x8e4] ss:$24 sps:$4 sm:$0xff]  }
 0x44c   :  { %10524 = vmatpush1.bf16.msra.mxu1 %v22291_v34  ;;  %v22357_v34 = vld [vmem:[#allocation6 + $0x2d0] ss:$24 sps:$4 sm:$0xff]  }
 0x44d   :  { %8342 = vmatpush1.bf16.msra.mxu0 %v22255_v11  ;;  %10525 = vmatprep.subr.bf16.mxu1 %v22299_v13  ;;  %v22359_v11 = vld [vmem:[#allocation6 + $0x2d4] ss:$24 sps:$4 sm:$0xff]  }
 0x44e   :  { %8343 = vmatprep.subr.bf16.mxu0 %v22260_v12  ;;  %v22312_v12 = vld [vmem:[#allocation2 + $0x8e0] ss:$24 sps:$4 sm:$0xff]   ;;  %v22320_v13 = vld [vmem:[#allocation2 + $0x914] ss:$24 sps:$4 sm:$0xff]  }
 0x450   :  { %10526 = vmatpush1.bf16.msra.mxu1 %v22297_v17  ;;  %v22326_v17 = vld [vmem:[#allocation2 + $0x944] ss:$24 sps:$4 sm:$0xff]  }
 0x451   :  { %8344 = vmatpush1.bf16.msra.mxu0 %v22258_v54  ;;  %10527 = vmatprep.subr.bf16.mxu1 %v22305_v18  ;;  %v22413_v54 = vld [vmem:[#allocation6 + $0x304] ss:$24 sps:$4 sm:$0xff]  }
 0x452   :  { %8345 = vmatprep.subr.bf16.mxu0 %v22263_v16  ;;  %v22318_v16 = vld [vmem:[#allocation2 + $0x910] ss:$24 sps:$4 sm:$0xff]   ;;  %v22324_v18 = vld [vmem:[#allocation2 + $0x940] ss:$24 sps:$4 sm:$0xff]  }
 0x454   :  { %10528 = vmatpush1.bf16.msra.mxu1 %v22303_v23  ;;  %v22330_v23 = vld [vmem:[#allocation2 + $0x970] ss:$24 sps:$4 sm:$0xff]  }
 0x455   :  { %8346 = vmatpush1.bf16.msra.mxu0 %v22261_v21  ;;  %10529 = vmatprep.subr.bf16.mxu1 %v22311_v24  ;;  %v1393_v21 = vlaneseq }
 0x456   :  { %8347 = vmatprep.subr.bf16.mxu0 %v22266_v22  ;;  %v22332_v22 = vld [vmem:[#allocation2 + $0x974] ss:$24 sps:$4 sm:$0xff]  }
 0x457   :  { %v25424_v24 = vshrl.u32 %v1393_v21, 7  ;;  %v22377_v21 = vld [vmem:[#allocation2 + $0xb54] ss:$24 sps:$4 sm:$0xff]  }
 0x458   :  { %10530 = vmatpush1.bf16.msra.mxu1 %v22309_v30  ;;  %v22336_v30 = vld [vmem:[#allocation2 + $0x9a0] ss:$24 sps:$4 sm:$0xff]  }
 0x459   :  { %8348 = vmatpush1.bf16.msra.mxu0 %v22264_v29  ;;  %10531 = vmatprep.subr.bf16.mxu1 %v22317_v6  ;;  %v22338_v29 = vld [vmem:[#allocation2 + $0x9a4] ss:$24 sps:$4 sm:$0xff]   ;;  %v25427_v6 = vsub.s32 0, %v25424_v24 }
 0x45a   :  { %8349 = vmatprep.subr.bf16.mxu0 %v22272_v58  ;;  %v1391_v58 = vld [vmem:[#allocation4] sm:$0x3f] }
 0x45c   :  { %10532 = vmatpush1.bf16.msra.mxu1 %v22315_v36  ;;  %v1396_v36 = vrot.slane %v1391_v58, %v25427_v6 }
 0x45d   :  { %8350 = vmatpush1.bf16.msra.mxu0 %v22270_v35  ;;  %10533 = vmatprep.subr.bf16.mxu1 %v22323_v41  ;;  %v25430_v35 = vsub.s32 1, %v25424_v24 }
 0x45e   :  { %8351 = vmatprep.subr.bf16.mxu0 %v22278_v37  ;;  %v22350_v37 = vld [vmem:[#allocation2 + $0xa04] ss:$24 sps:$4 sm:$0xff]  }
 0x45f   :  { %v1400_v41 = vrot.slane %v1391_v58, %v25430_v35  ;;  %v22441_v58 = vld [vmem:[#allocation6 + $0x3f0] ss:$24 sps:$4 sm:$0xff]  }
 0x460   :  { %10534 = vmatpush1.bf16.msra.mxu1 %v22321_v51  ;;  %v7302_v51 = vadd.f32 %v25411_v1, %v1396_v36  ;;  %v22383_v36 = vld [vmem:[#allocation2 + $0xbb4] ss:$24 sps:$4 sm:$0xff]  }
 0x461   :  { %8352 = vmatpush1.bf16.msra.mxu0 %v22276_v42  ;;  %10535 = vmatprep.subr.bf16.mxu1 %v22329_v27  ;;  %v22348_v42 = vld [vmem:[#allocation2 + $0xa00] ss:$24 sps:$4 sm:$0xff]   ;;  %v7304_v27 = vadd.f32 %v25413_v5, %v1400_v41 }
 0x462   :  { %8353 = vmatprep.subr.bf16.mxu0 %v22284_v43  ;;  %v22356_v43 = vld [vmem:[#allocation2 + $0xa34] ss:$24 sps:$4 sm:$0xff]  }
 0x463   :  { %v22419_v5 = vld [vmem:[#allocation6 + $0x334] ss:$24 sps:$4 sm:$0xff]  }
 0x464   :  { %10536 = vmatpush1.bf16.msra.mxu1 %v22327_v46  ;;  %v22354_v46 = vld [vmem:[#allocation2 + $0xa30] ss:$24 sps:$4 sm:$0xff]  }
 0x465   :  { %8354 = vmatpush1.bf16.msra.mxu0 %v22282_v45  ;;  %10537 = vmatprep.subr.bf16.mxu1 %v22335_v48  ;;  %v22455_v41 = vld [vmem:[#allocation6 + $0x454] ss:$24 sps:$4 sm:$0xff]  }
 0x466   :  { %8355 = vmatprep.subr.bf16.mxu0 %v22290_v39 }
 0x468   :  { %10538 = vmatpush1.bf16.msra.mxu1 %v22333_v50 }
 0x469   :  { %8356 = vmatpush1.bf16.msra.mxu0 %v22288_v49  ;;  %10539 = vmatprep.subr.bf16.mxu1 %v22341_v53 }
 0x46a   :  { %8357 = vmatprep.subr.bf16.mxu0 %v22296_v52 }
 0x46c   :  { %10540 = vmatpush1.bf16.msra.mxu1 %v22339_v57 }
 0x46d   :  { %8358 = vmatpush1.bf16.msra.mxu0 %v22294_v56  ;;  %10541 = vmatprep.subr.bf16.mxu1 %v22347_v63  ;;  %v22362_v56 = vld [vmem:[#allocation2 + $0xa64] ss:$24 sps:$4 sm:$0xff]  }
 0x46e   :  { %8359 = vmatprep.subr.bf16.mxu0 %v22302_v62  ;;  %v22360_v62 = vld [vmem:[#allocation2 + $0xa60] ss:$24 sps:$4 sm:$0xff]  }
 0x46f   :  { %v22411_v63 = vld [vmem:[#allocation6 + $0x300] ss:$24 sps:$4 sm:$0xff]  }
 0x470   :  { %10542 = vmatpush1.bf16.msra.mxu1 %v22345_v47 }
 0x471   :  { %8360 = vmatpush1.bf16.msra.mxu0 %v22300_v19  ;;  %10543 = vmatprep.subr.bf16.mxu1 %v22353_v3  ;;  %v22365_v19 = vld [vmem:[#allocation2 + $0xa94] ss:$24 sps:$4 sm:$0xff]   ;;  %v22368_v3 = vld [vmem:[#allocation2 + $0xac4] ss:$24 sps:$4 sm:$0xff]  }
 0x472   :  { %8361 = vmatprep.subr.bf16.mxu0 %v22308_v28  ;;  %v22363_v28 = vld [vmem:[#allocation2 + $0xa90] ss:$24 sps:$4 sm:$0xff]  }
 0x474   :  { %10544 = vmatpush1.bf16.msra.mxu1 %v22351_v7  ;;  %v22425_v7 = vld [vmem:[#allocation6 + $0x364] ss:$24 sps:$4 sm:$0xff]  }
 0x475   :  { %8362 = vmatpush1.bf16.msra.mxu0 %v22306_v4  ;;  %10545 = vmatprep.subr.bf16.mxu1 %v22359_v11  ;;  %v22417_v4 = vld [vmem:[#allocation6 + $0x330] ss:$24 sps:$4 sm:$0xff]  }
 0x476   :  { %8363 = vmatprep.subr.bf16.mxu0 %v22314_v10  ;;  %v22366_v10 = vld [vmem:[#allocation2 + $0xac0] ss:$24 sps:$4 sm:$0xff]   ;;  %v22371_v11 = vld [vmem:[#allocation2 + $0xaf4] ss:$24 sps:$4 sm:$0xff]  }
 0x478   :  { %10546 = vmatpush1.bf16.msra.mxu1 %v22357_v34  ;;  %v22431_v34 = vld [vmem:[#allocation6 + $0x394] ss:$24 sps:$4 sm:$0xff]  }
 0x479   :  { %8364 = vmatpush1.bf16.msra.mxu0 %v22312_v12  ;;  %10556 = vmatprep.subr.bf16.mxu1 %v22413_v54  ;;  %v22423_v12 = vld [vmem:[#allocation6 + $0x360] ss:$24 sps:$4 sm:$0xff]  }
 0x47a   :  { %8374 = vmatprep.subr.bf16.mxu0 %v22320_v13  ;;  %v22369_v13 = vld [vmem:[#allocation2 + $0xaf0] ss:$24 sps:$4 sm:$0xff]   ;;  %v22374_v54 = vld [vmem:[#allocation2 + $0xb24] ss:$24 sps:$4 sm:$0xff]  }
 0x47c   :  { %8366 = vmatmul.mubr.bf16.vlgmr.msra.gmra.mrb[4].mxu0 %v25252_v14  ;;  %v22344_v14 = vld [vmem:[#allocation2 + $0x9d4] ss:$24 sps:$4 sm:$0xff]  }
 0x47d   :  { %8375 = vmatpush1.bf16.msra.mxu0 %v22318_v16  ;;  %8406 = vmatprep.mubr.bf16.mxu0 %v25261_v20  ;;  %v22342_v20 = vld [vmem:[#allocation2 + $0x9d0] ss:$24 sps:$4 sm:$0xff]  }
 0x47e   :  { %8376 = vmatprep.subr.bf16.mxu0 %v22326_v17  ;;  %v22429_v16 = vld [vmem:[#allocation6 + $0x390] ss:$24 sps:$4 sm:$0xff]   ;;  %v22437_v17 = vld [vmem:[#allocation6 + $0x3c4] ss:$24 sps:$4 sm:$0xff]  }
 0x481   :  { %8377 = vmatpush1.bf16.msra.mxu0 %v22324_v18  ;;  %v22372_v18 = vld [vmem:[#allocation2 + $0xb20] ss:$24 sps:$4 sm:$0xff]  }
 0x482   :  { %8378 = vmatprep.subr.bf16.mxu0 %v22332_v22  ;;  %v22435_v22 = vld [vmem:[#allocation6 + $0x3c0] ss:$24 sps:$4 sm:$0xff]  }
 0x485   :  { %8379 = vmatpush1.bf16.msra.mxu0 %v22330_v23  ;;  %v22443_v23 = vld [vmem:[#allocation6 + $0x3f4] ss:$24 sps:$4 sm:$0xff]  }
 0x486   :  { %8380 = vmatprep.subr.bf16.mxu0 %v22338_v29  ;;  %v22375_v29 = vld [vmem:[#allocation2 + $0xb50] ss:$24 sps:$4 sm:$0xff]  }
 0x489   :  { %8381 = vmatpush1.bf16.msra.mxu0 %v22336_v30  ;;  %v22380_v30 = vld [vmem:[#allocation2 + $0xb84] ss:$24 sps:$4 sm:$0xff]  }
 0x48a   :  { %8382 = vmatprep.subr.bf16.mxu0 %v22344_v14  ;;  %v22449_v14 = vld [vmem:[#allocation6 + $0x424] ss:$24 sps:$4 sm:$0xff]  }
 0x48d   :  { %8383 = vmatpush1.bf16.msra.mxu0 %v22342_v20  ;;  %v22378_v20 = vld [vmem:[#allocation2 + $0xb80] ss:$24 sps:$4 sm:$0xff]  }
 0x48e   :  { %8384 = vmatprep.subr.bf16.mxu0 %v22350_v37  ;;  %v22447_v37 = vld [vmem:[#allocation6 + $0x420] ss:$24 sps:$4 sm:$0xff]  }
 0x48f   :  { %v7752_v45 = vpop.f32.mrb[0].mxu0 }
 0x490   :  { %v20686_v39 = vadd.f32 %v7752_v45, %v7302_v51  ;;  %v7754_v48 = vpop.f32.mrb[1].mxu0  ;;  %v22386_v51 = vld [vmem:[#allocation2 + $0xbe4] ss:$24 sps:$4 sm:$0xff]   ;;  %v22384_v45 = vld [vmem:[#allocation2 + $0xbe0] ss:$24 sps:$4 sm:$0xff]  }
 0x491   :  { %v20688_v49 = vadd.f32 %v7754_v48, %v7304_v27  ;;  %v7756_v50 = vpop.f32.mrb[2].mxu0  ;;  %8385 = vmatpush1.bf16.msra.mxu0 %v22348_v42  ;;  %v22381_v42 = vld [vmem:[#allocation2 + $0xbb0] ss:$24 sps:$4 sm:$0xff]  }
 0x492   :  { %v8743_v52 = vmax.f32 %v20686_v39, 0.0  ;;  %v7757_v53 = vpop.f32.mrb[3].mxu0  ;;  %8386 = vmatprep.subr.bf16.mxu0 %v22356_v43  ;;  %v22453_v43 = vld [vmem:[#allocation6 + $0x450] ss:$24 sps:$4 sm:$0xff]   ;;  %v22461_v27 = vld [vmem:[#allocation6 + $0x484] ss:$24 sps:$4 sm:$0xff]  }
 0x493   :  { %v8744_v57 = vmax.f32 %v20688_v49, 0.0  ;;  %v22459_v39 = vld [vmem:[#allocation6 + $0x480] ss:$24 sps:$4 sm:$0xff]   ;;  %v22467_v48 = vld [vmem:[#allocation6 + $0x4b4] ss:$24 sps:$4 sm:$0xff]  }
 0x494   :  { %v25438_v47 = vpack.c.bf16 %v8743_v52, %v8743_v52  ;;  %v22387_v49 = vld [vmem:[#allocation2 + $0xc10] ss:$24 sps:$4 sm:$0xff]   ;;  %v22392_v50 = vld [vmem:[#allocation2 + $0xc44] ss:$24 sps:$4 sm:$0xff]  }
 0x495   :  { %v25436_v1 = vpack.c.bf16 %v8744_v57, %v8744_v57  ;;  %8387 = vmatpush1.bf16.msra.mxu0 %v22354_v46  ;;  %v22389_v46 = vld [vmem:[#allocation2 + $0xc14] ss:$24 sps:$4 sm:$0xff]  }
 0x496   :  { %8388 = vmatprep.subr.bf16.mxu0 %v22362_v56  ;;  %v22465_v52 = vld [vmem:[#allocation6 + $0x4b0] ss:$24 sps:$4 sm:$0xff]   ;;  %v22473_v53 = vld [vmem:[#allocation6 + $0x4e4] ss:$24 sps:$4 sm:$0xff]  }
 0x497   :  { %10547 = vmatprep.mubr.bf16.mxu1 %v25436_v1  ;;  %v22390_v56 = vld [vmem:[#allocation2 + $0xc40] ss:$24 sps:$4 sm:$0xff]   ;;  %v22395_v57 = vld [vmem:[#allocation2 + $0xc74] ss:$24 sps:$4 sm:$0xff]  }
 0x498   :  { %10548 = vmatmul.mubr.bf16.vlgmr.msra.gmra.mrb[8].mxu1 %v25438_v47 }
 0x499   :  { %8389 = vmatpush1.bf16.msra.mxu0 %v22360_v62  ;;  %10557 = vmatpush1.bf16.msra.mxu1 %v22411_v63  ;;  %v22471_v62 = vld [vmem:[#allocation6 + $0x4e0] ss:$24 sps:$4 sm:$0xff]   ;;  %v22479_v63 = vld [vmem:[#allocation6 + $0x514] ss:$24 sps:$4 sm:$0xff]  }
 0x49a   :  { %8390 = vmatprep.subr.bf16.mxu0 %v22365_v19  ;;  %10558 = vmatprep.subr.bf16.mxu1 %v22419_v5  ;;  %v22393_v19 = vld [vmem:[#allocation2 + $0xc70] ss:$24 sps:$4 sm:$0xff]   ;;  %v22398_v5 = vld [vmem:[#allocation2 + $0xca4] ss:$24 sps:$4 sm:$0xff]  }
 0x49d   :  { %8391 = vmatpush1.bf16.msra.mxu0 %v22363_v28  ;;  %10559 = vmatpush1.bf16.msra.mxu1 %v22417_v4  ;;  %v22477_v28 = vld [vmem:[#allocation6 + $0x510] ss:$24 sps:$4 sm:$0xff]  }
 0x49e   :  { %8392 = vmatprep.subr.bf16.mxu0 %v22368_v3  ;;  %10560 = vmatprep.subr.bf16.mxu1 %v22425_v7  ;;  %v22485_v3 = vld [vmem:[#allocation6 + $0x544] ss:$24 sps:$4 sm:$0xff]  }
 0x49f   :  { %v22396_v4 = vld [vmem:[#allocation2 + $0xca0] ss:$24 sps:$4 sm:$0xff]   ;;  %v22401_v7 = vld [vmem:[#allocation2 + $0xcd4] ss:$24 sps:$4 sm:$0xff]  }
 0x4a1   :  { %8393 = vmatpush1.bf16.msra.mxu0 %v22366_v10  ;;  %10561 = vmatpush1.bf16.msra.mxu1 %v22423_v12  ;;  %v22491_v10 = vld [vmem:[#allocation6 + $0x574] ss:$24 sps:$4 sm:$0xff]   ;;  %v22489_v12 = vld [vmem:[#allocation6 + $0x570] ss:$24 sps:$4 sm:$0xff]  }
 0x4a2   :  { %8394 = vmatprep.subr.bf16.mxu0 %v22371_v11  ;;  %10562 = vmatprep.subr.bf16.mxu1 %v22431_v34  ;;  %v22404_v11 = vld [vmem:[#allocation2 + $0xd04] ss:$24 sps:$4 sm:$0xff]  }
 0x4a3   :  { %v22497_v34 = vld [vmem:[#allocation6 + $0x5a4] ss:$24 sps:$4 sm:$0xff]  }
 0x4a5   :  { %8395 = vmatpush1.bf16.msra.mxu0 %v22369_v13  ;;  %10563 = vmatpush1.bf16.msra.mxu1 %v22429_v16  ;;  %v22402_v13 = vld [vmem:[#allocation2 + $0xd00] ss:$24 sps:$4 sm:$0xff]  }
 0x4a6   :  { %8396 = vmatprep.subr.bf16.mxu0 %v22374_v54  ;;  %10564 = vmatprep.subr.bf16.mxu1 %v22437_v17  ;;  %v22407_v54 = vld [vmem:[#allocation2 + $0xd34] ss:$24 sps:$4 sm:$0xff]   ;;  %v22495_v16 = vld [vmem:[#allocation6 + $0x5a0] ss:$24 sps:$4 sm:$0xff]  }
 0x4a7   :  { %v22503_v17 = vld [vmem:[#allocation6 + $0x5d4] ss:$24 sps:$4 sm:$0xff]  }
 0x4a9   :  { %8397 = vmatpush1.bf16.msra.mxu0 %v22372_v18  ;;  %10565 = vmatpush1.bf16.msra.mxu1 %v22435_v22  ;;  %v22405_v18 = vld [vmem:[#allocation2 + $0xd30] ss:$24 sps:$4 sm:$0xff]  }
 0x4aa   :  { %8398 = vmatprep.subr.bf16.mxu0 %v22377_v21  ;;  %10566 = vmatprep.subr.bf16.mxu1 %v22443_v23  ;;  %v22410_v21 = vld [vmem:[#allocation2 + $0xd64] ss:$24 sps:$4 sm:$0xff]   ;;  %v22501_v22 = vld [vmem:[#allocation6 + $0x5d0] ss:$24 sps:$4 sm:$0xff]  }
 0x4ab   :  { %v22408_v23 = vld [vmem:[#allocation2 + $0xd60] ss:$24 sps:$4 sm:$0xff]  }
 0x4ad   :  { %8399 = vmatpush1.bf16.msra.mxu0 %v22375_v29  ;;  %10567 = vmatpush1.bf16.msra.mxu1 %v22441_v58  ;;  %v22416_v29 = vld [vmem:[#allocation2 + $0xd94] ss:$24 sps:$4 sm:$0xff]   ;;  %v22422_v58 = vld [vmem:[#allocation2 + $0xdc4] ss:$24 sps:$4 sm:$0xff]  }
 0x4ae   :  { %8400 = vmatprep.subr.bf16.mxu0 %v22380_v30  ;;  %10568 = vmatprep.subr.bf16.mxu1 %v22449_v14  ;;  %v22414_v30 = vld [vmem:[#allocation2 + $0xd90] ss:$24 sps:$4 sm:$0xff]   ;;  %v22420_v14 = vld [vmem:[#allocation2 + $0xdc0] ss:$24 sps:$4 sm:$0xff]  }
 0x4b1   :  { %8401 = vmatpush1.bf16.msra.mxu0 %v22378_v20  ;;  %10569 = vmatpush1.bf16.msra.mxu1 %v22447_v37  ;;  %v22428_v20 = vld [vmem:[#allocation2 + $0xdf4] ss:$24 sps:$4 sm:$0xff]   ;;  %v22434_v37 = vld [vmem:[#allocation2 + $0xe24] ss:$24 sps:$4 sm:$0xff]  }
 0x4b2   :  { %8402 = vmatprep.subr.bf16.mxu0 %v22383_v36  ;;  %10570 = vmatprep.subr.bf16.mxu1 %v22455_v41  ;;  %v22426_v36 = vld [vmem:[#allocation2 + $0xdf0] ss:$24 sps:$4 sm:$0xff]   ;;  %v22432_v41 = vld [vmem:[#allocation2 + $0xe20] ss:$24 sps:$4 sm:$0xff]  }
 0x4b5   :  { %8403 = vmatpush1.bf16.msra.mxu0 %v22381_v42  ;;  %10571 = vmatpush1.bf16.msra.mxu1 %v22453_v43  ;;  %v22440_v42 = vld [vmem:[#allocation2 + $0xe54] ss:$24 sps:$4 sm:$0xff]   ;;  %v22446_v43 = vld [vmem:[#allocation2 + $0xe84] ss:$24 sps:$4 sm:$0xff]  }
 0x4b6   :  { %8404 = vmatprep.subr.bf16.mxu0 %v22386_v51  ;;  %10572 = vmatprep.subr.bf16.mxu1 %v22461_v27  ;;  %v22438_v51 = vld [vmem:[#allocation2 + $0xe50] ss:$24 sps:$4 sm:$0xff]   ;;  %v22444_v27 = vld [vmem:[#allocation2 + $0xe80] ss:$24 sps:$4 sm:$0xff]  }
 0x4b9   :  { %8405 = vmatpush1.bf16.msra.mxu0 %v22384_v45  ;;  %10573 = vmatpush1.bf16.msra.mxu1 %v22459_v39  ;;  %v22452_v45 = vld [vmem:[#allocation2 + $0xeb4] ss:$24 sps:$4 sm:$0xff]   ;;  %v22458_v39 = vld [vmem:[#allocation2 + $0xee4] ss:$24 sps:$4 sm:$0xff]  }
 0x4ba   :  { %8415 = vmatprep.subr.bf16.mxu0 %v22389_v46  ;;  %10574 = vmatprep.subr.bf16.mxu1 %v22467_v48  ;;  %v22450_v46 = vld [vmem:[#allocation2 + $0xeb0] ss:$24 sps:$4 sm:$0xff]   ;;  %v22456_v48 = vld [vmem:[#allocation2 + $0xee0] ss:$24 sps:$4 sm:$0xff]  }
 0x4bc   :  { %8407 = vmatmul.mubr.bf16.vlgmr.msra.gmra.mrb[4].mxu0 %v25269_v26  ;;  %v22483_v26 = vld [vmem:[#allocation6 + $0x540] ss:$24 sps:$4 sm:$0xff]  }
 0x4bd   :  { %8416 = vmatpush1.bf16.msra.mxu0 %v22387_v49  ;;  %8447 = vmatprep.mubr.bf16.mxu0 %v25278_v31  ;;  %v22399_v31 = vld [vmem:[#allocation2 + $0xcd0] ss:$24 sps:$4 sm:$0xff]   ;;  %v22464_v49 = vld [vmem:[#allocation2 + $0xf14] ss:$24 sps:$4 sm:$0xff]  }
 0x4be   :  { %8417 = vmatprep.subr.bf16.mxu0 %v22392_v50  ;;  %10575 = vmatpush1.bf16.msra.mxu1 %v22465_v52  ;;  %v22462_v50 = vld [vmem:[#allocation2 + $0xf10] ss:$24 sps:$4 sm:$0xff]   ;;  %v22470_v52 = vld [vmem:[#allocation2 + $0xf44] ss:$24 sps:$4 sm:$0xff]  }
 0x4bf   :  { %10576 = vmatprep.subr.bf16.mxu1 %v22473_v53  ;;  %v22468_v53 = vld [vmem:[#allocation2 + $0xf40] ss:$24 sps:$4 sm:$0xff]  }
 0x4c1   :  { %8418 = vmatpush1.bf16.msra.mxu0 %v22390_v56  ;;  %v22476_v56 = vld [vmem:[#allocation2 + $0xf74] ss:$24 sps:$4 sm:$0xff]  }
 0x4c2   :  { %8419 = vmatprep.subr.bf16.mxu0 %v22395_v57  ;;  %10577 = vmatpush1.bf16.msra.mxu1 %v22471_v62  ;;  %v22474_v57 = vld [vmem:[#allocation2 + $0xf70] ss:$24 sps:$4 sm:$0xff]   ;;  %v22482_v62 = vld [vmem:[#allocation2 + $0xfa4] ss:$24 sps:$4 sm:$0xff]  }
 0x4c3   :  { %10578 = vmatprep.subr.bf16.mxu1 %v22479_v63  ;;  %v22480_v63 = vld [vmem:[#allocation2 + $0xfa0] ss:$24 sps:$4 sm:$0xff]  }
 0x4c5   :  { %8420 = vmatpush1.bf16.msra.mxu0 %v22393_v19  ;;  %v22488_v19 = vld [vmem:[#allocation2 + $0xfd4] ss:$24 sps:$4 sm:$0xff]  }
 0x4c6   :  { %8421 = vmatprep.subr.bf16.mxu0 %v22398_v5  ;;  %10579 = vmatpush1.bf16.msra.mxu1 %v22477_v28  ;;  %v25447_v5 = vsub.s32 2, %v25424_v24  ;;  %v22486_v28 = vld [vmem:[#allocation2 + $0xfd0] ss:$24 sps:$4 sm:$0xff]  }
 0x4c7   :  { %10580 = vmatprep.subr.bf16.mxu1 %v22485_v3  ;;  %v22494_v3 = vld [vmem:[#allocation2 + $0x1004] ss:$24 sps:$4 sm:$0xff]  }
 0x4c9   :  { %8422 = vmatpush1.bf16.msra.mxu0 %v22396_v4 }
 0x4ca   :  { %8423 = vmatprep.subr.bf16.mxu0 %v22401_v7  ;;  %10581 = vmatpush1.bf16.msra.mxu1 %v22483_v26  ;;  %v22492_v26 = vld [vmem:[#allocation2 + $0x1000] ss:$24 sps:$4 sm:$0xff]  }
 0x4cb   :  { %10582 = vmatprep.subr.bf16.mxu1 %v22491_v10  ;;  %v22500_v10 = vld [vmem:[#allocation2 + $0x1034] ss:$24 sps:$4 sm:$0xff]  }
 0x4cd   :  { %8424 = vmatpush1.bf16.msra.mxu0 %v22399_v31 }
 0x4ce   :  { %8425 = vmatprep.subr.bf16.mxu0 %v22404_v11  ;;  %10583 = vmatpush1.bf16.msra.mxu1 %v22489_v12 }
 0x4cf   :  { %10584 = vmatprep.subr.bf16.mxu1 %v22497_v34 }
 0x4d1   :  { %8426 = vmatpush1.bf16.msra.mxu0 %v22402_v13 }
 0x4d2   :  { %8427 = vmatprep.subr.bf16.mxu0 %v22407_v54  ;;  %10585 = vmatpush1.bf16.msra.mxu1 %v22495_v16  ;;  %v22498_v54 = vld [vmem:[#allocation2 + $0x1030] ss:$24 sps:$4 sm:$0xff]   ;;  %v22506_v16 = vld [vmem:[#allocation2 + $0x1064] ss:$24 sps:$4 sm:$0xff]  }
 0x4d3   :  { %10586 = vmatprep.subr.bf16.mxu1 %v22503_v17 }
 0x4d5   :  { %8428 = vmatpush1.bf16.msra.mxu0 %v22405_v18 }
 0x4d6   :  { %8429 = vmatprep.subr.bf16.mxu0 %v22410_v21  ;;  %10587 = vmatpush1.bf16.msra.mxu1 %v22501_v22 }
 0x4d9   :  { %8430 = vmatpush1.bf16.msra.mxu0 %v22408_v23  ;;  %v22504_v23 = vld [vmem:[#allocation2 + $0x1060] ss:$24 sps:$4 sm:$0xff]  }
 0x4da   :  { %8431 = vmatprep.subr.bf16.mxu0 %v22416_v29  ;;  %v22509_v29 = vld [vmem:[#allocation2 + $0x1094] ss:$24 sps:$4 sm:$0xff]  }
 0x4dd   :  { %8432 = vmatpush1.bf16.msra.mxu0 %v22414_v30 }
 0x4de   :  { %8433 = vmatprep.subr.bf16.mxu0 %v22422_v58  ;;  %v22507_v58 = vld [vmem:[#allocation2 + $0x1090] ss:$24 sps:$4 sm:$0xff]  }
 0x4e1   :  { %8434 = vmatpush1.bf16.msra.mxu0 %v22420_v14  ;;  %v22512_v14 = vld [vmem:[#allocation2 + $0x10c4] ss:$24 sps:$4 sm:$0xff]  }
 0x4e2   :  { %8435 = vmatprep.subr.bf16.mxu0 %v22428_v20  ;;  %v22510_v20 = vld [vmem:[#allocation2 + $0x10c0] ss:$24 sps:$4 sm:$0xff]  }
 0x4e5   :  { %8436 = vmatpush1.bf16.msra.mxu0 %v22426_v36  ;;  %v22515_v36 = vld [vmem:[#allocation2 + $0x10f4] ss:$24 sps:$4 sm:$0xff]  }
 0x4e6   :  { %8437 = vmatprep.subr.bf16.mxu0 %v22434_v37  ;;  %v22513_v37 = vld [vmem:[#allocation2 + $0x10f0] ss:$24 sps:$4 sm:$0xff]  }
 0x4e9   :  { %8438 = vmatpush1.bf16.msra.mxu0 %v22432_v41  ;;  %v22518_v41 = vld [vmem:[#allocation2 + $0x1124] ss:$24 sps:$4 sm:$0xff]  }
 0x4ea   :  { %8439 = vmatprep.subr.bf16.mxu0 %v22440_v42  ;;  %v22516_v42 = vld [vmem:[#allocation2 + $0x1120] ss:$24 sps:$4 sm:$0xff]  }
 0x4ed   :  { %8440 = vmatpush1.bf16.msra.mxu0 %v22438_v51  ;;  %v22521_v51 = vld [vmem:[#allocation2 + $0x1154] ss:$24 sps:$4 sm:$0xff]  }
 0x4ee   :  { %8441 = vmatprep.subr.bf16.mxu0 %v22446_v43  ;;  %v22519_v43 = vld [vmem:[#allocation2 + $0x1150] ss:$24 sps:$4 sm:$0xff]  }
 0x4f1   :  { %8442 = vmatpush1.bf16.msra.mxu0 %v22444_v27  ;;  %v22524_v27 = vld [vmem:[#allocation2 + $0x1184] ss:$24 sps:$4 sm:$0xff]  }
 0x4f2   :  { %8443 = vmatprep.subr.bf16.mxu0 %v22452_v45  ;;  %v22522_v45 = vld [vmem:[#allocation2 + $0x1180] ss:$24 sps:$4 sm:$0xff]  }
 0x4f5   :  { %8444 = vmatpush1.bf16.msra.mxu0 %v22450_v46  ;;  %v22527_v46 = vld [vmem:[#allocation2 + $0x11b4] ss:$24 sps:$4 sm:$0xff]  }
 0x4f6   :  { %8445 = vmatprep.subr.bf16.mxu0 %v22458_v39  ;;  %v22525_v39 = vld [vmem:[#allocation2 + $0x11b0] ss:$24 sps:$4 sm:$0xff]  }
 0x4f9   :  { %8446 = vmatpush1.bf16.msra.mxu0 %v22456_v48  ;;  %v22530_v48 = vld [vmem:[#allocation2 + $0x11e4] ss:$24 sps:$4 sm:$0xff]  }
 0x4fa   :  { %8456 = vmatprep.subr.bf16.mxu0 %v22464_v49  ;;  %v22528_v49 = vld [vmem:[#allocation2 + $0x11e0] ss:$24 sps:$4 sm:$0xff]  }
 0x4fc   :  { %8448 = vmatmul.mubr.bf16.vlgmr.msra.gmra.mrb[4].mxu0 %v25286_v38  ;;  %v25450_v38 = vsub.s32 3, %v25424_v24 }
 0x4fd   :  { %8457 = vmatpush1.bf16.msra.mxu0 %v22462_v50  ;;  %8488 = vmatprep.mubr.bf16.mxu0 %v25295_v44  ;;  %v24611_v44 = vld [vmem:[#allocation4] sm:$0x3f]  ;;  %v22533_v50 = vld [vmem:[#allocation2 + $0x1214] ss:$24 sps:$4 sm:$0xff]  }
 0x4fe   :  { %8458 = vmatprep.subr.bf16.mxu0 %v22470_v52  ;;  %v1404_v4 = vrot.slane %v24611_v44, %v25447_v5  ;;  %v1408_v7 = vrot.slane %v24611_v44, %v25450_v38  ;;  %v22531_v52 = vld [vmem:[#allocation2 + $0x1210] ss:$24 sps:$4 sm:$0xff]   ;;  %v22548_v44 = vld [vmem:[#allocation2 + $0x1304] ss:$24 sps:$4 sm:$0xff]  }
 0x501   :  { %8459 = vmatpush1.bf16.msra.mxu0 %v22468_v53  ;;  %v22536_v53 = vld [vmem:[#allocation2 + $0x1244] ss:$24 sps:$4 sm:$0xff]  }
 0x502   :  { %8460 = vmatprep.subr.bf16.mxu0 %v22476_v56  ;;  %v22534_v56 = vld [vmem:[#allocation2 + $0x1240] ss:$24 sps:$4 sm:$0xff]  }
 0x505   :  { %8461 = vmatpush1.bf16.msra.mxu0 %v22474_v57  ;;  %v22539_v57 = vld [vmem:[#allocation2 + $0x1274] ss:$24 sps:$4 sm:$0xff]  }
 0x506   :  { %8462 = vmatprep.subr.bf16.mxu0 %v22482_v62  ;;  %v22537_v62 = vld [vmem:[#allocation2 + $0x1270] ss:$24 sps:$4 sm:$0xff]  }
 0x509   :  { %8463 = vmatpush1.bf16.msra.mxu0 %v22480_v63  ;;  %v22542_v63 = vld [vmem:[#allocation2 + $0x12a4] ss:$24 sps:$4 sm:$0xff]  }
 0x50a   :  { %8464 = vmatprep.subr.bf16.mxu0 %v22488_v19  ;;  %v22540_v19 = vld [vmem:[#allocation2 + $0x12a0] ss:$24 sps:$4 sm:$0xff]  }
 0x50d   :  { %8465 = vmatpush1.bf16.msra.mxu0 %v22486_v28  ;;  %v22545_v28 = vld [vmem:[#allocation2 + $0x12d4] ss:$24 sps:$4 sm:$0xff]  }
 0x50e   :  { %8466 = vmatprep.subr.bf16.mxu0 %v22494_v3  ;;  %v8244_v31 = vpop.f32.mrb[4].mxu1  ;;  %v22543_v3 = vld [vmem:[#allocation2 + $0x12d0] ss:$24 sps:$4 sm:$0xff]  }
 0x50f   :  { %v20689_v11 = vadd.f32 %v8244_v31, %v1404_v4  ;;  %v8246_v12 = vpop.f32.mrb[5].mxu1  ;;  %v22551_v4 = vld [vmem:[#allocation2 + $0x1334] ss:$24 sps:$4 sm:$0xff]   ;;  %v22555_v31 = vld [vmem:[#allocation2 + $0x1390] ss:$24 sps:$4 sm:$0xff]  }
 0x510   :  { %v20690_v34 = vadd.f32 %v8246_v12, %v1408_v7  ;;  %v8248_v13 = vpop.f32.mrb[6].mxu1  ;;  %v22549_v7 = vld [vmem:[#allocation2 + $0x1330] ss:$24 sps:$4 sm:$0xff]   ;;  %v22558_v12 = vld [vmem:[#allocation2 + $0x13c0] ss:$24 sps:$4 sm:$0xff]  }
 0x511   :  { %8467 = vmatpush1.bf16.msra.mxu0 %v22492_v26  ;;  %v8745_v17 = vmax.f32 %v20689_v11, 0.0  ;;  %v8249_v18 = vpop.f32.mrb[7].mxu1  ;;  %v22552_v26 = vld [vmem:[#allocation2 + $0x1360] ss:$24 sps:$4 sm:$0xff]   ;;  %v22560_v11 = vld [vmem:[#allocation2 + $0x13c4] ss:$24 sps:$4 sm:$0xff]  }
 0x512   :  { %8468 = vmatprep.subr.bf16.mxu0 %v22500_v10  ;;  %v8746_v21 = vmax.f32 %v20690_v34, 0.0  ;;  %v22557_v10 = vld [vmem:[#allocation2 + $0x1394] ss:$24 sps:$4 sm:$0xff]   ;;  %v22561_v13 = vld [vmem:[#allocation2 + $0x13f0] ss:$24 sps:$4 sm:$0xff]  }
 0x513   :  { %v25456_v30 = vpack.c.bf16 %v8745_v17, %v8745_v17  ;;  %v22563_v34 = vld [vmem:[#allocation2 + $0x13f4] ss:$24 sps:$4 sm:$0xff]   ;;  %v22567_v18 = vld [vmem:[#allocation2 + $0x1450] ss:$24 sps:$4 sm:$0xff]  }
 0x514   :  { %v25454_v22 = vpack.c.bf16 %v8746_v21, %v8746_v21  ;;  %v22569_v17 = vld [vmem:[#allocation2 + $0x1454] ss:$24 sps:$4 sm:$0xff]   ;;  %v22572_v21 = vld [vmem:[#allocation2 + $0x1484] ss:$24 sps:$4 sm:$0xff]  }
 0x515   :  { %8469 = vmatpush1.bf16.msra.mxu0 %v22498_v54  ;;  %v22566_v54 = vld [vmem:[#allocation2 + $0x1424] ss:$24 sps:$4 sm:$0xff]  }
 0x516   :  { %8470 = vmatprep.subr.bf16.mxu0 %v22506_v16  ;;  %10588 = vmatprep.mubr.bf16.mxu1 %v25454_v22  ;;  %v22564_v16 = vld [vmem:[#allocation2 + $0x1420] ss:$24 sps:$4 sm:$0xff]  }
 0x517   :  { %10589 = vmatmul.mubr.bf16.vlgmr.msra.gmra.mrb[8].mxu1 %v25456_v30 }
 0x519   :  { %8471 = vmatpush1.bf16.msra.mxu0 %v22504_v23  ;;  %v22570_v23 = vld [vmem:[#allocation2 + $0x1480] ss:$24 sps:$4 sm:$0xff]  }
 0x51a   :  { %8472 = vmatprep.subr.bf16.mxu0 %v22509_v29  ;;  %v22575_v29 = vld [vmem:[#allocation2 + $0x14b4] ss:$24 sps:$4 sm:$0xff]  }
 0x51d   :  { %8473 = vmatpush1.bf16.msra.mxu0 %v22507_v58  ;;  %v22573_v58 = vld [vmem:[#allocation2 + $0x14b0] ss:$24 sps:$4 sm:$0xff]  }
 0x51e   :  { %8474 = vmatprep.subr.bf16.mxu0 %v22512_v14  ;;  %v22578_v14 = vld [vmem:[#allocation2 + $0x14e4] ss:$24 sps:$4 sm:$0xff]  }
 0x521   :  { %8475 = vmatpush1.bf16.msra.mxu0 %v22510_v20  ;;  %v22576_v20 = vld [vmem:[#allocation2 + $0x14e0] ss:$24 sps:$4 sm:$0xff]  }
 0x522   :  { %8476 = vmatprep.subr.bf16.mxu0 %v22515_v36  ;;  %v22581_v36 = vld [vmem:[#allocation2 + $0x1514] ss:$24 sps:$4 sm:$0xff]  }
 0x525   :  { %8477 = vmatpush1.bf16.msra.mxu0 %v22513_v37  ;;  %v22579_v37 = vld [vmem:[#allocation2 + $0x1510] ss:$24 sps:$4 sm:$0xff]  }
 0x526   :  { %8478 = vmatprep.subr.bf16.mxu0 %v22518_v41  ;;  %v22584_v41 = vld [vmem:[#allocation2 + $0x1544] ss:$24 sps:$4 sm:$0xff]  }
 0x529   :  { %8479 = vmatpush1.bf16.msra.mxu0 %v22516_v42  ;;  %v22582_v42 = vld [vmem:[#allocation2 + $0x1540] ss:$24 sps:$4 sm:$0xff]  }
 0x52a   :  { %8480 = vmatprep.subr.bf16.mxu0 %v22521_v51  ;;  %v22587_v51 = vld [vmem:[#allocation2 + $0x1574] ss:$24 sps:$4 sm:$0xff]  }
 0x52d   :  { %8481 = vmatpush1.bf16.msra.mxu0 %v22519_v43  ;;  %v22585_v43 = vld [vmem:[#allocation2 + $0x1570] ss:$24 sps:$4 sm:$0xff]  }
 0x52e   :  { %8482 = vmatprep.subr.bf16.mxu0 %v22524_v27  ;;  %v22590_v27 = vld [vmem:[#allocation2 + $0x15a4] ss:$24 sps:$4 sm:$0xff]  }
 0x531   :  { %8483 = vmatpush1.bf16.msra.mxu0 %v22522_v45  ;;  %v22588_v45 = vld [vmem:[#allocation2 + $0x15a0] ss:$24 sps:$4 sm:$0xff]  }
 0x532   :  { %8484 = vmatprep.subr.bf16.mxu0 %v22527_v46  ;;  %v22593_v46 = vld [vmem:[#allocation2 + $0x15d4] ss:$24 sps:$4 sm:$0xff]  }
 0x535   :  { %8485 = vmatpush1.bf16.msra.mxu0 %v22525_v39  ;;  %v22591_v39 = vld [vmem:[#allocation2 + $0x15d0] ss:$24 sps:$4 sm:$0xff]  }
 0x536   :  { %8486 = vmatprep.subr.bf16.mxu0 %v22530_v48  ;;  %v22596_v48 = vld [vmem:[#allocation2 + $0x1604] ss:$24 sps:$4 sm:$0xff]  }
 0x539   :  { %8487 = vmatpush1.bf16.msra.mxu0 %v22528_v49  ;;  %v22599_v49 = vld [vmem:[#allocation2 + $0x1634] ss:$24 sps:$4 sm:$0xff]  }
 0x53a   :  { %8497 = vmatprep.subr.bf16.mxu0 %v22533_v50  ;;  %v22597_v50 = vld [vmem:[#allocation2 + $0x1630] ss:$24 sps:$4 sm:$0xff]  }
 0x53c   :  { %8489 = vmatmul.mubr.bf16.vlgmr.msra.gmra.mrb[4].mxu0 %v25308_v55  ;;  %v22546_v55 = vld [vmem:[#allocation2 + $0x1300] ss:$24 sps:$4 sm:$0xff]  }
 0x53d   :  { %8498 = vmatpush1.bf16.msra.mxu0 %v22531_v52  ;;  %8529 = vmatprep.mubr.bf16.mxu0 %v25312_v60  ;;  %v22554_v60 = vld [vmem:[#allocation2 + $0x1364] ss:$24 sps:$4 sm:$0xff]   ;;  %v22600_v52 = vld [vmem:[#allocation2 + $0x1660] ss:$24 sps:$4 sm:$0xff]  }
 0x53e   :  { %8499 = vmatprep.subr.bf16.mxu0 %v22536_v53  ;;  %v22605_v53 = vld [vmem:[#allocation2 + $0x1694] ss:$24 sps:$4 sm:$0xff]  }
 0x541   :  { %8500 = vmatpush1.bf16.msra.mxu0 %v22534_v56  ;;  %v22603_v56 = vld [vmem:[#allocation2 + $0x1690] ss:$24 sps:$4 sm:$0xff]  }
 0x542   :  { %8501 = vmatprep.subr.bf16.mxu0 %v22539_v57  ;;  %v22608_v57 = vld [vmem:[#allocation2 + $0x16c4] ss:$24 sps:$4 sm:$0xff]  }
 0x545   :  { %8502 = vmatpush1.bf16.msra.mxu0 %v22537_v62  ;;  %v22606_v62 = vld [vmem:[#allocation2 + $0x16c0] ss:$24 sps:$4 sm:$0xff]  }
 0x546   :  { %8503 = vmatprep.subr.bf16.mxu0 %v22542_v63  ;;  %v22611_v63 = vld [vmem:[#allocation2 + $0x16f4] ss:$24 sps:$4 sm:$0xff]  }
 0x549   :  { %8504 = vmatpush1.bf16.msra.mxu0 %v22540_v19  ;;  %v22609_v19 = vld [vmem:[#allocation2 + $0x16f0] ss:$24 sps:$4 sm:$0xff]  }
 0x54a   :  { %8505 = vmatprep.subr.bf16.mxu0 %v22545_v28  ;;  %v22614_v28 = vld [vmem:[#allocation2 + $0x1724] ss:$24 sps:$4 sm:$0xff]  }
 0x54d   :  { %8506 = vmatpush1.bf16.msra.mxu0 %v22543_v3  ;;  %v22612_v3 = vld [vmem:[#allocation2 + $0x1720] ss:$24 sps:$4 sm:$0xff]  }
 0x54e   :  { %8507 = vmatprep.subr.bf16.mxu0 %v22548_v44  ;;  %v22617_v44 = vld [vmem:[#allocation2 + $0x1754] ss:$24 sps:$4 sm:$0xff]  }
 0x551   :  { %8508 = vmatpush1.bf16.msra.mxu0 %v22546_v55  ;;  %v22615_v55 = vld [vmem:[#allocation2 + $0x1750] ss:$24 sps:$4 sm:$0xff]  }
 0x552   :  { %8509 = vmatprep.subr.bf16.mxu0 %v22551_v4  ;;  %v22620_v4 = vld [vmem:[#allocation2 + $0x1784] ss:$24 sps:$4 sm:$0xff]  }
 0x555   :  { %8510 = vmatpush1.bf16.msra.mxu0 %v22549_v7  ;;  %v22618_v7 = vld [vmem:[#allocation2 + $0x1780] ss:$24 sps:$4 sm:$0xff]  }
 0x556   :  { %8511 = vmatprep.subr.bf16.mxu0 %v22554_v60  ;;  %v22623_v60 = vld [vmem:[#allocation2 + $0x17b4] ss:$24 sps:$4 sm:$0xff]  }
 0x559   :  { %8512 = vmatpush1.bf16.msra.mxu0 %v22552_v26  ;;  %v22621_v26 = vld [vmem:[#allocation2 + $0x17b0] ss:$24 sps:$4 sm:$0xff]  }
 0x55a   :  { %8513 = vmatprep.subr.bf16.mxu0 %v22557_v10  ;;  %v22626_v10 = vld [vmem:[#allocation2 + $0x17e4] ss:$24 sps:$4 sm:$0xff]  }
 0x55d   :  { %8514 = vmatpush1.bf16.msra.mxu0 %v22555_v31  ;;  %v22624_v31 = vld [vmem:[#allocation2 + $0x17e0] ss:$24 sps:$4 sm:$0xff]  }
 0x55e   :  { %8515 = vmatprep.subr.bf16.mxu0 %v22560_v11  ;;  %v22629_v11 = vld [vmem:[#allocation2 + $0x1814] ss:$24 sps:$4 sm:$0xff]  }
 0x561   :  { %8516 = vmatpush1.bf16.msra.mxu0 %v22558_v12  ;;  %v22627_v12 = vld [vmem:[#allocation2 + $0x1810] ss:$24 sps:$4 sm:$0xff]  }
 0x562   :  { %8517 = vmatprep.subr.bf16.mxu0 %v22563_v34  ;;  %v22632_v34 = vld [vmem:[#allocation2 + $0x1844] ss:$24 sps:$4 sm:$0xff]  }
 0x565   :  { %8518 = vmatpush1.bf16.msra.mxu0 %v22561_v13  ;;  %v22630_v13 = vld [vmem:[#allocation2 + $0x1840] ss:$24 sps:$4 sm:$0xff]  }
 0x566   :  { %8519 = vmatprep.subr.bf16.mxu0 %v22566_v54  ;;  %v22635_v54 = vld [vmem:[#allocation2 + $0x1874] ss:$24 sps:$4 sm:$0xff]  }
 0x569   :  { %8520 = vmatpush1.bf16.msra.mxu0 %v22564_v16  ;;  %v22633_v16 = vld [vmem:[#allocation2 + $0x1870] ss:$24 sps:$4 sm:$0xff]  }
 0x56a   :  { %8521 = vmatprep.subr.bf16.mxu0 %v22569_v17  ;;  %v22638_v17 = vld [vmem:[#allocation2 + $0x18a4] ss:$24 sps:$4 sm:$0xff]  }
 0x56d   :  { %8522 = vmatpush1.bf16.msra.mxu0 %v22567_v18  ;;  %v22636_v18 = vld [vmem:[#allocation2 + $0x18a0] ss:$24 sps:$4 sm:$0xff]  }
 0x56e   :  { %8523 = vmatprep.subr.bf16.mxu0 %v22572_v21  ;;  %v22641_v21 = vld [vmem:[#allocation2 + $0x18d4] ss:$24 sps:$4 sm:$0xff]  }
 0x571   :  { %8524 = vmatpush1.bf16.msra.mxu0 %v22570_v23  ;;  %v22639_v23 = vld [vmem:[#allocation2 + $0x18d0] ss:$24 sps:$4 sm:$0xff]  }
 0x572   :  { %8525 = vmatprep.subr.bf16.mxu0 %v22575_v29  ;;  %v22644_v29 = vld [vmem:[#allocation2 + $0x1904] ss:$24 sps:$4 sm:$0xff]  }
 0x575   :  { %8526 = vmatpush1.bf16.msra.mxu0 %v22573_v58  ;;  %v22647_v58 = vld [vmem:[#allocation2 + $0x1934] ss:$24 sps:$4 sm:$0xff]  }
 0x576   :  { %8527 = vmatprep.subr.bf16.mxu0 %v22578_v14  ;;  %v22650_v14 = vld [vmem:[#allocation2 + $0x1964] ss:$24 sps:$4 sm:$0xff]  }
 0x579   :  { %8528 = vmatpush1.bf16.msra.mxu0 %v22576_v20  ;;  %v22648_v20 = vld [vmem:[#allocation2 + $0x1960] ss:$24 sps:$4 sm:$0xff]  }
 0x57a   :  { %8538 = vmatprep.subr.bf16.mxu0 %v22581_v36  ;;  %v22653_v36 = vld [vmem:[#allocation2 + $0x1994] ss:$24 sps:$4 sm:$0xff]  }
 0x57c   :  { %8530 = vmatmul.mubr.bf16.vlgmr.msra.gmra.mrb[4].mxu0 %v25325_v9  ;;  %v22594_v9 = vld [vmem:[#allocation2 + $0x1600] ss:$24 sps:$4 sm:$0xff]  }
 0x57d   :  { %8539 = vmatpush1.bf16.msra.mxu0 %v22579_v37  ;;  %8570 = vmatprep.mubr.bf16.mxu0 %v25329_v15  ;;  %v22602_v15 = vld [vmem:[#allocation2 + $0x1664] ss:$24 sps:$4 sm:$0xff]   ;;  %v22651_v37 = vld [vmem:[#allocation2 + $0x1990] ss:$24 sps:$4 sm:$0xff]  }
 0x57e   :  { %8540 = vmatprep.subr.bf16.mxu0 %v22584_v41  ;;  %v22656_v41 = vld [vmem:[#allocation2 + $0x19c4] ss:$24 sps:$4 sm:$0xff]  }
 0x581   :  { %8541 = vmatpush1.bf16.msra.mxu0 %v22582_v42  ;;  %v22654_v42 = vld [vmem:[#allocation2 + $0x19c0] ss:$24 sps:$4 sm:$0xff]  }
 0x582   :  { %8542 = vmatprep.subr.bf16.mxu0 %v22587_v51  ;;  %v22659_v51 = vld [vmem:[#allocation2 + $0x19f4] ss:$24 sps:$4 sm:$0xff]  }
 0x585   :  { %8543 = vmatpush1.bf16.msra.mxu0 %v22585_v43  ;;  %v22657_v43 = vld [vmem:[#allocation2 + $0x19f0] ss:$24 sps:$4 sm:$0xff]  }
 0x586   :  { %8544 = vmatprep.subr.bf16.mxu0 %v22590_v27  ;;  %v22662_v27 = vld [vmem:[#allocation2 + $0x1a24] ss:$24 sps:$4 sm:$0xff]  }
 0x589   :  { %8545 = vmatpush1.bf16.msra.mxu0 %v22588_v45  ;;  %v22660_v45 = vld [vmem:[#allocation2 + $0x1a20] ss:$24 sps:$4 sm:$0xff]  }
 0x58a   :  { %8546 = vmatprep.subr.bf16.mxu0 %v22593_v46  ;;  %v22665_v46 = vld [vmem:[#allocation2 + $0x1a54] ss:$24 sps:$4 sm:$0xff]  }
 0x58d   :  { %8547 = vmatpush1.bf16.msra.mxu0 %v22591_v39  ;;  %v22663_v39 = vld [vmem:[#allocation2 + $0x1a50] ss:$24 sps:$4 sm:$0xff]  }
 0x58e   :  { %8548 = vmatprep.subr.bf16.mxu0 %v22596_v48  ;;  %v22668_v48 = vld [vmem:[#allocation2 + $0x1a84] ss:$24 sps:$4 sm:$0xff]  }
 0x591   :  { %8549 = vmatpush1.bf16.msra.mxu0 %v22594_v9  ;;  %v22666_v9 = vld [vmem:[#allocation2 + $0x1a80] ss:$24 sps:$4 sm:$0xff]  }
 0x592   :  { %8550 = vmatprep.subr.bf16.mxu0 %v22599_v49  ;;  %v22671_v49 = vld [vmem:[#allocation2 + $0x1ab4] ss:$24 sps:$4 sm:$0xff]  }
 0x595   :  { %8551 = vmatpush1.bf16.msra.mxu0 %v22597_v50  ;;  %v22669_v50 = vld [vmem:[#allocation2 + $0x1ab0] ss:$24 sps:$4 sm:$0xff]  }
 0x596   :  { %8552 = vmatprep.subr.bf16.mxu0 %v22602_v15  ;;  %v22674_v15 = vld [vmem:[#allocation2 + $0x1ae4] ss:$24 sps:$4 sm:$0xff]  }
 0x599   :  { %8553 = vmatpush1.bf16.msra.mxu0 %v22600_v52  ;;  %v22672_v52 = vld [vmem:[#allocation2 + $0x1ae0] ss:$24 sps:$4 sm:$0xff]  }
 0x59a   :  { %8554 = vmatprep.subr.bf16.mxu0 %v22605_v53  ;;  %v22677_v53 = vld [vmem:[#allocation2 + $0x1b14] ss:$24 sps:$4 sm:$0xff]  }
 0x59d   :  { %8555 = vmatpush1.bf16.msra.mxu0 %v22603_v56  ;;  %v22675_v56 = vld [vmem:[#allocation2 + $0x1b10] ss:$24 sps:$4 sm:$0xff]  }
 0x59e   :  { %8556 = vmatprep.subr.bf16.mxu0 %v22608_v57  ;;  %v22680_v57 = vld [vmem:[#allocation2 + $0x1b44] ss:$24 sps:$4 sm:$0xff]  }
 0x5a1   :  { %8557 = vmatpush1.bf16.msra.mxu0 %v22606_v62  ;;  %v22678_v62 = vld [vmem:[#allocation2 + $0x1b40] ss:$24 sps:$4 sm:$0xff]  }
 0x5a2   :  { %8558 = vmatprep.subr.bf16.mxu0 %v22611_v63  ;;  %v22683_v63 = vld [vmem:[#allocation2 + $0x1b74] ss:$24 sps:$4 sm:$0xff]  }
 0x5a5   :  { %8559 = vmatpush1.bf16.msra.mxu0 %v22609_v19  ;;  %v22681_v19 = vld [vmem:[#allocation2 + $0x1b70] ss:$24 sps:$4 sm:$0xff]  }
 0x5a6   :  { %8560 = vmatprep.subr.bf16.mxu0 %v22614_v28  ;;  %v22686_v28 = vld [vmem:[#allocation2 + $0x1ba4] ss:$24 sps:$4 sm:$0xff]  }
 0x5a9   :  { %8561 = vmatpush1.bf16.msra.mxu0 %v22612_v3  ;;  %v22684_v3 = vld [vmem:[#allocation2 + $0x1ba0] ss:$24 sps:$4 sm:$0xff]  }
 0x5aa   :  { %8562 = vmatprep.subr.bf16.mxu0 %v22617_v44  ;;  %v22689_v44 = vld [vmem:[#allocation2 + $0x1bd4] ss:$24 sps:$4 sm:$0xff]  }
 0x5ad   :  { %8563 = vmatpush1.bf16.msra.mxu0 %v22615_v55  ;;  %v22687_v55 = vld [vmem:[#allocation2 + $0x1bd0] ss:$24 sps:$4 sm:$0xff]  }
 0x5ae   :  { %8564 = vmatprep.subr.bf16.mxu0 %v22620_v4  ;;  %v22692_v4 = vld [vmem:[#allocation2 + $0x1c04] ss:$24 sps:$4 sm:$0xff]  }
 0x5b1   :  { %8565 = vmatpush1.bf16.msra.mxu0 %v22618_v7  ;;  %v22695_v7 = vld [vmem:[#allocation2 + $0x1c34] ss:$24 sps:$4 sm:$0xff]  }
 0x5b2   :  { %8566 = vmatprep.subr.bf16.mxu0 %v22623_v60  ;;  %v22698_v60 = vld [vmem:[#allocation2 + $0x1c64] ss:$24 sps:$4 sm:$0xff]  }
 0x5b5   :  { %8567 = vmatpush1.bf16.msra.mxu0 %v22621_v26  ;;  %v22696_v26 = vld [vmem:[#allocation2 + $0x1c60] ss:$24 sps:$4 sm:$0xff]  }
 0x5b6   :  { %8568 = vmatprep.subr.bf16.mxu0 %v22626_v10  ;;  %v22701_v10 = vld [vmem:[#allocation2 + $0x1c94] ss:$24 sps:$4 sm:$0xff]  }
 0x5b9   :  { %8569 = vmatpush1.bf16.msra.mxu0 %v22624_v31  ;;  %v22699_v31 = vld [vmem:[#allocation2 + $0x1c90] ss:$24 sps:$4 sm:$0xff]  }
 0x5ba   :  { %8579 = vmatprep.subr.bf16.mxu0 %v22629_v11  ;;  %v22704_v11 = vld [vmem:[#allocation2 + $0x1cc4] ss:$24 sps:$4 sm:$0xff]  }
 0x5bc   :  { %8571 = vmatmul.mubr.bf16.vlgmr.msra.gmra.mrb[4].mxu0 %v25342_v32  ;;  %v22642_v32 = vld [vmem:[#allocation2 + $0x1900] ss:$24 sps:$4 sm:$0xff]  }
 0x5bd   :  { %8580 = vmatpush1.bf16.msra.mxu0 %v22627_v12  ;;  %8611 = vmatprep.mubr.bf16.mxu0 %v25346_v40  ;;  %v22645_v40 = vld [vmem:[#allocation2 + $0x1930] ss:$24 sps:$4 sm:$0xff]   ;;  %v22702_v12 = vld [vmem:[#allocation2 + $0x1cc0] ss:$24 sps:$4 sm:$0xff]  }
 0x5be   :  { %8581 = vmatprep.subr.bf16.mxu0 %v22632_v34  ;;  %v22707_v34 = vld [vmem:[#allocation2 + $0x1cf4] ss:$24 sps:$4 sm:$0xff]  }
 0x5c1   :  { %8582 = vmatpush1.bf16.msra.mxu0 %v22630_v13  ;;  %v22705_v13 = vld [vmem:[#allocation2 + $0x1cf0] ss:$24 sps:$4 sm:$0xff]  }
 0x5c2   :  { %8583 = vmatprep.subr.bf16.mxu0 %v22635_v54  ;;  %v22710_v54 = vld [vmem:[#allocation2 + $0x1d24] ss:$24 sps:$4 sm:$0xff]  }
 0x5c5   :  { %8584 = vmatpush1.bf16.msra.mxu0 %v22633_v16  ;;  %v22708_v16 = vld [vmem:[#allocation2 + $0x1d20] ss:$24 sps:$4 sm:$0xff]  }
 0x5c6   :  { %8585 = vmatprep.subr.bf16.mxu0 %v22638_v17  ;;  %v22713_v17 = vld [vmem:[#allocation2 + $0x1d54] ss:$24 sps:$4 sm:$0xff]  }
 0x5c9   :  { %8586 = vmatpush1.bf16.msra.mxu0 %v22636_v18  ;;  %v22711_v18 = vld [vmem:[#allocation2 + $0x1d50] ss:$24 sps:$4 sm:$0xff]  }
 0x5ca   :  { %8587 = vmatprep.subr.bf16.mxu0 %v22641_v21  ;;  %v22716_v21 = vld [vmem:[#allocation2 + $0x1d84] ss:$24 sps:$4 sm:$0xff]  }
 0x5cd   :  { %8588 = vmatpush1.bf16.msra.mxu0 %v22639_v23  ;;  %v22714_v23 = vld [vmem:[#allocation2 + $0x1d80] ss:$24 sps:$4 sm:$0xff]  }
 0x5ce   :  { %8589 = vmatprep.subr.bf16.mxu0 %v22644_v29  ;;  %v22719_v29 = vld [vmem:[#allocation2 + $0x1db4] ss:$24 sps:$4 sm:$0xff]  }
 0x5d1   :  { %8590 = vmatpush1.bf16.msra.mxu0 %v22642_v32  ;;  %v22717_v32 = vld [vmem:[#allocation2 + $0x1db0] ss:$24 sps:$4 sm:$0xff]  }
 0x5d2   :  { %8591 = vmatprep.subr.bf16.mxu0 %v22647_v58  ;;  %v22722_v58 = vld [vmem:[#allocation2 + $0x1de4] ss:$24 sps:$4 sm:$0xff]  }
 0x5d5   :  { %8592 = vmatpush1.bf16.msra.mxu0 %v22645_v40  ;;  %v22720_v40 = vld [vmem:[#allocation2 + $0x1de0] ss:$24 sps:$4 sm:$0xff]  }
 0x5d6   :  { %8593 = vmatprep.subr.bf16.mxu0 %v22650_v14  ;;  %v22725_v14 = vld [vmem:[#allocation2 + $0x1e14] ss:$24 sps:$4 sm:$0xff]  }
 0x5d9   :  { %8594 = vmatpush1.bf16.msra.mxu0 %v22648_v20  ;;  %v22723_v20 = vld [vmem:[#allocation2 + $0x1e10] ss:$24 sps:$4 sm:$0xff]  }
 0x5da   :  { %8595 = vmatprep.subr.bf16.mxu0 %v22653_v36  ;;  %v22728_v36 = vld [vmem:[#allocation2 + $0x1e44] ss:$24 sps:$4 sm:$0xff]  }
 0x5dd   :  { %8596 = vmatpush1.bf16.msra.mxu0 %v22651_v37  ;;  %v22819_v37 = vld [vmem:[#allocation6 + $0x600] ss:$24 sps:$4 sm:$0xff]  }
 0x5de   :  { %8597 = vmatprep.subr.bf16.mxu0 %v22656_v41  ;;  %v22821_v41 = vld [vmem:[#allocation6 + $0x604] ss:$24 sps:$4 sm:$0xff]  }
 0x5df   :  { %10597 = vmatprep.subr.bf16.mxu1 %v22821_v41  ;;  %v22858_v41 = vld [vmem:[#allocation6 + $0x870] ss:$24 sps:$4 sm:$0xff]  }
 0x5e0   :  { %10598 = vmatpush1.bf16.msra.mxu1 %v22819_v37  ;;  %v22767_v37 = vld [vmem:[#allocation2 + $0x20b4] ss:$24 sps:$4 sm:$0xff]  }
 0x5e1   :  { %8598 = vmatpush1.bf16.msra.mxu0 %v22654_v42  ;;  %v22726_v42 = vld [vmem:[#allocation2 + $0x1e40] ss:$24 sps:$4 sm:$0xff]  }
 0x5e2   :  { %8599 = vmatprep.subr.bf16.mxu0 %v22659_v51  ;;  %v22824_v51 = vld [vmem:[#allocation6 + $0x634] ss:$24 sps:$4 sm:$0xff]  }
 0x5e3   :  { %10599 = vmatprep.subr.bf16.mxu1 %v22824_v51  ;;  %v22770_v51 = vld [vmem:[#allocation2 + $0x20e4] ss:$24 sps:$4 sm:$0xff]  }
 0x5e5   :  { %8600 = vmatpush1.bf16.msra.mxu0 %v22657_v43  ;;  %v22731_v43 = vld [vmem:[#allocation2 + $0x1e74] ss:$24 sps:$4 sm:$0xff]  }
 0x5e6   :  { %8601 = vmatprep.subr.bf16.mxu0 %v22662_v27  ;;  %v22822_v27 = vld [vmem:[#allocation6 + $0x630] ss:$24 sps:$4 sm:$0xff]  }
 0x5e7   :  { %10600 = vmatpush1.bf16.msra.mxu1 %v22822_v27  ;;  %v22773_v27 = vld [vmem:[#allocation2 + $0x2114] ss:$24 sps:$4 sm:$0xff]  }
 0x5e9   :  { %8602 = vmatpush1.bf16.msra.mxu0 %v22660_v45  ;;  %v22827_v45 = vld [vmem:[#allocation6 + $0x664] ss:$24 sps:$4 sm:$0xff]  }
 0x5ea   :  { %8603 = vmatprep.subr.bf16.mxu0 %v22665_v46  ;;  %v22729_v46 = vld [vmem:[#allocation2 + $0x1e70] ss:$24 sps:$4 sm:$0xff]   ;;  %10601 = vmatprep.subr.bf16.mxu1 %v22827_v45 }
 0x5eb   :  { %v22771_v45 = vld [vmem:[#allocation2 + $0x2110] ss:$24 sps:$4 sm:$0xff]  }
 0x5ed   :  { %8604 = vmatpush1.bf16.msra.mxu0 %v22663_v39  ;;  %v22734_v39 = vld [vmem:[#allocation2 + $0x1ea4] ss:$24 sps:$4 sm:$0xff]  }
 0x5ee   :  { %8605 = vmatprep.subr.bf16.mxu0 %v22668_v48  ;;  %v22830_v48 = vld [vmem:[#allocation6 + $0x694] ss:$24 sps:$4 sm:$0xff]  }
 0x5f1   :  { %8606 = vmatpush1.bf16.msra.mxu0 %v22666_v9  ;;  %v22732_v9 = vld [vmem:[#allocation2 + $0x1ea0] ss:$24 sps:$4 sm:$0xff]  }
 0x5f2   :  { %8607 = vmatprep.subr.bf16.mxu0 %v22671_v49  ;;  %v22828_v49 = vld [vmem:[#allocation6 + $0x690] ss:$24 sps:$4 sm:$0xff]  }
 0x5f5   :  { %8608 = vmatpush1.bf16.msra.mxu0 %v22669_v50  ;;  %v22833_v50 = vld [vmem:[#allocation6 + $0x6c4] ss:$24 sps:$4 sm:$0xff]  }
 0x5f6   :  { %8609 = vmatprep.subr.bf16.mxu0 %v22674_v15  ;;  %v22735_v15 = vld [vmem:[#allocation2 + $0x1ed0] ss:$24 sps:$4 sm:$0xff]  }
 0x5f9   :  { %8610 = vmatpush1.bf16.msra.mxu0 %v22672_v52  ;;  %v22740_v52 = vld [vmem:[#allocation2 + $0x1f04] ss:$24 sps:$4 sm:$0xff]  }
 0x5fa   :  { %8620 = vmatprep.subr.bf16.mxu0 %v22677_v53  ;;  %v22831_v53 = vld [vmem:[#allocation6 + $0x6c0] ss:$24 sps:$4 sm:$0xff]  }
 0x5fc   :  { %8612 = vmatmul.mubr.bf16.vlgmr.msra.gmra.mrb[4].mxu0 %v25359_v59  ;;  %v22690_v59 = vld [vmem:[#allocation2 + $0x1c00] ss:$24 sps:$4 sm:$0xff]  }
 0x5fd   :  { %8621 = vmatpush1.bf16.msra.mxu0 %v22675_v56  ;;  %8652 = vmatprep.mubr.bf16.mxu0 %v25363_v0  ;;  %v22693_v0 = vld [vmem:[#allocation2 + $0x1c30] ss:$24 sps:$4 sm:$0xff]  }
 0x5fe   :  { %8622 = vmatprep.subr.bf16.mxu0 %v22680_v57  ;;  %v22836_v56 = vld [vmem:[#allocation6 + $0x6f4] ss:$24 sps:$4 sm:$0xff]  }
 0x5ff   :  { %v22738_v57 = vld [vmem:[#allocation2 + $0x1f00] ss:$24 sps:$4 sm:$0xff]  }
 0x601   :  { %8623 = vmatpush1.bf16.msra.mxu0 %v22678_v62  ;;  %v22743_v62 = vld [vmem:[#allocation2 + $0x1f34] ss:$24 sps:$4 sm:$0xff]  }
 0x602   :  { %8624 = vmatprep.subr.bf16.mxu0 %v22683_v63  ;;  %v22834_v63 = vld [vmem:[#allocation6 + $0x6f0] ss:$24 sps:$4 sm:$0xff]  }
 0x605   :  { %8625 = vmatpush1.bf16.msra.mxu0 %v22681_v19  ;;  %v22839_v19 = vld [vmem:[#allocation6 + $0x724] ss:$24 sps:$4 sm:$0xff]  }
 0x606   :  { %8626 = vmatprep.subr.bf16.mxu0 %v22686_v28  ;;  %v22741_v28 = vld [vmem:[#allocation2 + $0x1f30] ss:$24 sps:$4 sm:$0xff]  }
 0x609   :  { %8627 = vmatpush1.bf16.msra.mxu0 %v22684_v3  ;;  %v22746_v3 = vld [vmem:[#allocation2 + $0x1f64] ss:$24 sps:$4 sm:$0xff]  }
 0x60a   :  { %8628 = vmatprep.subr.bf16.mxu0 %v22689_v44  ;;  %v22837_v44 = vld [vmem:[#allocation6 + $0x720] ss:$24 sps:$4 sm:$0xff]  }
 0x60d   :  { %8629 = vmatpush1.bf16.msra.mxu0 %v22687_v55  ;;  %v22842_v55 = vld [vmem:[#allocation6 + $0x754] ss:$24 sps:$4 sm:$0xff]  }
 0x60e   :  { %8630 = vmatprep.subr.bf16.mxu0 %v22692_v4  ;;  %v22744_v4 = vld [vmem:[#allocation2 + $0x1f60] ss:$24 sps:$4 sm:$0xff]  }
 0x611   :  { %8631 = vmatpush1.bf16.msra.mxu0 %v22690_v59  ;;  %v22749_v59 = vld [vmem:[#allocation2 + $0x1f94] ss:$24 sps:$4 sm:$0xff]  }
 0x612   :  { %8632 = vmatprep.subr.bf16.mxu0 %v22695_v7  ;;  %v22840_v7 = vld [vmem:[#allocation6 + $0x750] ss:$24 sps:$4 sm:$0xff]  }
 0x615   :  { %8633 = vmatpush1.bf16.msra.mxu0 %v22693_v0  ;;  %v22845_v0 = vld [vmem:[#allocation6 + $0x784] ss:$24 sps:$4 sm:$0xff]  }
 0x616   :  { %8634 = vmatprep.subr.bf16.mxu0 %v22698_v60  ;;  %v22747_v60 = vld [vmem:[#allocation2 + $0x1f90] ss:$24 sps:$4 sm:$0xff]  }
 0x619   :  { %8635 = vmatpush1.bf16.msra.mxu0 %v22696_v26  ;;  %v22752_v26 = vld [vmem:[#allocation2 + $0x1fc4] ss:$24 sps:$4 sm:$0xff]  }
 0x61a   :  { %8636 = vmatprep.subr.bf16.mxu0 %v22701_v10  ;;  %v22843_v10 = vld [vmem:[#allocation6 + $0x780] ss:$24 sps:$4 sm:$0xff]  }
 0x61d   :  { %8637 = vmatpush1.bf16.msra.mxu0 %v22699_v31  ;;  %v22848_v31 = vld [vmem:[#allocation6 + $0x7b4] ss:$24 sps:$4 sm:$0xff]  }
 0x61e   :  { %8638 = vmatprep.subr.bf16.mxu0 %v22704_v11  ;;  %v22750_v11 = vld [vmem:[#allocation2 + $0x1fc0] ss:$24 sps:$4 sm:$0xff]  }
 0x621   :  { %8639 = vmatpush1.bf16.msra.mxu0 %v22702_v12  ;;  %v22755_v12 = vld [vmem:[#allocation2 + $0x1ff4] ss:$24 sps:$4 sm:$0xff]  }
 0x622   :  { %8640 = vmatprep.subr.bf16.mxu0 %v22707_v34  ;;  %v22846_v34 = vld [vmem:[#allocation6 + $0x7b0] ss:$24 sps:$4 sm:$0xff]  }
 0x625   :  { %8641 = vmatpush1.bf16.msra.mxu0 %v22705_v13  ;;  %v22851_v13 = vld [vmem:[#allocation6 + $0x7e4] ss:$24 sps:$4 sm:$0xff]  }
 0x626   :  { %8642 = vmatprep.subr.bf16.mxu0 %v22710_v54  ;;  %v22753_v54 = vld [vmem:[#allocation2 + $0x1ff0] ss:$24 sps:$4 sm:$0xff]  }
 0x629   :  { %8643 = vmatpush1.bf16.msra.mxu0 %v22708_v16  ;;  %v22758_v16 = vld [vmem:[#allocation2 + $0x2024] ss:$24 sps:$4 sm:$0xff]  }
 0x62a   :  { %8644 = vmatprep.subr.bf16.mxu0 %v22713_v17  ;;  %v22849_v17 = vld [vmem:[#allocation6 + $0x7e0] ss:$24 sps:$4 sm:$0xff]  }
 0x62d   :  { %8645 = vmatpush1.bf16.msra.mxu0 %v22711_v18  ;;  %v22854_v18 = vld [vmem:[#allocation6 + $0x814] ss:$24 sps:$4 sm:$0xff]  }
 0x62e   :  { %8646 = vmatprep.subr.bf16.mxu0 %v22716_v21  ;;  %v22756_v21 = vld [vmem:[#allocation2 + $0x2020] ss:$24 sps:$4 sm:$0xff]  }
 0x631   :  { %8647 = vmatpush1.bf16.msra.mxu0 %v22714_v23  ;;  %v22761_v23 = vld [vmem:[#allocation2 + $0x2054] ss:$24 sps:$4 sm:$0xff]  }
 0x632   :  { %8648 = vmatprep.subr.bf16.mxu0 %v22719_v29  ;;  %v22852_v29 = vld [vmem:[#allocation6 + $0x810] ss:$24 sps:$4 sm:$0xff]  }
 0x635   :  { %8649 = vmatpush1.bf16.msra.mxu0 %v22717_v32  ;;  %v22857_v32 = vld [vmem:[#allocation6 + $0x844] ss:$24 sps:$4 sm:$0xff]  }
 0x636   :  { %8650 = vmatprep.subr.bf16.mxu0 %v22722_v58  ;;  %v22759_v58 = vld [vmem:[#allocation2 + $0x2050] ss:$24 sps:$4 sm:$0xff]  }
 0x639   :  { %8651 = vmatpush1.bf16.msra.mxu0 %v22720_v40  ;;  %v22764_v40 = vld [vmem:[#allocation2 + $0x2084] ss:$24 sps:$4 sm:$0xff]  }
 0x63a   :  { %8661 = vmatprep.subr.bf16.mxu0 %v22725_v14  ;;  %v22855_v14 = vld [vmem:[#allocation6 + $0x840] ss:$24 sps:$4 sm:$0xff]  }
 0x63c   :  { %8653 = vmatmul.mubr.bf16.vlgmr.msra.gmra.mrb[4].mxu0 %v25371_v25  ;;  %v22825_v25 = vld [vmem:[#allocation6 + $0x660] ss:$24 sps:$4 sm:$0xff]  }
 0x63d   :  { %8662 = vmatpush1.bf16.msra.mxu0 %v22723_v20  ;;  %8693 = vmatprep.mubr.bf16.mxu0 %v25380_v33  ;;  %v22737_v33 = vld [vmem:[#allocation2 + $0x1ed4] ss:$24 sps:$4 sm:$0xff]  }
 0x63e   :  { %8663 = vmatprep.subr.bf16.mxu0 %v22728_v36  ;;  %10602 = vmatpush1.bf16.msra.mxu1 %v22825_v25  ;;  %v22860_v20 = vld [vmem:[#allocation6 + $0x874] ss:$24 sps:$4 sm:$0xff]  }
 0x63f   :  { %10603 = vmatprep.subr.bf16.mxu1 %v22830_v48  ;;  %v22762_v36 = vld [vmem:[#allocation2 + $0x2080] ss:$24 sps:$4 sm:$0xff]   ;;  %v22779_v25 = vld [vmem:[#allocation2 + $0x2174] ss:$24 sps:$4 sm:$0xff]   ;;  %v22777_v48 = vld [vmem:[#allocation2 + $0x2170] ss:$24 sps:$4 sm:$0xff]  }
 0x641   :  { %8664 = vmatpush1.bf16.msra.mxu0 %v22726_v42  ;;  %v22765_v42 = vld [vmem:[#allocation2 + $0x20b0] ss:$24 sps:$4 sm:$0xff]  }
 0x642   :  { %8665 = vmatprep.subr.bf16.mxu0 %v22731_v43  ;;  %10604 = vmatpush1.bf16.msra.mxu1 %v22828_v49  ;;  %v22768_v43 = vld [vmem:[#allocation2 + $0x20e0] ss:$24 sps:$4 sm:$0xff]   ;;  %v22785_v49 = vld [vmem:[#allocation2 + $0x21d4] ss:$24 sps:$4 sm:$0xff]  }
 0x643   :  { %10605 = vmatprep.subr.bf16.mxu1 %v22833_v50  ;;  %v22783_v50 = vld [vmem:[#allocation2 + $0x21d0] ss:$24 sps:$4 sm:$0xff]  }
 0x645   :  { %8666 = vmatpush1.bf16.msra.mxu0 %v22729_v46  ;;  %v22776_v46 = vld [vmem:[#allocation2 + $0x2144] ss:$24 sps:$4 sm:$0xff]  }
 0x646   :  { %8667 = vmatprep.subr.bf16.mxu0 %v22734_v39  ;;  %10606 = vmatpush1.bf16.msra.mxu1 %v22831_v53  ;;  %v22774_v39 = vld [vmem:[#allocation2 + $0x2140] ss:$24 sps:$4 sm:$0xff]   ;;  %v22794_v53 = vld [vmem:[#allocation2 + $0x2264] ss:$24 sps:$4 sm:$0xff]  }
 0x647   :  { %10607 = vmatprep.subr.bf16.mxu1 %v22836_v56  ;;  %v22792_v56 = vld [vmem:[#allocation2 + $0x2260] ss:$24 sps:$4 sm:$0xff]  }
 0x649   :  { %8668 = vmatpush1.bf16.msra.mxu0 %v22732_v9  ;;  %v22782_v9 = vld [vmem:[#allocation2 + $0x21a4] ss:$24 sps:$4 sm:$0xff]  }
 0x64a   :  { %8669 = vmatprep.subr.bf16.mxu0 %v22737_v33  ;;  %10608 = vmatpush1.bf16.msra.mxu1 %v22834_v63  ;;  %v22780_v33 = vld [vmem:[#allocation2 + $0x21a0] ss:$24 sps:$4 sm:$0xff]   ;;  %v22800_v63 = vld [vmem:[#allocation2 + $0x22c4] ss:$24 sps:$4 sm:$0xff]  }
 0x64b   :  { %10609 = vmatprep.subr.bf16.mxu1 %v22839_v19  ;;  %v22798_v19 = vld [vmem:[#allocation2 + $0x22c0] ss:$24 sps:$4 sm:$0xff]  }
 0x64d   :  { %8670 = vmatpush1.bf16.msra.mxu0 %v22735_v15  ;;  %v22788_v15 = vld [vmem:[#allocation2 + $0x2204] ss:$24 sps:$4 sm:$0xff]  }
 0x64e   :  { %8671 = vmatprep.subr.bf16.mxu0 %v22740_v52  ;;  %10610 = vmatpush1.bf16.msra.mxu1 %v22837_v44  ;;  %v22791_v52 = vld [vmem:[#allocation2 + $0x2234] ss:$24 sps:$4 sm:$0xff]   ;;  %v22806_v44 = vld [vmem:[#allocation2 + $0x2324] ss:$24 sps:$4 sm:$0xff]  }
 0x64f   :  { %10611 = vmatprep.subr.bf16.mxu1 %v22842_v55  ;;  %v22804_v55 = vld [vmem:[#allocation2 + $0x2320] ss:$24 sps:$4 sm:$0xff]  }
 0x651   :  { %8672 = vmatpush1.bf16.msra.mxu0 %v22738_v57  ;;  %v22797_v57 = vld [vmem:[#allocation2 + $0x2294] ss:$24 sps:$4 sm:$0xff]  }
 0x652   :  { %8673 = vmatprep.subr.bf16.mxu0 %v22743_v62  ;;  %10612 = vmatpush1.bf16.msra.mxu1 %v22840_v7  ;;  %v22795_v62 = vld [vmem:[#allocation2 + $0x2290] ss:$24 sps:$4 sm:$0xff]   ;;  %v22812_v7 = vld [vmem:[#allocation2 + $0x2384] ss:$24 sps:$4 sm:$0xff]  }
 0x653   :  { %10613 = vmatprep.subr.bf16.mxu1 %v22845_v0  ;;  %v22810_v0 = vld [vmem:[#allocation2 + $0x2380] ss:$24 sps:$4 sm:$0xff]  }
 0x655   :  { %8674 = vmatpush1.bf16.msra.mxu0 %v22741_v28  ;;  %v22803_v28 = vld [vmem:[#allocation2 + $0x22f4] ss:$24 sps:$4 sm:$0xff]  }
 0x656   :  { %8675 = vmatprep.subr.bf16.mxu0 %v22746_v3  ;;  %10614 = vmatpush1.bf16.msra.mxu1 %v22843_v10  ;;  %v22801_v3 = vld [vmem:[#allocation2 + $0x22f0] ss:$24 sps:$4 sm:$0xff]   ;;  %v22818_v10 = vld [vmem:[#allocation2 + $0x23e4] ss:$24 sps:$4 sm:$0xff]  }
 0x657   :  { %10615 = vmatprep.subr.bf16.mxu1 %v22848_v31  ;;  %v22816_v31 = vld [vmem:[#allocation2 + $0x23e0] ss:$24 sps:$4 sm:$0xff]  }
 0x659   :  { %8676 = vmatpush1.bf16.msra.mxu0 %v22744_v4  ;;  %v22809_v4 = vld [vmem:[#allocation2 + $0x2354] ss:$24 sps:$4 sm:$0xff]  }
 0x65a   :  { %8677 = vmatprep.subr.bf16.mxu0 %v22749_v59  ;;  %10616 = vmatpush1.bf16.msra.mxu1 %v22846_v34  ;;  %v22807_v59 = vld [vmem:[#allocation2 + $0x2350] ss:$24 sps:$4 sm:$0xff]  }
 0x65b   :  { %10617 = vmatprep.subr.bf16.mxu1 %v22851_v13  ;;  %v22866_v34 = vld [vmem:[#allocation6 + $0x8d4] ss:$24 sps:$4 sm:$0xff]   ;;  %v22864_v13 = vld [vmem:[#allocation6 + $0x8d0] ss:$24 sps:$4 sm:$0xff]  }
 0x65d   :  { %8678 = vmatpush1.bf16.msra.mxu0 %v22747_v60  ;;  %v22815_v60 = vld [vmem:[#allocation2 + $0x23b4] ss:$24 sps:$4 sm:$0xff]  }
 0x65e   :  { %8679 = vmatprep.subr.bf16.mxu0 %v22752_v26  ;;  %10618 = vmatpush1.bf16.msra.mxu1 %v22849_v17  ;;  %v22813_v26 = vld [vmem:[#allocation2 + $0x23b0] ss:$24 sps:$4 sm:$0xff]   ;;  %v25477_v17 = vsub.s32 5, %v25424_v24 }
 0x65f   :  { %10619 = vmatprep.subr.bf16.mxu1 %v22854_v18  ;;  %v24612_v18 = vld [vmem:[#allocation4] sm:$0x3f] }
 0x661   :  { %8680 = vmatpush1.bf16.msra.mxu0 %v22750_v11  ;;  %v22863_v11 = vld [vmem:[#allocation6 + $0x8a4] ss:$24 sps:$4 sm:$0xff]  }
 0x662   :  { %8681 = vmatprep.subr.bf16.mxu0 %v22755_v12  ;;  %10620 = vmatpush1.bf16.msra.mxu1 %v22852_v29  ;;  %v22861_v12 = vld [vmem:[#allocation6 + $0x8a0] ss:$24 sps:$4 sm:$0xff]  }
 0x663   :  { %10621 = vmatprep.subr.bf16.mxu1 %v22857_v32 }
 0x665   :  { %8682 = vmatpush1.bf16.msra.mxu0 %v22753_v54  ;;  %v22869_v54 = vld [vmem:[#allocation6 + $0xc] ss:$24 sps:$4 sm:$0xff]  }
 0x666   :  { %8683 = vmatprep.subr.bf16.mxu0 %v22758_v16  ;;  %10622 = vmatpush1.bf16.msra.mxu1 %v22855_v14  ;;  %v25474_v16 = vsub.s32 4, %v25424_v24  ;;  %v22872_v24 = vld [vmem:[#allocation6 + $0x3c] ss:$24 sps:$4 sm:$0xff]  }
 0x667   :  { %10623 = vmatprep.subr.bf16.mxu1 %v22860_v20 }
 0x669   :  { %8684 = vmatpush1.bf16.msra.mxu0 %v22756_v21  ;;  %v1412_v21 = vrot.slane %v24612_v18, %v25474_v16 }
 0x66a   :  { %8685 = vmatprep.subr.bf16.mxu0 %v22761_v23  ;;  %10624 = vmatpush1.bf16.msra.mxu1 %v22858_v41  ;;  %v22867_v41 = vld [vmem:[#allocation6 + $0x8] ss:$24 sps:$4 sm:$0xff]  }
 0x66b   :  { %10625 = vmatprep.subr.bf16.mxu1 %v22863_v11  ;;  %v23019_v11 = vld [vmem:[#allocation9 + $0xfc] ss:$24 sps:$4 sm:$0xff]  }
 0x66d   :  { %8686 = vmatpush1.bf16.msra.mxu0 %v22759_v58 }
 0x66e   :  { %8687 = vmatprep.subr.bf16.mxu0 %v22764_v40  ;;  %10626 = vmatpush1.bf16.msra.mxu1 %v22861_v12  ;;  %v23017_v12 = vld [vmem:[#allocation9 + $0xf8] ss:$24 sps:$4 sm:$0xff]  }
 0x66f   :  { %10627 = vmatprep.subr.bf16.mxu1 %v22866_v34  ;;  %v22906_v34 = vld [vmem:[#allocation6 + $0x278] ss:$24 sps:$4 sm:$0xff]  }
 0x671   :  { %8688 = vmatpush1.bf16.msra.mxu0 %v22762_v36 }
 0x672   :  { %8689 = vmatprep.subr.bf16.mxu0 %v22767_v37  ;;  %10628 = vmatpush1.bf16.msra.mxu1 %v22864_v13  ;;  %v22911_v13 = vld [vmem:[#allocation6 + $0x2ac] ss:$24 sps:$4 sm:$0xff]  }
 0x673   :  { %10638 = vmatprep.subr.bf16.mxu1 %v22869_v54  ;;  %v23025_v54 = vld [vmem:[#allocation9 + $0x12c] ss:$24 sps:$4 sm:$0xff]  }
 0x675   :  { %8690 = vmatpush1.bf16.msra.mxu0 %v22765_v42 }
 0x676   :  { %8691 = vmatprep.subr.bf16.mxu0 %v22770_v51  ;;  %v22870_v51 = vld [vmem:[#allocation6 + $0x38] ss:$24 sps:$4 sm:$0xff]  }
 0x679   :  { %8692 = vmatpush1.bf16.msra.mxu0 %v22768_v43  ;;  %v22875_v43 = vld [vmem:[#allocation6 + $0x6c] ss:$24 sps:$4 sm:$0xff]  }
 0x67a   :  { %8702 = vmatprep.subr.bf16.mxu0 %v22773_v27  ;;  %v22873_v27 = vld [vmem:[#allocation6 + $0x68] ss:$24 sps:$4 sm:$0xff]  }
 0x67c   :  { %8694 = vmatmul.mubr.bf16.vlgmr.msra.gmra.mrb[4].mxu0 %v25393_v61  ;;  %v22786_v61 = vld [vmem:[#allocation2 + $0x2200] ss:$24 sps:$4 sm:$0xff]  }
 0x67d   :  { %8703 = vmatpush1.bf16.msra.mxu0 %v22771_v45  ;;  %8734 = vmatprep.mubr.bf16.mxu0 %v25397_v2  ;;  %v22789_v2 = vld [vmem:[#allocation2 + $0x2230] ss:$24 sps:$4 sm:$0xff]   ;;  %v22878_v45 = vld [vmem:[#allocation6 + $0x9c] ss:$24 sps:$4 sm:$0xff]  }
 0x67e   :  { %8704 = vmatprep.subr.bf16.mxu0 %v22776_v46  ;;  %v22876_v46 = vld [vmem:[#allocation6 + $0x98] ss:$24 sps:$4 sm:$0xff]  }
 0x681   :  { %8705 = vmatpush1.bf16.msra.mxu0 %v22774_v39  ;;  %v22881_v39 = vld [vmem:[#allocation6 + $0xcc] ss:$24 sps:$4 sm:$0xff]  }
 0x682   :  { %8706 = vmatprep.subr.bf16.mxu0 %v22779_v25  ;;  %v22879_v25 = vld [vmem:[#allocation6 + $0xc8] ss:$24 sps:$4 sm:$0xff]  }
 0x685   :  { %8707 = vmatpush1.bf16.msra.mxu0 %v22777_v48  ;;  %v22884_v48 = vld [vmem:[#allocation6 + $0xfc] ss:$24 sps:$4 sm:$0xff]  }
 0x686   :  { %8708 = vmatprep.subr.bf16.mxu0 %v22782_v9  ;;  %v22882_v9 = vld [vmem:[#allocation6 + $0xf8] ss:$24 sps:$4 sm:$0xff]  }
 0x689   :  { %8709 = vmatpush1.bf16.msra.mxu0 %v22780_v33  ;;  %v22887_v33 = vld [vmem:[#allocation6 + $0x12c] ss:$24 sps:$4 sm:$0xff]  }
 0x68a   :  { %8710 = vmatprep.subr.bf16.mxu0 %v22785_v49  ;;  %v22885_v49 = vld [vmem:[#allocation6 + $0x128] ss:$24 sps:$4 sm:$0xff]  }
 0x68d   :  { %8711 = vmatpush1.bf16.msra.mxu0 %v22783_v50  ;;  %v22890_v50 = vld [vmem:[#allocation6 + $0x15c] ss:$24 sps:$4 sm:$0xff]  }
 0x68e   :  { %8712 = vmatprep.subr.bf16.mxu0 %v22788_v15  ;;  %v22888_v15 = vld [vmem:[#allocation6 + $0x158] ss:$24 sps:$4 sm:$0xff]  }
 0x691   :  { %8713 = vmatpush1.bf16.msra.mxu0 %v22786_v61  ;;  %v22893_v61 = vld [vmem:[#allocation6 + $0x18c] ss:$24 sps:$4 sm:$0xff]  }
 0x692   :  { %8714 = vmatprep.subr.bf16.mxu0 %v22791_v52  ;;  %v22989_v52 = vld [vmem:[#allocation9 + $0xc] ss:$24 sps:$4 sm:$0xff]  }
 0x695   :  { %8715 = vmatpush1.bf16.msra.mxu0 %v22789_v2  ;;  %v22987_v2 = vld [vmem:[#allocation9 + $0x8] ss:$24 sps:$4 sm:$0xff]  }
 0x696   :  { %8716 = vmatprep.subr.bf16.mxu0 %v22794_v53  ;;  %v22891_v53 = vld [vmem:[#allocation6 + $0x188] ss:$24 sps:$4 sm:$0xff]  }
 0x699   :  { %8717 = vmatpush1.bf16.msra.mxu0 %v22792_v56  ;;  %v22896_v56 = vld [vmem:[#allocation6 + $0x1bc] ss:$24 sps:$4 sm:$0xff]  }
 0x69a   :  { %8718 = vmatprep.subr.bf16.mxu0 %v22797_v57  ;;  %v22995_v57 = vld [vmem:[#allocation9 + $0x3c] ss:$24 sps:$4 sm:$0xff]  }
 0x69d   :  { %8719 = vmatpush1.bf16.msra.mxu0 %v22795_v62  ;;  %v22993_v62 = vld [vmem:[#allocation9 + $0x38] ss:$24 sps:$4 sm:$0xff]  }
 0x69e   :  { %8720 = vmatprep.subr.bf16.mxu0 %v22800_v63  ;;  %v22894_v63 = vld [vmem:[#allocation6 + $0x1b8] ss:$24 sps:$4 sm:$0xff]  }
 0x6a1   :  { %8721 = vmatpush1.bf16.msra.mxu0 %v22798_v19  ;;  %v22899_v19 = vld [vmem:[#allocation6 + $0x1ec] ss:$24 sps:$4 sm:$0xff]  }
 0x6a2   :  { %8722 = vmatprep.subr.bf16.mxu0 %v22803_v28  ;;  %v23001_v28 = vld [vmem:[#allocation9 + $0x6c] ss:$24 sps:$4 sm:$0xff]  }
 0x6a5   :  { %8723 = vmatpush1.bf16.msra.mxu0 %v22801_v3  ;;  %v22999_v3 = vld [vmem:[#allocation9 + $0x68] ss:$24 sps:$4 sm:$0xff]  }
 0x6a6   :  { %8724 = vmatprep.subr.bf16.mxu0 %v22806_v44  ;;  %v22897_v44 = vld [vmem:[#allocation6 + $0x1e8] ss:$24 sps:$4 sm:$0xff]  }
 0x6a9   :  { %8725 = vmatpush1.bf16.msra.mxu0 %v22804_v55  ;;  %v22902_v55 = vld [vmem:[#allocation6 + $0x21c] ss:$24 sps:$4 sm:$0xff]  }
 0x6aa   :  { %8726 = vmatprep.subr.bf16.mxu0 %v22809_v4  ;;  %v23007_v4 = vld [vmem:[#allocation9 + $0x9c] ss:$24 sps:$4 sm:$0xff]  }
 0x6ad   :  { %8727 = vmatpush1.bf16.msra.mxu0 %v22807_v59  ;;  %v23005_v59 = vld [vmem:[#allocation9 + $0x98] ss:$24 sps:$4 sm:$0xff]  }
 0x6ae   :  { %8728 = vmatprep.subr.bf16.mxu0 %v22812_v7  ;;  %v22900_v7 = vld [vmem:[#allocation6 + $0x218] ss:$24 sps:$4 sm:$0xff]  }
 0x6b1   :  { %8729 = vmatpush1.bf16.msra.mxu0 %v22810_v0  ;;  %v22905_v0 = vld [vmem:[#allocation6 + $0x24c] ss:$24 sps:$4 sm:$0xff]  }
 0x6b2   :  { %8730 = vmatprep.subr.bf16.mxu0 %v22815_v60  ;;  %v23013_v60 = vld [vmem:[#allocation9 + $0xcc] ss:$24 sps:$4 sm:$0xff]  }
 0x6b5   :  { %8731 = vmatpush1.bf16.msra.mxu0 %v22813_v26  ;;  %v23011_v26 = vld [vmem:[#allocation9 + $0xc8] ss:$24 sps:$4 sm:$0xff]  }
 0x6b6   :  { %8732 = vmatprep.subr.bf16.mxu0 %v22818_v10  ;;  %v22903_v10 = vld [vmem:[#allocation6 + $0x248] ss:$24 sps:$4 sm:$0xff]  }
 0x6b9   :  { %8733 = vmatpush1.bf16.msra.mxu0 %v22816_v31  ;;  %v22908_v31 = vld [vmem:[#allocation6 + $0x27c] ss:$24 sps:$4 sm:$0xff]  }
 0x6ba   :  { %12779 = vmatprep.subr.bf16.mxu0 %v22989_v52  ;;  %v23067_v52 = vld [vmem:[#allocation9 + $0x27c] ss:$24 sps:$4 sm:$0xff]  }
 0x6bc   :  { %8735 = vmatmul.mubr.bf16.vlgmr.msra.gmra.mrb[4].mxu0 %v25405_v8  ;;  %v1416_v8 = vrot.slane %v24612_v18, %v25477_v17  ;;  %v23023_v18 = vld [vmem:[#allocation9 + $0x128] ss:$24 sps:$4 sm:$0xff]  }
 0x6bd   :  { %12780 = vmatpush1.bf16.msra.mxu0 %v22987_v2  ;;  %v23065_v2 = vld [vmem:[#allocation9 + $0x278] ss:$24 sps:$4 sm:$0xff]  }
 0x6be   :  { %12781 = vmatprep.subr.bf16.mxu0 %v22995_v57  ;;  %v23073_v57 = vld [vmem:[#allocation9 + $0x2ac] ss:$24 sps:$4 sm:$0xff]  }
 0x6c1   :  { %12782 = vmatpush1.bf16.msra.mxu0 %v22993_v62  ;;  %v23071_v62 = vld [vmem:[#allocation9 + $0x2a8] ss:$24 sps:$4 sm:$0xff]  }
 0x6c2   :  { %12783 = vmatprep.subr.bf16.mxu0 %v23001_v28  ;;  %v23079_v28 = vld [vmem:[#allocation9 + $0x2dc] ss:$24 sps:$4 sm:$0xff]  }
 0x6c5   :  { %12784 = vmatpush1.bf16.msra.mxu0 %v22999_v3  ;;  %v23077_v3 = vld [vmem:[#allocation9 + $0x2d8] ss:$24 sps:$4 sm:$0xff]  }
 0x6c6   :  { %12785 = vmatprep.subr.bf16.mxu0 %v23007_v4  ;;  %v22939_v4 = vld [vmem:[#allocation6 + $0x488] ss:$24 sps:$4 sm:$0xff]  }
 0x6c9   :  { %12786 = vmatpush1.bf16.msra.mxu0 %v23005_v59  ;;  %v22944_v59 = vld [vmem:[#allocation6 + $0x4bc] ss:$24 sps:$4 sm:$0xff]  }
 0x6ca   :  { %12787 = vmatprep.subr.bf16.mxu0 %v23013_v60  ;;  %v22945_v60 = vld [vmem:[#allocation6 + $0x4e8] ss:$24 sps:$4 sm:$0xff]  }
 0x6cd   :  { %12788 = vmatpush1.bf16.msra.mxu0 %v23011_v26  ;;  %v22950_v26 = vld [vmem:[#allocation6 + $0x51c] ss:$24 sps:$4 sm:$0xff]  }
 0x6ce   :  { %12789 = vmatprep.subr.bf16.mxu0 %v23019_v11  ;;  %v22951_v11 = vld [vmem:[#allocation6 + $0x548] ss:$24 sps:$4 sm:$0xff]  }
 0x6d1   :  { %12790 = vmatpush1.bf16.msra.mxu0 %v23017_v12  ;;  %v22956_v12 = vld [vmem:[#allocation6 + $0x57c] ss:$24 sps:$4 sm:$0xff]  }
 0x6d2   :  { %12791 = vmatprep.subr.bf16.mxu0 %v23025_v54  ;;  %v22957_v54 = vld [vmem:[#allocation6 + $0x5a8] ss:$24 sps:$4 sm:$0xff]  }
 0x6d5   :  { %12792 = vmatpush1.bf16.msra.mxu0 %v23023_v18  ;;  %v22962_v18 = vld [vmem:[#allocation6 + $0x5dc] ss:$24 sps:$4 sm:$0xff]  }
 0x78f   :  { %v8736_v23 = vpop.f32.mrb[4].mxu0 }
 0x790   :  { %v20691_v29 = vadd.f32 %v8736_v23, %v1412_v21  ;;  %v8738_v32 = vpop.f32.mrb[5].mxu0  ;;  %v22909_v21 = vld [vmem:[#allocation6 + $0x2a8] ss:$24 sps:$4 sm:$0xff]  }
 0x791   :  { %v20692_v58 = vadd.f32 %v8738_v32, %v1416_v8  ;;  %v8740_v40 = vpop.f32.mrb[6].mxu0  ;;  %v22914_v8 = vld [vmem:[#allocation6 + $0x2dc] ss:$24 sps:$4 sm:$0xff]   ;;  %v22912_v32 = vld [vmem:[#allocation6 + $0x2d8] ss:$24 sps:$4 sm:$0xff]  }
 0x792   :  { %v8747_v14 = vmax.f32 %v20691_v29, 0.0  ;;  %v8741_v20 = vpop.f32.mrb[7].mxu0  ;;  %v23031_v23 = vld [vmem:[#allocation9 + $0x15c] ss:$24 sps:$4 sm:$0xff]   ;;  %v23029_v29 = vld [vmem:[#allocation9 + $0x158] ss:$24 sps:$4 sm:$0xff]  }
 0x793   :  { %v8748_v36 = vmax.f32 %v20692_v58, 0.0  ;;  %12793 = vmatprep.subr.bf16.mxu0 %v23031_v23  ;;  %v22917_v58 = vld [vmem:[#allocation6 + $0x30c] ss:$24 sps:$4 sm:$0xff]   ;;  %v22915_v20 = vld [vmem:[#allocation6 + $0x308] ss:$24 sps:$4 sm:$0xff]  }
 0x794   :  { %v25483_v42 = vpack.c.bf16 %v8747_v14, %v8747_v14  ;;  %12794 = vmatpush1.bf16.msra.mxu0 %v23029_v29  ;;  %v23037_v40 = vld [vmem:[#allocation9 + $0x18c] ss:$24 sps:$4 sm:$0xff]   ;;  %v23035_v14 = vld [vmem:[#allocation9 + $0x188] ss:$24 sps:$4 sm:$0xff]  }
 0x795   :  { %v25481_v37 = vpack.c.bf16 %v8748_v36, %v8748_v36  ;;  %12795 = vmatprep.subr.bf16.mxu0 %v23037_v40  ;;  %v22920_v36 = vld [vmem:[#allocation6 + $0x33c] ss:$24 sps:$4 sm:$0xff]   ;;  %v22963_v23 = vld [vmem:[#allocation6 + $0x608] ss:$24 sps:$4 sm:$0xff]  }
 0x796   :  { %v22968_v29 = vld [vmem:[#allocation6 + $0x63c] ss:$24 sps:$4 sm:$0xff]   ;;  %v22969_v40 = vld [vmem:[#allocation6 + $0x668] ss:$24 sps:$4 sm:$0xff]  }
 0x797   :  { %10629 = vmatprep.mubr.bf16.mxu1 %v25481_v37 }
 0x798   :  { %10630 = vmatmul.mubr.bf16.vlgmr.msra.gmra.mrb[8].mxu1 %v25483_v42  ;;  %12796 = vmatpush1.bf16.msra.mxu0 %v23035_v14  ;;  %v22974_v14 = vld [vmem:[#allocation6 + $0x69c] ss:$24 sps:$4 sm:$0xff]  }
 0x799   :  { %10639 = vmatpush1.bf16.msra.mxu1 %v22867_v41  ;;  %10670 = vmatprep.mubr.bf16.mxu1 %v25436_v1  ;;  %v23043_v41 = vld [vmem:[#allocation9 + $0x1bc] ss:$24 sps:$4 sm:$0xff]  }
 0x79a   :  { %10640 = vmatprep.subr.bf16.mxu1 %v22872_v24  ;;  %v23041_v24 = vld [vmem:[#allocation9 + $0x1b8] ss:$24 sps:$4 sm:$0xff]   ;;  %12797 = vmatprep.subr.bf16.mxu0 %v23043_v41 }
 0x79b   :  { %v22975_v41 = vld [vmem:[#allocation6 + $0x6c8] ss:$24 sps:$4 sm:$0xff]  }
 0x79c   :  { %12798 = vmatpush1.bf16.msra.mxu0 %v23041_v24  ;;  %v22980_v24 = vld [vmem:[#allocation6 + $0x6fc] ss:$24 sps:$4 sm:$0xff]  }
 0x79d   :  { %10641 = vmatpush1.bf16.msra.mxu1 %v22870_v51  ;;  %v22918_v51 = vld [vmem:[#allocation6 + $0x338] ss:$24 sps:$4 sm:$0xff]  }
 0x79e   :  { %10642 = vmatprep.subr.bf16.mxu1 %v22875_v43  ;;  %v22923_v43 = vld [vmem:[#allocation6 + $0x36c] ss:$24 sps:$4 sm:$0xff]  }
 0x7a1   :  { %10643 = vmatpush1.bf16.msra.mxu1 %v22873_v27  ;;  %v23049_v27 = vld [vmem:[#allocation9 + $0x1ec] ss:$24 sps:$4 sm:$0xff]  }
 0x7a2   :  { %10644 = vmatprep.subr.bf16.mxu1 %v22878_v45  ;;  %v23047_v45 = vld [vmem:[#allocation9 + $0x1e8] ss:$24 sps:$4 sm:$0xff]   ;;  %12799 = vmatprep.subr.bf16.mxu0 %v23049_v27 }
 0x7a3   :  { %12800 = vmatpush1.bf16.msra.mxu0 %v23047_v45  ;;  %v22981_v27 = vld [vmem:[#allocation6 + $0x728] ss:$24 sps:$4 sm:$0xff]   ;;  %v22986_v45 = vld [vmem:[#allocation6 + $0x75c] ss:$24 sps:$4 sm:$0xff]  }
 0x7a5   :  { %10645 = vmatpush1.bf16.msra.mxu1 %v22876_v46  ;;  %v22921_v46 = vld [vmem:[#allocation6 + $0x368] ss:$24 sps:$4 sm:$0xff]  }
 0x7a6   :  { %10646 = vmatprep.subr.bf16.mxu1 %v22881_v39  ;;  %v22926_v39 = vld [vmem:[#allocation6 + $0x39c] ss:$24 sps:$4 sm:$0xff]  }
 0x7a9   :  { %10647 = vmatpush1.bf16.msra.mxu1 %v22879_v25  ;;  %v23055_v25 = vld [vmem:[#allocation9 + $0x21c] ss:$24 sps:$4 sm:$0xff]  }
 0x7aa   :  { %10648 = vmatprep.subr.bf16.mxu1 %v22884_v48  ;;  %v23053_v48 = vld [vmem:[#allocation9 + $0x218] ss:$24 sps:$4 sm:$0xff]   ;;  %12801 = vmatprep.subr.bf16.mxu0 %v23055_v25 }
 0x7ab   :  { %12802 = vmatpush1.bf16.msra.mxu0 %v23053_v48  ;;  %v22990_v25 = vld [vmem:[#allocation6 + $0x788] ss:$24 sps:$4 sm:$0xff]   ;;  %v22998_v48 = vld [vmem:[#allocation6 + $0x7bc] ss:$24 sps:$4 sm:$0xff]  }
 0x7ad   :  { %10649 = vmatpush1.bf16.msra.mxu1 %v22882_v9  ;;  %v22924_v9 = vld [vmem:[#allocation6 + $0x398] ss:$24 sps:$4 sm:$0xff]  }
 0x7ae   :  { %10650 = vmatprep.subr.bf16.mxu1 %v22887_v33  ;;  %v22929_v33 = vld [vmem:[#allocation6 + $0x3cc] ss:$24 sps:$4 sm:$0xff]  }
 0x7b1   :  { %10651 = vmatpush1.bf16.msra.mxu1 %v22885_v49  ;;  %v23061_v49 = vld [vmem:[#allocation9 + $0x24c] ss:$24 sps:$4 sm:$0xff]  }
 0x7b2   :  { %10652 = vmatprep.subr.bf16.mxu1 %v22890_v50  ;;  %v23059_v50 = vld [vmem:[#allocation9 + $0x248] ss:$24 sps:$4 sm:$0xff]   ;;  %12803 = vmatprep.subr.bf16.mxu0 %v23061_v49 }
 0x7b3   :  { %12804 = vmatpush1.bf16.msra.mxu0 %v23059_v50  ;;  %v23002_v49 = vld [vmem:[#allocation6 + $0x7e8] ss:$24 sps:$4 sm:$0xff]   ;;  %v23010_v50 = vld [vmem:[#allocation6 + $0x81c] ss:$24 sps:$4 sm:$0xff]  }
 0x7b4   :  { %12805 = vmatprep.subr.bf16.mxu0 %v23067_v52  ;;  %v23014_v52 = vld [vmem:[#allocation6 + $0x848] ss:$24 sps:$4 sm:$0xff]  }
 0x7b5   :  { %10653 = vmatpush1.bf16.msra.mxu1 %v22888_v15  ;;  %v22927_v15 = vld [vmem:[#allocation6 + $0x3c8] ss:$24 sps:$4 sm:$0xff]  }
 0x7b6   :  { %10654 = vmatprep.subr.bf16.mxu1 %v22893_v61  ;;  %v22932_v61 = vld [vmem:[#allocation6 + $0x3fc] ss:$24 sps:$4 sm:$0xff]  }
 0x7b7   :  { %12806 = vmatpush1.bf16.msra.mxu0 %v23065_v2  ;;  %v23022_v2 = vld [vmem:[#allocation6 + $0x87c] ss:$24 sps:$4 sm:$0xff]  }
 0x7b8   :  { %12807 = vmatprep.subr.bf16.mxu0 %v23073_v57  ;;  %v23026_v57 = vld [vmem:[#allocation6 + $0x8a8] ss:$24 sps:$4 sm:$0xff]  }
 0x7b9   :  { %10655 = vmatpush1.bf16.msra.mxu1 %v22891_v53  ;;  %v22930_v53 = vld [vmem:[#allocation6 + $0x3f8] ss:$24 sps:$4 sm:$0xff]  }
 0x7ba   :  { %10656 = vmatprep.subr.bf16.mxu1 %v22896_v56  ;;  %v22935_v56 = vld [vmem:[#allocation6 + $0x42c] ss:$24 sps:$4 sm:$0xff]  }
 0x7bb   :  { %12808 = vmatpush1.bf16.msra.mxu0 %v23071_v62  ;;  %v23034_v62 = vld [vmem:[#allocation6 + $0x8dc] ss:$24 sps:$4 sm:$0xff]  }
 0x7bc   :  { %12809 = vmatprep.subr.bf16.mxu0 %v23079_v28  ;;  %v23038_v28 = vld [vmem:[#allocation6 + $0x10] ss:$24 sps:$4 sm:$0xff]  }
 0x7bd   :  { %10657 = vmatpush1.bf16.msra.mxu1 %v22894_v63  ;;  %v22933_v63 = vld [vmem:[#allocation6 + $0x428] ss:$24 sps:$4 sm:$0xff]  }
 0x7be   :  { %10658 = vmatprep.subr.bf16.mxu1 %v22899_v19  ;;  %v22938_v19 = vld [vmem:[#allocation6 + $0x45c] ss:$24 sps:$4 sm:$0xff]  }
 0x7bf   :  { %12810 = vmatpush1.bf16.msra.mxu0 %v23077_v3  ;;  %v23046_v3 = vld [vmem:[#allocation6 + $0x44] ss:$24 sps:$4 sm:$0xff]  }
 0x7c1   :  { %10659 = vmatpush1.bf16.msra.mxu1 %v22897_v44  ;;  %v22936_v44 = vld [vmem:[#allocation6 + $0x458] ss:$24 sps:$4 sm:$0xff]  }
 0x7c2   :  { %10660 = vmatprep.subr.bf16.mxu1 %v22902_v55  ;;  %v22941_v55 = vld [vmem:[#allocation6 + $0x48c] ss:$24 sps:$4 sm:$0xff]  }
 0x7c5   :  { %10661 = vmatpush1.bf16.msra.mxu1 %v22900_v7  ;;  %v22942_v7 = vld [vmem:[#allocation6 + $0x4b8] ss:$24 sps:$4 sm:$0xff]  }
 0x7c6   :  { %10662 = vmatprep.subr.bf16.mxu1 %v22905_v0  ;;  %v22947_v0 = vld [vmem:[#allocation6 + $0x4ec] ss:$24 sps:$4 sm:$0xff]  }
 0x7c9   :  { %10663 = vmatpush1.bf16.msra.mxu1 %v22903_v10  ;;  %v22948_v10 = vld [vmem:[#allocation6 + $0x518] ss:$24 sps:$4 sm:$0xff]  }
 0x7ca   :  { %10664 = vmatprep.subr.bf16.mxu1 %v22908_v31  ;;  %v22953_v31 = vld [vmem:[#allocation6 + $0x54c] ss:$24 sps:$4 sm:$0xff]  }
 0x7cd   :  { %10665 = vmatpush1.bf16.msra.mxu1 %v22906_v34  ;;  %v22954_v34 = vld [vmem:[#allocation6 + $0x578] ss:$24 sps:$4 sm:$0xff]  }
 0x7ce   :  { %10666 = vmatprep.subr.bf16.mxu1 %v22911_v13  ;;  %v22959_v13 = vld [vmem:[#allocation6 + $0x5ac] ss:$24 sps:$4 sm:$0xff]  }
 0x7d1   :  { %10667 = vmatpush1.bf16.msra.mxu1 %v22909_v21  ;;  %v22960_v21 = vld [vmem:[#allocation6 + $0x5d8] ss:$24 sps:$4 sm:$0xff]  }
 0x7d2   :  { %10668 = vmatprep.subr.bf16.mxu1 %v22914_v8  ;;  %v22965_v8 = vld [vmem:[#allocation6 + $0x60c] ss:$24 sps:$4 sm:$0xff]  }
 0x7d5   :  { %10669 = vmatpush1.bf16.msra.mxu1 %v22912_v32  ;;  %v22966_v32 = vld [vmem:[#allocation6 + $0x638] ss:$24 sps:$4 sm:$0xff]  }
 0x7d6   :  { %10679 = vmatprep.subr.bf16.mxu1 %v22917_v58  ;;  %v22971_v58 = vld [vmem:[#allocation6 + $0x66c] ss:$24 sps:$4 sm:$0xff]  }
 0x7d8   :  { %10671 = vmatmul.mubr.bf16.vlgmr.msra.gmra.mrb[12].mxu1 %v25438_v47 }
 0x7d9   :  { %10680 = vmatpush1.bf16.msra.mxu1 %v22915_v20  ;;  %10711 = vmatprep.mubr.bf16.mxu1 %v25454_v22  ;;  %v22972_v20 = vld [vmem:[#allocation6 + $0x698] ss:$24 sps:$4 sm:$0xff]  }
 0x7da   :  { %10681 = vmatprep.subr.bf16.mxu1 %v22920_v36  ;;  %v22977_v36 = vld [vmem:[#allocation6 + $0x6cc] ss:$24 sps:$4 sm:$0xff]  }
 0x7dd   :  { %10682 = vmatpush1.bf16.msra.mxu1 %v22918_v51  ;;  %v22978_v51 = vld [vmem:[#allocation6 + $0x6f8] ss:$24 sps:$4 sm:$0xff]  }
 0x7de   :  { %10683 = vmatprep.subr.bf16.mxu1 %v22923_v43  ;;  %v22983_v43 = vld [vmem:[#allocation6 + $0x72c] ss:$24 sps:$4 sm:$0xff]  }
 0x7e1   :  { %10684 = vmatpush1.bf16.msra.mxu1 %v22921_v46  ;;  %v22984_v46 = vld [vmem:[#allocation6 + $0x758] ss:$24 sps:$4 sm:$0xff]  }
 0x7e2   :  { %10685 = vmatprep.subr.bf16.mxu1 %v22926_v39  ;;  %v22992_v39 = vld [vmem:[#allocation6 + $0x78c] ss:$24 sps:$4 sm:$0xff]  }
 0x7e5   :  { %10686 = vmatpush1.bf16.msra.mxu1 %v22924_v9  ;;  %v22996_v9 = vld [vmem:[#allocation6 + $0x7b8] ss:$24 sps:$4 sm:$0xff]  }
 0x7e6   :  { %10687 = vmatprep.subr.bf16.mxu1 %v22929_v33  ;;  %v23004_v33 = vld [vmem:[#allocation6 + $0x7ec] ss:$24 sps:$4 sm:$0xff]  }
 0x7e9   :  { %10688 = vmatpush1.bf16.msra.mxu1 %v22927_v15  ;;  %v23008_v15 = vld [vmem:[#allocation6 + $0x818] ss:$24 sps:$4 sm:$0xff]  }
 0x7ea   :  { %10689 = vmatprep.subr.bf16.mxu1 %v22932_v61  ;;  %v23016_v61 = vld [vmem:[#allocation6 + $0x84c] ss:$24 sps:$4 sm:$0xff]  }
 0x7ed   :  { %10690 = vmatpush1.bf16.msra.mxu1 %v22930_v53  ;;  %v23020_v53 = vld [vmem:[#allocation6 + $0x878] ss:$24 sps:$4 sm:$0xff]  }
 0x7ee   :  { %10691 = vmatprep.subr.bf16.mxu1 %v22935_v56  ;;  %v23028_v56 = vld [vmem:[#allocation6 + $0x8ac] ss:$24 sps:$4 sm:$0xff]  }
 0x7f1   :  { %10692 = vmatpush1.bf16.msra.mxu1 %v22933_v63  ;;  %v23032_v63 = vld [vmem:[#allocation6 + $0x8d8] ss:$24 sps:$4 sm:$0xff]  }
 0x7f2   :  { %10693 = vmatprep.subr.bf16.mxu1 %v22938_v19  ;;  %v23040_v19 = vld [vmem:[#allocation6 + $0x14] ss:$24 sps:$4 sm:$0xff]  }
 0x7f5   :  { %10694 = vmatpush1.bf16.msra.mxu1 %v22936_v44  ;;  %v23044_v44 = vld [vmem:[#allocation6 + $0x40] ss:$24 sps:$4 sm:$0xff]  }
 0x7f6   :  { %10695 = vmatprep.subr.bf16.mxu1 %v22941_v55  ;;  %v23052_v55 = vld [vmem:[#allocation6 + $0x74] ss:$24 sps:$4 sm:$0xff]  }
 0x7f9   :  { %10696 = vmatpush1.bf16.msra.mxu1 %v22939_v4  ;;  %v23050_v4 = vld [vmem:[#allocation6 + $0x70] ss:$24 sps:$4 sm:$0xff]  }
 0x7fa   :  { %10697 = vmatprep.subr.bf16.mxu1 %v22944_v59  ;;  %v23058_v59 = vld [vmem:[#allocation6 + $0xa4] ss:$24 sps:$4 sm:$0xff]  }
 0x7fd   :  { %10698 = vmatpush1.bf16.msra.mxu1 %v22942_v7  ;;  %v23056_v7 = vld [vmem:[#allocation6 + $0xa0] ss:$24 sps:$4 sm:$0xff]  }
 0x7fe   :  { %10699 = vmatprep.subr.bf16.mxu1 %v22947_v0  ;;  %v23064_v0 = vld [vmem:[#allocation6 + $0xd4] ss:$24 sps:$4 sm:$0xff]  }
 0x801   :  { %10700 = vmatpush1.bf16.msra.mxu1 %v22945_v60  ;;  %v23062_v60 = vld [vmem:[#allocation6 + $0xd0] ss:$24 sps:$4 sm:$0xff]  }
 0x802   :  { %10701 = vmatprep.subr.bf16.mxu1 %v22950_v26  ;;  %v25494_v26 = vld [vmem:[#allocation7] sm:$0x3f] }
 0x805   :  { %10702 = vmatpush1.bf16.msra.mxu1 %v22948_v10  ;;  %v23070_v10 = vld [vmem:[#allocation6 + $0x104] ss:$24 sps:$4 sm:$0xff]  }
 0x806   :  { %10703 = vmatprep.subr.bf16.mxu1 %v22953_v31  ;;  %v23068_v31 = vld [vmem:[#allocation6 + $0x100] ss:$24 sps:$4 sm:$0xff]  }
 0x809   :  { %10704 = vmatpush1.bf16.msra.mxu1 %v22951_v11  ;;  %v9052_v11 = vrot.slane %v25494_v26, %v25430_v35 }
 0x80a   :  { %10705 = vmatprep.subr.bf16.mxu1 %v22956_v12  ;;  %v23076_v12 = vld [vmem:[#allocation6 + $0x134] ss:$24 sps:$4 sm:$0xff]  }
 0x80d   :  { %10706 = vmatpush1.bf16.msra.mxu1 %v22954_v34 }
 0x80e   :  { %10707 = vmatprep.subr.bf16.mxu1 %v22959_v13 }
 0x811   :  { %10708 = vmatpush1.bf16.msra.mxu1 %v22957_v54 }
 0x812   :  { %10709 = vmatprep.subr.bf16.mxu1 %v22962_v18 }
 0x815   :  { %10710 = vmatpush1.bf16.msra.mxu1 %v22960_v21 }
 0x816   :  { %10720 = vmatprep.subr.bf16.mxu1 %v22965_v8  ;;  %v23074_v8 = vld [vmem:[#allocation6 + $0x130] ss:$24 sps:$4 sm:$0xff]  }
 0x818   :  { %10712 = vmatmul.mubr.bf16.vlgmr.msra.gmra.mrb[12].mxu1 %v25456_v30 }
 0x819   :  { %10721 = vmatpush1.bf16.msra.mxu1 %v22963_v23  ;;  %10752 = vmatprep.mubr.bf16.mxu1 %v25481_v37 }
 0x81a   :  { %10722 = vmatprep.subr.bf16.mxu1 %v22968_v29 }
 0x81d   :  { %10723 = vmatpush1.bf16.msra.mxu1 %v22966_v32  ;;  %v23082_v32 = vld [vmem:[#allocation6 + $0x164] ss:$24 sps:$4 sm:$0xff]  }
 0x81e   :  { %10724 = vmatprep.subr.bf16.mxu1 %v22971_v58 }
 0x821   :  { %10725 = vmatpush1.bf16.msra.mxu1 %v22969_v40 }
 0x822   :  { %10726 = vmatprep.subr.bf16.mxu1 %v22974_v14  ;;  %v23080_v14 = vld [vmem:[#allocation6 + $0x160] ss:$24 sps:$4 sm:$0xff]  }
 0x825   :  { %10727 = vmatpush1.bf16.msra.mxu1 %v22972_v20 }
 0x826   :  { %10728 = vmatprep.subr.bf16.mxu1 %v22977_v36  ;;  %v23085_v36 = vld [vmem:[#allocation6 + $0x194] ss:$24 sps:$4 sm:$0xff]  }
 0x829   :  { %10729 = vmatpush1.bf16.msra.mxu1 %v22975_v41  ;;  %v23179_v41 = vld [vmem:[#allocation9 + $0x308] ss:$24 sps:$4 sm:$0xff]  }
 0x82a   :  { %10730 = vmatprep.subr.bf16.mxu1 %v22980_v24  ;;  %v23181_v24 = vld [vmem:[#allocation9 + $0x30c] ss:$24 sps:$4 sm:$0xff]  }
 0x82b   :  { %12820 = vmatprep.subr.bf16.mxu0 %v23181_v24  ;;  %v23259_v24 = vld [vmem:[#allocation9 + $0x57c] ss:$24 sps:$4 sm:$0xff]  }
 0x82d   :  { %10731 = vmatpush1.bf16.msra.mxu1 %v22978_v51  ;;  %v23083_v51 = vld [vmem:[#allocation6 + $0x190] ss:$24 sps:$4 sm:$0xff]  }
 0x82e   :  { %10732 = vmatprep.subr.bf16.mxu1 %v22983_v43  ;;  %v23088_v43 = vld [vmem:[#allocation6 + $0x1c4] ss:$24 sps:$4 sm:$0xff]  }
 0x831   :  { %10733 = vmatpush1.bf16.msra.mxu1 %v22981_v27  ;;  %v23185_v27 = vld [vmem:[#allocation9 + $0x338] ss:$24 sps:$4 sm:$0xff]  }
 0x832   :  { %10734 = vmatprep.subr.bf16.mxu1 %v22986_v45  ;;  %v23187_v45 = vld [vmem:[#allocation9 + $0x33c] ss:$24 sps:$4 sm:$0xff]  }
 0x835   :  { %10735 = vmatpush1.bf16.msra.mxu1 %v22984_v46  ;;  %v23086_v46 = vld [vmem:[#allocation6 + $0x1c0] ss:$24 sps:$4 sm:$0xff]  }
 0x836   :  { %10736 = vmatprep.subr.bf16.mxu1 %v22992_v39  ;;  %v23091_v39 = vld [vmem:[#allocation6 + $0x1f4] ss:$24 sps:$4 sm:$0xff]  }
 0x839   :  { %10737 = vmatpush1.bf16.msra.mxu1 %v22990_v25  ;;  %v23191_v25 = vld [vmem:[#allocation9 + $0x368] ss:$24 sps:$4 sm:$0xff]  }
 0x83a   :  { %10738 = vmatprep.subr.bf16.mxu1 %v22998_v48  ;;  %v23193_v48 = vld [vmem:[#allocation9 + $0x36c] ss:$24 sps:$4 sm:$0xff]  }
 0x83d   :  { %10739 = vmatpush1.bf16.msra.mxu1 %v22996_v9  ;;  %v23089_v9 = vld [vmem:[#allocation6 + $0x1f0] ss:$24 sps:$4 sm:$0xff]  }
 0x83e   :  { %10740 = vmatprep.subr.bf16.mxu1 %v23004_v33  ;;  %v23094_v33 = vld [vmem:[#allocation6 + $0x224] ss:$24 sps:$4 sm:$0xff]  }
 0x841   :  { %10741 = vmatpush1.bf16.msra.mxu1 %v23002_v49  ;;  %v23197_v49 = vld [vmem:[#allocation9 + $0x398] ss:$24 sps:$4 sm:$0xff]  }
 0x842   :  { %10742 = vmatprep.subr.bf16.mxu1 %v23010_v50  ;;  %v23199_v50 = vld [vmem:[#allocation9 + $0x39c] ss:$24 sps:$4 sm:$0xff]  }
 0x845   :  { %10743 = vmatpush1.bf16.msra.mxu1 %v23008_v15  ;;  %v23092_v15 = vld [vmem:[#allocation6 + $0x220] ss:$24 sps:$4 sm:$0xff]  }
 0x846   :  { %10744 = vmatprep.subr.bf16.mxu1 %v23016_v61  ;;  %v23097_v61 = vld [vmem:[#allocation6 + $0x254] ss:$24 sps:$4 sm:$0xff]  }
 0x849   :  { %10745 = vmatpush1.bf16.msra.mxu1 %v23014_v52  ;;  %v23203_v52 = vld [vmem:[#allocation9 + $0x3c8] ss:$24 sps:$4 sm:$0xff]  }
 0x84a   :  { %10746 = vmatprep.subr.bf16.mxu1 %v23022_v2  ;;  %v23205_v2 = vld [vmem:[#allocation9 + $0x3cc] ss:$24 sps:$4 sm:$0xff]  }
 0x84d   :  { %10747 = vmatpush1.bf16.msra.mxu1 %v23020_v53  ;;  %v23095_v53 = vld [vmem:[#allocation6 + $0x250] ss:$24 sps:$4 sm:$0xff]  }
 0x84e   :  { %10748 = vmatprep.subr.bf16.mxu1 %v23028_v56  ;;  %v23100_v56 = vld [vmem:[#allocation6 + $0x284] ss:$24 sps:$4 sm:$0xff]  }
 0x851   :  { %10749 = vmatpush1.bf16.msra.mxu1 %v23026_v57  ;;  %v23209_v57 = vld [vmem:[#allocation9 + $0x3f8] ss:$24 sps:$4 sm:$0xff]  }
 0x852   :  { %10750 = vmatprep.subr.bf16.mxu1 %v23034_v62  ;;  %v23211_v62 = vld [vmem:[#allocation9 + $0x3fc] ss:$24 sps:$4 sm:$0xff]  }
 0x855   :  { %10751 = vmatpush1.bf16.msra.mxu1 %v23032_v63  ;;  %v23098_v63 = vld [vmem:[#allocation6 + $0x280] ss:$24 sps:$4 sm:$0xff]  }
 0x856   :  { %10761 = vmatprep.subr.bf16.mxu1 %v23040_v19  ;;  %v23103_v19 = vld [vmem:[#allocation6 + $0x2b4] ss:$24 sps:$4 sm:$0xff]  }
 0x858   :  { %10753 = vmatmul.mubr.bf16.vlgmr.msra.gmra.mrb[12].mxu1 %v25483_v42 }
 0x859   :  { %10762 = vmatpush1.bf16.msra.mxu1 %v23038_v28  ;;  %10793 = vmatprep.mubr.bf16.mxu1 %v25436_v1  ;;  %v9048_v1 = vrot.slane %v25494_v26, %v25427_v6  ;;  %v23215_v28 = vld [vmem:[#allocation9 + $0x428] ss:$24 sps:$4 sm:$0xff]  }
 0x85a   :  { %10763 = vmatprep.subr.bf16.mxu1 %v23046_v3  ;;  %v23217_v3 = vld [vmem:[#allocation9 + $0x42c] ss:$24 sps:$4 sm:$0xff]  }
 0x85d   :  { %10764 = vmatpush1.bf16.msra.mxu1 %v23044_v44  ;;  %v23101_v44 = vld [vmem:[#allocation6 + $0x2b0] ss:$24 sps:$4 sm:$0xff]  }
 0x85e   :  { %10765 = vmatprep.subr.bf16.mxu1 %v23052_v55  ;;  %v23106_v55 = vld [vmem:[#allocation6 + $0x2e4] ss:$24 sps:$4 sm:$0xff]  }
 0x861   :  { %10766 = vmatpush1.bf16.msra.mxu1 %v23050_v4  ;;  %v23221_v4 = vld [vmem:[#allocation9 + $0x458] ss:$24 sps:$4 sm:$0xff]  }
 0x862   :  { %10767 = vmatprep.subr.bf16.mxu1 %v23058_v59  ;;  %v23223_v59 = vld [vmem:[#allocation9 + $0x45c] ss:$24 sps:$4 sm:$0xff]  }
 0x865   :  { %10768 = vmatpush1.bf16.msra.mxu1 %v23056_v7  ;;  %v23104_v7 = vld [vmem:[#allocation6 + $0x2e0] ss:$24 sps:$4 sm:$0xff]  }
 0x866   :  { %10769 = vmatprep.subr.bf16.mxu1 %v23064_v0  ;;  %v23109_v0 = vld [vmem:[#allocation6 + $0x314] ss:$24 sps:$4 sm:$0xff]  }
 0x869   :  { %10770 = vmatpush1.bf16.msra.mxu1 %v23062_v60  ;;  %v23227_v60 = vld [vmem:[#allocation9 + $0x488] ss:$24 sps:$4 sm:$0xff]  }
 0x86a   :  { %10771 = vmatprep.subr.bf16.mxu1 %v23070_v10  ;;  %v23229_v10 = vld [vmem:[#allocation9 + $0x48c] ss:$24 sps:$4 sm:$0xff]  }
 0x86b   :  { %v10631_v34 = vpop.f32.mrb[8].mxu1 }
 0x86c   :  { %v20693_v13 = vadd.f32 %v10631_v34, %v9048_v1  ;;  %v10633_v54 = vpop.f32.mrb[9].mxu1  ;;  %v23107_v1 = vld [vmem:[#allocation6 + $0x310] ss:$24 sps:$4 sm:$0xff]   ;;  %v23110_v34 = vld [vmem:[#allocation6 + $0x340] ss:$24 sps:$4 sm:$0xff]  }
 0x86d   :  { %v20694_v18 = vadd.f32 %v10633_v54, %v9052_v11  ;;  %10772 = vmatpush1.bf16.msra.mxu1 %v23068_v31  ;;  %v10635_v21 = vpop.f32.mrb[10].mxu1  ;;  %v23112_v31 = vld [vmem:[#allocation6 + $0x344] ss:$24 sps:$4 sm:$0xff]  }
 0x86e   :  { %v10884_v23 = vmax.f32 %v20693_v13, 0.0  ;;  %v10636_v29 = vpop.f32.mrb[11].mxu1  ;;  %10773 = vmatprep.subr.bf16.mxu1 %v23076_v12  ;;  %v23235_v11 = vld [vmem:[#allocation9 + $0x4bc] ss:$24 sps:$4 sm:$0xff]   ;;  %v23233_v12 = vld [vmem:[#allocation9 + $0x4b8] ss:$24 sps:$4 sm:$0xff]  }
 0x86f   :  { %v10885_v58 = vmax.f32 %v20694_v18, 0.0  ;;  %v23115_v13 = vld [vmem:[#allocation6 + $0x374] ss:$24 sps:$4 sm:$0xff]   ;;  %v23113_v21 = vld [vmem:[#allocation6 + $0x370] ss:$24 sps:$4 sm:$0xff]  }
 0x870   :  { %v25502_v20 = vpack.c.bf16 %v10884_v23, %v10884_v23  ;;  %v23239_v54 = vld [vmem:[#allocation9 + $0x4e8] ss:$24 sps:$4 sm:$0xff]   ;;  %v23241_v18 = vld [vmem:[#allocation9 + $0x4ec] ss:$24 sps:$4 sm:$0xff]   ;;  %v23245_v23 = vld [vmem:[#allocation9 + $0x518] ss:$24 sps:$4 sm:$0xff]  }
 0x871   :  { %v25500_v40 = vpack.c.bf16 %v10885_v58, %v10885_v58  ;;  %10774 = vmatpush1.bf16.msra.mxu1 %v23074_v8  ;;  %v23118_v8 = vld [vmem:[#allocation6 + $0x3a4] ss:$24 sps:$4 sm:$0xff]   ;;  %v23253_v58 = vld [vmem:[#allocation9 + $0x54c] ss:$24 sps:$4 sm:$0xff]  }
 0x872   :  { %10775 = vmatprep.subr.bf16.mxu1 %v23082_v32  ;;  %v23247_v29 = vld [vmem:[#allocation9 + $0x51c] ss:$24 sps:$4 sm:$0xff]   ;;  %v23121_v32 = vld [vmem:[#allocation6 + $0x3d4] ss:$24 sps:$4 sm:$0xff]  }
 0x873   :  { %12811 = vmatprep.mubr.bf16.mxu0 %v25500_v40 }
 0x874   :  { %12812 = vmatmul.mubr.bf16.vlgmr.msra.gmra.mrb[8].mxu0 %v25502_v20 }
 0x875   :  { %10776 = vmatpush1.bf16.msra.mxu1 %v23080_v14  ;;  %12821 = vmatpush1.bf16.msra.mxu0 %v23179_v41  ;;  %v23119_v14 = vld [vmem:[#allocation6 + $0x3d0] ss:$24 sps:$4 sm:$0xff]   ;;  %v23257_v41 = vld [vmem:[#allocation9 + $0x578] ss:$24 sps:$4 sm:$0xff]  }
 0x876   :  { %10777 = vmatprep.subr.bf16.mxu1 %v23085_v36  ;;  %12822 = vmatprep.subr.bf16.mxu0 %v23187_v45  ;;  %v23124_v36 = vld [vmem:[#allocation6 + $0x404] ss:$24 sps:$4 sm:$0xff]  }
 0x877   :  { %v23263_v45 = vld [vmem:[#allocation9 + $0x5a8] ss:$24 sps:$4 sm:$0xff]  }
 0x879   :  { %10778 = vmatpush1.bf16.msra.mxu1 %v23083_v51  ;;  %12823 = vmatpush1.bf16.msra.mxu0 %v23185_v27  ;;  %v23122_v51 = vld [vmem:[#allocation6 + $0x400] ss:$24 sps:$4 sm:$0xff]   ;;  %v23265_v27 = vld [vmem:[#allocation9 + $0x5ac] ss:$24 sps:$4 sm:$0xff]  }
 0x87a   :  { %10779 = vmatprep.subr.bf16.mxu1 %v23088_v43  ;;  %12824 = vmatprep.subr.bf16.mxu0 %v23193_v48  ;;  %v23127_v43 = vld [vmem:[#allocation6 + $0x434] ss:$24 sps:$4 sm:$0xff]  }
 0x87b   :  { %v23269_v48 = vld [vmem:[#allocation9 + $0x5d8] ss:$24 sps:$4 sm:$0xff]  }
 0x87d   :  { %10780 = vmatpush1.bf16.msra.mxu1 %v23086_v46  ;;  %12825 = vmatpush1.bf16.msra.mxu0 %v23191_v25  ;;  %v23125_v46 = vld [vmem:[#allocation6 + $0x430] ss:$24 sps:$4 sm:$0xff]   ;;  %v23271_v25 = vld [vmem:[#allocation9 + $0x5dc] ss:$24 sps:$4 sm:$0xff]  }
 0x87e   :  { %10781 = vmatprep.subr.bf16.mxu1 %v23091_v39  ;;  %12826 = vmatprep.subr.bf16.mxu0 %v23199_v50  ;;  %v23130_v39 = vld [vmem:[#allocation6 + $0x464] ss:$24 sps:$4 sm:$0xff]  }
 0x87f   :  { %v23136_v50 = vld [vmem:[#allocation6 + $0x4c4] ss:$24 sps:$4 sm:$0xff]  }
 0x881   :  { %10782 = vmatpush1.bf16.msra.mxu1 %v23089_v9  ;;  %12827 = vmatpush1.bf16.msra.mxu0 %v23197_v49  ;;  %v23128_v9 = vld [vmem:[#allocation6 + $0x460] ss:$24 sps:$4 sm:$0xff]   ;;  %v23131_v49 = vld [vmem:[#allocation6 + $0x490] ss:$24 sps:$4 sm:$0xff]  }
 0x882   :  { %10783 = vmatprep.subr.bf16.mxu1 %v23094_v33  ;;  %12828 = vmatprep.subr.bf16.mxu0 %v23205_v2  ;;  %v23133_v33 = vld [vmem:[#allocation6 + $0x494] ss:$24 sps:$4 sm:$0xff]   ;;  %v23142_v2 = vld [vmem:[#allocation6 + $0x524] ss:$24 sps:$4 sm:$0xff]  }
 0x885   :  { %10784 = vmatpush1.bf16.msra.mxu1 %v23092_v15  ;;  %12829 = vmatpush1.bf16.msra.mxu0 %v23203_v52  ;;  %v23134_v15 = vld [vmem:[#allocation6 + $0x4c0] ss:$24 sps:$4 sm:$0xff]   ;;  %v23137_v52 = vld [vmem:[#allocation6 + $0x4f0] ss:$24 sps:$4 sm:$0xff]  }
 0x886   :  { %10785 = vmatprep.subr.bf16.mxu1 %v23097_v61  ;;  %12830 = vmatprep.subr.bf16.mxu0 %v23211_v62  ;;  %v23139_v61 = vld [vmem:[#allocation6 + $0x4f4] ss:$24 sps:$4 sm:$0xff]   ;;  %v23148_v62 = vld [vmem:[#allocation6 + $0x584] ss:$24 sps:$4 sm:$0xff]  }
 0x889   :  { %10786 = vmatpush1.bf16.msra.mxu1 %v23095_v53  ;;  %12831 = vmatpush1.bf16.msra.mxu0 %v23209_v57  ;;  %v23140_v53 = vld [vmem:[#allocation6 + $0x520] ss:$24 sps:$4 sm:$0xff]   ;;  %v23143_v57 = vld [vmem:[#allocation6 + $0x550] ss:$24 sps:$4 sm:$0xff]  }
 0x88a   :  { %10787 = vmatprep.subr.bf16.mxu1 %v23100_v56  ;;  %12832 = vmatprep.subr.bf16.mxu0 %v23217_v3  ;;  %v23145_v56 = vld [vmem:[#allocation6 + $0x554] ss:$24 sps:$4 sm:$0xff]   ;;  %v23154_v3 = vld [vmem:[#allocation6 + $0x5e4] ss:$24 sps:$4 sm:$0xff]  }
 0x88d   :  { %10788 = vmatpush1.bf16.msra.mxu1 %v23098_v63  ;;  %12833 = vmatpush1.bf16.msra.mxu0 %v23215_v28  ;;  %v23146_v63 = vld [vmem:[#allocation6 + $0x580] ss:$24 sps:$4 sm:$0xff]   ;;  %v23149_v28 = vld [vmem:[#allocation6 + $0x5b0] ss:$24 sps:$4 sm:$0xff]  }
 0x88e   :  { %10789 = vmatprep.subr.bf16.mxu1 %v23103_v19  ;;  %12834 = vmatprep.subr.bf16.mxu0 %v23223_v59  ;;  %v23151_v19 = vld [vmem:[#allocation6 + $0x5b4] ss:$24 sps:$4 sm:$0xff]   ;;  %v23160_v59 = vld [vmem:[#allocation6 + $0x644] ss:$24 sps:$4 sm:$0xff]  }
 0x891   :  { %10790 = vmatpush1.bf16.msra.mxu1 %v23101_v44  ;;  %12835 = vmatpush1.bf16.msra.mxu0 %v23221_v4  ;;  %v23152_v44 = vld [vmem:[#allocation6 + $0x5e0] ss:$24 sps:$4 sm:$0xff]   ;;  %v23155_v4 = vld [vmem:[#allocation6 + $0x610] ss:$24 sps:$4 sm:$0xff]  }
 0x892   :  { %10791 = vmatprep.subr.bf16.mxu1 %v23106_v55  ;;  %12836 = vmatprep.subr.bf16.mxu0 %v23229_v10  ;;  %v23157_v55 = vld [vmem:[#allocation6 + $0x614] ss:$24 sps:$4 sm:$0xff]   ;;  %v23166_v10 = vld [vmem:[#allocation6 + $0x6a4] ss:$24 sps:$4 sm:$0xff]  }
 0x895   :  { %10792 = vmatpush1.bf16.msra.mxu1 %v23104_v7  ;;  %12837 = vmatpush1.bf16.msra.mxu0 %v23227_v60  ;;  %v23158_v7 = vld [vmem:[#allocation6 + $0x640] ss:$24 sps:$4 sm:$0xff]   ;;  %v23161_v60 = vld [vmem:[#allocation6 + $0x670] ss:$24 sps:$4 sm:$0xff]  }
 0x896   :  { %10802 = vmatprep.subr.bf16.mxu1 %v23109_v0  ;;  %12838 = vmatprep.subr.bf16.mxu0 %v23235_v11  ;;  %v23163_v0 = vld [vmem:[#allocation6 + $0x674] ss:$24 sps:$4 sm:$0xff]   ;;  %v23167_v11 = vld [vmem:[#allocation6 + $0x6d0] ss:$24 sps:$4 sm:$0xff]  }
 0x898   :  { %10794 = vmatmul.mubr.bf16.vlgmr.msra.gmra.mrb[16].mxu1 %v25438_v47  ;;  %v23116_v47 = vld [vmem:[#allocation6 + $0x3a0] ss:$24 sps:$4 sm:$0xff]  }
 0x899   :  { %10803 = vmatpush1.bf16.msra.mxu1 %v23107_v1  ;;  %10834 = vmatprep.mubr.bf16.mxu1 %v25454_v22  ;;  %v23251_v22 = vld [vmem:[#allocation9 + $0x548] ss:$24 sps:$4 sm:$0xff]   ;;  %v23164_v1 = vld [vmem:[#allocation6 + $0x6a0] ss:$24 sps:$4 sm:$0xff]  }
 0x89a   :  { %10804 = vmatprep.subr.bf16.mxu1 %v23112_v31  ;;  %12839 = vmatpush1.bf16.msra.mxu0 %v23233_v12  ;;  %v23169_v31 = vld [vmem:[#allocation6 + $0x6d4] ss:$24 sps:$4 sm:$0xff]   ;;  %v23172_v12 = vld [vmem:[#allocation6 + $0x704] ss:$24 sps:$4 sm:$0xff]  }
 0x89b   :  { %12840 = vmatprep.subr.bf16.mxu0 %v23241_v18  ;;  %v23184_v18 = vld [vmem:[#allocation6 + $0x794] ss:$24 sps:$4 sm:$0xff]  }
 0x89d   :  { %10805 = vmatpush1.bf16.msra.mxu1 %v23110_v34  ;;  %v23175_v34 = vld [vmem:[#allocation6 + $0x734] ss:$24 sps:$4 sm:$0xff]  }
 0x89e   :  { %10806 = vmatprep.subr.bf16.mxu1 %v23115_v13  ;;  %12841 = vmatpush1.bf16.msra.mxu0 %v23239_v54  ;;  %v23178_v13 = vld [vmem:[#allocation6 + $0x764] ss:$24 sps:$4 sm:$0xff]   ;;  %v23176_v54 = vld [vmem:[#allocation6 + $0x760] ss:$24 sps:$4 sm:$0xff]  }
 0x89f   :  { %12842 = vmatprep.subr.bf16.mxu0 %v23247_v29  ;;  %v23196_v29 = vld [vmem:[#allocation6 + $0x7f4] ss:$24 sps:$4 sm:$0xff]  }
 0x8a1   :  { %10807 = vmatpush1.bf16.msra.mxu1 %v23113_v21  ;;  %v23182_v21 = vld [vmem:[#allocation6 + $0x790] ss:$24 sps:$4 sm:$0xff]  }
 0x8a2   :  { %10808 = vmatprep.subr.bf16.mxu1 %v23118_v8  ;;  %12843 = vmatpush1.bf16.msra.mxu0 %v23245_v23  ;;  %v23190_v8 = vld [vmem:[#allocation6 + $0x7c4] ss:$24 sps:$4 sm:$0xff]   ;;  %v23188_v23 = vld [vmem:[#allocation6 + $0x7c0] ss:$24 sps:$4 sm:$0xff]  }
 0x8a3   :  { %12844 = vmatprep.subr.bf16.mxu0 %v23253_v58  ;;  %v23208_v58 = vld [vmem:[#allocation6 + $0x854] ss:$24 sps:$4 sm:$0xff]  }
 0x8a5   :  { %10809 = vmatpush1.bf16.msra.mxu1 %v23116_v47  ;;  %v23194_v47 = vld [vmem:[#allocation6 + $0x7f0] ss:$24 sps:$4 sm:$0xff]  }
 0x8a6   :  { %10810 = vmatprep.subr.bf16.mxu1 %v23121_v32  ;;  %12845 = vmatpush1.bf16.msra.mxu0 %v23251_v22  ;;  %v23202_v32 = vld [vmem:[#allocation6 + $0x824] ss:$24 sps:$4 sm:$0xff]   ;;  %v23200_v22 = vld [vmem:[#allocation6 + $0x820] ss:$24 sps:$4 sm:$0xff]  }
 0x8a7   :  { %12846 = vmatprep.subr.bf16.mxu0 %v23259_v24  ;;  %v23220_v24 = vld [vmem:[#allocation6 + $0x8b4] ss:$24 sps:$4 sm:$0xff]  }
 0x8a9   :  { %10811 = vmatpush1.bf16.msra.mxu1 %v23119_v14  ;;  %v23206_v14 = vld [vmem:[#allocation6 + $0x850] ss:$24 sps:$4 sm:$0xff]  }
 0x8aa   :  { %10812 = vmatprep.subr.bf16.mxu1 %v23124_v36  ;;  %12847 = vmatpush1.bf16.msra.mxu0 %v23257_v41  ;;  %v23214_v36 = vld [vmem:[#allocation6 + $0x884] ss:$24 sps:$4 sm:$0xff]   ;;  %v23212_v41 = vld [vmem:[#allocation6 + $0x880] ss:$24 sps:$4 sm:$0xff]  }
 0x8ab   :  { %12848 = vmatprep.subr.bf16.mxu0 %v23265_v27  ;;  %v23224_v27 = vld [vmem:[#allocation6 + $0x8e0] ss:$24 sps:$4 sm:$0xff]  }
 0x8ad   :  { %10813 = vmatpush1.bf16.msra.mxu1 %v23122_v51  ;;  %v23218_v51 = vld [vmem:[#allocation6 + $0x8b0] ss:$24 sps:$4 sm:$0xff]  }
 0x8ae   :  { %10814 = vmatprep.subr.bf16.mxu1 %v23127_v43  ;;  %12849 = vmatpush1.bf16.msra.mxu0 %v23263_v45  ;;  %v23226_v43 = vld [vmem:[#allocation6 + $0x8e4] ss:$24 sps:$4 sm:$0xff]  }
 0x8af   :  { %12850 = vmatprep.subr.bf16.mxu0 %v23271_v25  ;;  %v23232_v45 = vld [vmem:[#allocation9 + $0x4] ss:$24 sps:$4 sm:$0xff]   ;;  %v23236_v25 = vld [vmem:[#allocation9 + $0x30] ss:$24 sps:$4 sm:$0xff]  }
 0x8b1   :  { %10815 = vmatpush1.bf16.msra.mxu1 %v23125_v46  ;;  %v23230_v46 = vld [vmem:[#allocation9] ss:$24 sps:$4 sm:$0xff]  }
 0x8b2   :  { %10816 = vmatprep.subr.bf16.mxu1 %v23130_v39  ;;  %12851 = vmatpush1.bf16.msra.mxu0 %v23269_v48  ;;  %v23238_v39 = vld [vmem:[#allocation9 + $0x34] ss:$24 sps:$4 sm:$0xff]  }
 0x8b3   :  { %v23352_v48 = vld [vmem:[#allocation9 + $0x60c] ss:$24 sps:$4 sm:$0xff]  }
 0x8b4   :  { %12861 = vmatprep.subr.bf16.mxu0 %v23352_v48  ;;  %v23296_v48 = vld [vmem:[#allocation9 + $0x2d0] ss:$24 sps:$4 sm:$0xff]  }
 0x8b5   :  { %10817 = vmatpush1.bf16.msra.mxu1 %v23128_v9  ;;  %v23244_v9 = vld [vmem:[#allocation9 + $0x64] ss:$24 sps:$4 sm:$0xff]  }
 0x8b6   :  { %10818 = vmatprep.subr.bf16.mxu1 %v23133_v33  ;;  %v23242_v33 = vld [vmem:[#allocation9 + $0x60] ss:$24 sps:$4 sm:$0xff]  }
 0x8b9   :  { %10819 = vmatpush1.bf16.msra.mxu1 %v23131_v49  ;;  %v23250_v49 = vld [vmem:[#allocation9 + $0x94] ss:$24 sps:$4 sm:$0xff]  }
 0x8ba   :  { %10820 = vmatprep.subr.bf16.mxu1 %v23136_v50  ;;  %v23248_v50 = vld [vmem:[#allocation9 + $0x90] ss:$24 sps:$4 sm:$0xff]  }
 0x8bd   :  { %10821 = vmatpush1.bf16.msra.mxu1 %v23134_v15  ;;  %v23256_v15 = vld [vmem:[#allocation9 + $0xc4] ss:$24 sps:$4 sm:$0xff]  }
 0x8be   :  { %10822 = vmatprep.subr.bf16.mxu1 %v23139_v61  ;;  %v23254_v61 = vld [vmem:[#allocation9 + $0xc0] ss:$24 sps:$4 sm:$0xff]  }
 0x8c1   :  { %10823 = vmatpush1.bf16.msra.mxu1 %v23137_v52  ;;  %v9056_v52 = vrot.slane %v25494_v26, %v25447_v5 }
 0x8c2   :  { %10824 = vmatprep.subr.bf16.mxu1 %v23142_v2  ;;  %v9060_v2 = vrot.slane %v25494_v26, %v25450_v38  ;;  %v23350_v26 = vld [vmem:[#allocation9 + $0x608] ss:$24 sps:$4 sm:$0xff]  }
 0x8c5   :  { %10825 = vmatpush1.bf16.msra.mxu1 %v23140_v53  ;;  %v23260_v53 = vld [vmem:[#allocation9 + $0xf0] ss:$24 sps:$4 sm:$0xff]  }
 0x8c6   :  { %10826 = vmatprep.subr.bf16.mxu1 %v23145_v56  ;;  %v23268_v56 = vld [vmem:[#allocation9 + $0x124] ss:$24 sps:$4 sm:$0xff]  }
 0x8c9   :  { %10827 = vmatpush1.bf16.msra.mxu1 %v23143_v57 }
 0x8ca   :  { %10828 = vmatprep.subr.bf16.mxu1 %v23148_v62 }
 0x8cd   :  { %10829 = vmatpush1.bf16.msra.mxu1 %v23146_v63 }
 0x8ce   :  { %10830 = vmatprep.subr.bf16.mxu1 %v23151_v19 }
 0x8d1   :  { %10831 = vmatpush1.bf16.msra.mxu1 %v23149_v28 }
 0x8d2   :  { %10832 = vmatprep.subr.bf16.mxu1 %v23154_v3  ;;  %v23266_v3 = vld [vmem:[#allocation9 + $0x120] ss:$24 sps:$4 sm:$0xff]  }
 0x8d5   :  { %10833 = vmatpush1.bf16.msra.mxu1 %v23152_v44 }
 0x8d6   :  { %10843 = vmatprep.subr.bf16.mxu1 %v23157_v55 }
 0x8d8   :  { %10835 = vmatmul.mubr.bf16.vlgmr.msra.gmra.mrb[16].mxu1 %v25456_v30  ;;  %v23170_v30 = vld [vmem:[#allocation6 + $0x700] ss:$24 sps:$4 sm:$0xff]  }
 0x8d9   :  { %10844 = vmatpush1.bf16.msra.mxu1 %v23155_v4  ;;  %10875 = vmatprep.mubr.bf16.mxu1 %v25481_v37  ;;  %v23173_v37 = vld [vmem:[#allocation6 + $0x730] ss:$24 sps:$4 sm:$0xff]  }
 0x8da   :  { %10845 = vmatprep.subr.bf16.mxu1 %v23160_v59  ;;  %v23274_v4 = vld [vmem:[#allocation9 + $0x154] ss:$24 sps:$4 sm:$0xff]  }
 0x8dd   :  { %10846 = vmatpush1.bf16.msra.mxu1 %v23158_v7 }
 0x8de   :  { %10847 = vmatprep.subr.bf16.mxu1 %v23163_v0  ;;  %v23272_v0 = vld [vmem:[#allocation9 + $0x150] ss:$24 sps:$4 sm:$0xff]  }
 0x8e1   :  { %10848 = vmatpush1.bf16.msra.mxu1 %v23161_v60 }
 0x8e2   :  { %10849 = vmatprep.subr.bf16.mxu1 %v23166_v10  ;;  %v23277_v10 = vld [vmem:[#allocation9 + $0x184] ss:$24 sps:$4 sm:$0xff]  }
 0x8e5   :  { %10850 = vmatpush1.bf16.msra.mxu1 %v23164_v1  ;;  %v23358_v1 = vld [vmem:[#allocation9 + $0x63c] ss:$24 sps:$4 sm:$0xff]  }
 0x8e6   :  { %10851 = vmatprep.subr.bf16.mxu1 %v23169_v31  ;;  %v23275_v31 = vld [vmem:[#allocation9 + $0x180] ss:$24 sps:$4 sm:$0xff]  }
 0x8e9   :  { %10852 = vmatpush1.bf16.msra.mxu1 %v23167_v11  ;;  %v23356_v11 = vld [vmem:[#allocation9 + $0x638] ss:$24 sps:$4 sm:$0xff]  }
 0x8ea   :  { %10853 = vmatprep.subr.bf16.mxu1 %v23172_v12  ;;  %v23280_v12 = vld [vmem:[#allocation9 + $0x1b4] ss:$24 sps:$4 sm:$0xff]  }
 0x8ed   :  { %10854 = vmatpush1.bf16.msra.mxu1 %v23170_v30  ;;  %v23364_v30 = vld [vmem:[#allocation9 + $0x66c] ss:$24 sps:$4 sm:$0xff]  }
 0x8ee   :  { %10855 = vmatprep.subr.bf16.mxu1 %v23175_v34  ;;  %v23278_v34 = vld [vmem:[#allocation9 + $0x1b0] ss:$24 sps:$4 sm:$0xff]  }
 0x8f1   :  { %10856 = vmatpush1.bf16.msra.mxu1 %v23173_v37  ;;  %v23362_v37 = vld [vmem:[#allocation9 + $0x668] ss:$24 sps:$4 sm:$0xff]  }
 0x8f2   :  { %10857 = vmatprep.subr.bf16.mxu1 %v23178_v13  ;;  %v23283_v13 = vld [vmem:[#allocation9 + $0x1e4] ss:$24 sps:$4 sm:$0xff]  }
 0x8f5   :  { %10858 = vmatpush1.bf16.msra.mxu1 %v23176_v54  ;;  %v23370_v54 = vld [vmem:[#allocation9 + $0x69c] ss:$24 sps:$4 sm:$0xff]  }
 0x8f6   :  { %10859 = vmatprep.subr.bf16.mxu1 %v23184_v18  ;;  %v23281_v18 = vld [vmem:[#allocation9 + $0x1e0] ss:$24 sps:$4 sm:$0xff]  }
 0x8f9   :  { %10860 = vmatpush1.bf16.msra.mxu1 %v23182_v21  ;;  %v23368_v21 = vld [vmem:[#allocation9 + $0x698] ss:$24 sps:$4 sm:$0xff]  }
 0x8fa   :  { %10861 = vmatprep.subr.bf16.mxu1 %v23190_v8  ;;  %v23286_v8 = vld [vmem:[#allocation9 + $0x214] ss:$24 sps:$4 sm:$0xff]  }
 0x8fd   :  { %10862 = vmatpush1.bf16.msra.mxu1 %v23188_v23  ;;  %v23376_v23 = vld [vmem:[#allocation9 + $0x6cc] ss:$24 sps:$4 sm:$0xff]  }
 0x8fe   :  { %10863 = vmatprep.subr.bf16.mxu1 %v23196_v29  ;;  %v23284_v29 = vld [vmem:[#allocation9 + $0x210] ss:$24 sps:$4 sm:$0xff]  }
 0x901   :  { %10864 = vmatpush1.bf16.msra.mxu1 %v23194_v47  ;;  %v23374_v47 = vld [vmem:[#allocation9 + $0x6c8] ss:$24 sps:$4 sm:$0xff]  }
 0x902   :  { %10865 = vmatprep.subr.bf16.mxu1 %v23202_v32  ;;  %v23289_v32 = vld [vmem:[#allocation9 + $0x244] ss:$24 sps:$4 sm:$0xff]  }
 0x905   :  { %10866 = vmatpush1.bf16.msra.mxu1 %v23200_v22  ;;  %v23382_v22 = vld [vmem:[#allocation9 + $0x6fc] ss:$24 sps:$4 sm:$0xff]  }
 0x906   :  { %10867 = vmatprep.subr.bf16.mxu1 %v23208_v58  ;;  %v23287_v58 = vld [vmem:[#allocation9 + $0x240] ss:$24 sps:$4 sm:$0xff]  }
 0x909   :  { %10868 = vmatpush1.bf16.msra.mxu1 %v23206_v14  ;;  %v23380_v14 = vld [vmem:[#allocation9 + $0x6f8] ss:$24 sps:$4 sm:$0xff]  }
 0x90a   :  { %10869 = vmatprep.subr.bf16.mxu1 %v23214_v36  ;;  %v23292_v36 = vld [vmem:[#allocation9 + $0x274] ss:$24 sps:$4 sm:$0xff]  }
 0x90d   :  { %10870 = vmatpush1.bf16.msra.mxu1 %v23212_v41  ;;  %v23388_v41 = vld [vmem:[#allocation9 + $0x72c] ss:$24 sps:$4 sm:$0xff]  }
 0x90e   :  { %10871 = vmatprep.subr.bf16.mxu1 %v23220_v24  ;;  %v23290_v24 = vld [vmem:[#allocation9 + $0x270] ss:$24 sps:$4 sm:$0xff]  }
 0x911   :  { %10872 = vmatpush1.bf16.msra.mxu1 %v23218_v51  ;;  %v23386_v51 = vld [vmem:[#allocation9 + $0x728] ss:$24 sps:$4 sm:$0xff]  }
 0x912   :  { %10873 = vmatprep.subr.bf16.mxu1 %v23226_v43  ;;  %v23295_v43 = vld [vmem:[#allocation9 + $0x2a4] ss:$24 sps:$4 sm:$0xff]  }
 0x915   :  { %10874 = vmatpush1.bf16.msra.mxu1 %v23224_v27  ;;  %v23394_v27 = vld [vmem:[#allocation9 + $0x75c] ss:$24 sps:$4 sm:$0xff]  }
 0x916   :  { %12656 = vmatprep.subr.bf16.mxu1 %v23232_v45  ;;  %v23293_v45 = vld [vmem:[#allocation9 + $0x2a0] ss:$24 sps:$4 sm:$0xff]  }
 0x918   :  { %10876 = vmatmul.mubr.bf16.vlgmr.msra.gmra.mrb[16].mxu1 %v25483_v42  ;;  %v23262_v42 = vld [vmem:[#allocation9 + $0xf4] ss:$24 sps:$4 sm:$0xff]  }
 0x919   :  { %12657 = vmatpush1.bf16.msra.mxu1 %v23230_v46  ;;  %12688 = vmatprep.mubr.bf16.mxu1 %v25500_v40  ;;  %v23392_v46 = vld [vmem:[#allocation9 + $0x758] ss:$24 sps:$4 sm:$0xff]  }
 0x91a   :  { %12658 = vmatprep.subr.bf16.mxu1 %v23238_v39  ;;  %v23298_v39 = vld [vmem:[#allocation9 + $0x2d4] ss:$24 sps:$4 sm:$0xff]  }
 0x91d   :  { %12659 = vmatpush1.bf16.msra.mxu1 %v23236_v25  ;;  %v23400_v25 = vld [vmem:[#allocation9 + $0x78c] ss:$24 sps:$4 sm:$0xff]  }
 0x91e   :  { %12660 = vmatprep.subr.bf16.mxu1 %v23244_v9  ;;  %v23398_v9 = vld [vmem:[#allocation9 + $0x788] ss:$24 sps:$4 sm:$0xff]  }
 0x921   :  { %12661 = vmatpush1.bf16.msra.mxu1 %v23242_v33  ;;  %v23301_v33 = vld [vmem:[#allocation9 + $0x304] ss:$24 sps:$4 sm:$0xff]  }
 0x922   :  { %12662 = vmatprep.subr.bf16.mxu1 %v23250_v49  ;;  %v23406_v49 = vld [vmem:[#allocation9 + $0x7bc] ss:$24 sps:$4 sm:$0xff]  }
 0x925   :  { %12663 = vmatpush1.bf16.msra.mxu1 %v23248_v50  ;;  %v23299_v50 = vld [vmem:[#allocation9 + $0x300] ss:$24 sps:$4 sm:$0xff]  }
 0x926   :  { %12664 = vmatprep.subr.bf16.mxu1 %v23256_v15  ;;  %v23304_v15 = vld [vmem:[#allocation9 + $0x334] ss:$24 sps:$4 sm:$0xff]  }
 0x929   :  { %12665 = vmatpush1.bf16.msra.mxu1 %v23254_v61  ;;  %v23404_v61 = vld [vmem:[#allocation9 + $0x7b8] ss:$24 sps:$4 sm:$0xff]  }
 0x92a   :  { %12666 = vmatprep.subr.bf16.mxu1 %v23262_v42  ;;  %v23412_v42 = vld [vmem:[#allocation9 + $0x7ec] ss:$24 sps:$4 sm:$0xff]  }
 0x92b   :  { %v10754_v57 = vpop.f32.mrb[12].mxu1 }
 0x92c   :  { %v20695_v62 = vadd.f32 %v10754_v57, %v9056_v52  ;;  %v10756_v63 = vpop.f32.mrb[13].mxu1  ;;  %v23302_v52 = vld [vmem:[#allocation9 + $0x330] ss:$24 sps:$4 sm:$0xff]   ;;  %v23305_v57 = vld [vmem:[#allocation9 + $0x360] ss:$24 sps:$4 sm:$0xff]  }
 0x92d   :  { %v20696_v19 = vadd.f32 %v10756_v63, %v9060_v2  ;;  %v10758_v28 = vpop.f32.mrb[14].mxu1  ;;  %12667 = vmatpush1.bf16.msra.mxu1 %v23260_v53  ;;  %v23307_v2 = vld [vmem:[#allocation9 + $0x364] ss:$24 sps:$4 sm:$0xff]   ;;  %v23410_v53 = vld [vmem:[#allocation9 + $0x7e8] ss:$24 sps:$4 sm:$0xff]  }
 0x92e   :  { %v10886_v44 = vmax.f32 %v20695_v62, 0.0  ;;  %v10759_v55 = vpop.f32.mrb[15].mxu1  ;;  %12668 = vmatprep.subr.bf16.mxu1 %v23268_v56  ;;  %v23418_v56 = vld [vmem:[#allocation9 + $0x81c] ss:$24 sps:$4 sm:$0xff]   ;;  %v23416_v63 = vld [vmem:[#allocation9 + $0x818] ss:$24 sps:$4 sm:$0xff]  }
 0x92f   :  { %v10887_v59 = vmax.f32 %v20696_v19, 0.0  ;;  %v23310_v62 = vld [vmem:[#allocation9 + $0x394] ss:$24 sps:$4 sm:$0xff]   ;;  %v23308_v28 = vld [vmem:[#allocation9 + $0x390] ss:$24 sps:$4 sm:$0xff]  }
 0x930   :  { %v25518_v60 = vpack.c.bf16 %v10886_v44, %v10886_v44  ;;  %v23424_v19 = vld [vmem:[#allocation9 + $0x84c] ss:$24 sps:$4 sm:$0xff]   ;;  %v23422_v44 = vld [vmem:[#allocation9 + $0x848] ss:$24 sps:$4 sm:$0xff]   ;;  %v23430_v55 = vld [vmem:[#allocation9 + $0x87c] ss:$24 sps:$4 sm:$0xff]  }
 0x931   :  { %v25516_v7 = vpack.c.bf16 %v10887_v59, %v10887_v59  ;;  %12669 = vmatpush1.bf16.msra.mxu1 %v23266_v3  ;;  %v23313_v3 = vld [vmem:[#allocation9 + $0x3c4] ss:$24 sps:$4 sm:$0xff]   ;;  %v23316_v59 = vld [vmem:[#allocation9 + $0x3f4] ss:$24 sps:$4 sm:$0xff]  }
 0x932   :  { %12670 = vmatprep.subr.bf16.mxu1 %v23274_v4  ;;  %v23311_v4 = vld [vmem:[#allocation9 + $0x3c0] ss:$24 sps:$4 sm:$0xff]  }
 0x933   :  { %12852 = vmatprep.mubr.bf16.mxu0 %v25516_v7 }
 0x934   :  { %12853 = vmatmul.mubr.bf16.vlgmr.msra.gmra.mrb[8].mxu0 %v25518_v60 }
 0x935   :  { %12671 = vmatpush1.bf16.msra.mxu1 %v23272_v0  ;;  %12862 = vmatpush1.bf16.msra.mxu0 %v23350_v26  ;;  %v23428_v0 = vld [vmem:[#allocation9 + $0x878] ss:$24 sps:$4 sm:$0xff]  }
 0x936   :  { %12672 = vmatprep.subr.bf16.mxu1 %v23277_v10  ;;  %12863 = vmatprep.subr.bf16.mxu0 %v23358_v1  ;;  %v23314_v26 = vld [vmem:[#allocation9 + $0x3f0] ss:$24 sps:$4 sm:$0xff]   ;;  %v23319_v10 = vld [vmem:[#allocation9 + $0x424] ss:$24 sps:$4 sm:$0xff]  }
 0x937   :  { %v23436_v1 = vld [vmem:[#allocation9 + $0x8ac] ss:$24 sps:$4 sm:$0xff]  }
 0x939   :  { %12673 = vmatpush1.bf16.msra.mxu1 %v23275_v31  ;;  %12864 = vmatpush1.bf16.msra.mxu0 %v23356_v11  ;;  %v23434_v31 = vld [vmem:[#allocation9 + $0x8a8] ss:$24 sps:$4 sm:$0xff]  }
 0x93a   :  { %12674 = vmatprep.subr.bf16.mxu1 %v23280_v12  ;;  %12865 = vmatprep.subr.bf16.mxu0 %v23364_v30  ;;  %v23317_v11 = vld [vmem:[#allocation9 + $0x420] ss:$24 sps:$4 sm:$0xff]   ;;  %v23322_v12 = vld [vmem:[#allocation9 + $0x454] ss:$24 sps:$4 sm:$0xff]  }
 0x93b   :  { %v23442_v30 = vld [vmem:[#allocation9 + $0x8dc] ss:$24 sps:$4 sm:$0xff]  }
 0x93d   :  { %12675 = vmatpush1.bf16.msra.mxu1 %v23278_v34  ;;  %12866 = vmatpush1.bf16.msra.mxu0 %v23362_v37  ;;  %v23440_v34 = vld [vmem:[#allocation9 + $0x8d8] ss:$24 sps:$4 sm:$0xff]  }
 0x93e   :  { %12676 = vmatprep.subr.bf16.mxu1 %v23283_v13  ;;  %12867 = vmatprep.subr.bf16.mxu0 %v23370_v54  ;;  %v23320_v37 = vld [vmem:[#allocation9 + $0x450] ss:$24 sps:$4 sm:$0xff]   ;;  %v23325_v13 = vld [vmem:[#allocation9 + $0x484] ss:$24 sps:$4 sm:$0xff]   ;;  %v23323_v54 = vld [vmem:[#allocation9 + $0x480] ss:$24 sps:$4 sm:$0xff]  }
 0x941   :  { %12677 = vmatpush1.bf16.msra.mxu1 %v23281_v18  ;;  %12868 = vmatpush1.bf16.msra.mxu0 %v23368_v21  ;;  %v23328_v18 = vld [vmem:[#allocation9 + $0x4b4] ss:$24 sps:$4 sm:$0xff]   ;;  %v23326_v21 = vld [vmem:[#allocation9 + $0x4b0] ss:$24 sps:$4 sm:$0xff]  }
 0x942   :  { %12678 = vmatprep.subr.bf16.mxu1 %v23286_v8  ;;  %12869 = vmatprep.subr.bf16.mxu0 %v23376_v23  ;;  %v23331_v8 = vld [vmem:[#allocation9 + $0x4e4] ss:$24 sps:$4 sm:$0xff]   ;;  %v23329_v23 = vld [vmem:[#allocation9 + $0x4e0] ss:$24 sps:$4 sm:$0xff]  }
 0x945   :  { %12679 = vmatpush1.bf16.msra.mxu1 %v23284_v29  ;;  %12870 = vmatpush1.bf16.msra.mxu0 %v23374_v47  ;;  %v23334_v29 = vld [vmem:[#allocation9 + $0x514] ss:$24 sps:$4 sm:$0xff]   ;;  %v23332_v47 = vld [vmem:[#allocation9 + $0x510] ss:$24 sps:$4 sm:$0xff]  }
 0x946   :  { %12680 = vmatprep.subr.bf16.mxu1 %v23289_v32  ;;  %12871 = vmatprep.subr.bf16.mxu0 %v23382_v22  ;;  %v23337_v32 = vld [vmem:[#allocation9 + $0x544] ss:$24 sps:$4 sm:$0xff]   ;;  %v23335_v22 = vld [vmem:[#allocation9 + $0x540] ss:$24 sps:$4 sm:$0xff]  }
 0x949   :  { %12681 = vmatpush1.bf16.msra.mxu1 %v23287_v58  ;;  %12872 = vmatpush1.bf16.msra.mxu0 %v23380_v14  ;;  %v23340_v58 = vld [vmem:[#allocation9 + $0x574] ss:$24 sps:$4 sm:$0xff]   ;;  %v23338_v14 = vld [vmem:[#allocation9 + $0x570] ss:$24 sps:$4 sm:$0xff]  }
 0x94a   :  { %12682 = vmatprep.subr.bf16.mxu1 %v23292_v36  ;;  %12873 = vmatprep.subr.bf16.mxu0 %v23388_v41  ;;  %v23343_v36 = vld [vmem:[#allocation9 + $0x5a4] ss:$24 sps:$4 sm:$0xff]   ;;  %v23341_v41 = vld [vmem:[#allocation9 + $0x5a0] ss:$24 sps:$4 sm:$0xff]  }
 0x94d   :  { %12683 = vmatpush1.bf16.msra.mxu1 %v23290_v24  ;;  %12874 = vmatpush1.bf16.msra.mxu0 %v23386_v51  ;;  %v23346_v24 = vld [vmem:[#allocation9 + $0x5d4] ss:$24 sps:$4 sm:$0xff]   ;;  %v23344_v51 = vld [vmem:[#allocation9 + $0x5d0] ss:$24 sps:$4 sm:$0xff]  }
 0x94e   :  { %12684 = vmatprep.subr.bf16.mxu1 %v23295_v43  ;;  %12875 = vmatprep.subr.bf16.mxu0 %v23394_v27  ;;  %v23349_v43 = vld [vmem:[#allocation9 + $0x604] ss:$24 sps:$4 sm:$0xff]   ;;  %v23347_v27 = vld [vmem:[#allocation9 + $0x600] ss:$24 sps:$4 sm:$0xff]  }
 0x951   :  { %12685 = vmatpush1.bf16.msra.mxu1 %v23293_v45  ;;  %12876 = vmatpush1.bf16.msra.mxu0 %v23392_v46  ;;  %v23355_v45 = vld [vmem:[#allocation9 + $0x634] ss:$24 sps:$4 sm:$0xff]   ;;  %v23353_v46 = vld [vmem:[#allocation9 + $0x630] ss:$24 sps:$4 sm:$0xff]  }
 0x952   :  { %12686 = vmatprep.subr.bf16.mxu1 %v23298_v39  ;;  %12877 = vmatprep.subr.bf16.mxu0 %v23400_v25  ;;  %v23361_v39 = vld [vmem:[#allocation9 + $0x664] ss:$24 sps:$4 sm:$0xff]   ;;  %v23359_v25 = vld [vmem:[#allocation9 + $0x660] ss:$24 sps:$4 sm:$0xff]  }
 0x955   :  { %12687 = vmatpush1.bf16.msra.mxu1 %v23296_v48  ;;  %12878 = vmatpush1.bf16.msra.mxu0 %v23398_v9  ;;  %v23367_v48 = vld [vmem:[#allocation9 + $0x694] ss:$24 sps:$4 sm:$0xff]   ;;  %v23365_v9 = vld [vmem:[#allocation9 + $0x690] ss:$24 sps:$4 sm:$0xff]  }
 0x956   :  { %12697 = vmatprep.subr.bf16.mxu1 %v23301_v33  ;;  %12879 = vmatprep.subr.bf16.mxu0 %v23406_v49  ;;  %v23373_v33 = vld [vmem:[#allocation9 + $0x6c4] ss:$24 sps:$4 sm:$0xff]   ;;  %v23371_v49 = vld [vmem:[#allocation9 + $0x6c0] ss:$24 sps:$4 sm:$0xff]  }
 0x958   :  { %12689 = vmatmul.mubr.bf16.vlgmr.msra.gmra.mrb[20].mxu1 %v25502_v20 }
 0x959   :  { %12698 = vmatpush1.bf16.msra.mxu1 %v23299_v50  ;;  %12729 = vmatprep.mubr.bf16.mxu1 %v25516_v7  ;;  %v23379_v50 = vld [vmem:[#allocation9 + $0x6f4] ss:$24 sps:$4 sm:$0xff]  }
 0x95a   :  { %12699 = vmatprep.subr.bf16.mxu1 %v23304_v15  ;;  %12880 = vmatpush1.bf16.msra.mxu0 %v23404_v61  ;;  %v23377_v15 = vld [vmem:[#allocation9 + $0x6f0] ss:$24 sps:$4 sm:$0xff]   ;;  %v23385_v61 = vld [vmem:[#allocation9 + $0x724] ss:$24 sps:$4 sm:$0xff]  }
 0x95b   :  { %12881 = vmatprep.subr.bf16.mxu0 %v23412_v42  ;;  %v23383_v42 = vld [vmem:[#allocation9 + $0x720] ss:$24 sps:$4 sm:$0xff]  }
 0x95d   :  { %12700 = vmatpush1.bf16.msra.mxu1 %v23302_v52  ;;  %v23391_v52 = vld [vmem:[#allocation9 + $0x754] ss:$24 sps:$4 sm:$0xff]  }
 0x95e   :  { %12701 = vmatprep.subr.bf16.mxu1 %v23307_v2  ;;  %12882 = vmatpush1.bf16.msra.mxu0 %v23410_v53  ;;  %v23389_v2 = vld [vmem:[#allocation9 + $0x750] ss:$24 sps:$4 sm:$0xff]   ;;  %v23397_v53 = vld [vmem:[#allocation9 + $0x784] ss:$24 sps:$4 sm:$0xff]  }
 0x95f   :  { %12883 = vmatprep.subr.bf16.mxu0 %v23418_v56  ;;  %v23395_v56 = vld [vmem:[#allocation9 + $0x780] ss:$24 sps:$4 sm:$0xff]  }
 0x961   :  { %12702 = vmatpush1.bf16.msra.mxu1 %v23305_v57  ;;  %v23403_v57 = vld [vmem:[#allocation9 + $0x7b4] ss:$24 sps:$4 sm:$0xff]  }
 0x962   :  { %12703 = vmatprep.subr.bf16.mxu1 %v23310_v62  ;;  %12884 = vmatpush1.bf16.msra.mxu0 %v23416_v63  ;;  %v23401_v62 = vld [vmem:[#allocation9 + $0x7b0] ss:$24 sps:$4 sm:$0xff]   ;;  %v23409_v63 = vld [vmem:[#allocation9 + $0x7e4] ss:$24 sps:$4 sm:$0xff]  }
 0x963   :  { %12885 = vmatprep.subr.bf16.mxu0 %v23424_v19  ;;  %v23407_v19 = vld [vmem:[#allocation9 + $0x7e0] ss:$24 sps:$4 sm:$0xff]  }
 0x965   :  { %12704 = vmatpush1.bf16.msra.mxu1 %v23308_v28  ;;  %v23415_v28 = vld [vmem:[#allocation9 + $0x814] ss:$24 sps:$4 sm:$0xff]  }
 0x966   :  { %12705 = vmatprep.subr.bf16.mxu1 %v23313_v3  ;;  %12886 = vmatpush1.bf16.msra.mxu0 %v23422_v44  ;;  %v23413_v3 = vld [vmem:[#allocation9 + $0x810] ss:$24 sps:$4 sm:$0xff]   ;;  %v23421_v44 = vld [vmem:[#allocation9 + $0x844] ss:$24 sps:$4 sm:$0xff]  }
 0x967   :  { %12887 = vmatprep.subr.bf16.mxu0 %v23430_v55  ;;  %v23419_v55 = vld [vmem:[#allocation9 + $0x840] ss:$24 sps:$4 sm:$0xff]  }
 0x969   :  { %12706 = vmatpush1.bf16.msra.mxu1 %v23311_v4  ;;  %v23427_v4 = vld [vmem:[#allocation9 + $0x874] ss:$24 sps:$4 sm:$0xff]  }
 0x96a   :  { %12707 = vmatprep.subr.bf16.mxu1 %v23316_v59  ;;  %12888 = vmatpush1.bf16.msra.mxu0 %v23428_v0  ;;  %v23425_v59 = vld [vmem:[#allocation9 + $0x870] ss:$24 sps:$4 sm:$0xff]   ;;  %v23433_v0 = vld [vmem:[#allocation9 + $0x8a4] ss:$24 sps:$4 sm:$0xff]  }
 0x96b   :  { %12889 = vmatprep.subr.bf16.mxu0 %v23436_v1  ;;  %v23437_v1 = vld [vmem:[#allocation9 + $0x8d0] ss:$24 sps:$4 sm:$0xff]  }
 0x96d   :  { %12708 = vmatpush1.bf16.msra.mxu1 %v23314_v26  ;;  %v23431_v26 = vld [vmem:[#allocation9 + $0x8a0] ss:$24 sps:$4 sm:$0xff]  }
 0x96e   :  { %12709 = vmatprep.subr.bf16.mxu1 %v23319_v10  ;;  %12890 = vmatpush1.bf16.msra.mxu0 %v23434_v31  ;;  %v23439_v10 = vld [vmem:[#allocation9 + $0x8d4] ss:$24 sps:$4 sm:$0xff]  }
 0x96f   :  { %12891 = vmatprep.subr.bf16.mxu0 %v23442_v30  ;;  %v23445_v31 = vld [vmem:[#allocation9 + $0x14] ss:$24 sps:$4 sm:$0xff]  }
 0x971   :  { %12710 = vmatpush1.bf16.msra.mxu1 %v23317_v11  ;;  %v24613_v11 = vld [vmem:[#allocation7] sm:$0x3f] }
 0x972   :  { %12711 = vmatprep.subr.bf16.mxu1 %v23322_v12  ;;  %12892 = vmatpush1.bf16.msra.mxu0 %v23440_v34  ;;  %v9064_v12 = vrot.slane %v24613_v11, %v25474_v16  ;;  %v9068_v30 = vrot.slane %v24613_v11, %v25477_v17  ;;  %v23485_v11 = vld [vmem:[#allocation9 + $0x2b0] ss:$24 sps:$4 sm:$0xff]  }
 0x975   :  { %12712 = vmatpush1.bf16.msra.mxu1 %v23320_v37 }
 0x976   :  { %12713 = vmatprep.subr.bf16.mxu1 %v23325_v13 }
 0x979   :  { %12714 = vmatpush1.bf16.msra.mxu1 %v23323_v54 }
 0x97a   :  { %12715 = vmatprep.subr.bf16.mxu1 %v23328_v18 }
 0x97d   :  { %12716 = vmatpush1.bf16.msra.mxu1 %v23326_v21 }
 0x97e   :  { %12717 = vmatprep.subr.bf16.mxu1 %v23331_v8 }
 0x981   :  { %12718 = vmatpush1.bf16.msra.mxu1 %v23329_v23 }
 0x982   :  { %12719 = vmatprep.subr.bf16.mxu1 %v23334_v29 }
 0x985   :  { %12720 = vmatpush1.bf16.msra.mxu1 %v23332_v47  ;;  %v23443_v47 = vld [vmem:[#allocation9 + $0x10] ss:$24 sps:$4 sm:$0xff]  }
 0x986   :  { %12721 = vmatprep.subr.bf16.mxu1 %v23337_v32 }
 0x989   :  { %12722 = vmatpush1.bf16.msra.mxu1 %v23335_v22  ;;  %v23448_v22 = vld [vmem:[#allocation9 + $0x44] ss:$24 sps:$4 sm:$0xff]  }
 0x98a   :  { %12723 = vmatprep.subr.bf16.mxu1 %v23340_v58  ;;  %v23446_v58 = vld [vmem:[#allocation9 + $0x40] ss:$24 sps:$4 sm:$0xff]  }
 0x98d   :  { %12724 = vmatpush1.bf16.msra.mxu1 %v23338_v14  ;;  %v23451_v14 = vld [vmem:[#allocation9 + $0x74] ss:$24 sps:$4 sm:$0xff]  }
 0x98e   :  { %12725 = vmatprep.subr.bf16.mxu1 %v23343_v36  ;;  %v23449_v36 = vld [vmem:[#allocation9 + $0x70] ss:$24 sps:$4 sm:$0xff]  }
 0x991   :  { %12726 = vmatpush1.bf16.msra.mxu1 %v23341_v41  ;;  %v23454_v41 = vld [vmem:[#allocation9 + $0xa4] ss:$24 sps:$4 sm:$0xff]  }
 0x992   :  { %12727 = vmatprep.subr.bf16.mxu1 %v23346_v24  ;;  %v23452_v24 = vld [vmem:[#allocation9 + $0xa0] ss:$24 sps:$4 sm:$0xff]  }
 0x995   :  { %12728 = vmatpush1.bf16.msra.mxu1 %v23344_v51  ;;  %v23457_v51 = vld [vmem:[#allocation9 + $0xd4] ss:$24 sps:$4 sm:$0xff]  }
 0x996   :  { %12738 = vmatprep.subr.bf16.mxu1 %v23349_v43  ;;  %v23455_v43 = vld [vmem:[#allocation9 + $0xd0] ss:$24 sps:$4 sm:$0xff]  }
 0x998   :  { %12730 = vmatmul.mubr.bf16.vlgmr.msra.gmra.mrb[20].mxu1 %v25518_v60 }
 0x999   :  { %12739 = vmatpush1.bf16.msra.mxu1 %v23347_v27  ;;  %v23460_v27 = vld [vmem:[#allocation9 + $0x104] ss:$24 sps:$4 sm:$0xff]  }
 0x99a   :  { %12740 = vmatprep.subr.bf16.mxu1 %v23355_v45  ;;  %v23458_v45 = vld [vmem:[#allocation9 + $0x100] ss:$24 sps:$4 sm:$0xff]  }
 0x99d   :  { %12741 = vmatpush1.bf16.msra.mxu1 %v23353_v46  ;;  %v23463_v46 = vld [vmem:[#allocation9 + $0x134] ss:$24 sps:$4 sm:$0xff]  }
 0x99e   :  { %12742 = vmatprep.subr.bf16.mxu1 %v23361_v39  ;;  %v23466_v39 = vld [vmem:[#allocation9 + $0x164] ss:$24 sps:$4 sm:$0xff]  }
 0x9a1   :  { %12743 = vmatpush1.bf16.msra.mxu1 %v23359_v25  ;;  %v23464_v25 = vld [vmem:[#allocation9 + $0x160] ss:$24 sps:$4 sm:$0xff]  }
 0x9a2   :  { %12744 = vmatprep.subr.bf16.mxu1 %v23367_v48  ;;  %v23469_v48 = vld [vmem:[#allocation9 + $0x194] ss:$24 sps:$4 sm:$0xff]  }
 0x9a5   :  { %12745 = vmatpush1.bf16.msra.mxu1 %v23365_v9  ;;  %v23563_v9 = vld [vmem:[#allocation12] ss:$24 sps:$4 sm:$0xff]  }
 0x9a6   :  { %12746 = vmatprep.subr.bf16.mxu1 %v23373_v33  ;;  %v23565_v33 = vld [vmem:[#allocation12 + $0x4] ss:$24 sps:$4 sm:$0xff]  }
 0x9a7   :  { %14797 = vmatprep.subr.bf16.mxu0 %v23565_v33  ;;  %v23646_v33 = vld [vmem:[#allocation12 + $0x2a4] ss:$24 sps:$4 sm:$0xff]  }
 0x9a9   :  { %12747 = vmatpush1.bf16.msra.mxu1 %v23371_v49  ;;  %v23467_v49 = vld [vmem:[#allocation9 + $0x190] ss:$24 sps:$4 sm:$0xff]  }
 0x9aa   :  { %12748 = vmatprep.subr.bf16.mxu1 %v23379_v50  ;;  %v23472_v50 = vld [vmem:[#allocation9 + $0x1c4] ss:$24 sps:$4 sm:$0xff]  }
 0x9ad   :  { %12749 = vmatpush1.bf16.msra.mxu1 %v23377_v15  ;;  %v23569_v15 = vld [vmem:[#allocation12 + $0x30] ss:$24 sps:$4 sm:$0xff]  }
 0x9ae   :  { %12750 = vmatprep.subr.bf16.mxu1 %v23385_v61  ;;  %v23571_v61 = vld [vmem:[#allocation12 + $0x34] ss:$24 sps:$4 sm:$0xff]  }
 0x9b1   :  { %12751 = vmatpush1.bf16.msra.mxu1 %v23383_v42  ;;  %v23470_v42 = vld [vmem:[#allocation9 + $0x1c0] ss:$24 sps:$4 sm:$0xff]  }
 0x9b2   :  { %12752 = vmatprep.subr.bf16.mxu1 %v23391_v52  ;;  %v23475_v52 = vld [vmem:[#allocation9 + $0x1f4] ss:$24 sps:$4 sm:$0xff]  }
 0x9b5   :  { %12753 = vmatpush1.bf16.msra.mxu1 %v23389_v2  ;;  %v23575_v2 = vld [vmem:[#allocation12 + $0x60] ss:$24 sps:$4 sm:$0xff]  }
 0x9b6   :  { %12754 = vmatprep.subr.bf16.mxu1 %v23397_v53  ;;  %v23577_v53 = vld [vmem:[#allocation12 + $0x64] ss:$24 sps:$4 sm:$0xff]  }
 0x9b9   :  { %12755 = vmatpush1.bf16.msra.mxu1 %v23395_v56  ;;  %v23473_v56 = vld [vmem:[#allocation9 + $0x1f0] ss:$24 sps:$4 sm:$0xff]  }
 0x9ba   :  { %12756 = vmatprep.subr.bf16.mxu1 %v23403_v57  ;;  %v23478_v57 = vld [vmem:[#allocation9 + $0x224] ss:$24 sps:$4 sm:$0xff]  }
 0x9bd   :  { %12757 = vmatpush1.bf16.msra.mxu1 %v23401_v62  ;;  %v23581_v62 = vld [vmem:[#allocation12 + $0x90] ss:$24 sps:$4 sm:$0xff]  }
 0x9be   :  { %12758 = vmatprep.subr.bf16.mxu1 %v23409_v63  ;;  %v23583_v63 = vld [vmem:[#allocation12 + $0x94] ss:$24 sps:$4 sm:$0xff]  }
 0x9c1   :  { %12759 = vmatpush1.bf16.msra.mxu1 %v23407_v19  ;;  %v23476_v19 = vld [vmem:[#allocation9 + $0x220] ss:$24 sps:$4 sm:$0xff]  }
 0x9c2   :  { %12760 = vmatprep.subr.bf16.mxu1 %v23415_v28  ;;  %v23481_v28 = vld [vmem:[#allocation9 + $0x254] ss:$24 sps:$4 sm:$0xff]  }
 0x9c5   :  { %12761 = vmatpush1.bf16.msra.mxu1 %v23413_v3  ;;  %v23587_v3 = vld [vmem:[#allocation12 + $0xc0] ss:$24 sps:$4 sm:$0xff]  }
 0x9c6   :  { %12762 = vmatprep.subr.bf16.mxu1 %v23421_v44  ;;  %v23589_v44 = vld [vmem:[#allocation12 + $0xc4] ss:$24 sps:$4 sm:$0xff]  }
 0x9c9   :  { %12763 = vmatpush1.bf16.msra.mxu1 %v23419_v55  ;;  %v23479_v55 = vld [vmem:[#allocation9 + $0x250] ss:$24 sps:$4 sm:$0xff]  }
 0x9ca   :  { %12764 = vmatprep.subr.bf16.mxu1 %v23427_v4  ;;  %v23484_v4 = vld [vmem:[#allocation9 + $0x284] ss:$24 sps:$4 sm:$0xff]  }
 0x9cd   :  { %12765 = vmatpush1.bf16.msra.mxu1 %v23425_v59  ;;  %v23593_v59 = vld [vmem:[#allocation12 + $0xf0] ss:$24 sps:$4 sm:$0xff]  }
 0x9ce   :  { %12766 = vmatprep.subr.bf16.mxu1 %v23433_v0  ;;  %v23595_v0 = vld [vmem:[#allocation12 + $0xf4] ss:$24 sps:$4 sm:$0xff]  }
 0x9d1   :  { %12767 = vmatpush1.bf16.msra.mxu1 %v23431_v26  ;;  %v23482_v26 = vld [vmem:[#allocation9 + $0x280] ss:$24 sps:$4 sm:$0xff]  }
 0x9d2   :  { %12768 = vmatprep.subr.bf16.mxu1 %v23439_v10  ;;  %v23487_v10 = vld [vmem:[#allocation9 + $0x2b4] ss:$24 sps:$4 sm:$0xff]  }
 0x9d5   :  { %12769 = vmatpush1.bf16.msra.mxu1 %v23437_v1  ;;  %v23599_v1 = vld [vmem:[#allocation12 + $0x120] ss:$24 sps:$4 sm:$0xff]  }
 0x9d6   :  { %12902 = vmatprep.subr.bf16.mxu1 %v23445_v31  ;;  %v23601_v31 = vld [vmem:[#allocation12 + $0x124] ss:$24 sps:$4 sm:$0xff]  }
 0x9eb   :  { %v10877_v34 = vpop.f32.mrb[16].mxu1 }
 0x9ec   :  { %v20697_v37 = vadd.f32 %v10877_v34, %v9064_v12  ;;  %v10879_v13 = vpop.f32.mrb[17].mxu1  ;;  %v23490_v12 = vld [vmem:[#allocation9 + $0x2e4] ss:$24 sps:$4 sm:$0xff]  }
 0x9ed   :  { %v20698_v54 = vadd.f32 %v10879_v13, %v9068_v30  ;;  %v10881_v18 = vpop.f32.mrb[18].mxu1  ;;  %v23605_v30 = vld [vmem:[#allocation12 + $0x150] ss:$24 sps:$4 sm:$0xff]   ;;  %v23607_v34 = vld [vmem:[#allocation12 + $0x154] ss:$24 sps:$4 sm:$0xff]  }
 0x9ee   :  { %v10888_v21 = vmax.f32 %v20697_v37, 0.0  ;;  %v10882_v8 = vpop.f32.mrb[19].mxu1  ;;  %v23488_v37 = vld [vmem:[#allocation9 + $0x2e0] ss:$24 sps:$4 sm:$0xff]   ;;  %v23493_v13 = vld [vmem:[#allocation9 + $0x314] ss:$24 sps:$4 sm:$0xff]  }
 0x9ef   :  { %v10889_v23 = vmax.f32 %v20698_v54, 0.0  ;;  %v23611_v54 = vld [vmem:[#allocation12 + $0x180] ss:$24 sps:$4 sm:$0xff]   ;;  %v23613_v18 = vld [vmem:[#allocation12 + $0x184] ss:$24 sps:$4 sm:$0xff]  }
 0x9f0   :  { %v25529_v32 = vpack.c.bf16 %v10888_v21, %v10888_v21  ;;  %v23491_v21 = vld [vmem:[#allocation9 + $0x310] ss:$24 sps:$4 sm:$0xff]   ;;  %v23496_v8 = vld [vmem:[#allocation9 + $0x344] ss:$24 sps:$4 sm:$0xff]  }
 0x9f1   :  { %v25527_v29 = vpack.c.bf16 %v10889_v23, %v10889_v23  ;;  %v23616_v23 = vld [vmem:[#allocation12 + $0x1b4] ss:$24 sps:$4 sm:$0xff]  }
 0x9f3   :  { %12770 = vmatprep.mubr.bf16.mxu1 %v25527_v29  ;;  %12893 = vmatprep.mubr.bf16.mxu0 %v25527_v29 }
 0x9f4   :  { %12771 = vmatmul.mubr.bf16.vlgmr.msra.gmra.mrb[20].mxu1 %v25529_v32  ;;  %12894 = vmatmul.mubr.bf16.vlgmr.msra.gmra.mrb[8].mxu0 %v25529_v32 }
 0x9f5   :  { %12903 = vmatpush1.bf16.msra.mxu1 %v23443_v47  ;;  %12934 = vmatprep.mubr.bf16.mxu1 %v25500_v40  ;;  %v23461_v40 = vld [vmem:[#allocation9 + $0x130] ss:$24 sps:$4 sm:$0xff]  }
 0x9f6   :  { %12904 = vmatprep.subr.bf16.mxu1 %v23448_v22  ;;  %14798 = vmatpush1.bf16.msra.mxu0 %v23563_v9  ;;  %v23614_v47 = vld [vmem:[#allocation12 + $0x1b0] ss:$24 sps:$4 sm:$0xff]  }
 0x9f7   :  { %14799 = vmatprep.subr.bf16.mxu0 %v23571_v61  ;;  %v23494_v22 = vld [vmem:[#allocation9 + $0x340] ss:$24 sps:$4 sm:$0xff]   ;;  %v23511_v9 = vld [vmem:[#allocation9 + $0x434] ss:$24 sps:$4 sm:$0xff]  }
 0x9f8   :  { %v23652_v61 = vld [vmem:[#allocation12 + $0x2d4] ss:$24 sps:$4 sm:$0xff]  }
 0x9f9   :  { %12905 = vmatpush1.bf16.msra.mxu1 %v23446_v58  ;;  %v23622_v58 = vld [vmem:[#allocation12 + $0x1e4] ss:$24 sps:$4 sm:$0xff]  }
 0x9fa   :  { %12906 = vmatprep.subr.bf16.mxu1 %v23451_v14  ;;  %14800 = vmatpush1.bf16.msra.mxu0 %v23569_v15  ;;  %v23499_v14 = vld [vmem:[#allocation9 + $0x374] ss:$24 sps:$4 sm:$0xff]   ;;  %v23514_v15 = vld [vmem:[#allocation9 + $0x464] ss:$24 sps:$4 sm:$0xff]  }
 0x9fb   :  { %14801 = vmatprep.subr.bf16.mxu0 %v23577_v53  ;;  %v23658_v53 = vld [vmem:[#allocation12 + $0x304] ss:$24 sps:$4 sm:$0xff]  }
 0x9fd   :  { %12907 = vmatpush1.bf16.msra.mxu1 %v23449_v36  ;;  %v23620_v36 = vld [vmem:[#allocation12 + $0x1e0] ss:$24 sps:$4 sm:$0xff]  }
 0x9fe   :  { %12908 = vmatprep.subr.bf16.mxu1 %v23454_v41  ;;  %14802 = vmatpush1.bf16.msra.mxu0 %v23575_v2  ;;  %v23497_v41 = vld [vmem:[#allocation9 + $0x370] ss:$24 sps:$4 sm:$0xff]   ;;  %v23517_v2 = vld [vmem:[#allocation9 + $0x494] ss:$24 sps:$4 sm:$0xff]  }
 0x9ff   :  { %14803 = vmatprep.subr.bf16.mxu0 %v23583_v63  ;;  %v23523_v63 = vld [vmem:[#allocation9 + $0x4f4] ss:$24 sps:$4 sm:$0xff]  }
 0xa01   :  { %12909 = vmatpush1.bf16.msra.mxu1 %v23452_v24  ;;  %v23628_v24 = vld [vmem:[#allocation12 + $0x214] ss:$24 sps:$4 sm:$0xff]  }
 0xa02   :  { %12910 = vmatprep.subr.bf16.mxu1 %v23457_v51  ;;  %14804 = vmatpush1.bf16.msra.mxu0 %v23581_v62  ;;  %v23502_v51 = vld [vmem:[#allocation9 + $0x3a4] ss:$24 sps:$4 sm:$0xff]   ;;  %v23518_v62 = vld [vmem:[#allocation9 + $0x4c0] ss:$24 sps:$4 sm:$0xff]  }
 0xa03   :  { %14805 = vmatprep.subr.bf16.mxu0 %v23589_v44  ;;  %v23529_v44 = vld [vmem:[#allocation9 + $0x554] ss:$24 sps:$4 sm:$0xff]  }
 0xa05   :  { %12911 = vmatpush1.bf16.msra.mxu1 %v23455_v43  ;;  %v23626_v43 = vld [vmem:[#allocation12 + $0x210] ss:$24 sps:$4 sm:$0xff]  }
 0xa06   :  { %12912 = vmatprep.subr.bf16.mxu1 %v23460_v27  ;;  %14806 = vmatpush1.bf16.msra.mxu0 %v23587_v3  ;;  %v23634_v27 = vld [vmem:[#allocation12 + $0x244] ss:$24 sps:$4 sm:$0xff]  }
 0xa07   :  { %14807 = vmatprep.subr.bf16.mxu0 %v23595_v0  ;;  %v23524_v3 = vld [vmem:[#allocation9 + $0x520] ss:$24 sps:$4 sm:$0xff]   ;;  %v23535_v0 = vld [vmem:[#allocation9 + $0x5b4] ss:$24 sps:$4 sm:$0xff]  }
 0xa09   :  { %12913 = vmatpush1.bf16.msra.mxu1 %v23458_v45  ;;  %v23632_v45 = vld [vmem:[#allocation12 + $0x240] ss:$24 sps:$4 sm:$0xff]  }
 0xa0a   :  { %12914 = vmatprep.subr.bf16.mxu1 %v23463_v46  ;;  %14808 = vmatpush1.bf16.msra.mxu0 %v23593_v59  ;;  %v23503_v46 = vld [vmem:[#allocation9 + $0x3d0] ss:$24 sps:$4 sm:$0xff]   ;;  %v23530_v59 = vld [vmem:[#allocation9 + $0x580] ss:$24 sps:$4 sm:$0xff]  }
 0xa0b   :  { %14809 = vmatprep.subr.bf16.mxu0 %v23601_v31  ;;  %v23541_v31 = vld [vmem:[#allocation9 + $0x614] ss:$24 sps:$4 sm:$0xff]  }
 0xa0d   :  { %12915 = vmatpush1.bf16.msra.mxu1 %v23461_v40  ;;  %v23640_v40 = vld [vmem:[#allocation12 + $0x274] ss:$24 sps:$4 sm:$0xff]  }
 0xa0e   :  { %12916 = vmatprep.subr.bf16.mxu1 %v23466_v39  ;;  %14810 = vmatpush1.bf16.msra.mxu0 %v23599_v1  ;;  %v23508_v39 = vld [vmem:[#allocation9 + $0x404] ss:$24 sps:$4 sm:$0xff]   ;;  %v23536_v1 = vld [vmem:[#allocation9 + $0x5e0] ss:$24 sps:$4 sm:$0xff]  }
 0xa0f   :  { %14811 = vmatprep.subr.bf16.mxu0 %v23607_v34  ;;  %v23547_v34 = vld [vmem:[#allocation9 + $0x674] ss:$24 sps:$4 sm:$0xff]  }
 0xa11   :  { %12917 = vmatpush1.bf16.msra.mxu1 %v23464_v25  ;;  %v23638_v25 = vld [vmem:[#allocation12 + $0x270] ss:$24 sps:$4 sm:$0xff]  }
 0xa12   :  { %12918 = vmatprep.subr.bf16.mxu1 %v23469_v48  ;;  %14812 = vmatpush1.bf16.msra.mxu0 %v23605_v30  ;;  %v23506_v48 = vld [vmem:[#allocation9 + $0x400] ss:$24 sps:$4 sm:$0xff]  }
 0xa13   :  { %14813 = vmatprep.subr.bf16.mxu0 %v23613_v18  ;;  %v23542_v30 = vld [vmem:[#allocation9 + $0x640] ss:$24 sps:$4 sm:$0xff]   ;;  %v23553_v18 = vld [vmem:[#allocation9 + $0x6d4] ss:$24 sps:$4 sm:$0xff]  }
 0xa15   :  { %12919 = vmatpush1.bf16.msra.mxu1 %v23467_v49  ;;  %v23644_v49 = vld [vmem:[#allocation12 + $0x2a0] ss:$24 sps:$4 sm:$0xff]  }
 0xa16   :  { %12920 = vmatprep.subr.bf16.mxu1 %v23472_v50  ;;  %14814 = vmatpush1.bf16.msra.mxu0 %v23611_v54  ;;  %v23509_v50 = vld [vmem:[#allocation9 + $0x430] ss:$24 sps:$4 sm:$0xff]   ;;  %v23548_v54 = vld [vmem:[#allocation9 + $0x6a0] ss:$24 sps:$4 sm:$0xff]  }
 0xa17   :  { %14815 = vmatprep.subr.bf16.mxu0 %v23616_v23  ;;  %v23559_v23 = vld [vmem:[#allocation9 + $0x734] ss:$24 sps:$4 sm:$0xff]  }
 0xa19   :  { %12921 = vmatpush1.bf16.msra.mxu1 %v23470_v42  ;;  %v23650_v42 = vld [vmem:[#allocation12 + $0x2d0] ss:$24 sps:$4 sm:$0xff]  }
 0xa1a   :  { %12922 = vmatprep.subr.bf16.mxu1 %v23475_v52  ;;  %14816 = vmatpush1.bf16.msra.mxu0 %v23614_v47  ;;  %v23512_v52 = vld [vmem:[#allocation9 + $0x460] ss:$24 sps:$4 sm:$0xff]   ;;  %v23562_v47 = vld [vmem:[#allocation9 + $0x764] ss:$24 sps:$4 sm:$0xff]  }
 0xa1b   :  { %14817 = vmatprep.subr.bf16.mxu0 %v23622_v58  ;;  %v23568_v58 = vld [vmem:[#allocation9 + $0x794] ss:$24 sps:$4 sm:$0xff]  }
 0xa1d   :  { %12923 = vmatpush1.bf16.msra.mxu1 %v23473_v56  ;;  %v23515_v56 = vld [vmem:[#allocation9 + $0x490] ss:$24 sps:$4 sm:$0xff]  }
 0xa1e   :  { %12924 = vmatprep.subr.bf16.mxu1 %v23478_v57  ;;  %14818 = vmatpush1.bf16.msra.mxu0 %v23620_v36  ;;  %v23520_v57 = vld [vmem:[#allocation9 + $0x4c4] ss:$24 sps:$4 sm:$0xff]  }
 0xa1f   :  { %14819 = vmatprep.subr.bf16.mxu0 %v23628_v24  ;;  %v23574_v36 = vld [vmem:[#allocation9 + $0x7c4] ss:$24 sps:$4 sm:$0xff]   ;;  %v23580_v24 = vld [vmem:[#allocation9 + $0x7f4] ss:$24 sps:$4 sm:$0xff]  }
 0xa21   :  { %12925 = vmatpush1.bf16.msra.mxu1 %v23476_v19  ;;  %v23521_v19 = vld [vmem:[#allocation9 + $0x4f0] ss:$24 sps:$4 sm:$0xff]  }
 0xa22   :  { %12926 = vmatprep.subr.bf16.mxu1 %v23481_v28  ;;  %14820 = vmatpush1.bf16.msra.mxu0 %v23626_v43  ;;  %v23526_v28 = vld [vmem:[#allocation9 + $0x524] ss:$24 sps:$4 sm:$0xff]  }
 0xa23   :  { %14821 = vmatprep.subr.bf16.mxu0 %v23634_v27  ;;  %v23586_v43 = vld [vmem:[#allocation9 + $0x824] ss:$24 sps:$4 sm:$0xff]   ;;  %v23592_v27 = vld [vmem:[#allocation9 + $0x854] ss:$24 sps:$4 sm:$0xff]  }
 0xa25   :  { %12927 = vmatpush1.bf16.msra.mxu1 %v23479_v55  ;;  %v23527_v55 = vld [vmem:[#allocation9 + $0x550] ss:$24 sps:$4 sm:$0xff]  }
 0xa26   :  { %12928 = vmatprep.subr.bf16.mxu1 %v23484_v4  ;;  %14822 = vmatpush1.bf16.msra.mxu0 %v23632_v45  ;;  %v23532_v4 = vld [vmem:[#allocation9 + $0x584] ss:$24 sps:$4 sm:$0xff]  }
 0xa27   :  { %14823 = vmatprep.subr.bf16.mxu0 %v23640_v40  ;;  %v23598_v45 = vld [vmem:[#allocation9 + $0x884] ss:$24 sps:$4 sm:$0xff]   ;;  %v23604_v40 = vld [vmem:[#allocation9 + $0x8b4] ss:$24 sps:$4 sm:$0xff]  }
 0xa29   :  { %12929 = vmatpush1.bf16.msra.mxu1 %v23482_v26  ;;  %v23533_v26 = vld [vmem:[#allocation9 + $0x5b0] ss:$24 sps:$4 sm:$0xff]  }
 0xa2a   :  { %12930 = vmatprep.subr.bf16.mxu1 %v23487_v10  ;;  %14824 = vmatpush1.bf16.msra.mxu0 %v23638_v25  ;;  %v23538_v10 = vld [vmem:[#allocation9 + $0x5e4] ss:$24 sps:$4 sm:$0xff]  }
 0xa2b   :  { %14825 = vmatprep.subr.bf16.mxu0 %v23646_v33  ;;  %v23610_v25 = vld [vmem:[#allocation9 + $0x8e4] ss:$24 sps:$4 sm:$0xff]  }
 0xa2c   :  { %v23617_v33 = vld [vmem:[#allocation12 + $0x8] ss:$24 sps:$4 sm:$0xff]  }
 0xa2d   :  { %12931 = vmatpush1.bf16.msra.mxu1 %v23485_v11  ;;  %v23539_v11 = vld [vmem:[#allocation9 + $0x610] ss:$24 sps:$4 sm:$0xff]  }
 0xa2e   :  { %12932 = vmatprep.subr.bf16.mxu1 %v23490_v12  ;;  %14826 = vmatpush1.bf16.msra.mxu0 %v23644_v49  ;;  %v23544_v12 = vld [vmem:[#allocation9 + $0x644] ss:$24 sps:$4 sm:$0xff]  }
 0xa2f   :  { %14827 = vmatprep.subr.bf16.mxu0 %v23652_v61  ;;  %v23625_v49 = vld [vmem:[#allocation12 + $0x3c] ss:$24 sps:$4 sm:$0xff]   ;;  %v23629_v61 = vld [vmem:[#allocation12 + $0x68] ss:$24 sps:$4 sm:$0xff]  }
 0xa31   :  { %12933 = vmatpush1.bf16.msra.mxu1 %v23488_v37  ;;  %v23545_v37 = vld [vmem:[#allocation9 + $0x670] ss:$24 sps:$4 sm:$0xff]  }
 0xa32   :  { %12943 = vmatprep.subr.bf16.mxu1 %v23493_v13  ;;  %14828 = vmatpush1.bf16.msra.mxu0 %v23650_v42  ;;  %v23550_v13 = vld [vmem:[#allocation9 + $0x6a4] ss:$24 sps:$4 sm:$0xff]  }
 0xa33   :  { %14838 = vmatprep.subr.bf16.mxu0 %v23658_v53  ;;  %v23637_v42 = vld [vmem:[#allocation12 + $0x9c] ss:$24 sps:$4 sm:$0xff]   ;;  %v23641_v53 = vld [vmem:[#allocation12 + $0xc8] ss:$24 sps:$4 sm:$0xff]  }
 0xa34   :  { %12935 = vmatmul.mubr.bf16.vlgmr.msra.gmra.mrb[24].mxu1 %v25502_v20  ;;  %v23500_v20 = vld [vmem:[#allocation9 + $0x3a0] ss:$24 sps:$4 sm:$0xff]  }
 0xa35   :  { %12944 = vmatpush1.bf16.msra.mxu1 %v23491_v21  ;;  %12975 = vmatprep.mubr.bf16.mxu1 %v25516_v7  ;;  %v23505_v7 = vld [vmem:[#allocation9 + $0x3d4] ss:$24 sps:$4 sm:$0xff]   ;;  %v23551_v21 = vld [vmem:[#allocation9 + $0x6d0] ss:$24 sps:$4 sm:$0xff]  }
 0xa36   :  { %12945 = vmatprep.subr.bf16.mxu1 %v23496_v8  ;;  %v23556_v8 = vld [vmem:[#allocation9 + $0x704] ss:$24 sps:$4 sm:$0xff]  }
 0xa39   :  { %12946 = vmatpush1.bf16.msra.mxu1 %v23494_v22  ;;  %v23560_v22 = vld [vmem:[#allocation9 + $0x760] ss:$24 sps:$4 sm:$0xff]  }
 0xa3a   :  { %12947 = vmatprep.subr.bf16.mxu1 %v23499_v14  ;;  %v23566_v14 = vld [vmem:[#allocation9 + $0x790] ss:$24 sps:$4 sm:$0xff]  }
 0xa3d   :  { %12948 = vmatpush1.bf16.msra.mxu1 %v23497_v41  ;;  %v23572_v41 = vld [vmem:[#allocation9 + $0x7c0] ss:$24 sps:$4 sm:$0xff]  }
 0xa3e   :  { %12949 = vmatprep.subr.bf16.mxu1 %v23502_v51  ;;  %v23578_v51 = vld [vmem:[#allocation9 + $0x7f0] ss:$24 sps:$4 sm:$0xff]  }
 0xa41   :  { %12950 = vmatpush1.bf16.msra.mxu1 %v23500_v20  ;;  %v23584_v20 = vld [vmem:[#allocation9 + $0x820] ss:$24 sps:$4 sm:$0xff]  }
 0xa42   :  { %12951 = vmatprep.subr.bf16.mxu1 %v23505_v7  ;;  %v23590_v7 = vld [vmem:[#allocation9 + $0x850] ss:$24 sps:$4 sm:$0xff]  }
 0xa45   :  { %12952 = vmatpush1.bf16.msra.mxu1 %v23503_v46  ;;  %v23596_v46 = vld [vmem:[#allocation9 + $0x880] ss:$24 sps:$4 sm:$0xff]  }
 0xa46   :  { %12953 = vmatprep.subr.bf16.mxu1 %v23508_v39  ;;  %v23602_v39 = vld [vmem:[#allocation9 + $0x8b0] ss:$24 sps:$4 sm:$0xff]  }
 0xa49   :  { %12954 = vmatpush1.bf16.msra.mxu1 %v23506_v48  ;;  %v23608_v48 = vld [vmem:[#allocation9 + $0x8e0] ss:$24 sps:$4 sm:$0xff]  }
 0xa4a   :  { %12955 = vmatprep.subr.bf16.mxu1 %v23511_v9  ;;  %v23619_v9 = vld [vmem:[#allocation12 + $0xc] ss:$24 sps:$4 sm:$0xff]  }
 0xa4d   :  { %12956 = vmatpush1.bf16.msra.mxu1 %v23509_v50  ;;  %v23623_v50 = vld [vmem:[#allocation12 + $0x38] ss:$24 sps:$4 sm:$0xff]  }
 0xa4e   :  { %12957 = vmatprep.subr.bf16.mxu1 %v23514_v15  ;;  %v23631_v15 = vld [vmem:[#allocation12 + $0x6c] ss:$24 sps:$4 sm:$0xff]  }
 0xa51   :  { %12958 = vmatpush1.bf16.msra.mxu1 %v23512_v52  ;;  %v23635_v52 = vld [vmem:[#allocation12 + $0x98] ss:$24 sps:$4 sm:$0xff]  }
 0xa52   :  { %12959 = vmatprep.subr.bf16.mxu1 %v23517_v2  ;;  %v23643_v2 = vld [vmem:[#allocation12 + $0xcc] ss:$24 sps:$4 sm:$0xff]  }
 0xa55   :  { %12960 = vmatpush1.bf16.msra.mxu1 %v23515_v56  ;;  %v25541_v56 = vld [vmem:[#allocation10] sm:$0x3f] }
 0xa56   :  { %12961 = vmatprep.subr.bf16.mxu1 %v23520_v57  ;;  %v23649_v57 = vld [vmem:[#allocation12 + $0xfc] ss:$24 sps:$4 sm:$0xff]  }
 0xa59   :  { %12962 = vmatpush1.bf16.msra.mxu1 %v23518_v62  ;;  %v23647_v62 = vld [vmem:[#allocation12 + $0xf8] ss:$24 sps:$4 sm:$0xff]  }
 0xa5a   :  { %12963 = vmatprep.subr.bf16.mxu1 %v23523_v63  ;;  %v11193_v63 = vrot.slane %v25541_v56, %v25430_v35 }
 0xa5d   :  { %12964 = vmatpush1.bf16.msra.mxu1 %v23521_v19  ;;  %v11201_v19 = vrot.slane %v25541_v56, %v25450_v38 }
 0xa5e   :  { %12965 = vmatprep.subr.bf16.mxu1 %v23526_v28  ;;  %v23655_v28 = vld [vmem:[#allocation12 + $0x12c] ss:$24 sps:$4 sm:$0xff]  }
 0xa61   :  { %12966 = vmatpush1.bf16.msra.mxu1 %v23524_v3 }
 0xa62   :  { %12967 = vmatprep.subr.bf16.mxu1 %v23529_v44 }
 0xa65   :  { %12968 = vmatpush1.bf16.msra.mxu1 %v23527_v55 }
 0xa66   :  { %12969 = vmatprep.subr.bf16.mxu1 %v23532_v4 }
 0xa69   :  { %12970 = vmatpush1.bf16.msra.mxu1 %v23530_v59 }
 0xa6a   :  { %12971 = vmatprep.subr.bf16.mxu1 %v23535_v0 }
 0xa6d   :  { %12972 = vmatpush1.bf16.msra.mxu1 %v23533_v26 }
 0xa6e   :  { %12973 = vmatprep.subr.bf16.mxu1 %v23538_v10 }
 0xa71   :  { %12974 = vmatpush1.bf16.msra.mxu1 %v23536_v1 }
 0xa72   :  { %12984 = vmatprep.subr.bf16.mxu1 %v23541_v31  ;;  %v23653_v31 = vld [vmem:[#allocation12 + $0x128] ss:$24 sps:$4 sm:$0xff]  }
 0xa74   :  { %12976 = vmatmul.mubr.bf16.vlgmr.msra.gmra.mrb[24].mxu1 %v25518_v60  ;;  %v23554_v60 = vld [vmem:[#allocation9 + $0x700] ss:$24 sps:$4 sm:$0xff]  }
 0xa75   :  { %12985 = vmatpush1.bf16.msra.mxu1 %v23539_v11  ;;  %13016 = vmatprep.mubr.bf16.mxu1 %v25527_v29  ;;  %v23557_v29 = vld [vmem:[#allocation9 + $0x730] ss:$24 sps:$4 sm:$0xff]  }
 0xa76   :  { %12986 = vmatprep.subr.bf16.mxu1 %v23544_v12 }
 0xa79   :  { %12987 = vmatpush1.bf16.msra.mxu1 %v23542_v30 }
 0xa7a   :  { %12988 = vmatprep.subr.bf16.mxu1 %v23547_v34  ;;  %v23661_v34 = vld [vmem:[#allocation12 + $0x15c] ss:$24 sps:$4 sm:$0xff]  }
 0xa7d   :  { %12989 = vmatpush1.bf16.msra.mxu1 %v23545_v37 }
 0xa7e   :  { %12990 = vmatprep.subr.bf16.mxu1 %v23550_v13 }
 0xa81   :  { %12991 = vmatpush1.bf16.msra.mxu1 %v23548_v54 }
 0xa82   :  { %12992 = vmatprep.subr.bf16.mxu1 %v23553_v18  ;;  %v23656_v18 = vld [vmem:[#allocation12 + $0x300] ss:$24 sps:$4 sm:$0xff]  }
 0xa85   :  { %12993 = vmatpush1.bf16.msra.mxu1 %v23551_v21  ;;  %v23659_v21 = vld [vmem:[#allocation12 + $0x158] ss:$24 sps:$4 sm:$0xff]  }
 0xa86   :  { %12994 = vmatprep.subr.bf16.mxu1 %v23556_v8 }
 0xa89   :  { %12995 = vmatpush1.bf16.msra.mxu1 %v23554_v60  ;;  %v23664_v60 = vld [vmem:[#allocation12 + $0x334] ss:$24 sps:$4 sm:$0xff]  }
 0xa8a   :  { %12996 = vmatprep.subr.bf16.mxu1 %v23559_v23  ;;  %v23667_v23 = vld [vmem:[#allocation12 + $0x18c] ss:$24 sps:$4 sm:$0xff]  }
 0xa8d   :  { %12997 = vmatpush1.bf16.msra.mxu1 %v23557_v29 }
 0xa8e   :  { %12998 = vmatprep.subr.bf16.mxu1 %v23562_v47  ;;  %v23662_v47 = vld [vmem:[#allocation12 + $0x330] ss:$24 sps:$4 sm:$0xff]  }
 0xa91   :  { %12999 = vmatpush1.bf16.msra.mxu1 %v23560_v22  ;;  %v23665_v22 = vld [vmem:[#allocation12 + $0x188] ss:$24 sps:$4 sm:$0xff]  }
 0xa92   :  { %13000 = vmatprep.subr.bf16.mxu1 %v23568_v58  ;;  %v23670_v58 = vld [vmem:[#allocation12 + $0x364] ss:$24 sps:$4 sm:$0xff]  }
 0xa95   :  { %13001 = vmatpush1.bf16.msra.mxu1 %v23566_v14  ;;  %v23673_v14 = vld [vmem:[#allocation12 + $0x1bc] ss:$24 sps:$4 sm:$0xff]  }
 0xa96   :  { %13002 = vmatprep.subr.bf16.mxu1 %v23574_v36  ;;  %v23668_v36 = vld [vmem:[#allocation12 + $0x360] ss:$24 sps:$4 sm:$0xff]  }
 0xa99   :  { %13003 = vmatpush1.bf16.msra.mxu1 %v23572_v41  ;;  %v23671_v41 = vld [vmem:[#allocation12 + $0x1b8] ss:$24 sps:$4 sm:$0xff]  }
 0xa9a   :  { %13004 = vmatprep.subr.bf16.mxu1 %v23580_v24  ;;  %v23676_v24 = vld [vmem:[#allocation12 + $0x394] ss:$24 sps:$4 sm:$0xff]  }
 0xa9d   :  { %13005 = vmatpush1.bf16.msra.mxu1 %v23578_v51  ;;  %v23679_v51 = vld [vmem:[#allocation12 + $0x1ec] ss:$24 sps:$4 sm:$0xff]  }
 0xa9e   :  { %13006 = vmatprep.subr.bf16.mxu1 %v23586_v43  ;;  %v23674_v43 = vld [vmem:[#allocation12 + $0x390] ss:$24 sps:$4 sm:$0xff]  }
 0xaa1   :  { %13007 = vmatpush1.bf16.msra.mxu1 %v23584_v20  ;;  %v23677_v20 = vld [vmem:[#allocation12 + $0x1e8] ss:$24 sps:$4 sm:$0xff]  }
 0xaa2   :  { %13008 = vmatprep.subr.bf16.mxu1 %v23592_v27  ;;  %v23682_v27 = vld [vmem:[#allocation12 + $0x3c4] ss:$24 sps:$4 sm:$0xff]  }
 0xaa5   :  { %13009 = vmatpush1.bf16.msra.mxu1 %v23590_v7  ;;  %v23685_v7 = vld [vmem:[#allocation12 + $0x21c] ss:$24 sps:$4 sm:$0xff]  }
 0xaa6   :  { %13010 = vmatprep.subr.bf16.mxu1 %v23598_v45  ;;  %v23680_v45 = vld [vmem:[#allocation12 + $0x3c0] ss:$24 sps:$4 sm:$0xff]  }
 0xaa9   :  { %13011 = vmatpush1.bf16.msra.mxu1 %v23596_v46  ;;  %v23683_v46 = vld [vmem:[#allocation12 + $0x218] ss:$24 sps:$4 sm:$0xff]  }
 0xaaa   :  { %13012 = vmatprep.subr.bf16.mxu1 %v23604_v40  ;;  %v23688_v40 = vld [vmem:[#allocation12 + $0x3f4] ss:$24 sps:$4 sm:$0xff]  }
 0xaad   :  { %13013 = vmatpush1.bf16.msra.mxu1 %v23602_v39  ;;  %v23691_v39 = vld [vmem:[#allocation12 + $0x24c] ss:$24 sps:$4 sm:$0xff]  }
 0xaae   :  { %13014 = vmatprep.subr.bf16.mxu1 %v23610_v25  ;;  %v23686_v25 = vld [vmem:[#allocation12 + $0x3f0] ss:$24 sps:$4 sm:$0xff]  }
 0xab1   :  { %13015 = vmatpush1.bf16.msra.mxu1 %v23608_v48  ;;  %v23689_v48 = vld [vmem:[#allocation12 + $0x248] ss:$24 sps:$4 sm:$0xff]  }
 0xab2   :  { %14920 = vmatprep.subr.bf16.mxu1 %v23619_v9  ;;  %v23694_v9 = vld [vmem:[#allocation12 + $0x424] ss:$24 sps:$4 sm:$0xff]  }
 0xab4   :  { %13017 = vmatmul.mubr.bf16.vlgmr.msra.gmra.mrb[24].mxu1 %v25529_v32  ;;  %v11189_v32 = vrot.slane %v25541_v56, %v25427_v6 }
 0xab5   :  { %14921 = vmatpush1.bf16.msra.mxu1 %v23617_v33  ;;  %v23697_v33 = vld [vmem:[#allocation12 + $0x27c] ss:$24 sps:$4 sm:$0xff]  }
 0xab6   :  { %14922 = vmatprep.subr.bf16.mxu1 %v23625_v49  ;;  %v23692_v49 = vld [vmem:[#allocation12 + $0x420] ss:$24 sps:$4 sm:$0xff]  }
 0xab9   :  { %14923 = vmatpush1.bf16.msra.mxu1 %v23623_v50  ;;  %v23695_v50 = vld [vmem:[#allocation12 + $0x278] ss:$24 sps:$4 sm:$0xff]  }
 0xaba   :  { %14924 = vmatprep.subr.bf16.mxu1 %v23631_v15  ;;  %v23700_v15 = vld [vmem:[#allocation12 + $0x454] ss:$24 sps:$4 sm:$0xff]  }
 0xabd   :  { %14925 = vmatpush1.bf16.msra.mxu1 %v23629_v61  ;;  %v23703_v61 = vld [vmem:[#allocation12 + $0x2ac] ss:$24 sps:$4 sm:$0xff]  }
 0xabe   :  { %14926 = vmatprep.subr.bf16.mxu1 %v23637_v42  ;;  %v23698_v42 = vld [vmem:[#allocation12 + $0x450] ss:$24 sps:$4 sm:$0xff]  }
 0xac1   :  { %14927 = vmatpush1.bf16.msra.mxu1 %v23635_v52  ;;  %v23701_v52 = vld [vmem:[#allocation12 + $0x2a8] ss:$24 sps:$4 sm:$0xff]  }
 0xac2   :  { %14928 = vmatprep.subr.bf16.mxu1 %v23643_v2  ;;  %v23706_v2 = vld [vmem:[#allocation12 + $0x484] ss:$24 sps:$4 sm:$0xff]  }
 0xac5   :  { %14929 = vmatpush1.bf16.msra.mxu1 %v23641_v53  ;;  %v23709_v53 = vld [vmem:[#allocation12 + $0x2dc] ss:$24 sps:$4 sm:$0xff]  }
 0xac6   :  { %14930 = vmatprep.subr.bf16.mxu1 %v23649_v57  ;;  %v23704_v57 = vld [vmem:[#allocation12 + $0x480] ss:$24 sps:$4 sm:$0xff]  }
 0xac7   :  { %v12772_v3 = vpop.f32.mrb[20].mxu1  ;;  %v25549_v44 = vpop.f32.mrb[8].mxu0 }
 0xac8   :  { %v20699_v55 = vadd.f32 %v12772_v3, %v11189_v32  ;;  %v12774_v4 = vpop.f32.mrb[21].mxu1  ;;  %v12897_v59 = vpop.f32.mrb[9].mxu0  ;;  %v23707_v32 = vld [vmem:[#allocation12 + $0x2d8] ss:$24 sps:$4 sm:$0xff]   ;;  %v23718_v3 = vld [vmem:[#allocation12 + $0x4e4] ss:$24 sps:$4 sm:$0xff]  }
 0xac9   :  { %v20700_v0 = vadd.f32 %v12774_v4, %v11193_v63  ;;  %v20702_v26 = vadd.f32 %v12897_v59, %v11201_v19  ;;  %14931 = vmatpush1.bf16.msra.mxu1 %v23647_v62  ;;  %v12776_v10 = vpop.f32.mrb[22].mxu1  ;;  %v12899_v1 = vpop.f32.mrb[10].mxu0  ;;  %v23712_v62 = vld [vmem:[#allocation12 + $0x4b4] ss:$24 sps:$4 sm:$0xff]   ;;  %v23710_v19 = vld [vmem:[#allocation12 + $0x4b0] ss:$24 sps:$4 sm:$0xff]  }
 0xaca   :  { %v13025_v11 = vmax.f32 %v20699_v55, 0.0  ;;  %v12777_v12 = vpop.f32.mrb[23].mxu1  ;;  %v12900_v30 = vpop.f32.mrb[11].mxu0  ;;  %14932 = vmatprep.subr.bf16.mxu1 %v23655_v28  ;;  %v23715_v63 = vld [vmem:[#allocation12 + $0x30c] ss:$24 sps:$4 sm:$0xff]  }
 0xacb   :  { %v13026_v37 = vmax.f32 %v20700_v0, 0.0  ;;  %v13028_v13 = vmax.f32 %v20702_v26, 0.0  ;;  %v23713_v28 = vld [vmem:[#allocation12 + $0x308] ss:$24 sps:$4 sm:$0xff]   ;;  %v23721_v55 = vld [vmem:[#allocation12 + $0x33c] ss:$24 sps:$4 sm:$0xff]  }
 0xacc   :  { %v25553_v8 = vpack.c.bf16 %v13025_v11, %v13025_v11  ;;  %v23716_v4 = vld [vmem:[#allocation12 + $0x4e0] ss:$24 sps:$4 sm:$0xff]   ;;  %v23724_v0 = vld [vmem:[#allocation12 + $0x514] ss:$24 sps:$4 sm:$0xff]   ;;  %v23722_v10 = vld [vmem:[#allocation12 + $0x510] ss:$24 sps:$4 sm:$0xff]  }
 0xacd   :  { %v25551_v54 = vpack.c.bf16 %v13026_v37, %v13026_v37  ;;  %14933 = vmatpush1.bf16.msra.mxu1 %v23653_v31  ;;  %v25557_v29 = vpack.c.bf16 %v13028_v13, %v13028_v13  ;;  %v23719_v59 = vld [vmem:[#allocation12 + $0x338] ss:$24 sps:$4 sm:$0xff]   ;;  %v23727_v26 = vld [vmem:[#allocation12 + $0x36c] ss:$24 sps:$4 sm:$0xff]   ;;  %v23725_v1 = vld [vmem:[#allocation12 + $0x368] ss:$24 sps:$4 sm:$0xff]  }
 0xace   :  { %14934 = vmatprep.subr.bf16.mxu1 %v23661_v34  ;;  %v23730_v31 = vld [vmem:[#allocation12 + $0x544] ss:$24 sps:$4 sm:$0xff]   ;;  %v23728_v12 = vld [vmem:[#allocation12 + $0x540] ss:$24 sps:$4 sm:$0xff]   ;;  %v23736_v34 = vld [vmem:[#allocation12 + $0x574] ss:$24 sps:$4 sm:$0xff]  }
 0xacf   :  { %14829 = vmatprep.mubr.bf16.mxu0 %v25551_v54  ;;  %14952 = vmatprep.mubr.bf16.mxu1 %v25551_v54  ;;  %v23733_v11 = vld [vmem:[#allocation12 + $0x39c] ss:$24 sps:$4 sm:$0xff]   ;;  %v23731_v30 = vld [vmem:[#allocation12 + $0x398] ss:$24 sps:$4 sm:$0xff]   ;;  %v23739_v37 = vld [vmem:[#allocation12 + $0x3cc] ss:$24 sps:$4 sm:$0xff]  }
 0xad0   :  { %14830 = vmatmul.mubr.bf16.vlgmr.msra.gmra.mrb[12].mxu0 %v25553_v8  ;;  %v23734_v13 = vld [vmem:[#allocation12 + $0x570] ss:$24 sps:$4 sm:$0xff]  }
 0xad1   :  { %14839 = vmatpush1.bf16.msra.mxu0 %v23656_v18  ;;  %14935 = vmatpush1.bf16.msra.mxu1 %v23659_v21  ;;  %v23737_v18 = vld [vmem:[#allocation12 + $0x3c8] ss:$24 sps:$4 sm:$0xff]   ;;  %v11197_v21 = vrot.slane %v25541_v56, %v25447_v5 }
 0xad2   :  { %14870 = vmatprep.mubr.bf16.mxu0 %v25557_v29  ;;  %14840 = vmatprep.subr.bf16.mxu0 %v23664_v60  ;;  %v23742_v60 = vld [vmem:[#allocation12 + $0x5a4] ss:$24 sps:$4 sm:$0xff]  }
 0xad3   :  { %14936 = vmatprep.subr.bf16.mxu1 %v23667_v23  ;;  %v23745_v23 = vld [vmem:[#allocation12 + $0x3fc] ss:$24 sps:$4 sm:$0xff]  }
 0xad5   :  { %14841 = vmatpush1.bf16.msra.mxu0 %v23662_v47  ;;  %14937 = vmatpush1.bf16.msra.mxu1 %v23665_v22  ;;  %v23740_v47 = vld [vmem:[#allocation12 + $0x5a0] ss:$24 sps:$4 sm:$0xff]  }
 0xad6   :  { %14842 = vmatprep.subr.bf16.mxu0 %v23670_v58  ;;  %14938 = vmatprep.subr.bf16.mxu1 %v23673_v14  ;;  %v23743_v22 = vld [vmem:[#allocation12 + $0x3f8] ss:$24 sps:$4 sm:$0xff]   ;;  %v20701_v58 = vadd.f32 %v25549_v44, %v11197_v21  ;;  %v23748_v14 = vld [vmem:[#allocation12 + $0x5d4] ss:$24 sps:$4 sm:$0xff]  }
 0xad7   :  { %v23757_v44 = vld [vmem:[#allocation12 + $0x48c] ss:$24 sps:$4 sm:$0xff]   ;;  %v23788_v21 = vld [vmem:[#allocation12 + $0x638] ss:$24 sps:$4 sm:$0xff]  }
 0xad9   :  { %14843 = vmatpush1.bf16.msra.mxu0 %v23668_v36  ;;  %14939 = vmatpush1.bf16.msra.mxu1 %v23671_v41  ;;  %v23751_v36 = vld [vmem:[#allocation12 + $0x42c] ss:$24 sps:$4 sm:$0xff]   ;;  %v23746_v41 = vld [vmem:[#allocation12 + $0x5d0] ss:$24 sps:$4 sm:$0xff]  }
 0xada   :  { %14844 = vmatprep.subr.bf16.mxu0 %v23676_v24  ;;  %14940 = vmatprep.subr.bf16.mxu1 %v23679_v51  ;;  %v23749_v24 = vld [vmem:[#allocation12 + $0x428] ss:$24 sps:$4 sm:$0xff]   ;;  %v13027_v51 = vmax.f32 %v20701_v58, 0.0 }
 0xadb   :  { %v23845_v58 = vld [vmem:[#allocation12 + $0x810] ss:$24 sps:$4 sm:$0xff]  }
 0xadd   :  { %14845 = vmatpush1.bf16.msra.mxu0 %v23674_v43  ;;  %14941 = vmatpush1.bf16.msra.mxu1 %v23677_v20  ;;  %v23754_v43 = vld [vmem:[#allocation12 + $0x45c] ss:$24 sps:$4 sm:$0xff]  }
 0xade   :  { %14846 = vmatprep.subr.bf16.mxu0 %v23682_v27  ;;  %14942 = vmatprep.subr.bf16.mxu1 %v23685_v7  ;;  %v23781_v20 = vld [vmem:[#allocation12 + $0x604] ss:$24 sps:$4 sm:$0xff]   ;;  %v23752_v27 = vld [vmem:[#allocation12 + $0x458] ss:$24 sps:$4 sm:$0xff]  }
 0xadf   :  { %v23779_v7 = vld [vmem:[#allocation12 + $0x600] ss:$24 sps:$4 sm:$0xff]  }
 0xae1   :  { %14847 = vmatpush1.bf16.msra.mxu0 %v23680_v45  ;;  %14943 = vmatpush1.bf16.msra.mxu1 %v23683_v46  ;;  %v25566_v45 = vpack.c.bf16 %v13027_v51, %v13027_v51  ;;  %v23787_v46 = vld [vmem:[#allocation12 + $0x634] ss:$24 sps:$4 sm:$0xff]  }
 0xae2   :  { %14848 = vmatprep.subr.bf16.mxu0 %v23688_v40  ;;  %14944 = vmatprep.subr.bf16.mxu1 %v23691_v39  ;;  %v23755_v40 = vld [vmem:[#allocation12 + $0x488] ss:$24 sps:$4 sm:$0xff]   ;;  %v23808_v51 = vld [vmem:[#allocation12 + $0x6cc] ss:$24 sps:$4 sm:$0xff]  }
 0xae3   :  { %v23785_v39 = vld [vmem:[#allocation12 + $0x630] ss:$24 sps:$4 sm:$0xff]  }
 0xae5   :  { %14849 = vmatpush1.bf16.msra.mxu0 %v23686_v25  ;;  %14945 = vmatpush1.bf16.msra.mxu1 %v23689_v48  ;;  %v23760_v25 = vld [vmem:[#allocation12 + $0x4bc] ss:$24 sps:$4 sm:$0xff]  }
 0xae6   :  { %14850 = vmatprep.subr.bf16.mxu0 %v23694_v9  ;;  %14946 = vmatprep.subr.bf16.mxu1 %v23697_v33  ;;  %v23793_v48 = vld [vmem:[#allocation12 + $0x664] ss:$24 sps:$4 sm:$0xff]   ;;  %v23758_v9 = vld [vmem:[#allocation12 + $0x4b8] ss:$24 sps:$4 sm:$0xff]  }
 0xae7   :  { %v23791_v33 = vld [vmem:[#allocation12 + $0x660] ss:$24 sps:$4 sm:$0xff]  }
 0xae9   :  { %14851 = vmatpush1.bf16.msra.mxu0 %v23692_v49  ;;  %14947 = vmatpush1.bf16.msra.mxu1 %v23695_v50  ;;  %v23763_v49 = vld [vmem:[#allocation12 + $0x4ec] ss:$24 sps:$4 sm:$0xff]  }
 0xaea   :  { %14852 = vmatprep.subr.bf16.mxu0 %v23700_v15  ;;  %14948 = vmatprep.subr.bf16.mxu1 %v23703_v61  ;;  %v23799_v50 = vld [vmem:[#allocation12 + $0x694] ss:$24 sps:$4 sm:$0xff]   ;;  %v23761_v15 = vld [vmem:[#allocation12 + $0x4e8] ss:$24 sps:$4 sm:$0xff]  }
 0xaeb   :  { %v23797_v61 = vld [vmem:[#allocation12 + $0x690] ss:$24 sps:$4 sm:$0xff]  }
 0xaed   :  { %14853 = vmatpush1.bf16.msra.mxu0 %v23698_v42  ;;  %14949 = vmatpush1.bf16.msra.mxu1 %v23701_v52  ;;  %v23766_v42 = vld [vmem:[#allocation12 + $0x51c] ss:$24 sps:$4 sm:$0xff]  }
 0xaee   :  { %14854 = vmatprep.subr.bf16.mxu0 %v23706_v2  ;;  %14950 = vmatprep.subr.bf16.mxu1 %v23709_v53  ;;  %v23805_v52 = vld [vmem:[#allocation12 + $0x6c4] ss:$24 sps:$4 sm:$0xff]   ;;  %v23764_v2 = vld [vmem:[#allocation12 + $0x518] ss:$24 sps:$4 sm:$0xff]  }
 0xaef   :  { %v23803_v53 = vld [vmem:[#allocation12 + $0x6c0] ss:$24 sps:$4 sm:$0xff]  }
 0xaf1   :  { %14855 = vmatpush1.bf16.msra.mxu0 %v23704_v57  ;;  %14951 = vmatpush1.bf16.msra.mxu1 %v23707_v32  ;;  %v23769_v57 = vld [vmem:[#allocation12 + $0x54c] ss:$24 sps:$4 sm:$0xff]  }
 0xaf2   :  { %14856 = vmatprep.subr.bf16.mxu0 %v23712_v62  ;;  %14961 = vmatprep.subr.bf16.mxu1 %v23715_v63  ;;  %v23811_v32 = vld [vmem:[#allocation12 + $0x6f4] ss:$24 sps:$4 sm:$0xff]   ;;  %v23767_v62 = vld [vmem:[#allocation12 + $0x548] ss:$24 sps:$4 sm:$0xff]  }
 0xaf3   :  { %v23809_v63 = vld [vmem:[#allocation12 + $0x6f0] ss:$24 sps:$4 sm:$0xff]  }
 0xaf4   :  { %14953 = vmatmul.mubr.bf16.vlgmr.msra.gmra.mrb[28].mxu1 %v25553_v8 }
 0xaf5   :  { %14857 = vmatpush1.bf16.msra.mxu0 %v23710_v19  ;;  %14962 = vmatpush1.bf16.msra.mxu1 %v23713_v28  ;;  %v23772_v19 = vld [vmem:[#allocation12 + $0x57c] ss:$24 sps:$4 sm:$0xff]  }
 0xaf6   :  { %14993 = vmatprep.mubr.bf16.mxu1 %v25557_v29  ;;  %14858 = vmatprep.subr.bf16.mxu0 %v23718_v3  ;;  %v23817_v28 = vld [vmem:[#allocation12 + $0x724] ss:$24 sps:$4 sm:$0xff]   ;;  %v23770_v3 = vld [vmem:[#allocation12 + $0x578] ss:$24 sps:$4 sm:$0xff]  }
 0xaf7   :  { %14963 = vmatprep.subr.bf16.mxu1 %v23721_v55  ;;  %v23815_v55 = vld [vmem:[#allocation12 + $0x720] ss:$24 sps:$4 sm:$0xff]  }
 0xaf9   :  { %14859 = vmatpush1.bf16.msra.mxu0 %v23716_v4  ;;  %14964 = vmatpush1.bf16.msra.mxu1 %v23719_v59  ;;  %v23775_v4 = vld [vmem:[#allocation12 + $0x5ac] ss:$24 sps:$4 sm:$0xff]  }
 0xafa   :  { %14860 = vmatprep.subr.bf16.mxu0 %v23724_v0  ;;  %14965 = vmatprep.subr.bf16.mxu1 %v23727_v26  ;;  %v23823_v59 = vld [vmem:[#allocation12 + $0x754] ss:$24 sps:$4 sm:$0xff]   ;;  %v23773_v0 = vld [vmem:[#allocation12 + $0x5a8] ss:$24 sps:$4 sm:$0xff]  }
 0xafb   :  { %v23821_v26 = vld [vmem:[#allocation12 + $0x750] ss:$24 sps:$4 sm:$0xff]  }
 0xafd   :  { %14861 = vmatpush1.bf16.msra.mxu0 %v23722_v10  ;;  %14966 = vmatpush1.bf16.msra.mxu1 %v23725_v1  ;;  %v23778_v10 = vld [vmem:[#allocation12 + $0x5dc] ss:$24 sps:$4 sm:$0xff]  }
 0xafe   :  { %14862 = vmatprep.subr.bf16.mxu0 %v23730_v31  ;;  %14967 = vmatprep.subr.bf16.mxu1 %v23733_v11  ;;  %v23829_v1 = vld [vmem:[#allocation12 + $0x784] ss:$24 sps:$4 sm:$0xff]   ;;  %v23776_v31 = vld [vmem:[#allocation12 + $0x5d8] ss:$24 sps:$4 sm:$0xff]  }
 0xaff   :  { %v23827_v11 = vld [vmem:[#allocation12 + $0x780] ss:$24 sps:$4 sm:$0xff]  }
 0xb01   :  { %14863 = vmatpush1.bf16.msra.mxu0 %v23728_v12  ;;  %14968 = vmatpush1.bf16.msra.mxu1 %v23731_v30  ;;  %v23784_v12 = vld [vmem:[#allocation12 + $0x60c] ss:$24 sps:$4 sm:$0xff]  }
 0xb02   :  { %14864 = vmatprep.subr.bf16.mxu0 %v23736_v34  ;;  %14969 = vmatprep.subr.bf16.mxu1 %v23739_v37  ;;  %v23835_v30 = vld [vmem:[#allocation12 + $0x7b4] ss:$24 sps:$4 sm:$0xff]   ;;  %v23782_v34 = vld [vmem:[#allocation12 + $0x608] ss:$24 sps:$4 sm:$0xff]  }
 0xb03   :  { %v23833_v37 = vld [vmem:[#allocation12 + $0x7b0] ss:$24 sps:$4 sm:$0xff]  }
 0xb05   :  { %14865 = vmatpush1.bf16.msra.mxu0 %v23734_v13  ;;  %14970 = vmatpush1.bf16.msra.mxu1 %v23737_v18  ;;  %v23790_v13 = vld [vmem:[#allocation12 + $0x63c] ss:$24 sps:$4 sm:$0xff]  }
 0xb06   :  { %14866 = vmatprep.subr.bf16.mxu0 %v23742_v60  ;;  %14971 = vmatprep.subr.bf16.mxu1 %v23745_v23  ;;  %v23841_v18 = vld [vmem:[#allocation12 + $0x7e4] ss:$24 sps:$4 sm:$0xff]   ;;  %v23839_v60 = vld [vmem:[#allocation12 + $0x7e0] ss:$24 sps:$4 sm:$0xff]  }
 0xb07   :  { %v23796_v23 = vld [vmem:[#allocation12 + $0x66c] ss:$24 sps:$4 sm:$0xff]  }
 0xb09   :  { %14867 = vmatpush1.bf16.msra.mxu0 %v23740_v47  ;;  %14972 = vmatpush1.bf16.msra.mxu1 %v23743_v22  ;;  %v23847_v47 = vld [vmem:[#allocation12 + $0x814] ss:$24 sps:$4 sm:$0xff]   ;;  %v23794_v22 = vld [vmem:[#allocation12 + $0x668] ss:$24 sps:$4 sm:$0xff]  }
 0xb0a   :  { %14868 = vmatprep.subr.bf16.mxu0 %v23748_v14  ;;  %14973 = vmatprep.subr.bf16.mxu1 %v23751_v36  ;;  %v23802_v14 = vld [vmem:[#allocation12 + $0x69c] ss:$24 sps:$4 sm:$0xff]  }
 0xb0b   :  { %v23853_v36 = vld [vmem:[#allocation12 + $0x844] ss:$24 sps:$4 sm:$0xff]  }
 0xb0d   :  { %14869 = vmatpush1.bf16.msra.mxu0 %v23746_v41  ;;  %14974 = vmatpush1.bf16.msra.mxu1 %v23749_v24  ;;  %v23800_v41 = vld [vmem:[#allocation12 + $0x698] ss:$24 sps:$4 sm:$0xff]  }
 0xb0e   :  { %14975 = vmatprep.subr.bf16.mxu1 %v23754_v43  ;;  %14879 = vmatprep.subr.bf16.mxu0 %v23781_v20  ;;  %v23851_v24 = vld [vmem:[#allocation12 + $0x840] ss:$24 sps:$4 sm:$0xff]   ;;  %v23859_v43 = vld [vmem:[#allocation12 + $0x874] ss:$24 sps:$4 sm:$0xff]  }
 0xb0f   :  { %v23806_v20 = vld [vmem:[#allocation12 + $0x6c8] ss:$24 sps:$4 sm:$0xff]  }
 0xb10   :  { %14871 = vmatmul.mubr.bf16.vlgmr.msra.gmra.mrb[12].mxu0 %v25566_v45 }
 0xb11   :  { %14976 = vmatpush1.bf16.msra.mxu1 %v23752_v27  ;;  %14880 = vmatpush1.bf16.msra.mxu0 %v23779_v7  ;;  %v23857_v27 = vld [vmem:[#allocation12 + $0x870] ss:$24 sps:$4 sm:$0xff]   ;;  %v23814_v7 = vld [vmem:[#allocation12 + $0x6fc] ss:$24 sps:$4 sm:$0xff]  }
 0xb12   :  { %14977 = vmatprep.subr.bf16.mxu1 %v23757_v44  ;;  %14881 = vmatprep.subr.bf16.mxu0 %v23787_v46  ;;  %v23865_v44 = vld [vmem:[#allocation12 + $0x8a4] ss:$24 sps:$4 sm:$0xff]   ;;  %v23812_v46 = vld [vmem:[#allocation12 + $0x6f8] ss:$24 sps:$4 sm:$0xff]  }
 0xb15   :  { %14978 = vmatpush1.bf16.msra.mxu1 %v23755_v40  ;;  %14882 = vmatpush1.bf16.msra.mxu0 %v23785_v39  ;;  %v23863_v40 = vld [vmem:[#allocation12 + $0x8a0] ss:$24 sps:$4 sm:$0xff]   ;;  %v23820_v39 = vld [vmem:[#allocation12 + $0x72c] ss:$24 sps:$4 sm:$0xff]  }
 0xb16   :  { %14979 = vmatprep.subr.bf16.mxu1 %v23760_v25  ;;  %14883 = vmatprep.subr.bf16.mxu0 %v23793_v48  ;;  %v23871_v25 = vld [vmem:[#allocation12 + $0x8d4] ss:$24 sps:$4 sm:$0xff]   ;;  %v23818_v48 = vld [vmem:[#allocation12 + $0x728] ss:$24 sps:$4 sm:$0xff]  }
 0xb19   :  { %14980 = vmatpush1.bf16.msra.mxu1 %v23758_v9  ;;  %14884 = vmatpush1.bf16.msra.mxu0 %v23791_v33  ;;  %v23869_v9 = vld [vmem:[#allocation12 + $0x8d0] ss:$24 sps:$4 sm:$0xff]   ;;  %v23826_v33 = vld [vmem:[#allocation12 + $0x75c] ss:$24 sps:$4 sm:$0xff]  }
 0xb1a   :  { %14981 = vmatprep.subr.bf16.mxu1 %v23763_v49  ;;  %14885 = vmatprep.subr.bf16.mxu0 %v23799_v50  ;;  %v23877_v49 = vld [vmem:[#allocation12 + $0x14] ss:$24 sps:$4 sm:$0xff]   ;;  %v23824_v50 = vld [vmem:[#allocation12 + $0x758] ss:$24 sps:$4 sm:$0xff]  }
 0xb1d   :  { %14982 = vmatpush1.bf16.msra.mxu1 %v23761_v15  ;;  %14886 = vmatpush1.bf16.msra.mxu0 %v23797_v61  ;;  %v23832_v15 = vld [vmem:[#allocation12 + $0x78c] ss:$24 sps:$4 sm:$0xff]   ;;  %v23830_v61 = vld [vmem:[#allocation12 + $0x788] ss:$24 sps:$4 sm:$0xff]  }
 0xb1e   :  { %14983 = vmatprep.subr.bf16.mxu1 %v23766_v42  ;;  %14887 = vmatprep.subr.bf16.mxu0 %v23805_v52  ;;  %v23838_v42 = vld [vmem:[#allocation12 + $0x7bc] ss:$24 sps:$4 sm:$0xff]   ;;  %v23836_v52 = vld [vmem:[#allocation12 + $0x7b8] ss:$24 sps:$4 sm:$0xff]  }
 0xb21   :  { %14984 = vmatpush1.bf16.msra.mxu1 %v23764_v2  ;;  %14888 = vmatpush1.bf16.msra.mxu0 %v23803_v53  ;;  %v23844_v2 = vld [vmem:[#allocation12 + $0x7ec] ss:$24 sps:$4 sm:$0xff]   ;;  %v23842_v53 = vld [vmem:[#allocation12 + $0x7e8] ss:$24 sps:$4 sm:$0xff]  }
 0xb22   :  { %14985 = vmatprep.subr.bf16.mxu1 %v23769_v57  ;;  %14889 = vmatprep.subr.bf16.mxu0 %v23811_v32  ;;  %v23850_v57 = vld [vmem:[#allocation12 + $0x81c] ss:$24 sps:$4 sm:$0xff]   ;;  %v23848_v32 = vld [vmem:[#allocation12 + $0x818] ss:$24 sps:$4 sm:$0xff]  }
 0xb25   :  { %14986 = vmatpush1.bf16.msra.mxu1 %v23767_v62  ;;  %14890 = vmatpush1.bf16.msra.mxu0 %v23809_v63  ;;  %v23856_v62 = vld [vmem:[#allocation12 + $0x84c] ss:$24 sps:$4 sm:$0xff]   ;;  %v23854_v63 = vld [vmem:[#allocation12 + $0x848] ss:$24 sps:$4 sm:$0xff]  }
 0xb26   :  { %14987 = vmatprep.subr.bf16.mxu1 %v23772_v19  ;;  %14891 = vmatprep.subr.bf16.mxu0 %v23817_v28  ;;  %v23862_v19 = vld [vmem:[#allocation12 + $0x87c] ss:$24 sps:$4 sm:$0xff]   ;;  %v23860_v28 = vld [vmem:[#allocation12 + $0x878] ss:$24 sps:$4 sm:$0xff]  }
 0xb29   :  { %14988 = vmatpush1.bf16.msra.mxu1 %v23770_v3  ;;  %14892 = vmatpush1.bf16.msra.mxu0 %v23815_v55  ;;  %v23868_v3 = vld [vmem:[#allocation12 + $0x8ac] ss:$24 sps:$4 sm:$0xff]   ;;  %v23866_v55 = vld [vmem:[#allocation12 + $0x8a8] ss:$24 sps:$4 sm:$0xff]  }
 0xb2a   :  { %14989 = vmatprep.subr.bf16.mxu1 %v23775_v4  ;;  %14893 = vmatprep.subr.bf16.mxu0 %v23823_v59  ;;  %v23874_v4 = vld [vmem:[#allocation12 + $0x8dc] ss:$24 sps:$4 sm:$0xff]   ;;  %v23872_v59 = vld [vmem:[#allocation12 + $0x8d8] ss:$24 sps:$4 sm:$0xff]  }
 0xb2d   :  { %14990 = vmatpush1.bf16.msra.mxu1 %v23773_v0  ;;  %14894 = vmatpush1.bf16.msra.mxu0 %v23821_v26  ;;  %v11205_v0 = vrot.slane %v25541_v56, %v25474_v16  ;;  %v11209_v26 = vrot.slane %v25541_v56, %v25477_v17  ;;  %v23878_v56 = vld [vmem:[#allocation12 + $0x40] ss:$24 sps:$4 sm:$0xff]  }
 0xb2e   :  { %14991 = vmatprep.subr.bf16.mxu1 %v23778_v10  ;;  %14895 = vmatprep.subr.bf16.mxu0 %v23829_v1 }
 0xb31   :  { %14992 = vmatpush1.bf16.msra.mxu1 %v23776_v31  ;;  %14896 = vmatpush1.bf16.msra.mxu0 %v23827_v11 }
 0xb32   :  { %15002 = vmatprep.subr.bf16.mxu1 %v23784_v12  ;;  %14897 = vmatprep.subr.bf16.mxu0 %v23835_v30 }
 0xb34   :  { %14994 = vmatmul.mubr.bf16.vlgmr.msra.gmra.mrb[28].mxu1 %v25566_v45 }
 0xb35   :  { %15003 = vmatpush1.bf16.msra.mxu1 %v23782_v34  ;;  %14898 = vmatpush1.bf16.msra.mxu0 %v23833_v37 }
 0xb36   :  { %15004 = vmatprep.subr.bf16.mxu1 %v23790_v13  ;;  %14899 = vmatprep.subr.bf16.mxu0 %v23841_v18  ;;  %v23875_v18 = vld [vmem:[#allocation12 + $0x10] ss:$24 sps:$4 sm:$0xff]  }
 0xb39   :  { %15005 = vmatpush1.bf16.msra.mxu1 %v23788_v21  ;;  %14900 = vmatpush1.bf16.msra.mxu0 %v23839_v60  ;;  %v23880_v60 = vld [vmem:[#allocation12 + $0x44] ss:$24 sps:$4 sm:$0xff]  }
 0xb3a   :  { %15006 = vmatprep.subr.bf16.mxu1 %v23796_v23  ;;  %14901 = vmatprep.subr.bf16.mxu0 %v23847_v47  ;;  %v23883_v23 = vld [vmem:[#allocation12 + $0x74] ss:$24 sps:$4 sm:$0xff]   ;;  %v23881_v47 = vld [vmem:[#allocation12 + $0x70] ss:$24 sps:$4 sm:$0xff]  }
 0xb3d   :  { %15007 = vmatpush1.bf16.msra.mxu1 %v23794_v22  ;;  %14902 = vmatpush1.bf16.msra.mxu0 %v23845_v58  ;;  %v23886_v22 = vld [vmem:[#allocation12 + $0xa4] ss:$24 sps:$4 sm:$0xff]   ;;  %v23884_v58 = vld [vmem:[#allocation12 + $0xa0] ss:$24 sps:$4 sm:$0xff]  }
 0xb3e   :  { %15008 = vmatprep.subr.bf16.mxu1 %v23802_v14  ;;  %14903 = vmatprep.subr.bf16.mxu0 %v23853_v36  ;;  %v23889_v14 = vld [vmem:[#allocation12 + $0xd4] ss:$24 sps:$4 sm:$0xff]   ;;  %v23887_v36 = vld [vmem:[#allocation12 + $0xd0] ss:$24 sps:$4 sm:$0xff]  }
 0xb41   :  { %15009 = vmatpush1.bf16.msra.mxu1 %v23800_v41  ;;  %14904 = vmatpush1.bf16.msra.mxu0 %v23851_v24  ;;  %v23892_v41 = vld [vmem:[#allocation12 + $0x104] ss:$24 sps:$4 sm:$0xff]   ;;  %v23890_v24 = vld [vmem:[#allocation12 + $0x100] ss:$24 sps:$4 sm:$0xff]  }
 0xb42   :  { %15010 = vmatprep.subr.bf16.mxu1 %v23808_v51  ;;  %14905 = vmatprep.subr.bf16.mxu0 %v23859_v43  ;;  %v23895_v51 = vld [vmem:[#allocation12 + $0x134] ss:$24 sps:$4 sm:$0xff]   ;;  %v23898_v43 = vld [vmem:[#allocation12 + $0x164] ss:$24 sps:$4 sm:$0xff]  }
 0xb45   :  { %15011 = vmatpush1.bf16.msra.mxu1 %v23806_v20  ;;  %14906 = vmatpush1.bf16.msra.mxu0 %v23857_v27  ;;  %v23896_v20 = vld [vmem:[#allocation12 + $0x160] ss:$24 sps:$4 sm:$0xff]   ;;  %v23901_v27 = vld [vmem:[#allocation12 + $0x194] ss:$24 sps:$4 sm:$0xff]  }
 0xb46   :  { %15012 = vmatprep.subr.bf16.mxu1 %v23814_v7  ;;  %14907 = vmatprep.subr.bf16.mxu0 %v23865_v44  ;;  %v23995_v7 = vld [vmem:[#allocation15] ss:$24 sps:$4 sm:$0xff]   ;;  %v23997_v44 = vld [vmem:[#allocation15 + $0x4] ss:$24 sps:$4 sm:$0xff]  }
 0xb49   :  { %15013 = vmatpush1.bf16.msra.mxu1 %v23812_v46  ;;  %14908 = vmatpush1.bf16.msra.mxu0 %v23863_v40  ;;  %v23899_v46 = vld [vmem:[#allocation12 + $0x190] ss:$24 sps:$4 sm:$0xff]   ;;  %v23904_v40 = vld [vmem:[#allocation12 + $0x1c4] ss:$24 sps:$4 sm:$0xff]  }
 0xb4a   :  { %15014 = vmatprep.subr.bf16.mxu1 %v23820_v39  ;;  %14909 = vmatprep.subr.bf16.mxu0 %v23871_v25  ;;  %v24001_v39 = vld [vmem:[#allocation15 + $0x30] ss:$24 sps:$4 sm:$0xff]   ;;  %v24003_v25 = vld [vmem:[#allocation15 + $0x34] ss:$24 sps:$4 sm:$0xff]  }
 0xb4d   :  { %15015 = vmatpush1.bf16.msra.mxu1 %v23818_v48  ;;  %14910 = vmatpush1.bf16.msra.mxu0 %v23869_v9  ;;  %v23902_v48 = vld [vmem:[#allocation12 + $0x1c0] ss:$24 sps:$4 sm:$0xff]   ;;  %v23907_v9 = vld [vmem:[#allocation12 + $0x1f4] ss:$24 sps:$4 sm:$0xff]  }
 0xb4e   :  { %15016 = vmatprep.subr.bf16.mxu1 %v23826_v33  ;;  %15043 = vmatprep.subr.bf16.mxu0 %v23877_v49  ;;  %v24007_v33 = vld [vmem:[#allocation15 + $0x60] ss:$24 sps:$4 sm:$0xff]   ;;  %v24009_v49 = vld [vmem:[#allocation15 + $0x64] ss:$24 sps:$4 sm:$0xff]  }
 0xb51   :  { %15017 = vmatpush1.bf16.msra.mxu1 %v23824_v50  ;;  %v23905_v50 = vld [vmem:[#allocation12 + $0x1f0] ss:$24 sps:$4 sm:$0xff]  }
 0xb52   :  { %15018 = vmatprep.subr.bf16.mxu1 %v23832_v15  ;;  %v23910_v15 = vld [vmem:[#allocation12 + $0x224] ss:$24 sps:$4 sm:$0xff]  }
 0xb55   :  { %15019 = vmatpush1.bf16.msra.mxu1 %v23830_v61  ;;  %v24013_v61 = vld [vmem:[#allocation15 + $0x90] ss:$24 sps:$4 sm:$0xff]  }
 0xb56   :  { %15020 = vmatprep.subr.bf16.mxu1 %v23838_v42  ;;  %v24015_v42 = vld [vmem:[#allocation15 + $0x94] ss:$24 sps:$4 sm:$0xff]  }
 0xb59   :  { %15021 = vmatpush1.bf16.msra.mxu1 %v23836_v52  ;;  %v23908_v52 = vld [vmem:[#allocation12 + $0x220] ss:$24 sps:$4 sm:$0xff]  }
 0xb5a   :  { %15022 = vmatprep.subr.bf16.mxu1 %v23844_v2  ;;  %v23913_v2 = vld [vmem:[#allocation12 + $0x254] ss:$24 sps:$4 sm:$0xff]  }
 0xb5d   :  { %15023 = vmatpush1.bf16.msra.mxu1 %v23842_v53  ;;  %v24019_v53 = vld [vmem:[#allocation15 + $0xc0] ss:$24 sps:$4 sm:$0xff]  }
 0xb5e   :  { %15024 = vmatprep.subr.bf16.mxu1 %v23850_v57  ;;  %v24021_v57 = vld [vmem:[#allocation15 + $0xc4] ss:$24 sps:$4 sm:$0xff]  }
 0xb61   :  { %15025 = vmatpush1.bf16.msra.mxu1 %v23848_v32  ;;  %v23911_v32 = vld [vmem:[#allocation12 + $0x250] ss:$24 sps:$4 sm:$0xff]  }
 0xb62   :  { %15026 = vmatprep.subr.bf16.mxu1 %v23856_v62  ;;  %v23916_v62 = vld [vmem:[#allocation12 + $0x284] ss:$24 sps:$4 sm:$0xff]  }
 0xb65   :  { %15027 = vmatpush1.bf16.msra.mxu1 %v23854_v63  ;;  %v24025_v63 = vld [vmem:[#allocation15 + $0xf0] ss:$24 sps:$4 sm:$0xff]  }
 0xb66   :  { %15028 = vmatprep.subr.bf16.mxu1 %v23862_v19  ;;  %v24027_v19 = vld [vmem:[#allocation15 + $0xf4] ss:$24 sps:$4 sm:$0xff]  }
 0xb69   :  { %15029 = vmatpush1.bf16.msra.mxu1 %v23860_v28  ;;  %v23914_v28 = vld [vmem:[#allocation12 + $0x280] ss:$24 sps:$4 sm:$0xff]  }
 0xb6a   :  { %15030 = vmatprep.subr.bf16.mxu1 %v23868_v3  ;;  %v23919_v3 = vld [vmem:[#allocation12 + $0x2b4] ss:$24 sps:$4 sm:$0xff]  }
 0xb6d   :  { %15031 = vmatpush1.bf16.msra.mxu1 %v23866_v55  ;;  %v24031_v55 = vld [vmem:[#allocation15 + $0x120] ss:$24 sps:$4 sm:$0xff]  }
 0xb6e   :  { %15032 = vmatprep.subr.bf16.mxu1 %v23874_v4  ;;  %v24033_v4 = vld [vmem:[#allocation15 + $0x124] ss:$24 sps:$4 sm:$0xff]  }
 0xb71   :  { %15033 = vmatpush1.bf16.msra.mxu1 %v23872_v59  ;;  %v23917_v59 = vld [vmem:[#allocation12 + $0x2b0] ss:$24 sps:$4 sm:$0xff]  }
 0xb72   :  { %16938 = vmatprep.subr.bf16.mxu1 %v23997_v44  ;;  %v24078_v44 = vld [vmem:[#allocation15 + $0x2a4] ss:$24 sps:$4 sm:$0xff]  }
 0xb87   :  { %v13018_v10 = vpop.f32.mrb[24].mxu1 }
 0xb88   :  { %v20703_v1 = vadd.f32 %v13018_v10, %v11205_v0  ;;  %v13020_v31 = vpop.f32.mrb[25].mxu1  ;;  %v23922_v0 = vld [vmem:[#allocation12 + $0x2e4] ss:$24 sps:$4 sm:$0xff]  }
 0xb89   :  { %v20704_v11 = vadd.f32 %v13020_v31, %v11209_v26  ;;  %v13022_v12 = vpop.f32.mrb[26].mxu1  ;;  %v24037_v26 = vld [vmem:[#allocation15 + $0x150] ss:$24 sps:$4 sm:$0xff]   ;;  %v24039_v10 = vld [vmem:[#allocation15 + $0x154] ss:$24 sps:$4 sm:$0xff]  }
 0xb8a   :  { %v13029_v30 = vmax.f32 %v20703_v1, 0.0  ;;  %v13023_v34 = vpop.f32.mrb[27].mxu1  ;;  %v23920_v1 = vld [vmem:[#allocation12 + $0x2e0] ss:$24 sps:$4 sm:$0xff]   ;;  %v23925_v31 = vld [vmem:[#allocation12 + $0x314] ss:$24 sps:$4 sm:$0xff]  }
 0xb8b   :  { %v13030_v37 = vmax.f32 %v20704_v11, 0.0  ;;  %v24043_v11 = vld [vmem:[#allocation15 + $0x180] ss:$24 sps:$4 sm:$0xff]   ;;  %v24045_v12 = vld [vmem:[#allocation15 + $0x184] ss:$24 sps:$4 sm:$0xff]  }
 0xb8c   :  { %v25576_v21 = vpack.c.bf16 %v13029_v30, %v13029_v30  ;;  %v23923_v30 = vld [vmem:[#allocation12 + $0x310] ss:$24 sps:$4 sm:$0xff]   ;;  %v23928_v34 = vld [vmem:[#allocation12 + $0x344] ss:$24 sps:$4 sm:$0xff]  }
 0xb8d   :  { %v25574_v13 = vpack.c.bf16 %v13030_v37, %v13030_v37  ;;  %v24048_v37 = vld [vmem:[#allocation15 + $0x1b4] ss:$24 sps:$4 sm:$0xff]  }
 0xb8f   :  { %14911 = vmatprep.mubr.bf16.mxu0 %v25574_v13  ;;  %15034 = vmatprep.mubr.bf16.mxu1 %v25574_v13 }
 0xb90   :  { %14912 = vmatmul.mubr.bf16.vlgmr.msra.gmra.mrb[12].mxu0 %v25576_v21  ;;  %15035 = vmatmul.mubr.bf16.vlgmr.msra.gmra.mrb[28].mxu1 %v25576_v21 }
 0xb91   :  { %15044 = vmatpush1.bf16.msra.mxu0 %v23875_v18  ;;  %15075 = vmatprep.mubr.bf16.mxu0 %v25551_v54  ;;  %v23893_v54 = vld [vmem:[#allocation12 + $0x130] ss:$24 sps:$4 sm:$0xff]  }
 0xb92   :  { %15045 = vmatprep.subr.bf16.mxu0 %v23880_v60  ;;  %16939 = vmatpush1.bf16.msra.mxu1 %v23995_v7  ;;  %v24046_v18 = vld [vmem:[#allocation15 + $0x1b0] ss:$24 sps:$4 sm:$0xff]  }
 0xb93   :  { %16940 = vmatprep.subr.bf16.mxu1 %v24003_v25  ;;  %v23926_v60 = vld [vmem:[#allocation12 + $0x340] ss:$24 sps:$4 sm:$0xff]   ;;  %v23943_v7 = vld [vmem:[#allocation12 + $0x434] ss:$24 sps:$4 sm:$0xff]  }
 0xb94   :  { %v24084_v25 = vld [vmem:[#allocation15 + $0x2d4] ss:$24 sps:$4 sm:$0xff]  }
 0xb95   :  { %15046 = vmatpush1.bf16.msra.mxu0 %v23878_v56  ;;  %v24054_v56 = vld [vmem:[#allocation15 + $0x1e4] ss:$24 sps:$4 sm:$0xff]  }
 0xb96   :  { %15047 = vmatprep.subr.bf16.mxu0 %v23883_v23  ;;  %16941 = vmatpush1.bf16.msra.mxu1 %v24001_v39  ;;  %v23931_v23 = vld [vmem:[#allocation12 + $0x374] ss:$24 sps:$4 sm:$0xff]   ;;  %v23946_v39 = vld [vmem:[#allocation12 + $0x464] ss:$24 sps:$4 sm:$0xff]  }
 0xb97   :  { %16942 = vmatprep.subr.bf16.mxu1 %v24009_v49  ;;  %v24090_v49 = vld [vmem:[#allocation15 + $0x304] ss:$24 sps:$4 sm:$0xff]  }
 0xb99   :  { %15048 = vmatpush1.bf16.msra.mxu0 %v23881_v47  ;;  %v24052_v47 = vld [vmem:[#allocation15 + $0x1e0] ss:$24 sps:$4 sm:$0xff]  }
 0xb9a   :  { %15049 = vmatprep.subr.bf16.mxu0 %v23886_v22  ;;  %16943 = vmatpush1.bf16.msra.mxu1 %v24007_v33  ;;  %v23929_v22 = vld [vmem:[#allocation12 + $0x370] ss:$24 sps:$4 sm:$0xff]   ;;  %v23949_v33 = vld [vmem:[#allocation12 + $0x494] ss:$24 sps:$4 sm:$0xff]  }
 0xb9b   :  { %16944 = vmatprep.subr.bf16.mxu1 %v24015_v42  ;;  %v23955_v42 = vld [vmem:[#allocation12 + $0x4f4] ss:$24 sps:$4 sm:$0xff]  }
 0xb9d   :  { %15050 = vmatpush1.bf16.msra.mxu0 %v23884_v58  ;;  %v24060_v58 = vld [vmem:[#allocation15 + $0x214] ss:$24 sps:$4 sm:$0xff]  }
 0xb9e   :  { %15051 = vmatprep.subr.bf16.mxu0 %v23889_v14  ;;  %16945 = vmatpush1.bf16.msra.mxu1 %v24013_v61  ;;  %v23934_v14 = vld [vmem:[#allocation12 + $0x3a4] ss:$24 sps:$4 sm:$0xff]   ;;  %v23950_v61 = vld [vmem:[#allocation12 + $0x4c0] ss:$24 sps:$4 sm:$0xff]  }
 0xb9f   :  { %16946 = vmatprep.subr.bf16.mxu1 %v24021_v57  ;;  %v23961_v57 = vld [vmem:[#allocation12 + $0x554] ss:$24 sps:$4 sm:$0xff]  }
 0xba1   :  { %15052 = vmatpush1.bf16.msra.mxu0 %v23887_v36  ;;  %v24058_v36 = vld [vmem:[#allocation15 + $0x210] ss:$24 sps:$4 sm:$0xff]  }
 0xba2   :  { %15053 = vmatprep.subr.bf16.mxu0 %v23892_v41  ;;  %16947 = vmatpush1.bf16.msra.mxu1 %v24019_v53  ;;  %v24066_v41 = vld [vmem:[#allocation15 + $0x244] ss:$24 sps:$4 sm:$0xff]  }
 0xba3   :  { %16948 = vmatprep.subr.bf16.mxu1 %v24027_v19  ;;  %v23956_v53 = vld [vmem:[#allocation12 + $0x520] ss:$24 sps:$4 sm:$0xff]   ;;  %v23967_v19 = vld [vmem:[#allocation12 + $0x5b4] ss:$24 sps:$4 sm:$0xff]  }
 0xba5   :  { %15054 = vmatpush1.bf16.msra.mxu0 %v23890_v24  ;;  %v24064_v24 = vld [vmem:[#allocation15 + $0x240] ss:$24 sps:$4 sm:$0xff]  }
 0xba6   :  { %15055 = vmatprep.subr.bf16.mxu0 %v23895_v51  ;;  %16949 = vmatpush1.bf16.msra.mxu1 %v24025_v63  ;;  %v23935_v51 = vld [vmem:[#allocation12 + $0x3d0] ss:$24 sps:$4 sm:$0xff]   ;;  %v23962_v63 = vld [vmem:[#allocation12 + $0x580] ss:$24 sps:$4 sm:$0xff]  }
 0xba7   :  { %16950 = vmatprep.subr.bf16.mxu1 %v24033_v4  ;;  %v23973_v4 = vld [vmem:[#allocation12 + $0x614] ss:$24 sps:$4 sm:$0xff]  }
 0xba9   :  { %15056 = vmatpush1.bf16.msra.mxu0 %v23893_v54  ;;  %v24072_v54 = vld [vmem:[#allocation15 + $0x274] ss:$24 sps:$4 sm:$0xff]  }
 0xbaa   :  { %15057 = vmatprep.subr.bf16.mxu0 %v23898_v43  ;;  %16951 = vmatpush1.bf16.msra.mxu1 %v24031_v55  ;;  %v23940_v43 = vld [vmem:[#allocation12 + $0x404] ss:$24 sps:$4 sm:$0xff]   ;;  %v23968_v55 = vld [vmem:[#allocation12 + $0x5e0] ss:$24 sps:$4 sm:$0xff]  }
 0xbab   :  { %16952 = vmatprep.subr.bf16.mxu1 %v24039_v10  ;;  %v23979_v10 = vld [vmem:[#allocation12 + $0x674] ss:$24 sps:$4 sm:$0xff]  }
 0xbad   :  { %15058 = vmatpush1.bf16.msra.mxu0 %v23896_v20  ;;  %v24070_v20 = vld [vmem:[#allocation15 + $0x270] ss:$24 sps:$4 sm:$0xff]  }
 0xbae   :  { %15059 = vmatprep.subr.bf16.mxu0 %v23901_v27  ;;  %16953 = vmatpush1.bf16.msra.mxu1 %v24037_v26  ;;  %v23938_v27 = vld [vmem:[#allocation12 + $0x400] ss:$24 sps:$4 sm:$0xff]  }
 0xbaf   :  { %16954 = vmatprep.subr.bf16.mxu1 %v24045_v12  ;;  %v23974_v26 = vld [vmem:[#allocation12 + $0x640] ss:$24 sps:$4 sm:$0xff]   ;;  %v23985_v12 = vld [vmem:[#allocation12 + $0x6d4] ss:$24 sps:$4 sm:$0xff]  }
 0xbb1   :  { %15060 = vmatpush1.bf16.msra.mxu0 %v23899_v46  ;;  %v24076_v46 = vld [vmem:[#allocation15 + $0x2a0] ss:$24 sps:$4 sm:$0xff]  }
 0xbb2   :  { %15061 = vmatprep.subr.bf16.mxu0 %v23904_v40  ;;  %16955 = vmatpush1.bf16.msra.mxu1 %v24043_v11  ;;  %v23941_v40 = vld [vmem:[#allocation12 + $0x430] ss:$24 sps:$4 sm:$0xff]   ;;  %v23980_v11 = vld [vmem:[#allocation12 + $0x6a0] ss:$24 sps:$4 sm:$0xff]  }
 0xbb3   :  { %16956 = vmatprep.subr.bf16.mxu1 %v24048_v37  ;;  %v23991_v37 = vld [vmem:[#allocation12 + $0x734] ss:$24 sps:$4 sm:$0xff]  }
 0xbb5   :  { %15062 = vmatpush1.bf16.msra.mxu0 %v23902_v48  ;;  %v24082_v48 = vld [vmem:[#allocation15 + $0x2d0] ss:$24 sps:$4 sm:$0xff]  }
 0xbb6   :  { %15063 = vmatprep.subr.bf16.mxu0 %v23907_v9  ;;  %16957 = vmatpush1.bf16.msra.mxu1 %v24046_v18  ;;  %v23944_v9 = vld [vmem:[#allocation12 + $0x460] ss:$24 sps:$4 sm:$0xff]   ;;  %v23994_v18 = vld [vmem:[#allocation12 + $0x764] ss:$24 sps:$4 sm:$0xff]  }
 0xbb7   :  { %16958 = vmatprep.subr.bf16.mxu1 %v24054_v56  ;;  %v24000_v56 = vld [vmem:[#allocation12 + $0x794] ss:$24 sps:$4 sm:$0xff]  }
 0xbb9   :  { %15064 = vmatpush1.bf16.msra.mxu0 %v23905_v50  ;;  %v23947_v50 = vld [vmem:[#allocation12 + $0x490] ss:$24 sps:$4 sm:$0xff]  }
 0xbba   :  { %15065 = vmatprep.subr.bf16.mxu0 %v23910_v15  ;;  %16959 = vmatpush1.bf16.msra.mxu1 %v24052_v47  ;;  %v23952_v15 = vld [vmem:[#allocation12 + $0x4c4] ss:$24 sps:$4 sm:$0xff]  }
 0xbbb   :  { %16960 = vmatprep.subr.bf16.mxu1 %v24060_v58  ;;  %v24006_v47 = vld [vmem:[#allocation12 + $0x7c4] ss:$24 sps:$4 sm:$0xff]   ;;  %v24012_v58 = vld [vmem:[#allocation12 + $0x7f4] ss:$24 sps:$4 sm:$0xff]  }
 0xbbd   :  { %15066 = vmatpush1.bf16.msra.mxu0 %v23908_v52  ;;  %v23953_v52 = vld [vmem:[#allocation12 + $0x4f0] ss:$24 sps:$4 sm:$0xff]  }
 0xbbe   :  { %15067 = vmatprep.subr.bf16.mxu0 %v23913_v2  ;;  %16961 = vmatpush1.bf16.msra.mxu1 %v24058_v36  ;;  %v23958_v2 = vld [vmem:[#allocation12 + $0x524] ss:$24 sps:$4 sm:$0xff]  }
 0xbbf   :  { %16962 = vmatprep.subr.bf16.mxu1 %v24066_v41  ;;  %v24018_v36 = vld [vmem:[#allocation12 + $0x824] ss:$24 sps:$4 sm:$0xff]   ;;  %v24024_v41 = vld [vmem:[#allocation12 + $0x854] ss:$24 sps:$4 sm:$0xff]  }
 0xbc1   :  { %15068 = vmatpush1.bf16.msra.mxu0 %v23911_v32  ;;  %v23959_v32 = vld [vmem:[#allocation12 + $0x550] ss:$24 sps:$4 sm:$0xff]  }
 0xbc2   :  { %15069 = vmatprep.subr.bf16.mxu0 %v23916_v62  ;;  %16963 = vmatpush1.bf16.msra.mxu1 %v24064_v24  ;;  %v23964_v62 = vld [vmem:[#allocation12 + $0x584] ss:$24 sps:$4 sm:$0xff]  }
 0xbc3   :  { %16964 = vmatprep.subr.bf16.mxu1 %v24072_v54  ;;  %v24030_v24 = vld [vmem:[#allocation12 + $0x884] ss:$24 sps:$4 sm:$0xff]   ;;  %v24036_v54 = vld [vmem:[#allocation12 + $0x8b4] ss:$24 sps:$4 sm:$0xff]  }
 0xbc5   :  { %15070 = vmatpush1.bf16.msra.mxu0 %v23914_v28  ;;  %v23965_v28 = vld [vmem:[#allocation12 + $0x5b0] ss:$24 sps:$4 sm:$0xff]  }
 0xbc6   :  { %15071 = vmatprep.subr.bf16.mxu0 %v23919_v3  ;;  %16965 = vmatpush1.bf16.msra.mxu1 %v24070_v20  ;;  %v23970_v3 = vld [vmem:[#allocation12 + $0x5e4] ss:$24 sps:$4 sm:$0xff]  }
 0xbc7   :  { %16966 = vmatprep.subr.bf16.mxu1 %v24078_v44  ;;  %v24042_v20 = vld [vmem:[#allocation12 + $0x8e4] ss:$24 sps:$4 sm:$0xff]  }
 0xbc8   :  { %v24049_v44 = vld [vmem:[#allocation15 + $0x8] ss:$24 sps:$4 sm:$0xff]  }
 0xbc9   :  { %15072 = vmatpush1.bf16.msra.mxu0 %v23917_v59  ;;  %v23971_v59 = vld [vmem:[#allocation12 + $0x610] ss:$24 sps:$4 sm:$0xff]  }
 0xbca   :  { %15073 = vmatprep.subr.bf16.mxu0 %v23922_v0  ;;  %16967 = vmatpush1.bf16.msra.mxu1 %v24076_v46  ;;  %v23976_v0 = vld [vmem:[#allocation12 + $0x644] ss:$24 sps:$4 sm:$0xff]  }
 0xbcb   :  { %16968 = vmatprep.subr.bf16.mxu1 %v24084_v25  ;;  %v24057_v46 = vld [vmem:[#allocation15 + $0x3c] ss:$24 sps:$4 sm:$0xff]   ;;  %v24061_v25 = vld [vmem:[#allocation15 + $0x68] ss:$24 sps:$4 sm:$0xff]  }
 0xbcd   :  { %15074 = vmatpush1.bf16.msra.mxu0 %v23920_v1  ;;  %v23977_v1 = vld [vmem:[#allocation12 + $0x670] ss:$24 sps:$4 sm:$0xff]  }
 0xbce   :  { %15084 = vmatprep.subr.bf16.mxu0 %v23925_v31  ;;  %16969 = vmatpush1.bf16.msra.mxu1 %v24082_v48  ;;  %v23982_v31 = vld [vmem:[#allocation12 + $0x6a4] ss:$24 sps:$4 sm:$0xff]  }
 0xbcf   :  { %16979 = vmatprep.subr.bf16.mxu1 %v24090_v49  ;;  %v24069_v48 = vld [vmem:[#allocation15 + $0x9c] ss:$24 sps:$4 sm:$0xff]   ;;  %v24073_v49 = vld [vmem:[#allocation15 + $0xc8] ss:$24 sps:$4 sm:$0xff]  }
 0xbd0   :  { %15076 = vmatmul.mubr.bf16.vlgmr.msra.gmra.mrb[16].mxu0 %v25553_v8  ;;  %v23932_v8 = vld [vmem:[#allocation12 + $0x3a0] ss:$24 sps:$4 sm:$0xff]  }
 0xbd1   :  { %15085 = vmatpush1.bf16.msra.mxu0 %v23923_v30  ;;  %15116 = vmatprep.mubr.bf16.mxu0 %v25557_v29  ;;  %v23937_v29 = vld [vmem:[#allocation12 + $0x3d4] ss:$24 sps:$4 sm:$0xff]   ;;  %v23983_v30 = vld [vmem:[#allocation12 + $0x6d0] ss:$24 sps:$4 sm:$0xff]  }
 0xbd2   :  { %15086 = vmatprep.subr.bf16.mxu0 %v23928_v34  ;;  %v23988_v34 = vld [vmem:[#allocation12 + $0x704] ss:$24 sps:$4 sm:$0xff]  }
 0xbd5   :  { %15087 = vmatpush1.bf16.msra.mxu0 %v23926_v60  ;;  %v23992_v60 = vld [vmem:[#allocation12 + $0x760] ss:$24 sps:$4 sm:$0xff]  }
 0xbd6   :  { %15088 = vmatprep.subr.bf16.mxu0 %v23931_v23  ;;  %v23998_v23 = vld [vmem:[#allocation12 + $0x790] ss:$24 sps:$4 sm:$0xff]  }
 0xbd9   :  { %15089 = vmatpush1.bf16.msra.mxu0 %v23929_v22  ;;  %v24004_v22 = vld [vmem:[#allocation12 + $0x7c0] ss:$24 sps:$4 sm:$0xff]  }
 0xbda   :  { %15090 = vmatprep.subr.bf16.mxu0 %v23934_v14  ;;  %v24010_v14 = vld [vmem:[#allocation12 + $0x7f0] ss:$24 sps:$4 sm:$0xff]  }
 0xbdd   :  { %15091 = vmatpush1.bf16.msra.mxu0 %v23932_v8  ;;  %v24016_v8 = vld [vmem:[#allocation12 + $0x820] ss:$24 sps:$4 sm:$0xff]  }
 0xbde   :  { %15092 = vmatprep.subr.bf16.mxu0 %v23937_v29  ;;  %v24022_v29 = vld [vmem:[#allocation12 + $0x850] ss:$24 sps:$4 sm:$0xff]  }
 0xbe1   :  { %15093 = vmatpush1.bf16.msra.mxu0 %v23935_v51  ;;  %v24028_v51 = vld [vmem:[#allocation12 + $0x880] ss:$24 sps:$4 sm:$0xff]  }
 0xbe2   :  { %15094 = vmatprep.subr.bf16.mxu0 %v23940_v43  ;;  %v24034_v43 = vld [vmem:[#allocation12 + $0x8b0] ss:$24 sps:$4 sm:$0xff]  }
 0xbe5   :  { %15095 = vmatpush1.bf16.msra.mxu0 %v23938_v27  ;;  %v24040_v27 = vld [vmem:[#allocation12 + $0x8e0] ss:$24 sps:$4 sm:$0xff]  }
 0xbe6   :  { %15096 = vmatprep.subr.bf16.mxu0 %v23943_v7  ;;  %v24051_v7 = vld [vmem:[#allocation15 + $0xc] ss:$24 sps:$4 sm:$0xff]  }
 0xbe9   :  { %15097 = vmatpush1.bf16.msra.mxu0 %v23941_v40  ;;  %v24055_v40 = vld [vmem:[#allocation15 + $0x38] ss:$24 sps:$4 sm:$0xff]  }
 0xbea   :  { %15098 = vmatprep.subr.bf16.mxu0 %v23946_v39  ;;  %v24063_v39 = vld [vmem:[#allocation15 + $0x6c] ss:$24 sps:$4 sm:$0xff]  }
 0xbed   :  { %15099 = vmatpush1.bf16.msra.mxu0 %v23944_v9  ;;  %v24067_v9 = vld [vmem:[#allocation15 + $0x98] ss:$24 sps:$4 sm:$0xff]  }
 0xbee   :  { %15100 = vmatprep.subr.bf16.mxu0 %v23949_v33  ;;  %v24075_v33 = vld [vmem:[#allocation15 + $0xcc] ss:$24 sps:$4 sm:$0xff]  }
 0xbf1   :  { %15101 = vmatpush1.bf16.msra.mxu0 %v23947_v50  ;;  %v25588_v50 = vld [vmem:[#allocation13] sm:$0x3f] }
 0xbf2   :  { %15102 = vmatprep.subr.bf16.mxu0 %v23952_v15  ;;  %v24081_v15 = vld [vmem:[#allocation15 + $0xfc] ss:$24 sps:$4 sm:$0xff]  }
 0xbf5   :  { %15103 = vmatpush1.bf16.msra.mxu0 %v23950_v61  ;;  %v24079_v61 = vld [vmem:[#allocation15 + $0xf8] ss:$24 sps:$4 sm:$0xff]  }
 0xbf6   :  { %15104 = vmatprep.subr.bf16.mxu0 %v23955_v42  ;;  %v13334_v42 = vrot.slane %v25588_v50, %v25430_v35 }
 0xbf9   :  { %15105 = vmatpush1.bf16.msra.mxu0 %v23953_v52  ;;  %v13342_v52 = vrot.slane %v25588_v50, %v25450_v38 }
 0xbfa   :  { %15106 = vmatprep.subr.bf16.mxu0 %v23958_v2  ;;  %v24087_v2 = vld [vmem:[#allocation15 + $0x12c] ss:$24 sps:$4 sm:$0xff]  }
 0xbfd   :  { %15107 = vmatpush1.bf16.msra.mxu0 %v23956_v53 }
 0xbfe   :  { %15108 = vmatprep.subr.bf16.mxu0 %v23961_v57 }
 0xc01   :  { %15109 = vmatpush1.bf16.msra.mxu0 %v23959_v32 }
 0xc02   :  { %15110 = vmatprep.subr.bf16.mxu0 %v23964_v62 }
 0xc05   :  { %15111 = vmatpush1.bf16.msra.mxu0 %v23962_v63 }
 0xc06   :  { %15112 = vmatprep.subr.bf16.mxu0 %v23967_v19 }
 0xc09   :  { %15113 = vmatpush1.bf16.msra.mxu0 %v23965_v28 }
 0xc0a   :  { %15114 = vmatprep.subr.bf16.mxu0 %v23970_v3 }
 0xc0d   :  { %15115 = vmatpush1.bf16.msra.mxu0 %v23968_v55 }
 0xc0e   :  { %15125 = vmatprep.subr.bf16.mxu0 %v23973_v4  ;;  %v24085_v4 = vld [vmem:[#allocation15 + $0x128] ss:$24 sps:$4 sm:$0xff]  }
 0xc10   :  { %15117 = vmatmul.mubr.bf16.vlgmr.msra.gmra.mrb[16].mxu0 %v25566_v45  ;;  %v23986_v45 = vld [vmem:[#allocation12 + $0x700] ss:$24 sps:$4 sm:$0xff]  }
 0xc11   :  { %15126 = vmatpush1.bf16.msra.mxu0 %v23971_v59  ;;  %15157 = vmatprep.mubr.bf16.mxu0 %v25574_v13  ;;  %v23989_v13 = vld [vmem:[#allocation12 + $0x730] ss:$24 sps:$4 sm:$0xff]  }
 0xc12   :  { %15127 = vmatprep.subr.bf16.mxu0 %v23976_v0 }
 0xc15   :  { %15128 = vmatpush1.bf16.msra.mxu0 %v23974_v26 }
 0xc16   :  { %15129 = vmatprep.subr.bf16.mxu0 %v23979_v10  ;;  %v24093_v10 = vld [vmem:[#allocation15 + $0x15c] ss:$24 sps:$4 sm:$0xff]  }
 0xc19   :  { %15130 = vmatpush1.bf16.msra.mxu0 %v23977_v1 }
 0xc1a   :  { %15131 = vmatprep.subr.bf16.mxu0 %v23982_v31 }
 0xc1d   :  { %15132 = vmatpush1.bf16.msra.mxu0 %v23980_v11 }
 0xc1e   :  { %15133 = vmatprep.subr.bf16.mxu0 %v23985_v12  ;;  %v24088_v12 = vld [vmem:[#allocation15 + $0x300] ss:$24 sps:$4 sm:$0xff]  }
 0xc21   :  { %15134 = vmatpush1.bf16.msra.mxu0 %v23983_v30  ;;  %v24091_v30 = vld [vmem:[#allocation15 + $0x158] ss:$24 sps:$4 sm:$0xff]  }
 0xc22   :  { %15135 = vmatprep.subr.bf16.mxu0 %v23988_v34 }
 0xc25   :  { %15136 = vmatpush1.bf16.msra.mxu0 %v23986_v45  ;;  %v24096_v45 = vld [vmem:[#allocation15 + $0x334] ss:$24 sps:$4 sm:$0xff]  }
 0xc26   :  { %15137 = vmatprep.subr.bf16.mxu0 %v23991_v37  ;;  %v24099_v37 = vld [vmem:[#allocation15 + $0x18c] ss:$24 sps:$4 sm:$0xff]  }
 0xc29   :  { %15138 = vmatpush1.bf16.msra.mxu0 %v23989_v13 }
 0xc2a   :  { %15139 = vmatprep.subr.bf16.mxu0 %v23994_v18  ;;  %v24094_v18 = vld [vmem:[#allocation15 + $0x330] ss:$24 sps:$4 sm:$0xff]  }
 0xc2d   :  { %15140 = vmatpush1.bf16.msra.mxu0 %v23992_v60  ;;  %v24097_v60 = vld [vmem:[#allocation15 + $0x188] ss:$24 sps:$4 sm:$0xff]  }
 0xc2e   :  { %15141 = vmatprep.subr.bf16.mxu0 %v24000_v56  ;;  %v24102_v56 = vld [vmem:[#allocation15 + $0x364] ss:$24 sps:$4 sm:$0xff]  }
 0xc31   :  { %15142 = vmatpush1.bf16.msra.mxu0 %v23998_v23  ;;  %v24105_v23 = vld [vmem:[#allocation15 + $0x1bc] ss:$24 sps:$4 sm:$0xff]  }
 0xc32   :  { %15143 = vmatprep.subr.bf16.mxu0 %v24006_v47  ;;  %v24100_v47 = vld [vmem:[#allocation15 + $0x360] ss:$24 sps:$4 sm:$0xff]  }
 0xc35   :  { %15144 = vmatpush1.bf16.msra.mxu0 %v24004_v22  ;;  %v24103_v22 = vld [vmem:[#allocation15 + $0x1b8] ss:$24 sps:$4 sm:$0xff]  }
 0xc36   :  { %15145 = vmatprep.subr.bf16.mxu0 %v24012_v58  ;;  %v24108_v58 = vld [vmem:[#allocation15 + $0x394] ss:$24 sps:$4 sm:$0xff]  }
 0xc39   :  { %15146 = vmatpush1.bf16.msra.mxu0 %v24010_v14  ;;  %v24111_v14 = vld [vmem:[#allocation15 + $0x1ec] ss:$24 sps:$4 sm:$0xff]  }
 0xc3a   :  { %15147 = vmatprep.subr.bf16.mxu0 %v24018_v36  ;;  %v24106_v36 = vld [vmem:[#allocation15 + $0x390] ss:$24 sps:$4 sm:$0xff]  }
 0xc3d   :  { %15148 = vmatpush1.bf16.msra.mxu0 %v24016_v8  ;;  %v24109_v8 = vld [vmem:[#allocation15 + $0x1e8] ss:$24 sps:$4 sm:$0xff]  }
 0xc3e   :  { %15149 = vmatprep.subr.bf16.mxu0 %v24024_v41  ;;  %v24114_v41 = vld [vmem:[#allocation15 + $0x3c4] ss:$24 sps:$4 sm:$0xff]  }
 0xc41   :  { %15150 = vmatpush1.bf16.msra.mxu0 %v24022_v29  ;;  %v24117_v29 = vld [vmem:[#allocation15 + $0x21c] ss:$24 sps:$4 sm:$0xff]  }
 0xc42   :  { %15151 = vmatprep.subr.bf16.mxu0 %v24030_v24  ;;  %v24112_v24 = vld [vmem:[#allocation15 + $0x3c0] ss:$24 sps:$4 sm:$0xff]  }
 0xc45   :  { %15152 = vmatpush1.bf16.msra.mxu0 %v24028_v51  ;;  %v24115_v51 = vld [vmem:[#allocation15 + $0x218] ss:$24 sps:$4 sm:$0xff]  }
 0xc46   :  { %15153 = vmatprep.subr.bf16.mxu0 %v24036_v54  ;;  %v24120_v54 = vld [vmem:[#allocation15 + $0x3f4] ss:$24 sps:$4 sm:$0xff]  }
 0xc49   :  { %15154 = vmatpush1.bf16.msra.mxu0 %v24034_v43  ;;  %v24123_v43 = vld [vmem:[#allocation15 + $0x24c] ss:$24 sps:$4 sm:$0xff]  }
 0xc4a   :  { %15155 = vmatprep.subr.bf16.mxu0 %v24042_v20  ;;  %v24118_v20 = vld [vmem:[#allocation15 + $0x3f0] ss:$24 sps:$4 sm:$0xff]  }
 0xc4d   :  { %15156 = vmatpush1.bf16.msra.mxu0 %v24040_v27  ;;  %v24121_v27 = vld [vmem:[#allocation15 + $0x248] ss:$24 sps:$4 sm:$0xff]  }
 0xc4e   :  { %17061 = vmatprep.subr.bf16.mxu0 %v24051_v7  ;;  %v24126_v7 = vld [vmem:[#allocation15 + $0x424] ss:$24 sps:$4 sm:$0xff]  }
 0xc50   :  { %15158 = vmatmul.mubr.bf16.vlgmr.msra.gmra.mrb[16].mxu0 %v25576_v21  ;;  %v13330_v21 = vrot.slane %v25588_v50, %v25427_v6 }
 0xc51   :  { %17062 = vmatpush1.bf16.msra.mxu0 %v24049_v44  ;;  %v24129_v44 = vld [vmem:[#allocation15 + $0x27c] ss:$24 sps:$4 sm:$0xff]  }
 0xc52   :  { %17063 = vmatprep.subr.bf16.mxu0 %v24057_v46  ;;  %v24124_v46 = vld [vmem:[#allocation15 + $0x420] ss:$24 sps:$4 sm:$0xff]  }
 0xc55   :  { %17064 = vmatpush1.bf16.msra.mxu0 %v24055_v40  ;;  %v24127_v40 = vld [vmem:[#allocation15 + $0x278] ss:$24 sps:$4 sm:$0xff]  }
 0xc56   :  { %17065 = vmatprep.subr.bf16.mxu0 %v24063_v39  ;;  %v24132_v39 = vld [vmem:[#allocation15 + $0x454] ss:$24 sps:$4 sm:$0xff]  }
 0xc59   :  { %17066 = vmatpush1.bf16.msra.mxu0 %v24061_v25  ;;  %v24135_v25 = vld [vmem:[#allocation15 + $0x2ac] ss:$24 sps:$4 sm:$0xff]  }
 0xc5a   :  { %17067 = vmatprep.subr.bf16.mxu0 %v24069_v48  ;;  %v24130_v48 = vld [vmem:[#allocation15 + $0x450] ss:$24 sps:$4 sm:$0xff]  }
 0xc5d   :  { %17068 = vmatpush1.bf16.msra.mxu0 %v24067_v9  ;;  %v24133_v9 = vld [vmem:[#allocation15 + $0x2a8] ss:$24 sps:$4 sm:$0xff]  }
 0xc5e   :  { %17069 = vmatprep.subr.bf16.mxu0 %v24075_v33  ;;  %v24138_v33 = vld [vmem:[#allocation15 + $0x484] ss:$24 sps:$4 sm:$0xff]  }
 0xc61   :  { %17070 = vmatpush1.bf16.msra.mxu0 %v24073_v49  ;;  %v24141_v49 = vld [vmem:[#allocation15 + $0x2dc] ss:$24 sps:$4 sm:$0xff]  }
 0xc62   :  { %17071 = vmatprep.subr.bf16.mxu0 %v24081_v15  ;;  %v24136_v15 = vld [vmem:[#allocation15 + $0x480] ss:$24 sps:$4 sm:$0xff]  }
 0xc63   :  { %v14913_v53 = vpop.f32.mrb[12].mxu0  ;;  %v25596_v57 = vpop.f32.mrb[28].mxu1 }
 0xc64   :  { %v20705_v32 = vadd.f32 %v14913_v53, %v13330_v21  ;;  %v14915_v62 = vpop.f32.mrb[13].mxu0  ;;  %v15038_v63 = vpop.f32.mrb[29].mxu1  ;;  %v24139_v21 = vld [vmem:[#allocation15 + $0x2d8] ss:$24 sps:$4 sm:$0xff]   ;;  %v24150_v53 = vld [vmem:[#allocation15 + $0x4e4] ss:$24 sps:$4 sm:$0xff]  }
 0xc65   :  { %v20706_v19 = vadd.f32 %v14915_v62, %v13334_v42  ;;  %v20708_v28 = vadd.f32 %v15038_v63, %v13342_v52  ;;  %17072 = vmatpush1.bf16.msra.mxu0 %v24079_v61  ;;  %v14917_v3 = vpop.f32.mrb[14].mxu0  ;;  %v15040_v55 = vpop.f32.mrb[30].mxu1  ;;  %v24144_v61 = vld [vmem:[#allocation15 + $0x4b4] ss:$24 sps:$4 sm:$0xff]   ;;  %v24142_v52 = vld [vmem:[#allocation15 + $0x4b0] ss:$24 sps:$4 sm:$0xff]  }
 0xc66   :  { %v15166_v59 = vmax.f32 %v20705_v32, 0.0  ;;  %v14918_v0 = vpop.f32.mrb[15].mxu0  ;;  %v15041_v26 = vpop.f32.mrb[31].mxu1  ;;  %17073 = vmatprep.subr.bf16.mxu0 %v24087_v2  ;;  %v24147_v42 = vld [vmem:[#allocation15 + $0x30c] ss:$24 sps:$4 sm:$0xff]  }
 0xc67   :  { %v15167_v1 = vmax.f32 %v20706_v19, 0.0  ;;  %v15169_v31 = vmax.f32 %v20708_v28, 0.0  ;;  %v24145_v2 = vld [vmem:[#allocation15 + $0x308] ss:$24 sps:$4 sm:$0xff]   ;;  %v24153_v32 = vld [vmem:[#allocation15 + $0x33c] ss:$24 sps:$4 sm:$0xff]  }
 0xc68   :  { %v25600_v34 = vpack.c.bf16 %v15166_v59, %v15166_v59  ;;  %v24148_v62 = vld [vmem:[#allocation15 + $0x4e0] ss:$24 sps:$4 sm:$0xff]   ;;  %v24156_v19 = vld [vmem:[#allocation15 + $0x514] ss:$24 sps:$4 sm:$0xff]   ;;  %v24154_v3 = vld [vmem:[#allocation15 + $0x510] ss:$24 sps:$4 sm:$0xff]  }
 0xc69   :  { %v25598_v11 = vpack.c.bf16 %v15167_v1, %v15167_v1  ;;  %17074 = vmatpush1.bf16.msra.mxu0 %v24085_v4  ;;  %v25604_v13 = vpack.c.bf16 %v15169_v31, %v15169_v31  ;;  %v24151_v63 = vld [vmem:[#allocation15 + $0x338] ss:$24 sps:$4 sm:$0xff]   ;;  %v24159_v28 = vld [vmem:[#allocation15 + $0x36c] ss:$24 sps:$4 sm:$0xff]   ;;  %v24157_v55 = vld [vmem:[#allocation15 + $0x368] ss:$24 sps:$4 sm:$0xff]  }
 0xc6a   :  { %17075 = vmatprep.subr.bf16.mxu0 %v24093_v10  ;;  %v24162_v4 = vld [vmem:[#allocation15 + $0x544] ss:$24 sps:$4 sm:$0xff]   ;;  %v24160_v0 = vld [vmem:[#allocation15 + $0x540] ss:$24 sps:$4 sm:$0xff]   ;;  %v24168_v10 = vld [vmem:[#allocation15 + $0x574] ss:$24 sps:$4 sm:$0xff]  }
 0xc6b   :  { %16970 = vmatprep.mubr.bf16.mxu1 %v25598_v11  ;;  %17093 = vmatprep.mubr.bf16.mxu0 %v25598_v11  ;;  %v24165_v59 = vld [vmem:[#allocation15 + $0x39c] ss:$24 sps:$4 sm:$0xff]   ;;  %v24163_v26 = vld [vmem:[#allocation15 + $0x398] ss:$24 sps:$4 sm:$0xff]   ;;  %v24171_v1 = vld [vmem:[#allocation15 + $0x3cc] ss:$24 sps:$4 sm:$0xff]  }
 0xc6c   :  { %16971 = vmatmul.mubr.bf16.vlgmr.msra.gmra.mrb[32].mxu1 %v25600_v34  ;;  %v24166_v31 = vld [vmem:[#allocation15 + $0x570] ss:$24 sps:$4 sm:$0xff]  }
 0xc6d   :  { %16980 = vmatpush1.bf16.msra.mxu1 %v24088_v12  ;;  %17076 = vmatpush1.bf16.msra.mxu0 %v24091_v30  ;;  %v24169_v12 = vld [vmem:[#allocation15 + $0x3c8] ss:$24 sps:$4 sm:$0xff]   ;;  %v13338_v30 = vrot.slane %v25588_v50, %v25447_v5 }
 0xc6e   :  { %17011 = vmatprep.mubr.bf16.mxu1 %v25604_v13  ;;  %16981 = vmatprep.subr.bf16.mxu1 %v24096_v45  ;;  %v24174_v45 = vld [vmem:[#allocation15 + $0x5a4] ss:$24 sps:$4 sm:$0xff]  }
 0xc6f   :  { %17077 = vmatprep.subr.bf16.mxu0 %v24099_v37  ;;  %v24177_v37 = vld [vmem:[#allocation15 + $0x3fc] ss:$24 sps:$4 sm:$0xff]  }
 0xc71   :  { %16982 = vmatpush1.bf16.msra.mxu1 %v24094_v18  ;;  %17078 = vmatpush1.bf16.msra.mxu0 %v24097_v60  ;;  %v24172_v18 = vld [vmem:[#allocation15 + $0x5a0] ss:$24 sps:$4 sm:$0xff]  }
 0xc72   :  { %16983 = vmatprep.subr.bf16.mxu1 %v24102_v56  ;;  %17079 = vmatprep.subr.bf16.mxu0 %v24105_v23  ;;  %v24175_v60 = vld [vmem:[#allocation15 + $0x3f8] ss:$24 sps:$4 sm:$0xff]   ;;  %v20707_v56 = vadd.f32 %v25596_v57, %v13338_v30  ;;  %v24180_v23 = vld [vmem:[#allocation15 + $0x5d4] ss:$24 sps:$4 sm:$0xff]  }
 0xc73   :  { %v24189_v57 = vld [vmem:[#allocation15 + $0x48c] ss:$24 sps:$4 sm:$0xff]   ;;  %v24220_v30 = vld [vmem:[#allocation15 + $0x638] ss:$24 sps:$4 sm:$0xff]  }
 0xc75   :  { %16984 = vmatpush1.bf16.msra.mxu1 %v24100_v47  ;;  %17080 = vmatpush1.bf16.msra.mxu0 %v24103_v22  ;;  %v24183_v47 = vld [vmem:[#allocation15 + $0x42c] ss:$24 sps:$4 sm:$0xff]   ;;  %v24178_v22 = vld [vmem:[#allocation15 + $0x5d0] ss:$24 sps:$4 sm:$0xff]  }
 0xc76   :  { %16985 = vmatprep.subr.bf16.mxu1 %v24108_v58  ;;  %17081 = vmatprep.subr.bf16.mxu0 %v24111_v14  ;;  %v24181_v58 = vld [vmem:[#allocation15 + $0x428] ss:$24 sps:$4 sm:$0xff]   ;;  %v15168_v14 = vmax.f32 %v20707_v56, 0.0 }
 0xc77   :  { %v24277_v56 = vld [vmem:[#allocation15 + $0x810] ss:$24 sps:$4 sm:$0xff]  }
 0xc79   :  { %16986 = vmatpush1.bf16.msra.mxu1 %v24106_v36  ;;  %17082 = vmatpush1.bf16.msra.mxu0 %v24109_v8  ;;  %v24186_v36 = vld [vmem:[#allocation15 + $0x45c] ss:$24 sps:$4 sm:$0xff]  }
 0xc7a   :  { %16987 = vmatprep.subr.bf16.mxu1 %v24114_v41  ;;  %17083 = vmatprep.subr.bf16.mxu0 %v24117_v29  ;;  %v24213_v8 = vld [vmem:[#allocation15 + $0x604] ss:$24 sps:$4 sm:$0xff]   ;;  %v24184_v41 = vld [vmem:[#allocation15 + $0x458] ss:$24 sps:$4 sm:$0xff]  }
 0xc7b   :  { %v24211_v29 = vld [vmem:[#allocation15 + $0x600] ss:$24 sps:$4 sm:$0xff]  }
 0xc7d   :  { %16988 = vmatpush1.bf16.msra.mxu1 %v24112_v24  ;;  %17084 = vmatpush1.bf16.msra.mxu0 %v24115_v51  ;;  %v25613_v24 = vpack.c.bf16 %v15168_v14, %v15168_v14  ;;  %v24219_v51 = vld [vmem:[#allocation15 + $0x634] ss:$24 sps:$4 sm:$0xff]  }
 0xc7e   :  { %16989 = vmatprep.subr.bf16.mxu1 %v24120_v54  ;;  %17085 = vmatprep.subr.bf16.mxu0 %v24123_v43  ;;  %v24187_v54 = vld [vmem:[#allocation15 + $0x488] ss:$24 sps:$4 sm:$0xff]   ;;  %v24240_v14 = vld [vmem:[#allocation15 + $0x6cc] ss:$24 sps:$4 sm:$0xff]  }
 0xc7f   :  { %v24217_v43 = vld [vmem:[#allocation15 + $0x630] ss:$24 sps:$4 sm:$0xff]  }
 0xc81   :  { %16990 = vmatpush1.bf16.msra.mxu1 %v24118_v20  ;;  %17086 = vmatpush1.bf16.msra.mxu0 %v24121_v27  ;;  %v24192_v20 = vld [vmem:[#allocation15 + $0x4bc] ss:$24 sps:$4 sm:$0xff]  }
 0xc82   :  { %16991 = vmatprep.subr.bf16.mxu1 %v24126_v7  ;;  %17087 = vmatprep.subr.bf16.mxu0 %v24129_v44  ;;  %v24225_v27 = vld [vmem:[#allocation15 + $0x664] ss:$24 sps:$4 sm:$0xff]   ;;  %v24190_v7 = vld [vmem:[#allocation15 + $0x4b8] ss:$24 sps:$4 sm:$0xff]  }
 0xc83   :  { %v24223_v44 = vld [vmem:[#allocation15 + $0x660] ss:$24 sps:$4 sm:$0xff]  }
 0xc85   :  { %16992 = vmatpush1.bf16.msra.mxu1 %v24124_v46  ;;  %17088 = vmatpush1.bf16.msra.mxu0 %v24127_v40  ;;  %v24195_v46 = vld [vmem:[#allocation15 + $0x4ec] ss:$24 sps:$4 sm:$0xff]  }
 0xc86   :  { %16993 = vmatprep.subr.bf16.mxu1 %v24132_v39  ;;  %17089 = vmatprep.subr.bf16.mxu0 %v24135_v25  ;;  %v24231_v40 = vld [vmem:[#allocation15 + $0x694] ss:$24 sps:$4 sm:$0xff]   ;;  %v24193_v39 = vld [vmem:[#allocation15 + $0x4e8] ss:$24 sps:$4 sm:$0xff]  }
 0xc87   :  { %v24229_v25 = vld [vmem:[#allocation15 + $0x690] ss:$24 sps:$4 sm:$0xff]  }
 0xc89   :  { %16994 = vmatpush1.bf16.msra.mxu1 %v24130_v48  ;;  %17090 = vmatpush1.bf16.msra.mxu0 %v24133_v9  ;;  %v24198_v48 = vld [vmem:[#allocation15 + $0x51c] ss:$24 sps:$4 sm:$0xff]  }
 0xc8a   :  { %16995 = vmatprep.subr.bf16.mxu1 %v24138_v33  ;;  %17091 = vmatprep.subr.bf16.mxu0 %v24141_v49  ;;  %v24237_v9 = vld [vmem:[#allocation15 + $0x6c4] ss:$24 sps:$4 sm:$0xff]   ;;  %v24196_v33 = vld [vmem:[#allocation15 + $0x518] ss:$24 sps:$4 sm:$0xff]  }
 0xc8b   :  { %v24235_v49 = vld [vmem:[#allocation15 + $0x6c0] ss:$24 sps:$4 sm:$0xff]  }
 0xc8d   :  { %16996 = vmatpush1.bf16.msra.mxu1 %v24136_v15  ;;  %17092 = vmatpush1.bf16.msra.mxu0 %v24139_v21  ;;  %v24201_v15 = vld [vmem:[#allocation15 + $0x54c] ss:$24 sps:$4 sm:$0xff]  }
 0xc8e   :  { %16997 = vmatprep.subr.bf16.mxu1 %v24144_v61  ;;  %17102 = vmatprep.subr.bf16.mxu0 %v24147_v42  ;;  %v24243_v21 = vld [vmem:[#allocation15 + $0x6f4] ss:$24 sps:$4 sm:$0xff]   ;;  %v24199_v61 = vld [vmem:[#allocation15 + $0x548] ss:$24 sps:$4 sm:$0xff]  }
 0xc8f   :  { %v24241_v42 = vld [vmem:[#allocation15 + $0x6f0] ss:$24 sps:$4 sm:$0xff]  }
 0xc90   :  { %17094 = vmatmul.mubr.bf16.vlgmr.msra.gmra.mrb[20].mxu0 %v25600_v34 }
 0xc91   :  { %16998 = vmatpush1.bf16.msra.mxu1 %v24142_v52  ;;  %17103 = vmatpush1.bf16.msra.mxu0 %v24145_v2  ;;  %v24204_v52 = vld [vmem:[#allocation15 + $0x57c] ss:$24 sps:$4 sm:$0xff]  }
 0xc92   :  { %17134 = vmatprep.mubr.bf16.mxu0 %v25604_v13  ;;  %16999 = vmatprep.subr.bf16.mxu1 %v24150_v53  ;;  %v24249_v2 = vld [vmem:[#allocation15 + $0x724] ss:$24 sps:$4 sm:$0xff]   ;;  %v24202_v53 = vld [vmem:[#allocation15 + $0x578] ss:$24 sps:$4 sm:$0xff]  }
 0xc93   :  { %17104 = vmatprep.subr.bf16.mxu0 %v24153_v32  ;;  %v24247_v32 = vld [vmem:[#allocation15 + $0x720] ss:$24 sps:$4 sm:$0xff]  }
 0xc95   :  { %17000 = vmatpush1.bf16.msra.mxu1 %v24148_v62  ;;  %17105 = vmatpush1.bf16.msra.mxu0 %v24151_v63  ;;  %v24207_v62 = vld [vmem:[#allocation15 + $0x5ac] ss:$24 sps:$4 sm:$0xff]  }
 0xc96   :  { %17001 = vmatprep.subr.bf16.mxu1 %v24156_v19  ;;  %17106 = vmatprep.subr.bf16.mxu0 %v24159_v28  ;;  %v24255_v63 = vld [vmem:[#allocation15 + $0x754] ss:$24 sps:$4 sm:$0xff]   ;;  %v24205_v19 = vld [vmem:[#allocation15 + $0x5a8] ss:$24 sps:$4 sm:$0xff]  }
 0xc97   :  { %v24253_v28 = vld [vmem:[#allocation15 + $0x750] ss:$24 sps:$4 sm:$0xff]  }
 0xc99   :  { %17002 = vmatpush1.bf16.msra.mxu1 %v24154_v3  ;;  %17107 = vmatpush1.bf16.msra.mxu0 %v24157_v55  ;;  %v24210_v3 = vld [vmem:[#allocation15 + $0x5dc] ss:$24 sps:$4 sm:$0xff]  }
 0xc9a   :  { %17003 = vmatprep.subr.bf16.mxu1 %v24162_v4  ;;  %17108 = vmatprep.subr.bf16.mxu0 %v24165_v59  ;;  %v24261_v55 = vld [vmem:[#allocation15 + $0x784] ss:$24 sps:$4 sm:$0xff]   ;;  %v24208_v4 = vld [vmem:[#allocation15 + $0x5d8] ss:$24 sps:$4 sm:$0xff]  }
 0xc9b   :  { %v24259_v59 = vld [vmem:[#allocation15 + $0x780] ss:$24 sps:$4 sm:$0xff]  }
 0xc9d   :  { %17004 = vmatpush1.bf16.msra.mxu1 %v24160_v0  ;;  %17109 = vmatpush1.bf16.msra.mxu0 %v24163_v26  ;;  %v24216_v0 = vld [vmem:[#allocation15 + $0x60c] ss:$24 sps:$4 sm:$0xff]  }
 0xc9e   :  { %17005 = vmatprep.subr.bf16.mxu1 %v24168_v10  ;;  %17110 = vmatprep.subr.bf16.mxu0 %v24171_v1  ;;  %v24267_v26 = vld [vmem:[#allocation15 + $0x7b4] ss:$24 sps:$4 sm:$0xff]   ;;  %v24214_v10 = vld [vmem:[#allocation15 + $0x608] ss:$24 sps:$4 sm:$0xff]  }
 0xc9f   :  { %v24265_v1 = vld [vmem:[#allocation15 + $0x7b0] ss:$24 sps:$4 sm:$0xff]  }
 0xca1   :  { %17006 = vmatpush1.bf16.msra.mxu1 %v24166_v31  ;;  %17111 = vmatpush1.bf16.msra.mxu0 %v24169_v12  ;;  %v24222_v31 = vld [vmem:[#allocation15 + $0x63c] ss:$24 sps:$4 sm:$0xff]  }
 0xca2   :  { %17007 = vmatprep.subr.bf16.mxu1 %v24174_v45  ;;  %17112 = vmatprep.subr.bf16.mxu0 %v24177_v37  ;;  %v24273_v12 = vld [vmem:[#allocation15 + $0x7e4] ss:$24 sps:$4 sm:$0xff]   ;;  %v24271_v45 = vld [vmem:[#allocation15 + $0x7e0] ss:$24 sps:$4 sm:$0xff]  }
 0xca3   :  { %v24228_v37 = vld [vmem:[#allocation15 + $0x66c] ss:$24 sps:$4 sm:$0xff]  }
 0xca5   :  { %17008 = vmatpush1.bf16.msra.mxu1 %v24172_v18  ;;  %17113 = vmatpush1.bf16.msra.mxu0 %v24175_v60  ;;  %v24279_v18 = vld [vmem:[#allocation15 + $0x814] ss:$24 sps:$4 sm:$0xff]   ;;  %v24226_v60 = vld [vmem:[#allocation15 + $0x668] ss:$24 sps:$4 sm:$0xff]  }
 0xca6   :  { %17009 = vmatprep.subr.bf16.mxu1 %v24180_v23  ;;  %17114 = vmatprep.subr.bf16.mxu0 %v24183_v47  ;;  %v24234_v23 = vld [vmem:[#allocation15 + $0x69c] ss:$24 sps:$4 sm:$0xff]  }
 0xca7   :  { %v24285_v47 = vld [vmem:[#allocation15 + $0x844] ss:$24 sps:$4 sm:$0xff]  }
 0xca9   :  { %17010 = vmatpush1.bf16.msra.mxu1 %v24178_v22  ;;  %17115 = vmatpush1.bf16.msra.mxu0 %v24181_v58  ;;  %v24232_v22 = vld [vmem:[#allocation15 + $0x698] ss:$24 sps:$4 sm:$0xff]  }
 0xcaa   :  { %17116 = vmatprep.subr.bf16.mxu0 %v24186_v36  ;;  %17020 = vmatprep.subr.bf16.mxu1 %v24213_v8  ;;  %v24283_v58 = vld [vmem:[#allocation15 + $0x840] ss:$24 sps:$4 sm:$0xff]   ;;  %v24291_v36 = vld [vmem:[#allocation15 + $0x874] ss:$24 sps:$4 sm:$0xff]  }
 0xcab   :  { %v24238_v8 = vld [vmem:[#allocation15 + $0x6c8] ss:$24 sps:$4 sm:$0xff]  }
 0xcac   :  { %17012 = vmatmul.mubr.bf16.vlgmr.msra.gmra.mrb[32].mxu1 %v25613_v24 }
 0xcad   :  { %17117 = vmatpush1.bf16.msra.mxu0 %v24184_v41  ;;  %17021 = vmatpush1.bf16.msra.mxu1 %v24211_v29  ;;  %v24289_v41 = vld [vmem:[#allocation15 + $0x870] ss:$24 sps:$4 sm:$0xff]   ;;  %v24246_v29 = vld [vmem:[#allocation15 + $0x6fc] ss:$24 sps:$4 sm:$0xff]  }
 0xcae   :  { %17118 = vmatprep.subr.bf16.mxu0 %v24189_v57  ;;  %17022 = vmatprep.subr.bf16.mxu1 %v24219_v51  ;;  %v24297_v57 = vld [vmem:[#allocation15 + $0x8a4] ss:$24 sps:$4 sm:$0xff]   ;;  %v24244_v51 = vld [vmem:[#allocation15 + $0x6f8] ss:$24 sps:$4 sm:$0xff]  }
 0xcb1   :  { %17119 = vmatpush1.bf16.msra.mxu0 %v24187_v54  ;;  %17023 = vmatpush1.bf16.msra.mxu1 %v24217_v43  ;;  %v24295_v54 = vld [vmem:[#allocation15 + $0x8a0] ss:$24 sps:$4 sm:$0xff]   ;;  %v24252_v43 = vld [vmem:[#allocation15 + $0x72c] ss:$24 sps:$4 sm:$0xff]  }
 0xcb2   :  { %17120 = vmatprep.subr.bf16.mxu0 %v24192_v20  ;;  %17024 = vmatprep.subr.bf16.mxu1 %v24225_v27  ;;  %v24303_v20 = vld [vmem:[#allocation15 + $0x8d4] ss:$24 sps:$4 sm:$0xff]   ;;  %v24250_v27 = vld [vmem:[#allocation15 + $0x728] ss:$24 sps:$4 sm:$0xff]  }
 0xcb5   :  { %17121 = vmatpush1.bf16.msra.mxu0 %v24190_v7  ;;  %17025 = vmatpush1.bf16.msra.mxu1 %v24223_v44  ;;  %v24301_v7 = vld [vmem:[#allocation15 + $0x8d0] ss:$24 sps:$4 sm:$0xff]   ;;  %v24258_v44 = vld [vmem:[#allocation15 + $0x75c] ss:$24 sps:$4 sm:$0xff]  }
 0xcb6   :  { %17122 = vmatprep.subr.bf16.mxu0 %v24195_v46  ;;  %17026 = vmatprep.subr.bf16.mxu1 %v24231_v40  ;;  %v24309_v46 = vld [vmem:[#allocation15 + $0x14] ss:$24 sps:$4 sm:$0xff]   ;;  %v24256_v40 = vld [vmem:[#allocation15 + $0x758] ss:$24 sps:$4 sm:$0xff]  }
 0xcb9   :  { %17123 = vmatpush1.bf16.msra.mxu0 %v24193_v39  ;;  %17027 = vmatpush1.bf16.msra.mxu1 %v24229_v25  ;;  %v24264_v39 = vld [vmem:[#allocation15 + $0x78c] ss:$24 sps:$4 sm:$0xff]   ;;  %v24262_v25 = vld [vmem:[#allocation15 + $0x788] ss:$24 sps:$4 sm:$0xff]  }
 0xcba   :  { %17124 = vmatprep.subr.bf16.mxu0 %v24198_v48  ;;  %17028 = vmatprep.subr.bf16.mxu1 %v24237_v9  ;;  %v24270_v48 = vld [vmem:[#allocation15 + $0x7bc] ss:$24 sps:$4 sm:$0xff]   ;;  %v24268_v9 = vld [vmem:[#allocation15 + $0x7b8] ss:$24 sps:$4 sm:$0xff]  }
 0xcbd   :  { %17125 = vmatpush1.bf16.msra.mxu0 %v24196_v33  ;;  %17029 = vmatpush1.bf16.msra.mxu1 %v24235_v49  ;;  %v24276_v33 = vld [vmem:[#allocation15 + $0x7ec] ss:$24 sps:$4 sm:$0xff]   ;;  %v24274_v49 = vld [vmem:[#allocation15 + $0x7e8] ss:$24 sps:$4 sm:$0xff]  }
 0xcbe   :  { %17126 = vmatprep.subr.bf16.mxu0 %v24201_v15  ;;  %17030 = vmatprep.subr.bf16.mxu1 %v24243_v21  ;;  %v24282_v15 = vld [vmem:[#allocation15 + $0x81c] ss:$24 sps:$4 sm:$0xff]   ;;  %v24280_v21 = vld [vmem:[#allocation15 + $0x818] ss:$24 sps:$4 sm:$0xff]  }
 0xcc1   :  { %17127 = vmatpush1.bf16.msra.mxu0 %v24199_v61  ;;  %17031 = vmatpush1.bf16.msra.mxu1 %v24241_v42  ;;  %v24288_v61 = vld [vmem:[#allocation15 + $0x84c] ss:$24 sps:$4 sm:$0xff]   ;;  %v24286_v42 = vld [vmem:[#allocation15 + $0x848] ss:$24 sps:$4 sm:$0xff]  }
 0xcc2   :  { %17128 = vmatprep.subr.bf16.mxu0 %v24204_v52  ;;  %17032 = vmatprep.subr.bf16.mxu1 %v24249_v2  ;;  %v24294_v52 = vld [vmem:[#allocation15 + $0x87c] ss:$24 sps:$4 sm:$0xff]   ;;  %v24292_v2 = vld [vmem:[#allocation15 + $0x878] ss:$24 sps:$4 sm:$0xff]  }
 0xcc5   :  { %17129 = vmatpush1.bf16.msra.mxu0 %v24202_v53  ;;  %17033 = vmatpush1.bf16.msra.mxu1 %v24247_v32  ;;  %v24300_v53 = vld [vmem:[#allocation15 + $0x8ac] ss:$24 sps:$4 sm:$0xff]   ;;  %v24298_v32 = vld [vmem:[#allocation15 + $0x8a8] ss:$24 sps:$4 sm:$0xff]  }
 0xcc6   :  { %17130 = vmatprep.subr.bf16.mxu0 %v24207_v62  ;;  %17034 = vmatprep.subr.bf16.mxu1 %v24255_v63  ;;  %v24306_v62 = vld [vmem:[#allocation15 + $0x8dc] ss:$24 sps:$4 sm:$0xff]   ;;  %v24304_v63 = vld [vmem:[#allocation15 + $0x8d8] ss:$24 sps:$4 sm:$0xff]  }
 0xcc9   :  { %17131 = vmatpush1.bf16.msra.mxu0 %v24205_v19  ;;  %17035 = vmatpush1.bf16.msra.mxu1 %v24253_v28  ;;  %v13346_v19 = vrot.slane %v25588_v50, %v25474_v16  ;;  %v13350_v28 = vrot.slane %v25588_v50, %v25477_v17  ;;  %v24310_v50 = vld [vmem:[#allocation15 + $0x40] ss:$24 sps:$4 sm:$0xff]  }
 0xcca   :  { %17132 = vmatprep.subr.bf16.mxu0 %v24210_v3  ;;  %17036 = vmatprep.subr.bf16.mxu1 %v24261_v55 }
 0xccd   :  { %17133 = vmatpush1.bf16.msra.mxu0 %v24208_v4  ;;  %17037 = vmatpush1.bf16.msra.mxu1 %v24259_v59 }
 0xcce   :  { %17143 = vmatprep.subr.bf16.mxu0 %v24216_v0  ;;  %17038 = vmatprep.subr.bf16.mxu1 %v24267_v26 }
 0xcd0   :  { %17135 = vmatmul.mubr.bf16.vlgmr.msra.gmra.mrb[20].mxu0 %v25613_v24 }
 0xcd1   :  { %17144 = vmatpush1.bf16.msra.mxu0 %v24214_v10  ;;  %17039 = vmatpush1.bf16.msra.mxu1 %v24265_v1 }
 0xcd2   :  { %17145 = vmatprep.subr.bf16.mxu0 %v24222_v31  ;;  %17040 = vmatprep.subr.bf16.mxu1 %v24273_v12  ;;  %v24307_v12 = vld [vmem:[#allocation15 + $0x10] ss:$24 sps:$4 sm:$0xff]  }
 0xcd5   :  { %17146 = vmatpush1.bf16.msra.mxu0 %v24220_v30  ;;  %17041 = vmatpush1.bf16.msra.mxu1 %v24271_v45  ;;  %v24312_v45 = vld [vmem:[#allocation15 + $0x44] ss:$24 sps:$4 sm:$0xff]  }
 0xcd6   :  { %17147 = vmatprep.subr.bf16.mxu0 %v24228_v37  ;;  %17042 = vmatprep.subr.bf16.mxu1 %v24279_v18  ;;  %v24315_v37 = vld [vmem:[#allocation15 + $0x74] ss:$24 sps:$4 sm:$0xff]   ;;  %v24313_v18 = vld [vmem:[#allocation15 + $0x70] ss:$24 sps:$4 sm:$0xff]  }
 0xcd9   :  { %17148 = vmatpush1.bf16.msra.mxu0 %v24226_v60  ;;  %17043 = vmatpush1.bf16.msra.mxu1 %v24277_v56  ;;  %v24318_v60 = vld [vmem:[#allocation15 + $0xa4] ss:$24 sps:$4 sm:$0xff]   ;;  %v24316_v56 = vld [vmem:[#allocation15 + $0xa0] ss:$24 sps:$4 sm:$0xff]  }
 0xcda   :  { %17149 = vmatprep.subr.bf16.mxu0 %v24234_v23  ;;  %17044 = vmatprep.subr.bf16.mxu1 %v24285_v47  ;;  %v24321_v23 = vld [vmem:[#allocation15 + $0xd4] ss:$24 sps:$4 sm:$0xff]   ;;  %v24319_v47 = vld [vmem:[#allocation15 + $0xd0] ss:$24 sps:$4 sm:$0xff]  }
 0xcdd   :  { %17150 = vmatpush1.bf16.msra.mxu0 %v24232_v22  ;;  %17045 = vmatpush1.bf16.msra.mxu1 %v24283_v58  ;;  %v24324_v22 = vld [vmem:[#allocation15 + $0x104] ss:$24 sps:$4 sm:$0xff]   ;;  %v24322_v58 = vld [vmem:[#allocation15 + $0x100] ss:$24 sps:$4 sm:$0xff]  }
 0xcde   :  { %17151 = vmatprep.subr.bf16.mxu0 %v24240_v14  ;;  %17046 = vmatprep.subr.bf16.mxu1 %v24291_v36  ;;  %v24327_v14 = vld [vmem:[#allocation15 + $0x134] ss:$24 sps:$4 sm:$0xff]   ;;  %v24330_v36 = vld [vmem:[#allocation15 + $0x164] ss:$24 sps:$4 sm:$0xff]  }
 0xce1   :  { %17152 = vmatpush1.bf16.msra.mxu0 %v24238_v8  ;;  %17047 = vmatpush1.bf16.msra.mxu1 %v24289_v41  ;;  %v24328_v8 = vld [vmem:[#allocation15 + $0x160] ss:$24 sps:$4 sm:$0xff]   ;;  %v24333_v41 = vld [vmem:[#allocation15 + $0x194] ss:$24 sps:$4 sm:$0xff]  }
 0xce2   :  { %17153 = vmatprep.subr.bf16.mxu0 %v24246_v29  ;;  %17048 = vmatprep.subr.bf16.mxu1 %v24297_v57  ;;  %v24427_v29 = vld [vmem:[#allocation18] ss:$8 sps:$4 sm:$0xff]   ;;  %v24429_v57 = vld [vmem:[#allocation18 + $0x4] ss:$8 sps:$4 sm:$0xff]  }
 0xce5   :  { %17154 = vmatpush1.bf16.msra.mxu0 %v24244_v51  ;;  %17049 = vmatpush1.bf16.msra.mxu1 %v24295_v54  ;;  %v24331_v51 = vld [vmem:[#allocation15 + $0x190] ss:$24 sps:$4 sm:$0xff]   ;;  %v24336_v54 = vld [vmem:[#allocation15 + $0x1c4] ss:$24 sps:$4 sm:$0xff]  }
 0xce6   :  { %17155 = vmatprep.subr.bf16.mxu0 %v24252_v43  ;;  %17050 = vmatprep.subr.bf16.mxu1 %v24303_v20  ;;  %v24433_v43 = vld [vmem:[#allocation18 + $0x10] ss:$8 sps:$4 sm:$0xff]   ;;  %v24435_v20 = vld [vmem:[#allocation18 + $0x14] ss:$8 sps:$4 sm:$0xff]  }
 0xce9   :  { %17156 = vmatpush1.bf16.msra.mxu0 %v24250_v27  ;;  %17051 = vmatpush1.bf16.msra.mxu1 %v24301_v7  ;;  %v24334_v27 = vld [vmem:[#allocation15 + $0x1c0] ss:$24 sps:$4 sm:$0xff]   ;;  %v24339_v7 = vld [vmem:[#allocation15 + $0x1f4] ss:$24 sps:$4 sm:$0xff]  }
 0xcea   :  { %17157 = vmatprep.subr.bf16.mxu0 %v24258_v44  ;;  %17184 = vmatprep.subr.bf16.mxu1 %v24309_v46  ;;  %v24439_v44 = vld [vmem:[#allocation18 + $0x20] ss:$8 sps:$4 sm:$0xff]   ;;  %v24441_v46 = vld [vmem:[#allocation18 + $0x24] ss:$8 sps:$4 sm:$0xff]  }
 0xced   :  { %17158 = vmatpush1.bf16.msra.mxu0 %v24256_v40  ;;  %v24337_v40 = vld [vmem:[#allocation15 + $0x1f0] ss:$24 sps:$4 sm:$0xff]  }
 0xcee   :  { %17159 = vmatprep.subr.bf16.mxu0 %v24264_v39  ;;  %v24342_v39 = vld [vmem:[#allocation15 + $0x224] ss:$24 sps:$4 sm:$0xff]  }
 0xcf1   :  { %17160 = vmatpush1.bf16.msra.mxu0 %v24262_v25  ;;  %v24445_v25 = vld [vmem:[#allocation18 + $0x30] ss:$8 sps:$4 sm:$0xff]  }
 0xcf2   :  { %17161 = vmatprep.subr.bf16.mxu0 %v24270_v48  ;;  %v24447_v48 = vld [vmem:[#allocation18 + $0x34] ss:$8 sps:$4 sm:$0xff]  }
 0xcf5   :  { %17162 = vmatpush1.bf16.msra.mxu0 %v24268_v9  ;;  %v24340_v9 = vld [vmem:[#allocation15 + $0x220] ss:$24 sps:$4 sm:$0xff]  }
 0xcf6   :  { %17163 = vmatprep.subr.bf16.mxu0 %v24276_v33  ;;  %v24345_v33 = vld [vmem:[#allocation15 + $0x254] ss:$24 sps:$4 sm:$0xff]  }
 0xcf9   :  { %17164 = vmatpush1.bf16.msra.mxu0 %v24274_v49  ;;  %v24451_v49 = vld [vmem:[#allocation18 + $0x40] ss:$8 sps:$4 sm:$0xff]  }
 0xcfa   :  { %17165 = vmatprep.subr.bf16.mxu0 %v24282_v15  ;;  %v24453_v15 = vld [vmem:[#allocation18 + $0x44] ss:$8 sps:$4 sm:$0xff]  }
 0xcfd   :  { %17166 = vmatpush1.bf16.msra.mxu0 %v24280_v21  ;;  %v24343_v21 = vld [vmem:[#allocation15 + $0x250] ss:$24 sps:$4 sm:$0xff]  }
 0xcfe   :  { %17167 = vmatprep.subr.bf16.mxu0 %v24288_v61  ;;  %v24348_v61 = vld [vmem:[#allocation15 + $0x284] ss:$24 sps:$4 sm:$0xff]  }
 0xd01   :  { %17168 = vmatpush1.bf16.msra.mxu0 %v24286_v42  ;;  %v24457_v42 = vld [vmem:[#allocation18 + $0x50] ss:$8 sps:$4 sm:$0xff]  }
 0xd02   :  { %17169 = vmatprep.subr.bf16.mxu0 %v24294_v52  ;;  %v24459_v52 = vld [vmem:[#allocation18 + $0x54] ss:$8 sps:$4 sm:$0xff]  }
 0xd05   :  { %17170 = vmatpush1.bf16.msra.mxu0 %v24292_v2  ;;  %v24346_v2 = vld [vmem:[#allocation15 + $0x280] ss:$24 sps:$4 sm:$0xff]  }
 0xd06   :  { %17171 = vmatprep.subr.bf16.mxu0 %v24300_v53  ;;  %v24351_v53 = vld [vmem:[#allocation15 + $0x2b4] ss:$24 sps:$4 sm:$0xff]  }
 0xd09   :  { %17172 = vmatpush1.bf16.msra.mxu0 %v24298_v32  ;;  %v24463_v32 = vld [vmem:[#allocation18 + $0x60] ss:$8 sps:$4 sm:$0xff]  }
 0xd0a   :  { %17173 = vmatprep.subr.bf16.mxu0 %v24306_v62  ;;  %v24465_v62 = vld [vmem:[#allocation18 + $0x64] ss:$8 sps:$4 sm:$0xff]  }
 0xd0d   :  { %17174 = vmatpush1.bf16.msra.mxu0 %v24304_v63  ;;  %v24349_v63 = vld [vmem:[#allocation15 + $0x2b0] ss:$24 sps:$4 sm:$0xff]  }
 0xd0e   :  { %17907 = vmatprep.subr.bf16.mxu0 %v24429_v57  ;;  %v24495_v57 = vld [vmem:[#allocation18 + $0xe4] ss:$8 sps:$4 sm:$0xff]  }
 0xd23   :  { %v15159_v3 = vpop.f32.mrb[16].mxu0 }
 0xd24   :  { %v20709_v55 = vadd.f32 %v15159_v3, %v13346_v19  ;;  %v15161_v4 = vpop.f32.mrb[17].mxu0  ;;  %v24354_v19 = vld [vmem:[#allocation15 + $0x2e4] ss:$24 sps:$4 sm:$0xff]  }
 0xd25   :  { %v20710_v59 = vadd.f32 %v15161_v4, %v13350_v28  ;;  %v15163_v0 = vpop.f32.mrb[18].mxu0  ;;  %v24469_v28 = vld [vmem:[#allocation18 + $0x70] ss:$8 sps:$4 sm:$0xff]   ;;  %v24471_v3 = vld [vmem:[#allocation18 + $0x74] ss:$8 sps:$4 sm:$0xff]  }
 0xd26   :  { %v15170_v26 = vmax.f32 %v20709_v55, 0.0  ;;  %v15164_v10 = vpop.f32.mrb[19].mxu0  ;;  %v24352_v55 = vld [vmem:[#allocation15 + $0x2e0] ss:$24 sps:$4 sm:$0xff]   ;;  %v24357_v4 = vld [vmem:[#allocation15 + $0x314] ss:$24 sps:$4 sm:$0xff]  }
 0xd27   :  { %v15171_v1 = vmax.f32 %v20710_v59, 0.0  ;;  %v24475_v59 = vld [vmem:[#allocation18 + $0x80] ss:$8 sps:$4 sm:$0xff]   ;;  %v24477_v0 = vld [vmem:[#allocation18 + $0x84] ss:$8 sps:$4 sm:$0xff]  }
 0xd28   :  { %v25623_v30 = vpack.c.bf16 %v15170_v26, %v15170_v26  ;;  %v24355_v26 = vld [vmem:[#allocation15 + $0x310] ss:$24 sps:$4 sm:$0xff]   ;;  %v24360_v10 = vld [vmem:[#allocation15 + $0x344] ss:$24 sps:$4 sm:$0xff]  }
 0xd29   :  { %v25621_v31 = vpack.c.bf16 %v15171_v1, %v15171_v1  ;;  %v24480_v1 = vld [vmem:[#allocation18 + $0x94] ss:$8 sps:$4 sm:$0xff]  }
 0xd2b   :  { %17052 = vmatprep.mubr.bf16.mxu1 %v25621_v31  ;;  %17175 = vmatprep.mubr.bf16.mxu0 %v25621_v31 }
 0xd2c   :  { %17053 = vmatmul.mubr.bf16.vlgmr.msra.gmra.mrb[32].mxu1 %v25623_v30  ;;  %17176 = vmatmul.mubr.bf16.vlgmr.msra.gmra.mrb[20].mxu0 %v25623_v30 }
 0xd2d   :  { %17185 = vmatpush1.bf16.msra.mxu1 %v24307_v12  ;;  %17216 = vmatprep.mubr.bf16.mxu1 %v25598_v11  ;;  %v24325_v11 = vld [vmem:[#allocation15 + $0x130] ss:$24 sps:$4 sm:$0xff]   ;;  %v24478_v12 = vld [vmem:[#allocation18 + $0x90] ss:$8 sps:$4 sm:$0xff]  }
 0xd2e   :  { %17186 = vmatprep.subr.bf16.mxu1 %v24312_v45  ;;  %17908 = vmatpush1.bf16.msra.mxu0 %v24427_v29  ;;  %v24483_v45 = vld [vmem:[#allocation18 + $0xa4] ss:$8 sps:$4 sm:$0xff]  }
 0xd2f   :  { %17909 = vmatprep.subr.bf16.mxu0 %v24435_v20  ;;  %v24375_v29 = vld [vmem:[#allocation15 + $0x434] ss:$24 sps:$4 sm:$0xff]   ;;  %v24498_v20 = vld [vmem:[#allocation18 + $0xf4] ss:$8 sps:$4 sm:$0xff]  }
 0xd31   :  { %17187 = vmatpush1.bf16.msra.mxu1 %v24310_v50  ;;  %v24358_v50 = vld [vmem:[#allocation15 + $0x340] ss:$24 sps:$4 sm:$0xff]  }
 0xd32   :  { %17188 = vmatprep.subr.bf16.mxu1 %v24315_v37  ;;  %17910 = vmatpush1.bf16.msra.mxu0 %v24433_v43  ;;  %v24363_v37 = vld [vmem:[#allocation15 + $0x374] ss:$24 sps:$4 sm:$0xff]   ;;  %v24378_v43 = vld [vmem:[#allocation15 + $0x464] ss:$24 sps:$4 sm:$0xff]  }
 0xd33   :  { %17911 = vmatprep.subr.bf16.mxu0 %v24441_v46  ;;  %v24501_v46 = vld [vmem:[#allocation18 + $0x104] ss:$8 sps:$4 sm:$0xff]  }
 0xd35   :  { %17189 = vmatpush1.bf16.msra.mxu1 %v24313_v18  ;;  %v24481_v18 = vld [vmem:[#allocation18 + $0xa0] ss:$8 sps:$4 sm:$0xff]  }
 0xd36   :  { %17190 = vmatprep.subr.bf16.mxu1 %v24318_v60  ;;  %17912 = vmatpush1.bf16.msra.mxu0 %v24439_v44  ;;  %v24486_v60 = vld [vmem:[#allocation18 + $0xb4] ss:$8 sps:$4 sm:$0xff]   ;;  %v24381_v44 = vld [vmem:[#allocation15 + $0x494] ss:$24 sps:$4 sm:$0xff]  }
 0xd37   :  { %17913 = vmatprep.subr.bf16.mxu0 %v24447_v48  ;;  %v24387_v48 = vld [vmem:[#allocation15 + $0x4f4] ss:$24 sps:$4 sm:$0xff]  }
 0xd39   :  { %17191 = vmatpush1.bf16.msra.mxu1 %v24316_v56  ;;  %v24361_v56 = vld [vmem:[#allocation15 + $0x370] ss:$24 sps:$4 sm:$0xff]  }
 0xd3a   :  { %17192 = vmatprep.subr.bf16.mxu1 %v24321_v23  ;;  %17914 = vmatpush1.bf16.msra.mxu0 %v24445_v25  ;;  %v24366_v23 = vld [vmem:[#allocation15 + $0x3a4] ss:$24 sps:$4 sm:$0xff]   ;;  %v24382_v25 = vld [vmem:[#allocation15 + $0x4c0] ss:$24 sps:$4 sm:$0xff]  }
 0xd3b   :  { %17915 = vmatprep.subr.bf16.mxu0 %v24453_v15  ;;  %v24393_v15 = vld [vmem:[#allocation15 + $0x554] ss:$24 sps:$4 sm:$0xff]  }
 0xd3d   :  { %17193 = vmatpush1.bf16.msra.mxu1 %v24319_v47  ;;  %v24484_v47 = vld [vmem:[#allocation18 + $0xb0] ss:$8 sps:$4 sm:$0xff]  }
 0xd3e   :  { %17194 = vmatprep.subr.bf16.mxu1 %v24324_v22  ;;  %17916 = vmatpush1.bf16.msra.mxu0 %v24451_v49  ;;  %v24364_v22 = vld [vmem:[#allocation15 + $0x3a0] ss:$24 sps:$4 sm:$0xff]  }
 0xd3f   :  { %17917 = vmatprep.subr.bf16.mxu0 %v24459_v52  ;;  %v24388_v49 = vld [vmem:[#allocation15 + $0x520] ss:$24 sps:$4 sm:$0xff]   ;;  %v24399_v52 = vld [vmem:[#allocation15 + $0x5b4] ss:$24 sps:$4 sm:$0xff]  }
 0xd41   :  { %17195 = vmatpush1.bf16.msra.mxu1 %v24322_v58  ;;  %v24369_v58 = vld [vmem:[#allocation15 + $0x3d4] ss:$24 sps:$4 sm:$0xff]  }
 0xd42   :  { %17196 = vmatprep.subr.bf16.mxu1 %v24327_v14  ;;  %17918 = vmatpush1.bf16.msra.mxu0 %v24457_v42  ;;  %v24492_v14 = vld [vmem:[#allocation18 + $0xd4] ss:$8 sps:$4 sm:$0xff]  }
 0xd43   :  { %17919 = vmatprep.subr.bf16.mxu0 %v24465_v62  ;;  %v24394_v42 = vld [vmem:[#allocation15 + $0x580] ss:$24 sps:$4 sm:$0xff]   ;;  %v24405_v62 = vld [vmem:[#allocation15 + $0x614] ss:$24 sps:$4 sm:$0xff]  }
 0xd45   :  { %17197 = vmatpush1.bf16.msra.mxu1 %v24325_v11  ;;  %v24367_v11 = vld [vmem:[#allocation15 + $0x3d0] ss:$24 sps:$4 sm:$0xff]  }
 0xd46   :  { %17198 = vmatprep.subr.bf16.mxu1 %v24330_v36  ;;  %17920 = vmatpush1.bf16.msra.mxu0 %v24463_v32  ;;  %v24372_v36 = vld [vmem:[#allocation15 + $0x404] ss:$24 sps:$4 sm:$0xff]   ;;  %v24400_v32 = vld [vmem:[#allocation15 + $0x5e0] ss:$24 sps:$4 sm:$0xff]  }
 0xd47   :  { %17921 = vmatprep.subr.bf16.mxu0 %v24471_v3  ;;  %v24411_v3 = vld [vmem:[#allocation15 + $0x674] ss:$24 sps:$4 sm:$0xff]  }
 0xd49   :  { %17199 = vmatpush1.bf16.msra.mxu1 %v24328_v8  ;;  %v24490_v8 = vld [vmem:[#allocation18 + $0xd0] ss:$8 sps:$4 sm:$0xff]  }
 0xd4a   :  { %17200 = vmatprep.subr.bf16.mxu1 %v24333_v41  ;;  %17922 = vmatpush1.bf16.msra.mxu0 %v24469_v28  ;;  %v24370_v41 = vld [vmem:[#allocation15 + $0x400] ss:$24 sps:$4 sm:$0xff]  }
 0xd4b   :  { %17923 = vmatprep.subr.bf16.mxu0 %v24477_v0  ;;  %v24406_v28 = vld [vmem:[#allocation15 + $0x640] ss:$24 sps:$4 sm:$0xff]   ;;  %v24417_v0 = vld [vmem:[#allocation15 + $0x6d4] ss:$24 sps:$4 sm:$0xff]  }
 0xd4d   :  { %17201 = vmatpush1.bf16.msra.mxu1 %v24331_v51  ;;  %v24493_v51 = vld [vmem:[#allocation18 + $0xe0] ss:$8 sps:$4 sm:$0xff]  }
 0xd4e   :  { %17202 = vmatprep.subr.bf16.mxu1 %v24336_v54  ;;  %17924 = vmatpush1.bf16.msra.mxu0 %v24475_v59  ;;  %v24373_v54 = vld [vmem:[#allocation15 + $0x430] ss:$24 sps:$4 sm:$0xff]   ;;  %v24412_v59 = vld [vmem:[#allocation15 + $0x6a0] ss:$24 sps:$4 sm:$0xff]  }
 0xd4f   :  { %17925 = vmatprep.subr.bf16.mxu0 %v24480_v1  ;;  %v24423_v1 = vld [vmem:[#allocation15 + $0x734] ss:$24 sps:$4 sm:$0xff]  }
 0xd51   :  { %17203 = vmatpush1.bf16.msra.mxu1 %v24334_v27  ;;  %v24496_v27 = vld [vmem:[#allocation18 + $0xf0] ss:$8 sps:$4 sm:$0xff]  }
 0xd52   :  { %17204 = vmatprep.subr.bf16.mxu1 %v24339_v7  ;;  %17926 = vmatpush1.bf16.msra.mxu0 %v24478_v12  ;;  %v24376_v7 = vld [vmem:[#allocation15 + $0x460] ss:$24 sps:$4 sm:$0xff]   ;;  %v24426_v12 = vld [vmem:[#allocation15 + $0x764] ss:$24 sps:$4 sm:$0xff]  }
 0xd53   :  { %17927 = vmatprep.subr.bf16.mxu0 %v24483_v45  ;;  %v24424_v45 = vld [vmem:[#allocation15 + $0x760] ss:$24 sps:$4 sm:$0xff]  }
 0xd55   :  { %17205 = vmatpush1.bf16.msra.mxu1 %v24337_v40  ;;  %v24379_v40 = vld [vmem:[#allocation15 + $0x490] ss:$24 sps:$4 sm:$0xff]  }
 0xd56   :  { %17206 = vmatprep.subr.bf16.mxu1 %v24342_v39  ;;  %17928 = vmatpush1.bf16.msra.mxu0 %v24481_v18  ;;  %v24384_v39 = vld [vmem:[#allocation15 + $0x4c4] ss:$24 sps:$4 sm:$0xff]  }
 0xd57   :  { %17929 = vmatprep.subr.bf16.mxu0 %v24486_v60  ;;  %v24438_v18 = vld [vmem:[#allocation15 + $0x7c4] ss:$24 sps:$4 sm:$0xff]   ;;  %v24436_v60 = vld [vmem:[#allocation15 + $0x7c0] ss:$24 sps:$4 sm:$0xff]  }
 0xd59   :  { %17207 = vmatpush1.bf16.msra.mxu1 %v24340_v9  ;;  %v24385_v9 = vld [vmem:[#allocation15 + $0x4f0] ss:$24 sps:$4 sm:$0xff]  }
 0xd5a   :  { %17208 = vmatprep.subr.bf16.mxu1 %v24345_v33  ;;  %17930 = vmatpush1.bf16.msra.mxu0 %v24484_v47  ;;  %v24390_v33 = vld [vmem:[#allocation15 + $0x524] ss:$24 sps:$4 sm:$0xff]  }
 0xd5b   :  { %v24450_v47 = vld [vmem:[#allocation15 + $0x824] ss:$24 sps:$4 sm:$0xff]  }
 0xd5d   :  { %17209 = vmatpush1.bf16.msra.mxu1 %v24343_v21  ;;  %v24391_v21 = vld [vmem:[#allocation15 + $0x550] ss:$24 sps:$4 sm:$0xff]  }
 0xd5e   :  { %17210 = vmatprep.subr.bf16.mxu1 %v24348_v61  ;;  %v24396_v61 = vld [vmem:[#allocation15 + $0x584] ss:$24 sps:$4 sm:$0xff]  }
 0xd61   :  { %17211 = vmatpush1.bf16.msra.mxu1 %v24346_v2  ;;  %v24397_v2 = vld [vmem:[#allocation15 + $0x5b0] ss:$24 sps:$4 sm:$0xff]  }
 0xd62   :  { %17212 = vmatprep.subr.bf16.mxu1 %v24351_v53  ;;  %v24402_v53 = vld [vmem:[#allocation15 + $0x5e4] ss:$24 sps:$4 sm:$0xff]  }
 0xd65   :  { %17213 = vmatpush1.bf16.msra.mxu1 %v24349_v63  ;;  %v24403_v63 = vld [vmem:[#allocation15 + $0x610] ss:$24 sps:$4 sm:$0xff]  }
 0xd66   :  { %17214 = vmatprep.subr.bf16.mxu1 %v24354_v19  ;;  %v24408_v19 = vld [vmem:[#allocation15 + $0x644] ss:$24 sps:$4 sm:$0xff]  }
 0xd69   :  { %17215 = vmatpush1.bf16.msra.mxu1 %v24352_v55  ;;  %v24409_v55 = vld [vmem:[#allocation15 + $0x670] ss:$24 sps:$4 sm:$0xff]  }
 0xd6a   :  { %17225 = vmatprep.subr.bf16.mxu1 %v24357_v4  ;;  %v24414_v4 = vld [vmem:[#allocation15 + $0x6a4] ss:$24 sps:$4 sm:$0xff]  }
 0xd6c   :  { %17217 = vmatmul.mubr.bf16.vlgmr.msra.gmra.mrb[36].mxu1 %v25600_v34  ;;  %v24489_v34 = vld [vmem:[#allocation18 + $0xc4] ss:$8 sps:$4 sm:$0xff]  }
 0xd6d   :  { %17226 = vmatpush1.bf16.msra.mxu1 %v24355_v26  ;;  %17257 = vmatprep.mubr.bf16.mxu1 %v25604_v13  ;;  %v24487_v13 = vld [vmem:[#allocation18 + $0xc0] ss:$8 sps:$4 sm:$0xff]  }
 0xd6e   :  { %17227 = vmatprep.subr.bf16.mxu1 %v24360_v10  ;;  %17931 = vmatprep.subr.bf16.mxu0 %v24489_v34  ;;  %v24415_v26 = vld [vmem:[#allocation15 + $0x6d0] ss:$24 sps:$4 sm:$0xff]   ;;  %v24420_v10 = vld [vmem:[#allocation15 + $0x704] ss:$24 sps:$4 sm:$0xff]   ;;  %v24448_v34 = vld [vmem:[#allocation15 + $0x820] ss:$24 sps:$4 sm:$0xff]  }
 0xd6f   :  { %17932 = vmatpush1.bf16.msra.mxu0 %v24487_v13  ;;  %v24462_v13 = vld [vmem:[#allocation15 + $0x884] ss:$24 sps:$4 sm:$0xff]  }
 0xd70   :  { %17933 = vmatprep.subr.bf16.mxu0 %v24492_v14  ;;  %v24460_v14 = vld [vmem:[#allocation15 + $0x880] ss:$24 sps:$4 sm:$0xff]  }
 0xd71   :  { %17228 = vmatpush1.bf16.msra.mxu1 %v24358_v50  ;;  %v24432_v50 = vld [vmem:[#allocation15 + $0x794] ss:$24 sps:$4 sm:$0xff]  }
 0xd72   :  { %17229 = vmatprep.subr.bf16.mxu1 %v24363_v37  ;;  %v24430_v37 = vld [vmem:[#allocation15 + $0x790] ss:$24 sps:$4 sm:$0xff]  }
 0xd73   :  { %17934 = vmatpush1.bf16.msra.mxu0 %v24490_v8  ;;  %v24474_v8 = vld [vmem:[#allocation15 + $0x8e4] ss:$24 sps:$4 sm:$0xff]  }
 0xd74   :  { %17935 = vmatprep.subr.bf16.mxu0 %v24495_v57 }
 0xd75   :  { %17230 = vmatpush1.bf16.msra.mxu1 %v24361_v56  ;;  %v24444_v56 = vld [vmem:[#allocation15 + $0x7f4] ss:$24 sps:$4 sm:$0xff]  }
 0xd76   :  { %17231 = vmatprep.subr.bf16.mxu1 %v24366_v23  ;;  %v24442_v23 = vld [vmem:[#allocation15 + $0x7f0] ss:$24 sps:$4 sm:$0xff]  }
 0xd77   :  { %17936 = vmatpush1.bf16.msra.mxu0 %v24493_v51 }
 0xd78   :  { %17937 = vmatprep.subr.bf16.mxu0 %v24498_v20 }
 0xd79   :  { %17232 = vmatpush1.bf16.msra.mxu1 %v24364_v22  ;;  %v24456_v22 = vld [vmem:[#allocation15 + $0x854] ss:$24 sps:$4 sm:$0xff]  }
 0xd7a   :  { %17233 = vmatprep.subr.bf16.mxu1 %v24369_v58  ;;  %v24454_v58 = vld [vmem:[#allocation15 + $0x850] ss:$24 sps:$4 sm:$0xff]  }
 0xd7b   :  { %17938 = vmatpush1.bf16.msra.mxu0 %v24496_v27 }
 0xd7c   :  { %17948 = vmatprep.subr.bf16.mxu0 %v24501_v46 }
 0xd7d   :  { %17234 = vmatpush1.bf16.msra.mxu1 %v24367_v11  ;;  %v24468_v11 = vld [vmem:[#allocation15 + $0x8b4] ss:$24 sps:$4 sm:$0xff]  }
 0xd7e   :  { %17235 = vmatprep.subr.bf16.mxu1 %v24372_v36  ;;  %v24466_v36 = vld [vmem:[#allocation15 + $0x8b0] ss:$24 sps:$4 sm:$0xff]  }
 0xd81   :  { %17236 = vmatpush1.bf16.msra.mxu1 %v24370_v41  ;;  %v24472_v41 = vld [vmem:[#allocation15 + $0x8e0] ss:$24 sps:$4 sm:$0xff]  }
 0xd82   :  { %17237 = vmatprep.subr.bf16.mxu1 %v24375_v29  ;;  %v25635_v29 = vld [vmem:[#allocation16] sm:$0x3f] }
 0xd83   :  { %v15471_v57 = vrot.slane %v25635_v29, %v25427_v6  ;;  %v15475_v51 = vrot.slane %v25635_v29, %v25430_v35 }
 0xd85   :  { %17238 = vmatpush1.bf16.msra.mxu1 %v24373_v54  ;;  %v15483_v54 = vrot.slane %v25635_v29, %v25450_v38 }
 0xd86   :  { %17239 = vmatprep.subr.bf16.mxu1 %v24378_v43 }
 0xd89   :  { %17240 = vmatpush1.bf16.msra.mxu1 %v24376_v7 }
 0xd8a   :  { %17241 = vmatprep.subr.bf16.mxu1 %v24381_v44 }
 0xd8d   :  { %17242 = vmatpush1.bf16.msra.mxu1 %v24379_v40 }
 0xd8e   :  { %17243 = vmatprep.subr.bf16.mxu1 %v24384_v39 }
 0xd91   :  { %17244 = vmatpush1.bf16.msra.mxu1 %v24382_v25 }
 0xd92   :  { %17245 = vmatprep.subr.bf16.mxu1 %v24387_v48 }
 0xd95   :  { %17246 = vmatpush1.bf16.msra.mxu1 %v24385_v9 }
 0xd96   :  { %17247 = vmatprep.subr.bf16.mxu1 %v24390_v33 }
 0xd99   :  { %17248 = vmatpush1.bf16.msra.mxu1 %v24388_v49 }
 0xd9a   :  { %17249 = vmatprep.subr.bf16.mxu1 %v24393_v15 }
 0xd9d   :  { %17250 = vmatpush1.bf16.msra.mxu1 %v24391_v21  ;;  %v24499_v21 = vld [vmem:[#allocation18 + $0x100] ss:$8 sps:$4 sm:$0xff]  }
 0xd9e   :  { %17251 = vmatprep.subr.bf16.mxu1 %v24396_v61 }
 0xda1   :  { %17252 = vmatpush1.bf16.msra.mxu1 %v24394_v42  ;;  %v24504_v42 = vld [vmem:[#allocation18 + $0x114] ss:$8 sps:$4 sm:$0xff]  }
 0xda2   :  { %17253 = vmatprep.subr.bf16.mxu1 %v24399_v52  ;;  %v24502_v52 = vld [vmem:[#allocation18 + $0x110] ss:$8 sps:$4 sm:$0xff]  }
 0xda5   :  { %17254 = vmatpush1.bf16.msra.mxu1 %v24397_v2  ;;  %v24507_v2 = vld [vmem:[#allocation18 + $0x124] ss:$8 sps:$4 sm:$0xff]  }
 0xda6   :  { %17255 = vmatprep.subr.bf16.mxu1 %v24402_v53  ;;  %v24505_v53 = vld [vmem:[#allocation18 + $0x120] ss:$8 sps:$4 sm:$0xff]  }
 0xda9   :  { %17256 = vmatpush1.bf16.msra.mxu1 %v24400_v32  ;;  %v24510_v32 = vld [vmem:[#allocation18 + $0x134] ss:$8 sps:$4 sm:$0xff]  }
 0xdaa   :  { %17266 = vmatprep.subr.bf16.mxu1 %v24405_v62  ;;  %v24508_v62 = vld [vmem:[#allocation18 + $0x130] ss:$8 sps:$4 sm:$0xff]  }
 0xdac   :  { %17258 = vmatmul.mubr.bf16.vlgmr.msra.gmra.mrb[36].mxu1 %v25613_v24  ;;  %v24418_v24 = vld [vmem:[#allocation15 + $0x700] ss:$24 sps:$4 sm:$0xff]  }
 0xdad   :  { %17267 = vmatpush1.bf16.msra.mxu1 %v24403_v63  ;;  %17298 = vmatprep.mubr.bf16.mxu1 %v25621_v31  ;;  %v24421_v31 = vld [vmem:[#allocation15 + $0x730] ss:$24 sps:$4 sm:$0xff]  }
 0xdae   :  { %17268 = vmatprep.subr.bf16.mxu1 %v24408_v19  ;;  %v24513_v63 = vld [vmem:[#allocation18 + $0x144] ss:$8 sps:$4 sm:$0xff]   ;;  %v24511_v19 = vld [vmem:[#allocation18 + $0x140] ss:$8 sps:$4 sm:$0xff]  }
 0xdb1   :  { %17269 = vmatpush1.bf16.msra.mxu1 %v24406_v28  ;;  %v24516_v28 = vld [vmem:[#allocation18 + $0x154] ss:$8 sps:$4 sm:$0xff]  }
 0xdb2   :  { %17270 = vmatprep.subr.bf16.mxu1 %v24411_v3  ;;  %v24514_v3 = vld [vmem:[#allocation18 + $0x150] ss:$8 sps:$4 sm:$0xff]  }
 0xdb5   :  { %17271 = vmatpush1.bf16.msra.mxu1 %v24409_v55  ;;  %v24519_v55 = vld [vmem:[#allocation18 + $0x164] ss:$8 sps:$4 sm:$0xff]  }
 0xdb6   :  { %17272 = vmatprep.subr.bf16.mxu1 %v24414_v4  ;;  %v24517_v4 = vld [vmem:[#allocation18 + $0x160] ss:$8 sps:$4 sm:$0xff]  }
 0xdb9   :  { %17273 = vmatpush1.bf16.msra.mxu1 %v24412_v59  ;;  %v24522_v59 = vld [vmem:[#allocation18 + $0x174] ss:$8 sps:$4 sm:$0xff]  }
 0xdba   :  { %17274 = vmatprep.subr.bf16.mxu1 %v24417_v0  ;;  %v24520_v0 = vld [vmem:[#allocation18 + $0x170] ss:$8 sps:$4 sm:$0xff]  }
 0xdbd   :  { %17275 = vmatpush1.bf16.msra.mxu1 %v24415_v26  ;;  %v24525_v26 = vld [vmem:[#allocation18 + $0x184] ss:$8 sps:$4 sm:$0xff]  }
 0xdbe   :  { %17276 = vmatprep.subr.bf16.mxu1 %v24420_v10  ;;  %v24523_v10 = vld [vmem:[#allocation18 + $0x180] ss:$8 sps:$4 sm:$0xff]  }
 0xdc1   :  { %17277 = vmatpush1.bf16.msra.mxu1 %v24418_v24  ;;  %v24528_v24 = vld [vmem:[#allocation18 + $0x194] ss:$8 sps:$4 sm:$0xff]  }
 0xdc2   :  { %17278 = vmatprep.subr.bf16.mxu1 %v24423_v1  ;;  %v24526_v1 = vld [vmem:[#allocation18 + $0x190] ss:$8 sps:$4 sm:$0xff]  }
 0xdc5   :  { %17279 = vmatpush1.bf16.msra.mxu1 %v24421_v31  ;;  %v24531_v31 = vld [vmem:[#allocation18 + $0x1a4] ss:$8 sps:$4 sm:$0xff]  }
 0xdc6   :  { %17280 = vmatprep.subr.bf16.mxu1 %v24426_v12  ;;  %v24529_v12 = vld [vmem:[#allocation18 + $0x1a0] ss:$8 sps:$4 sm:$0xff]  }
 0xdc9   :  { %17281 = vmatpush1.bf16.msra.mxu1 %v24424_v45  ;;  %v24534_v45 = vld [vmem:[#allocation18 + $0x1b4] ss:$8 sps:$4 sm:$0xff]  }
 0xdca   :  { %17282 = vmatprep.subr.bf16.mxu1 %v24432_v50  ;;  %v24532_v50 = vld [vmem:[#allocation18 + $0x1b0] ss:$8 sps:$4 sm:$0xff]  }
 0xdcd   :  { %17283 = vmatpush1.bf16.msra.mxu1 %v24430_v37  ;;  %v24537_v37 = vld [vmem:[#allocation18 + $0x1c4] ss:$8 sps:$4 sm:$0xff]  }
 0xdce   :  { %17284 = vmatprep.subr.bf16.mxu1 %v24438_v18  ;;  %v24535_v18 = vld [vmem:[#allocation18 + $0x1c0] ss:$8 sps:$4 sm:$0xff]  }
 0xdd1   :  { %17285 = vmatpush1.bf16.msra.mxu1 %v24436_v60  ;;  %v24540_v60 = vld [vmem:[#allocation18 + $0x1d4] ss:$8 sps:$4 sm:$0xff]  }
 0xdd2   :  { %17286 = vmatprep.subr.bf16.mxu1 %v24444_v56  ;;  %v24538_v56 = vld [vmem:[#allocation18 + $0x1d0] ss:$8 sps:$4 sm:$0xff]  }
 0xdd5   :  { %17287 = vmatpush1.bf16.msra.mxu1 %v24442_v23  ;;  %v15479_v23 = vrot.slane %v25635_v29, %v25447_v5  ;;  %v24595_v5 = vld [vmem:[#allocation21 + $0x40] sm:$0xff]  }
 0xdd6   :  { %17288 = vmatprep.subr.bf16.mxu1 %v24450_v47  ;;  %v24543_v47 = vld [vmem:[#allocation18 + $0x1e4] ss:$8 sps:$4 sm:$0xff]  }
 0xdd9   :  { %17289 = vmatpush1.bf16.msra.mxu1 %v24448_v34  ;;  %v24541_v34 = vld [vmem:[#allocation18 + $0x1e0] ss:$8 sps:$4 sm:$0xff]  }
 0xdda   :  { %17290 = vmatprep.subr.bf16.mxu1 %v24456_v22 }
 0xddd   :  { %17291 = vmatpush1.bf16.msra.mxu1 %v24454_v58  ;;  %v24546_v58 = vld [vmem:[#allocation18 + $0x1f4] ss:$8 sps:$4 sm:$0xff]  }
 0xdde   :  { %17292 = vmatprep.subr.bf16.mxu1 %v24462_v13  ;;  %v24544_v13 = vld [vmem:[#allocation18 + $0x1f0] ss:$8 sps:$4 sm:$0xff]  }
 0xde1   :  { %17293 = vmatpush1.bf16.msra.mxu1 %v24460_v14 }
 0xde2   :  { %17294 = vmatprep.subr.bf16.mxu1 %v24468_v11  ;;  %v24549_v11 = vld [vmem:[#allocation18 + $0x204] ss:$8 sps:$4 sm:$0xff]  }
 0xde5   :  { %17295 = vmatpush1.bf16.msra.mxu1 %v24466_v36  ;;  %v24547_v36 = vld [vmem:[#allocation18 + $0x200] ss:$8 sps:$4 sm:$0xff]  }
 0xde6   :  { %17296 = vmatprep.subr.bf16.mxu1 %v24474_v8 }
 0xde9   :  { %17297 = vmatpush1.bf16.msra.mxu1 %v24472_v41  ;;  %v24552_v41 = vld [vmem:[#allocation18 + $0x214] ss:$8 sps:$4 sm:$0xff]  }
 0xdea   :  { %20663 = vmatprep.subr.bf16.mxu1 %v24595_v5 }
 0xdec   :  { %17299 = vmatmul.mubr.bf16.vlgmr.msra.gmra.mrb[36].mxu1 %v25623_v30 }
 0xdff   :  { %v17054_v43 = vpop.f32.mrb[32].mxu1  ;;  %v25643_v20 = vpop.f32.mrb[20].mxu0 }
 0xe00   :  { %v20711_v27 = vadd.f32 %v17054_v43, %v15471_v57  ;;  %v17056_v7 = vpop.f32.mrb[33].mxu1  ;;  %v17179_v44 = vpop.f32.mrb[21].mxu0  ;;  %v20713_v22 = vadd.f32 %v25643_v20, %v15479_v23  ;;  %v24596_v57 = vld [vmem:[#allocation21] sm:$0xff]   ;;  %v24598_v20 = vld [vmem:[#allocation21 + $0x8] sm:$0xff]  }
 0xe01   :  { %v20712_v46 = vadd.f32 %v17056_v7, %v15475_v51  ;;  %v20714_v40 = vadd.f32 %v17179_v44, %v15483_v54  ;;  %v17058_v30 = vpop.f32.mrb[34].mxu1  ;;  %v17181_v39 = vpop.f32.mrb[22].mxu0  ;;  %v24597_v51 = vld [vmem:[#allocation21 + $0x48] sm:$0xff]   ;;  %20664 = vmatpush3.bf16.msra.mxu1 %v24596_v57  ;;  %v24558_v44 = vld [vmem:[#allocation18 + $0x234] ss:$8 sps:$4 sm:$0xff]  }
 0xe02   :  { %v17307_v25 = vmax.f32 %v20711_v27, 0.0  ;;  %v17059_v48 = vpop.f32.mrb[35].mxu1  ;;  %v17182_v9 = vpop.f32.mrb[23].mxu0  ;;  %v17309_v14 = vmax.f32 %v20713_v22, 0.0  ;;  %v24550_v54 = vld [vmem:[#allocation18 + $0x210] ss:$8 sps:$4 sm:$0xff]   ;;  %20665 = vmatprep.subr.bf16.mxu1 %v24597_v51 }
 0xe03   :  { %v17308_v33 = vmax.f32 %v20712_v46, 0.0  ;;  %v17310_v49 = vmax.f32 %v20714_v40, 0.0  ;;  %v24555_v43 = vld [vmem:[#allocation18 + $0x224] ss:$8 sps:$4 sm:$0xff]   ;;  %v24599_v27 = vld [vmem:[#allocation21 + $0x50] sm:$0xff]   ;;  %v24601_v40 = vld [vmem:[#allocation21 + $0x58] sm:$0xff]  }
 0xe04   :  { %v17313_v61 = vpack.c.bf16 %v17307_v25, %v17307_v25  ;;  %v17315_v8 = vpack.c.bf16 %v17309_v14, %v17309_v14  ;;  %v24553_v7 = vld [vmem:[#allocation18 + $0x220] ss:$8 sps:$4 sm:$0xff]   ;;  %v24600_v46 = vld [vmem:[#allocation21 + $0x10] sm:$0xff]   ;;  %v24561_v39 = vld [vmem:[#allocation18 + $0x244] ss:$8 sps:$4 sm:$0xff]  }
 0xe05   :  { %v17314_v15 = vpack.c.bf16 %v17308_v33, %v17308_v33  ;;  %v17316_v38 = vpack.c.bf16 %v17310_v49, %v17310_v49  ;;  %20666 = vmatpush3.bf16.msra.mxu1 %v24598_v20  ;;  %v24556_v30 = vld [vmem:[#allocation18 + $0x230] ss:$8 sps:$4 sm:$0xff]   ;;  %v24603_v48 = vld [vmem:[#allocation21 + $0x60] sm:$0xff]   ;;  %v24564_v33 = vld [vmem:[#allocation18 + $0x254] ss:$8 sps:$4 sm:$0xff]  }
 0xe06   :  { %20667 = vmatprep.subr.bf16.mxu1 %v24599_v27  ;;  %v24602_v25 = vld [vmem:[#allocation21 + $0x18] sm:$0xff]   ;;  %v24604_v49 = vld [vmem:[#allocation21 + $0x20] sm:$0xff]   ;;  %v24608_v14 = vld [vmem:[#allocation21 + $0x30] sm:$0xff]  }
 0xe07   :  { %17939 = vmatprep.mubr.bf16.mxu0 %v17314_v15  ;;  %v24559_v9 = vld [vmem:[#allocation18 + $0x240] ss:$8 sps:$4 sm:$0xff]  }
 0xe08   :  { %17940 = vmatmul.mubr.bf16.vlgmr.msra.gmra.mrb[24].mxu0 %v17313_v61  ;;  %v24605_v15 = vld [vmem:[#allocation21 + $0x68] sm:$0xff]  }
 0xe09   :  { %17949 = vmatpush1.bf16.msra.mxu0 %v24499_v21  ;;  %17980 = vmatprep.mubr.bf16.mxu0 %v17316_v38  ;;  %v24562_v21 = vld [vmem:[#allocation18 + $0x250] ss:$8 sps:$4 sm:$0xff]   ;;  %v24567_v61 = vld [vmem:[#allocation18 + $0x264] ss:$8 sps:$4 sm:$0xff]   ;;  %v24565_v38 = vld [vmem:[#allocation18 + $0x260] ss:$8 sps:$4 sm:$0xff]  }
 0xe0a   :  { %17950 = vmatprep.subr.bf16.mxu0 %v24504_v42  ;;  %20668 = vmatpush3.bf16.msra.mxu1 %v24600_v46  ;;  %v24606_v42 = vld [vmem:[#allocation21 + $0x28] sm:$0xff]   ;;  %v20646_v46 = vld [vmem:[#allocation22] ss:$0 sm:$0xff] }
 0xe0b   :  { %20669 = vmatprep.subr.bf16.mxu1 %v24601_v40 }
 0xe0d   :  { %17951 = vmatpush1.bf16.msra.mxu0 %v24502_v52  ;;  %v24570_v52 = vld [vmem:[#allocation18 + $0x274] ss:$8 sps:$4 sm:$0xff]  }
 0xe0e   :  { %17952 = vmatprep.subr.bf16.mxu0 %v24507_v2  ;;  %20670 = vmatpush3.bf16.msra.mxu1 %v24602_v25  ;;  %v24568_v2 = vld [vmem:[#allocation18 + $0x270] ss:$8 sps:$4 sm:$0xff]  }
 0xe0f   :  { %20671 = vmatprep.subr.bf16.mxu1 %v24603_v48 }
 0xe11   :  { %17953 = vmatpush1.bf16.msra.mxu0 %v24505_v53  ;;  %v24573_v53 = vld [vmem:[#allocation18 + $0x284] ss:$8 sps:$4 sm:$0xff]  }
 0xe12   :  { %17954 = vmatprep.subr.bf16.mxu0 %v24510_v32  ;;  %20672 = vmatpush3.bf16.msra.mxu1 %v24604_v49  ;;  %v24571_v32 = vld [vmem:[#allocation18 + $0x280] ss:$8 sps:$4 sm:$0xff]  }
 0xe13   :  { %20673 = vmatprep.subr.bf16.mxu1 %v24605_v15 }
 0xe15   :  { %17955 = vmatpush1.bf16.msra.mxu0 %v24508_v62  ;;  %v24576_v62 = vld [vmem:[#allocation18 + $0x294] ss:$8 sps:$4 sm:$0xff]  }
 0xe16   :  { %17956 = vmatprep.subr.bf16.mxu0 %v24513_v63  ;;  %20674 = vmatpush3.bf16.msra.mxu1 %v24606_v42  ;;  %v24574_v63 = vld [vmem:[#allocation18 + $0x290] ss:$8 sps:$4 sm:$0xff]  }
 0xe19   :  { %17957 = vmatpush1.bf16.msra.mxu0 %v24511_v19  ;;  %v24579_v19 = vld [vmem:[#allocation18 + $0x2a4] ss:$8 sps:$4 sm:$0xff]  }
 0xe1a   :  { %17958 = vmatprep.subr.bf16.mxu0 %v24516_v28  ;;  %v24577_v28 = vld [vmem:[#allocation18 + $0x2a0] ss:$8 sps:$4 sm:$0xff]  }
 0xe1d   :  { %17959 = vmatpush1.bf16.msra.mxu0 %v24514_v3  ;;  %v24582_v3 = vld [vmem:[#allocation18 + $0x2b4] ss:$8 sps:$4 sm:$0xff]  }
 0xe1e   :  { %17960 = vmatprep.subr.bf16.mxu0 %v24519_v55  ;;  %v24580_v55 = vld [vmem:[#allocation18 + $0x2b0] ss:$8 sps:$4 sm:$0xff]  }
 0xe21   :  { %17961 = vmatpush1.bf16.msra.mxu0 %v24517_v4  ;;  %v24585_v4 = vld [vmem:[#allocation18 + $0x2c4] ss:$8 sps:$4 sm:$0xff]  }
 0xe22   :  { %17962 = vmatprep.subr.bf16.mxu0 %v24522_v59  ;;  %v24583_v59 = vld [vmem:[#allocation18 + $0x2c0] ss:$8 sps:$4 sm:$0xff]  }
 0xe25   :  { %17963 = vmatpush1.bf16.msra.mxu0 %v24520_v0  ;;  %v24588_v0 = vld [vmem:[#allocation18 + $0x2d4] ss:$8 sps:$4 sm:$0xff]  }
 0xe26   :  { %17964 = vmatprep.subr.bf16.mxu0 %v24525_v26  ;;  %v24586_v26 = vld [vmem:[#allocation18 + $0x2d0] ss:$8 sps:$4 sm:$0xff]  }
 0xe29   :  { %17965 = vmatpush1.bf16.msra.mxu0 %v24523_v10  ;;  %v24591_v10 = vld [vmem:[#allocation18 + $0x2e4] ss:$8 sps:$4 sm:$0xff]  }
 0xe2a   :  { %17966 = vmatprep.subr.bf16.mxu0 %v24528_v24  ;;  %v24589_v24 = vld [vmem:[#allocation18 + $0x2e0] ss:$8 sps:$4 sm:$0xff]  }
 0xe2d   :  { %17967 = vmatpush1.bf16.msra.mxu0 %v24526_v1  ;;  %v24594_v1 = vld [vmem:[#allocation18 + $0x2f4] ss:$8 sps:$4 sm:$0xff]  }
 0xe2e   :  { %17968 = vmatprep.subr.bf16.mxu0 %v24531_v31  ;;  %v24592_v31 = vld [vmem:[#allocation18 + $0x2f0] ss:$8 sps:$4 sm:$0xff]  }
 0xe31   :  { %17969 = vmatpush1.bf16.msra.mxu0 %v24529_v12  ;;  %v15487_v12 = vrot.slane %v25635_v29, %v25474_v16  ;;  %v24609_v16 = vld [vmem:[#allocation21 + $0x78] sm:$0xff]  }
 0xe32   :  { %17970 = vmatprep.subr.bf16.mxu0 %v24534_v45  ;;  %v15491_v45 = vrot.slane %v25635_v29, %v25477_v17  ;;  %v17415_v17 = vld [vmem:[#allocation19] sm:$0x3] }
 0xe33   :  { %v17420_v29 = vrot.slane %v17415_v17, %v25427_v6 }
 0xe35   :  { %17971 = vmatpush1.bf16.msra.mxu0 %v24532_v50 }
 0xe36   :  { %17972 = vmatprep.subr.bf16.mxu0 %v24537_v37 }
 0xe39   :  { %17973 = vmatpush1.bf16.msra.mxu0 %v24535_v18 }
 0xe3a   :  { %17974 = vmatprep.subr.bf16.mxu0 %v24540_v60 }
 0xe3d   :  { %17975 = vmatpush1.bf16.msra.mxu0 %v24538_v56 }
 0xe3e   :  { %17976 = vmatprep.subr.bf16.mxu0 %v24543_v47 }
 0xe41   :  { %17977 = vmatpush1.bf16.msra.mxu0 %v24541_v34 }
 0xe42   :  { %17978 = vmatprep.subr.bf16.mxu0 %v24546_v58 }
 0xe45   :  { %17979 = vmatpush1.bf16.msra.mxu0 %v24544_v13  ;;  %v24607_v13 = vld [vmem:[#allocation21 + $0x70] sm:$0xff]  }
 0xe46   :  { %17989 = vmatprep.subr.bf16.mxu0 %v24549_v11  ;;  %20675 = vmatprep.subr.bf16.mxu1 %v24607_v13  ;;  %v24610_v11 = vld [vmem:[#allocation21 + $0x38] sm:$0xff]  }
 0xe47   :  { %20676 = vmatpush3.bf16.msra.mxu1 %v24608_v14 }
 0xe48   :  { %17981 = vmatmul.mubr.bf16.vlgmr.msra.gmra.mrb[24].mxu0 %v17315_v8  ;;  %20677 = vmatprep.subr.bf16.mxu1 %v24609_v16 }
 0xe49   :  { %17990 = vmatpush1.bf16.msra.mxu0 %v24547_v36  ;;  %v17424_v36 = vrot.slane %v17415_v17, %v25430_v35 }
 0xe4a   :  { %17991 = vmatprep.subr.bf16.mxu0 %v24552_v41 }
 0xe4b   :  { %20678 = vmatpush3.bf16.msra.mxu1 %v24610_v11 }
 0xe4d   :  { %17992 = vmatpush1.bf16.msra.mxu0 %v24550_v54 }
 0xe4e   :  { %17993 = vmatprep.subr.bf16.mxu0 %v24555_v43 }
 0xe51   :  { %17994 = vmatpush1.bf16.msra.mxu0 %v24553_v7 }
 0xe52   :  { %17995 = vmatprep.subr.bf16.mxu0 %v24558_v44 }
 0xe55   :  { %17996 = vmatpush1.bf16.msra.mxu0 %v24556_v30 }
 0xe56   :  { %17997 = vmatprep.subr.bf16.mxu0 %v24561_v39 }
 0xe59   :  { %17998 = vmatpush1.bf16.msra.mxu0 %v24559_v9 }
 0xe5a   :  { %17999 = vmatprep.subr.bf16.mxu0 %v24564_v33 }
 0xe5d   :  { %18000 = vmatpush1.bf16.msra.mxu0 %v24562_v21 }
 0xe5e   :  { %18001 = vmatprep.subr.bf16.mxu0 %v24567_v61 }
 0xe61   :  { %18002 = vmatpush1.bf16.msra.mxu0 %v24565_v38 }
 0xe62   :  { %18003 = vmatprep.subr.bf16.mxu0 %v24570_v52 }
 0xe65   :  { %18004 = vmatpush1.bf16.msra.mxu0 %v24568_v2 }
 0xe66   :  { %18005 = vmatprep.subr.bf16.mxu0 %v24573_v53 }
 0xe69   :  { %18006 = vmatpush1.bf16.msra.mxu0 %v24571_v32 }
 0xe6a   :  { %18007 = vmatprep.subr.bf16.mxu0 %v24576_v62 }
 0xe6d   :  { %18008 = vmatpush1.bf16.msra.mxu0 %v24574_v63 }
 0xe6e   :  { %18009 = vmatprep.subr.bf16.mxu0 %v24579_v19 }
 0xe71   :  { %18010 = vmatpush1.bf16.msra.mxu0 %v24577_v28 }
 0xe72   :  { %18011 = vmatprep.subr.bf16.mxu0 %v24582_v3 }
 0xe75   :  { %18012 = vmatpush1.bf16.msra.mxu0 %v24580_v55 }
 0xe76   :  { %18013 = vmatprep.subr.bf16.mxu0 %v24585_v4 }
 0xe79   :  { %18014 = vmatpush1.bf16.msra.mxu0 %v24583_v59 }
 0xe7a   :  { %18015 = vmatprep.subr.bf16.mxu0 %v24588_v0 }
 0xe7d   :  { %18016 = vmatpush1.bf16.msra.mxu0 %v24586_v26 }
 0xe7e   :  { %18017 = vmatprep.subr.bf16.mxu0 %v24591_v10 }
 0xe81   :  { %18018 = vmatpush1.bf16.msra.mxu0 %v24589_v24 }
 0xe82   :  { %18019 = vmatprep.subr.bf16.mxu0 %v24594_v1 }
 0xe85   :  { %18020 = vmatpush1.bf16.msra.mxu0 %v24592_v31 }
 0xebf   :  { %v17300_v50 = vpop.f32.mrb[36].mxu1 }
 0xec0   :  { %v20715_v37 = vadd.f32 %v17300_v50, %v15487_v12  ;;  %v17302_v18 = vpop.f32.mrb[37].mxu1 }
 0xec1   :  { %v20716_v60 = vadd.f32 %v17302_v18, %v15491_v45  ;;  %v17304_v56 = vpop.f32.mrb[38].mxu1 }
 0xec2   :  { %v17311_v23 = vmax.f32 %v20715_v37, 0.0  ;;  %v17305_v47 = vpop.f32.mrb[39].mxu1 }
 0xec3   :  { %v17312_v34 = vmax.f32 %v20716_v60, 0.0 }
 0xec4   :  { %v17317_v58 = vpack.c.bf16 %v17311_v23, %v17311_v23 }
 0xec5   :  { %v17318_v22 = vpack.c.bf16 %v17312_v34, %v17312_v34 }
 0xec7   :  { %18021 = vmatprep.mubr.bf16.mxu0 %v17318_v22 }
 0xec8   :  { %18022 = vmatmul.mubr.bf16.vlgmr.msra.gmra.mrb[24].mxu0 %v17317_v58 }
 0xf9b   :  { %v18023_v8 = vpop.f32.mrb[24].mxu0 }
 0xf9c   :  { %v20717_v41 = vadd.f32 %v18023_v8, %v17420_v29  ;;  %v18025_v5 = vpop.f32.mrb[25].mxu0 }
 0xf9d   :  { %v20718_v57 = vadd.f32 %v18025_v5, %v17424_v36  ;;  %v18027_v51 = vpop.f32.mrb[26].mxu0 }
 0xf9e   :  { %v18030_v54 = vmax.f32 %v20717_v41, 0.0  ;;  %v18028_v43 = vpop.f32.mrb[27].mxu0 }
 0xf9f   :  { %v18031_v20 = vmax.f32 %v20718_v57, 0.0 }
 0xfa0   :  { %v18032_v7 = vpack.c.bf16 %v18030_v54, %v18030_v54 }
 0xfa1   :  { %v18033_v27 = vpack.c.bf16 %v18031_v20, %v18031_v20 }
 0xfa3   :  { %18201 = vmatprep.mubr.bf16.mxu1 %v18033_v27 }
 0xfa4   :  { %18202 = vmatmul.mubr.bf16.vlgmr.msra.gmra.mrb[40].mxu1 %v18032_v7 }
0x1077   :  { %v20679_v44 = vpop.f32.mrb[40].mxu1 }
0x1078   :  { %v20680_v40 = vpop.f32.mrb[41].mxu1 }
0x1079   :  { %v20681_v30 = vadd.f32 %v20680_v40, %v20679_v44  ;;  %v20682_v39 = vpop.f32.mrb[42].mxu1 }
0x107a   :  { %v20683_v6 = vpop.f32.mrb[43].mxu1 }
0x107b   :  { %v18204_v25 = vadd.f32 %v20681_v30, %v20646_v46 }
0x107d   :  { %18209 = vst [vmem:[%s25672_s15] sm:$0xff] %v18204_v25 }
0x107e   :  { %18214 = vsyncpa [#allocation3], 1 }
0x107f   :  { %18215 = vsyncpa [#allocation5], 1 }
0x1080   :  { %18216 = vsyncpa [#allocation8], 1 }
0x1081   :  { %18217 = vsyncpa [#allocation11], 1 }
0x1082   :  { %18218 = vsyncpa [#allocation14], 1 }
0x1083   :  { %18219 = vsyncpa [#allocation17], 1 }
0x1084   :  { %18220 = vsyncpa [#allocation20], 1 }
0x1085   :  { %18221 = vsyncpa [#allocation23], 1 }

</bundles_post_ra>
